<compile_context>
chip_gen: v7x
topology: tpu7x:2x2x1
jax: 0.10.0
libtpu: 0.0.40
codegen_flags: <defaults>
</compile_context>

<pallas_src>
import functools
import math

import numpy as np
import jax
import jax.numpy as jnp
from jax.experimental import pallas as pl
from jax.experimental.pallas import tpu as pltpu

_BASE = 128                      # 128-aligned lane offset of staged activations


# --------------------------- layout helper tables ---------------------------

def _pool_matrix(H, W):
    """0/1 matrix selecting the top-left corner of every 2x2 window, mapping the
    (H, W) padded-width flat layout to the (H/2, W/2) padded-width flat layout."""
    Wp, Hn, Wn = W + 2, H // 2, W // 2
    Wpn = Wn + 2
    S = np.zeros((H * Wp, Hn * Wpn), np.float32)
    for h in range(Hn):
        for w in range(Wn):
            S[(2 * h) * Wp + (2 * w) + 1, h * Wpn + w + 1] = 1.0
    return S


def _upsample_matrices(Hin, Win):
    """0/1 scatter matrices (one per 2x2 tap) for ConvTranspose2d(k=2, s=2)."""
    Wpi = Win + 2
    Ho, Wo = 2 * Hin, 2 * Win
    Wpo = Wo + 2
    U = np.zeros((4, Hin * Wpi, Ho * Wpo), np.float32)
    for h in range(Hin):
        for w in range(Win):
            p = h * Wpi + w + 1
            for a in range(2):
                for b in range(2):
                    U[2 * a + b, p, (2 * h + a) * Wpo + (2 * w + b) + 1] = 1.0
    return U


def _col_mask(H, W):
    """(1, H*(W+2)) mask: 1 at valid pixels, 0 at the left/right pad columns."""
    row = np.concatenate([[0.0], np.ones(W, np.float32), [0.0]]).astype(np.float32)
    return np.tile(row, H)[None, :]


def _const_index(*_, nd):
    return (0,) * nd


# ------------------------------ the fused kernel ----------------------------

def _unet_kernel(*args, treedef, n_leaves, n_levels, H0, W0, Lpad):
    x_ref = args[0]
    leaf_refs = args[1:1 + n_leaves]
    mask_refs = args[1 + n_leaves:1 + n_leaves + n_levels]
    ls_ref = args[1 + n_leaves + n_levels]
    scr = args[2 + n_leaves + n_levels]                  # bf16 staging scratch

    tr = jax.tree_util.tree_unflatten(treedef, list(leaf_refs))
    masks = [mask_refs[l][...] for l in range(n_levels)]  # (1, L_level) f32

    def geom(level):
        H, W = H0 >> level, W0 >> level
        Wp = W + 2
        return H, W, Wp, H * Wp, _BASE                   # H, W, Wp, L, base

    def stage(parts, level, tail=None):
        """Copy channel segments of the (C, L) activation (which already carry
        zero pad columns) into the bf16 staging scratch at a 128-aligned lane
        offset; zero only the halo columns the shifted taps can read."""
        _, _, Wp, L, base = geom(level)
        halo = Wp + 1
        right = halo if tail is None else tail
        cin = sum(int(part.shape[0]) for part in parts)
        scr[0:cin, base - halo:base] = jnp.zeros((cin, halo), jnp.bfloat16)
        if right > 0:
            scr[0:cin, base + L:base + L + right] = (
                jnp.zeros((cin, right), jnp.bfloat16))
        row = 0
        for part in parts:
            c = int(part.shape[0])
            scr[row:row + c, base:base + L] = part.astype(jnp.bfloat16)
            row += c
        return cin

    def conv3x3(parts, w_ref, b_ref, level, *, norm):
        """3x3 conv (padding=1) [+ InstanceNorm] + LeakyReLU(0.01); im2col is
        fused: 9 bf16 MXU matmuls over lane-shifted views of the staged input."""
        H, W, Wp, L, base = geom(level)
        cmask = masks[level]
        cin = stage(parts, level)
        acc = None
        t = 0
        for dy in (-1, 0, 1):
            for dx in (-1, 0, 1):
                d = dy * Wp + dx
                xs = scr[0:cin, base + d:base + d + L]          # (Cin, L) bf16
                if cin == 1:                                     # avoid K=1 dot
                    term = w_ref[t].astype(jnp.float32) * xs.astype(jnp.float32)
                else:
                    term = jnp.dot(w_ref[t], xs,
                                   preferred_element_type=jnp.float32)
                acc = term if acc is None else acc + term
                t += 1
        if norm:
            # InstanceNorm2d(affine=False, eps=1e-5, biased var) over the H*W
            # valid pixels only; the conv bias is dropped (mean cancels it).
            # One-pass: var = E[x^2] - mean^2.
            inv_n = 1.0 / float(H * W)
            am = acc * cmask
            s1 = jnp.sum(am, axis=-1, keepdims=True)
            s2 = jnp.sum(am * am, axis=-1, keepdims=True)
            mean = s1 * inv_n
            var = s2 * inv_n - mean * mean
            y = (acc - mean) * cmask * jax.lax.rsqrt(var + 1e-5)
        else:
            y = (acc + b_ref[...]) * cmask
        return jnp.where(y >= 0.0, y, 0.01 * y)                  # LeakyReLU

    def maxpool2x2(x, level, pool_ref):
        """2x2/s2 max pool: max of 4 lane-shifted bf16 views, then a bf16 0/1
        selection matmul that re-packs into the next level's padded layout."""
        _, _, Wp, L, base = geom(level)
        c = stage([x], level)
        s00 = scr[0:c, base:base + L]
        s01 = scr[0:c, base + 1:base + 1 + L]
        s10 = scr[0:c, base + Wp:base + Wp + L]
        s11 = scr[0:c, base + Wp + 1:base + Wp + 1 + L]
        m = jnp.maximum(jnp.maximum(s00, s01), jnp.maximum(s10, s11))
        return jnp.dot(m, pool_ref[...], preferred_element_type=jnp.float32)

    def upconv2x2(x, w_ref, b_ref, u_ref, level_out):
        """ConvTranspose2d(k=2, s=2): 4 bf16 MXU matmuls + bf16 0/1 scatter."""
        cmask = masks[level_out]
        xb = x.astype(jnp.bfloat16)
        acc = None
        for ab in range(4):
            tap = jnp.dot(w_ref[ab], xb, preferred_element_type=jnp.float32)
            scat = jnp.dot(tap.astype(jnp.bfloat16), u_ref[ab],
                           preferred_element_type=jnp.float32)
            acc = scat if acc is None else acc + scat
        return (acc + b_ref[...]) * cmask

    def apply_block(blk, x, level):
        if 'fw' in blk:                                          # outermost
            h = conv3x3([x], blk['c1w'], None, level, norm=True)
            h = conv3x3([h], blk['c2w'], None, level, norm=True)
            skip, up = apply_block(blk['sub'], h, level)
            h = conv3x3([skip, up], blk['c3w'], blk['c3b'], level, norm=False)
            h = conv3x3([h], blk['c4w'], blk['c4b'], level, norm=False)
            # Final 1x1 conv + log-softmax on a lane-dense (PAD_K, Lpad) slab.
            # fw rows >= num_classes are zero with -1e30 bias (exp underflows
            # to 0, so they don't perturb the softmax); lanes past L0 are zero
            # filler and get cropped by the wrapper.  The store is full-vreg.
            _, _, _, L, base = geom(level)
            cin4 = stage([h], level, tail=Lpad - L)
            hwin = scr[0:cin4, base:base + Lpad]                 # (C4, Lpad) bf16
            logits = jnp.dot(blk['fw'][...], hwin,
                             preferred_element_type=jnp.float32) + blk['fb'][...]
            mx = jnp.max(logits, axis=0, keepdims=True)
            z = logits - mx
            lse = jnp.log(jnp.sum(jnp.exp(z), axis=0, keepdims=True))
            return z - lse
        # down path: pool to the next level, two contracting convs there
        p = maxpool2x2(x, level, blk['pool'])
        h = conv3x3([p], blk['c1w'], None, level + 1, norm=True)
        h = conv3x3([h], blk['c2w'], None, level + 1, norm=True)
        if 'c3w' in blk:                                         # has submodule
            skip, up = apply_block(blk['sub'], h, level + 1)
            h = conv3x3([skip, up], blk['c3w'], blk['c3b'], level + 1, norm=False)
            h = conv3x3([h], blk['c4w'], blk['c4b'], level + 1, norm=False)
        up = upconv2x2(h, blk['upw'], blk['upb'], blk['umat'], level)
        # center_crop is the identity here (even H/W at every level):
        # the skip connection is (block input, upsampled result).
        return x, up

    ls_ref[0] = apply_block(tr, x_ref[0], 0)


# ------------------------------ parameters ----------------------------------

def _init_conv(key, cout, cin, kh, kw):
    # kaiming_normal_ (fan_in, a=0 -> gain sqrt(2)); bias zeroed (weights_init).
    std = math.sqrt(2.0 / (cin * kh * kw))
    w = std * jax.random.normal(key, (cout, cin, kh, kw), jnp.float32)
    return {"w": w, "b": jnp.zeros((cout,), jnp.float32)}


def _init_convt(key, cin, cout, k):
    # ConvTranspose2d is NOT matched by weights_init -> PyTorch default init.
    bound = 1.0 / math.sqrt(cin * k * k)
    kw_, kb_ = jax.random.split(key)
    w = jax.random.uniform(kw_, (cin, cout, k, k), jnp.float32, -bound, bound)
    b = jax.random.uniform(kb_, (cout,), jnp.float32, -bound, bound)
    return {"w": w, "b": b}


def _make_block(key, in_ch, out_ch, num_classes, submodule, outermost, innermost):
    ks = jax.random.split(key, 5)
    p = {"outermost": outermost, "innermost": innermost, "submodule": submodule}
    p["conv1"] = _init_conv(ks[0], out_ch, in_ch, 3, 3)
    p["conv2"] = _init_conv(ks[1], out_ch, out_ch, 3, 3)
    if outermost:
        p["conv3"] = _init_conv(ks[2], out_ch, 2 * out_ch, 3, 3)
        p["conv4"] = _init_conv(ks[3], out_ch, out_ch, 3, 3)
        p["final"] = _init_conv(ks[4], num_classes, out_ch, 1, 1)
    elif innermost:
        p["upconv"] = _init_convt(ks[2], 2 * in_ch, in_ch, 2)
    else:
        p["conv3"] = _init_conv(ks[2], out_ch, 2 * out_ch, 3, 3)
        p["conv4"] = _init_conv(ks[3], out_ch, out_ch, 3, 3)
        p["upconv"] = _init_convt(ks[4], 2 * in_ch, in_ch, 2)
    return p


def build_unet_params(key, num_classes=3, in_channels=1,
                      initial_filter_size=4, num_downs=2):
    ks = jax.random.split(key, num_downs + 1)
    blk = _make_block(ks[0],
                      initial_filter_size * 2 ** (num_downs - 1),
                      initial_filter_size * 2 ** num_downs,
                      num_classes, None, False, True)
    for i in range(1, num_downs):
        blk = _make_block(ks[i],
                          initial_filter_size * 2 ** (num_downs - (i + 1)),
                          initial_filter_size * 2 ** (num_downs - i),
                          num_classes, blk, False, False)
    blk = _make_block(ks[num_downs], in_channels, initial_filter_size,
                      num_classes, blk, True, False)
    return blk


# ------------------------- kernel-layout preparation -------------------------

def _prepare_block(p, level, H0, W0, stats):
    """Torch-layout block params -> kernel-layout arrays (nested dict of arrays
    only; block type is recovered in the kernel from which keys are present)."""
    H, W = H0 >> level, W0 >> level

    def conv_w(cp):
        w = cp["w"]                                     # (Cout, Cin, 3, 3)
        co, ci = int(w.shape[0]), int(w.shape[1])
        return jnp.transpose(w, (2, 3, 0, 1)).reshape(9, co, ci).astype(jnp.bfloat16)

    def conv_b(cp):
        return cp["b"].reshape(-1, 1).astype(jnp.float32)

    def conv_flops(cp, h, w):
        co, ci = int(cp["w"].shape[0]), int(cp["w"].shape[1])
        return 2 * 9 * co * ci * h * (w + 2)

    tr = {}
    if p["outermost"]:
        tr["c1w"], tr["c2w"] = conv_w(p["conv1"]), conv_w(p["conv2"])
        tr["c3w"], tr["c3b"] = conv_w(p["conv3"]), conv_b(p["conv3"])
        tr["c4w"], tr["c4b"] = conv_w(p["conv4"]), conv_b(p["conv4"])
        fw = p["final"]["w"]                            # (K, C4, 1, 1)
        K_, C4 = int(fw.shape[0]), int(fw.shape[1])
        padk = ((K_ + 7) // 8) * 8
        fw_pad = jnp.zeros((padk, C4), jnp.float32).at[:K_].set(fw.reshape(K_, C4))
        tr["fw"] = fw_pad.astype(jnp.bfloat16)
        tr["fb"] = jnp.full((padk, 1), -1e30, jnp.float32).at[:K_, 0].set(
            p["final"]["b"])
        tr["sub"] = _prepare_block(p["submodule"], level, H0, W0, stats)
        for name in ("conv1", "conv2", "conv3", "conv4"):
            stats["flops"] += conv_flops(p[name], H, W)
        stats["flops"] += 2 * padk * C4 * (((H * (W + 2) + 127) // 128) * 128)
        return tr

    Hn, Wn = H // 2, W // 2
    tr["pool"] = jnp.asarray(_pool_matrix(H, W), dtype=jnp.bfloat16)
    tr["c1w"], tr["c2w"] = conv_w(p["conv1"]), conv_w(p["conv2"])
    stats["flops"] += conv_flops(p["conv1"], Hn, Wn) + conv_flops(p["conv2"], Hn, Wn)
    stats["flops"] += 2 * int(p["conv1"]["w"].shape[1]) * H * (W + 2) * Hn * (Wn + 2)
    if not p["innermost"]:
        tr["c3w"], tr["c3b"] = conv_w(p["conv3"]), conv_b(p["conv3"])
        tr["c4w"], tr["c4b"] = conv_w(p["conv4"]), conv_b(p["conv4"])
        tr["sub"] = _prepare_block(p["submodule"], level + 1, H0, W0, stats)
        stats["flops"] += conv_flops(p["conv3"], Hn, Wn) + conv_flops(p["conv4"], Hn, Wn)
    uw = p["upconv"]["w"]                               # (Cin, Cout, 2, 2)
    ci, co = int(uw.shape[0]), int(uw.shape[1])
    tr["upw"] = jnp.transpose(uw, (2, 3, 1, 0)).reshape(4, co, ci).astype(jnp.bfloat16)
    tr["upb"] = conv_b(p["upconv"])
    tr["umat"] = jnp.asarray(_upsample_matrices(Hn, Wn), dtype=jnp.bfloat16)
    stats["flops"] += 2 * 4 * co * ci * Hn * (Wn + 2)
    stats["flops"] += 2 * 4 * co * Hn * (Wn + 2) * H * (W + 2)
    return tr


def build_unet_caller(params, in_shape):
    """Prepare kernel-layout weights / selection matrices and return a function
    (N, Cin, H, W) f32 -> {'log_softmax','softmax'} (each (N, K, H, W)) that
    runs the whole UNet forward in a single pallas_call."""
    N, Cin, H0, W0 = in_shape

    num_downs, q = 0, params
    while not q["innermost"]:
        q = q["submodule"]
        num_downs += 1
    num_levels = num_downs + 1
    assert H0 % (1 << num_downs) == 0 and W0 % (1 << num_downs) == 0, \
        "spatial dims must be divisible by 2**num_downs"
    Wp0 = W0 + 2
    assert _BASE >= Wp0 + 1, "staging base must cover the widest tap halo"

    stats = {"flops": 0}
    tr = _prepare_block(params, 0, H0, W0, stats)
    leaves, treedef = jax.tree_util.tree_flatten(tr)
    masks = [jnp.asarray(_col_mask(H0 >> l, W0 >> l)) for l in range(num_levels)]

    K = int(params["final"]["w"].shape[0])
    PAD_K = ((K + 7) // 8) * 8
    L0 = H0 * Wp0
    Lpad = ((L0 + 127) // 128) * 128
    # staging scratch (bf16): rows for the widest (concatenated) conv input,
    # columns for one 128-aligned level-0 padded image plus tap halos / Lpad tail.
    scr_rows = max([Cin] + [int(a.shape[2]) for a in leaves
                            if a.ndim == 3 and a.shape[0] == 9])
    scr_rows = ((scr_rows + 15) // 16) * 16              # bf16 sublane tile
    scr_cols = ((_BASE + max(L0 + Wp0 + 1, Lpad) + 127) // 128) * 128

    kernel = functools.partial(_unet_kernel, treedef=treedef,
                               n_leaves=len(leaves), n_levels=num_levels,
                               H0=H0, W0=W0, Lpad=Lpad)

    in_specs = [pl.BlockSpec((1, Cin, L0), lambda n: (n, 0, 0))]
    # TODO(synk): single-buffer these constant-index leaves (pl.Buffered(1))
    # when scaling toward the VMEM limit; irrelevant at this problem size.
    for a in list(leaves) + list(masks):
        in_specs.append(pl.BlockSpec(tuple(a.shape),
                                     functools.partial(_const_index, nd=a.ndim)))

    flops = int(stats["flops"]) * N
    bytes_accessed = int(
        N * Cin * L0 * 4
        + sum(int(a.size) * a.dtype.itemsize for a in leaves)   # fetched once
        + sum(int(m.size) * 4 for m in masks)
        + N * PAD_K * Lpad * 4)
    cost = pl.CostEstimate(flops=flops,
                           transcendentals=int(N * (PAD_K + 2) * Lpad),
                           bytes_accessed=bytes_accessed)

    call = pl.pallas_call(
        kernel,
        out_shape=jax.ShapeDtypeStruct((N, PAD_K, Lpad), jnp.float32),
        grid=(N,),
        in_specs=in_specs,
        out_specs=pl.BlockSpec((1, PAD_K, Lpad), lambda n: (n, 0, 0)),
        scratch_shapes=[pltpu.VMEM((scr_rows, scr_cols), jnp.bfloat16)],
        compiler_params=pltpu.CompilerParams(
            dimension_semantics=("parallel",)),   # batch axis -> 2 TCs on v7x
        cost_estimate=cost,
    )

    def forward(x_nchw):
        # NCHW -> lane-dense flat layout (N, C, H*(W+2)) with zero pad columns.
        xp = jnp.pad(x_nchw.astype(jnp.float32), ((0, 0), (0, 0), (0, 0), (1, 1)))
        xf = xp.reshape(N, Cin, L0)
        ls_full = call(xf, *leaves, *masks)              # (N, PAD_K, Lpad)
        ls = ls_full[:, :K, :L0].reshape(N, K, H0, Wp0)[:, :, :, 1:1 + W0]
        return {"log_softmax": ls, "softmax": jnp.exp(ls)}

    return forward


# ----------------------- pure-JAX reference (for checks) ---------------------

def _ref_conv3x3(x, w, b, *, norm):
    y = jax.lax.conv_general_dilated(
        x, w, (1, 1), ((1, 1), (1, 1)),
        dimension_numbers=("NCHW", "OIHW", "NCHW"),
        precision=jax.lax.Precision.HIGHEST)
    y = y + b[None, :, None, None]
    if norm:
        m = jnp.mean(y, axis=(2, 3), keepdims=True)
        v = jnp.mean((y - m) ** 2, axis=(2, 3), keepdims=True)
        y = (y - m) * jax.lax.rsqrt(v + 1e-5)
    return jnp.where(y >= 0.0, y, 0.01 * y)


def _ref_pool(x):
    n, c, h, w = x.shape
    return jnp.max(x.reshape(n, c, h // 2, 2, w // 2, 2), axis=(3, 5))


def _ref_upconv(x, w, b):
    y = jnp.einsum("nchw,cdab->ndhawb", x, w, precision=jax.lax.Precision.HIGHEST)
    n, co, h, _, w_, _ = y.shape
    return y.reshape(n, co, 2 * h, 2 * w_) + b[None, :, None, None]


def _ref_block(p, x):
    if p["outermost"]:
        h = _ref_conv3x3(x, p["conv1"]["w"], p["conv1"]["b"], norm=True)
        h = _ref_conv3x3(h, p["conv2"]["w"], p["conv2"]["b"], norm=True)
        h = _ref_block(p["submodule"], h)
        h = _ref_conv3x3(h, p["conv3"]["w"], p["conv3"]["b"], norm=False)
        h = _ref_conv3x3(h, p["conv4"]["w"], p["conv4"]["b"], norm=False)
        logits = jax.lax.conv_general_dilated(
            h, p["final"]["w"], (1, 1), ((0, 0), (0, 0)),
            dimension_numbers=("NCHW", "OIHW", "NCHW"),
            precision=jax.lax.Precision.HIGHEST)
        logits = logits + p["final"]["b"][None, :, None, None]
        return jax.nn.log_softmax(logits, axis=1), jax.nn.softmax(logits, axis=1)
    h = _ref_pool(x)
    h = _ref_conv3x3(h, p["conv1"]["w"], p["conv1"]["b"], norm=True)
    h = _ref_conv3x3(h, p["conv2"]["w"], p["conv2"]["b"], norm=True)
    if not p["innermost"]:
        h = _ref_block(p["submodule"], h)
        h = _ref_conv3x3(h, p["conv3"]["w"], p["conv3"]["b"], norm=False)
        h = _ref_conv3x3(h, p["conv4"]["w"], p["conv4"]["b"], norm=False)
    u = _ref_upconv(h, p["upconv"]["w"], p["upconv"]["b"])
    # center_crop is the identity for even spatial dims
    return jnp.concatenate([x, u], axis=1)


# ----------------------------------- main ------------------------------------

if __name__ == "__main__":
    key = jax.random.PRNGKey(0)
    kp, kx = jax.random.split(key)

    num_classes, in_channels = 3, 1
    initial_filter_size, num_downs = 4, 2          # small, consistent with module
    N, H, W = 2, 16, 16

    params = build_unet_params(kp, num_classes, in_channels,
                               initial_filter_size, num_downs)
    x = jax.random.normal(kx, (N, in_channels, H, W), jnp.float32)

    forward = jax.jit(build_unet_caller(params, (N, in_channels, H, W)))
    out = jax.block_until_ready(forward(x))

    assert out["log_softmax"].shape == (N, num_classes, H, W)
    assert out["softmax"].shape == (N, num_classes, H, W)
    sums = jnp.sum(out["softmax"], axis=1)
    assert bool(jnp.all(jnp.abs(sums - 1.0) < 1e-3))
    assert bool(jnp.all(jnp.abs(jnp.exp(out["log_softmax"]) - out["softmax"]) < 1e-3))

    # Cross-check against a plain-JAX f32 reference of the same PyTorch graph.
    # Tolerances are loose because the kernel uses bf16 MXU operands / staging;
    # layout or indexing bugs would produce O(0.5+) errors, bf16 gives ~1e-2.
    ls_ref, sm_ref = _ref_block(params, x)
    err_sm = float(jnp.max(jnp.abs(out["softmax"] - sm_ref)))
    err_ls = float(jnp.max(jnp.abs(out["log_softmax"] - ls_ref)))
    assert err_sm < 0.2, f"softmax mismatch vs reference: {err_sm}"
    assert err_ls < 0.45, f"log_softmax mismatch vs reference: {err_ls}"

    print("KERNEL_OK")
</pallas_src>

<mosaic_0001>
module attributes {stable_mosaic.version = 11 : i64} {
  func.func @_unet_kernel(%arg0: i32, %arg1: memref<1x1x288xf32, #tpu.memory_space<vmem>>, %arg2: memref<9x4x1xbf16, #tpu.memory_space<vmem>>, %arg3: memref<9x4x4xbf16, #tpu.memory_space<vmem>>, %arg4: memref<4x1xf32, #tpu.memory_space<vmem>>, %arg5: memref<9x4x8xbf16, #tpu.memory_space<vmem>>, %arg6: memref<4x1xf32, #tpu.memory_space<vmem>>, %arg7: memref<9x4x4xbf16, #tpu.memory_space<vmem>>, %arg8: memref<8x1xf32, #tpu.memory_space<vmem>>, %arg9: memref<8x4xbf16, #tpu.memory_space<vmem>>, %arg10: memref<9x8x4xbf16, #tpu.memory_space<vmem>>, %arg11: memref<9x8x8xbf16, #tpu.memory_space<vmem>>, %arg12: memref<8x1xf32, #tpu.memory_space<vmem>>, %arg13: memref<9x8x16xbf16, #tpu.memory_space<vmem>>, %arg14: memref<8x1xf32, #tpu.memory_space<vmem>>, %arg15: memref<9x8x8xbf16, #tpu.memory_space<vmem>>, %arg16: memref<288x80xbf16, #tpu.memory_space<vmem>>, %arg17: memref<9x16x8xbf16, #tpu.memory_space<vmem>>, %arg18: memref<9x16x16xbf16, #tpu.memory_space<vmem>>, %arg19: memref<80x24xbf16, #tpu.memory_space<vmem>>, %arg20: memref<4x24x80xbf16, #tpu.memory_space<vmem>>, %arg21: memref<8x1xf32, #tpu.memory_space<vmem>>, %arg22: memref<4x8x16xbf16, #tpu.memory_space<vmem>>, %arg23: memref<4x80x288xbf16, #tpu.memory_space<vmem>>, %arg24: memref<4x1xf32, #tpu.memory_space<vmem>>, %arg25: memref<4x4x8xbf16, #tpu.memory_space<vmem>>, %arg26: memref<1x288xf32, #tpu.memory_space<vmem>>, %arg27: memref<1x80xf32, #tpu.memory_space<vmem>>, %arg28: memref<1x24xf32, #tpu.memory_space<vmem>>, %arg29: memref<1x8x384xf32, #tpu.memory_space<vmem>>, %arg30: memref<16x512xbf16, #tpu.memory_space<vmem>>) attributes {dimension_semantics = [#tpu.dimension_semantics<parallel>], iteration_bounds = array<i64: 2>, scalar_prefetch = 0 : i64, scratch_operands = 1 : i64, tpu.core_type = #tpu.core_type<tc>, window_params = [{transform_indices = @transform_0, window_bounds = array<i64: 1, 1, 288>}, {pipeline_mode = #tpu.pipeline_mode<synchronous>, transform_indices = @transform_1, window_bounds = array<i64: 9, 4, 1>}, {pipeline_mode = #tpu.pipeline_mode<synchronous>, transform_indices = @transform_2, window_bounds = array<i64: 9, 4, 4>}, {pipeline_mode = #tpu.pipeline_mode<synchronous>, transform_indices = @transform_3, window_bounds = array<i64: 4, 1>}, {pipeline_mode = #tpu.pipeline_mode<synchronous>, transform_indices = @transform_4, window_bounds = array<i64: 9, 4, 8>}, {pipeline_mode = #tpu.pipeline_mode<synchronous>, transform_indices = @transform_5, window_bounds = array<i64: 4, 1>}, {pipeline_mode = #tpu.pipeline_mode<synchronous>, transform_indices = @transform_6, window_bounds = array<i64: 9, 4, 4>}, {pipeline_mode = #tpu.pipeline_mode<synchronous>, transform_indices = @transform_7, window_bounds = array<i64: 8, 1>}, {pipeline_mode = #tpu.pipeline_mode<synchronous>, transform_indices = @transform_8, window_bounds = array<i64: 8, 4>}, {pipeline_mode = #tpu.pipeline_mode<synchronous>, transform_indices = @transform_9, window_bounds = array<i64: 9, 8, 4>}, {pipeline_mode = #tpu.pipeline_mode<synchronous>, transform_indices = @transform_10, window_bounds = array<i64: 9, 8, 8>}, {pipeline_mode = #tpu.pipeline_mode<synchronous>, transform_indices = @transform_11, window_bounds = array<i64: 8, 1>}, {pipeline_mode = #tpu.pipeline_mode<synchronous>, transform_indices = @transform_12, window_bounds = array<i64: 9, 8, 16>}, {pipeline_mode = #tpu.pipeline_mode<synchronous>, transform_indices = @transform_13, window_bounds = array<i64: 8, 1>}, {pipeline_mode = #tpu.pipeline_mode<synchronous>, transform_indices = @transform_14, window_bounds = array<i64: 9, 8, 8>}, {pipeline_mode = #tpu.pipeline_mode<synchronous>, transform_indices = @transform_15, window_bounds = array<i64: 288, 80>}, {pipeline_mode = #tpu.pipeline_mode<synchronous>, transform_indices = @transform_16, window_bounds = array<i64: 9, 16, 8>}, {pipeline_mode = #tpu.pipeline_mode<synchronous>, transform_indices = @transform_17, window_bounds = array<i64: 9, 16, 16>}, {pipeline_mode = #tpu.pipeline_mode<synchronous>, transform_indices = @transform_18, window_bounds = array<i64: 80, 24>}, {pipeline_mode = #tpu.pipeline_mode<synchronous>, transform_indices = @transform_19, window_bounds = array<i64: 4, 24, 80>}, {pipeline_mode = #tpu.pipeline_mode<synchronous>, transform_indices = @transform_20, window_bounds = array<i64: 8, 1>}, {pipeline_mode = #tpu.pipeline_mode<synchronous>, transform_indices = @transform_21, window_bounds = array<i64: 4, 8, 16>}, {pipeline_mode = #tpu.pipeline_mode<synchronous>, transform_indices = @transform_22, window_bounds = array<i64: 4, 80, 288>}, {pipeline_mode = #tpu.pipeline_mode<synchronous>, transform_indices = @transform_23, window_bounds = array<i64: 4, 1>}, {pipeline_mode = #tpu.pipeline_mode<synchronous>, transform_indices = @transform_24, window_bounds = array<i64: 4, 4, 8>}, {pipeline_mode = #tpu.pipeline_mode<synchronous>, transform_indices = @transform_25, window_bounds = array<i64: 1, 288>}, {pipeline_mode = #tpu.pipeline_mode<synchronous>, transform_indices = @transform_26, window_bounds = array<i64: 1, 80>}, {pipeline_mode = #tpu.pipeline_mode<synchronous>, transform_indices = @transform_27, window_bounds = array<i64: 1, 24>}, {transform_indices = @transform_28, window_bounds = array<i64: 1, 8, 384>}]} {
    %c0 = arith.constant 0 : index
    %c0_0 = arith.constant 0 : index
    %0 = vector.load %arg26[%c0, %c0_0] : memref<1x288xf32, #tpu.memory_space<vmem>>, vector<1x288xf32>
    %c0_1 = arith.constant 0 : index
    %c0_2 = arith.constant 0 : index
    %1 = vector.load %arg27[%c0_1, %c0_2] : memref<1x80xf32, #tpu.memory_space<vmem>>, vector<1x80xf32>
    %c0_3 = arith.constant 0 : index
    %c0_4 = arith.constant 0 : index
    %2 = vector.load %arg28[%c0_3, %c0_4] : memref<1x24xf32, #tpu.memory_space<vmem>>, vector<1x24xf32>
    %c0_5 = arith.constant 0 : index
    %c0_6 = arith.constant 0 : index
    %c0_7 = arith.constant 0 : index
    %3 = vector.load %arg1[%c0_5, %c0_6, %c0_7] : memref<1x1x288xf32, #tpu.memory_space<vmem>>, vector<1x1x288xf32>
    %4 = vector.shape_cast %3 : vector<1x1x288xf32> to vector<1x288xf32>
    %cst = arith.constant 0.000000e+00 : bf16
    %5 = vector.broadcast %cst : bf16 to vector<1x19xbf16>
    %c0_8 = arith.constant 0 : index
    %c109 = arith.constant 109 : index
    %6 = vector.load %arg30[%c0_8, %c109] : memref<16x512xbf16, #tpu.memory_space<vmem>>, vector<1x19xbf16>
    tpu.vector_store %arg30[%c0_8, %c109], %5 {strides = array<i32>} : memref<16x512xbf16, #tpu.memory_space<vmem>>, vector<1x19xbf16>,
    %cst_9 = arith.constant 0.000000e+00 : bf16
    %7 = vector.broadcast %cst_9 : bf16 to vector<1x19xbf16>
    %c0_10 = arith.constant 0 : index
    %c416 = arith.constant 416 : index
    %8 = vector.load %arg30[%c0_10, %c416] : memref<16x512xbf16, #tpu.memory_space<vmem>>, vector<1x19xbf16>
    tpu.vector_store %arg30[%c0_10, %c416], %7 {strides = array<i32>} : memref<16x512xbf16, #tpu.memory_space<vmem>>, vector<1x19xbf16>,
    %9 = arith.truncf %4 : vector<1x288xf32> to vector<1x288xbf16>
    %c0_11 = arith.constant 0 : index
    %c128 = arith.constant 128 : index
    %10 = vector.load %arg30[%c0_11, %c128] : memref<16x512xbf16, #tpu.memory_space<vmem>>, vector<1x288xbf16>
    tpu.vector_store %arg30[%c0_11, %c128], %9 {strides = array<i32>} : memref<16x512xbf16, #tpu.memory_space<vmem>>, vector<1x288xbf16>,
    %c0_12 = arith.constant 0 : index
    %c109_13 = arith.constant 109 : index
    %11 = vector.load %arg30[%c0_12, %c109_13] : memref<16x512xbf16, #tpu.memory_space<vmem>>, vector<1x288xbf16>
    %c0_14 = arith.constant 0 : index
    %c0_15 = arith.constant 0 : index
    %c0_16 = arith.constant 0 : index
    %12 = vector.load %arg2[%c0_14, %c0_15, %c0_16] : memref<9x4x1xbf16, #tpu.memory_space<vmem>>, vector<1x4x1xbf16>
    %13 = vector.shape_cast %12 : vector<1x4x1xbf16> to vector<4x1xbf16>
    %14 = arith.extf %13 : vector<4x1xbf16> to vector<4x1xf32>
    %15 = arith.extf %11 : vector<1x288xbf16> to vector<1x288xf32>
    %16 = vector.broadcast %14 : vector<4x1xf32> to vector<4x288xf32>
    %17 = vector.broadcast %15 : vector<1x288xf32> to vector<4x288xf32>
    %18 = arith.mulf %16, %17 : vector<4x288xf32>
    %c0_17 = arith.constant 0 : index
    %c110 = arith.constant 110 : index
    %19 = vector.load %arg30[%c0_17, %c110] : memref<16x512xbf16, #tpu.memory_space<vmem>>, vector<1x288xbf16>
    %c1 = arith.constant 1 : index
    %c0_18 = arith.constant 0 : index
    %c0_19 = arith.constant 0 : index
    %20 = vector.load %arg2[%c1, %c0_18, %c0_19] : memref<9x4x1xbf16, #tpu.memory_space<vmem>>, vector<1x4x1xbf16>
    %21 = vector.shape_cast %20 : vector<1x4x1xbf16> to vector<4x1xbf16>
    %22 = arith.extf %21 : vector<4x1xbf16> to vector<4x1xf32>
    %23 = arith.extf %19 : vector<1x288xbf16> to vector<1x288xf32>
    %24 = vector.broadcast %22 : vector<4x1xf32> to vector<4x288xf32>
    %25 = vector.broadcast %23 : vector<1x288xf32> to vector<4x288xf32>
    %26 = arith.mulf %24, %25 : vector<4x288xf32>
    %27 = arith.addf %18, %26 : vector<4x288xf32>
    %c0_20 = arith.constant 0 : index
    %c111 = arith.constant 111 : index
    %28 = vector.load %arg30[%c0_20, %c111] : memref<16x512xbf16, #tpu.memory_space<vmem>>, vector<1x288xbf16>
    %c2 = arith.constant 2 : index
    %c0_21 = arith.constant 0 : index
    %c0_22 = arith.constant 0 : index
    %29 = vector.load %arg2[%c2, %c0_21, %c0_22] : memref<9x4x1xbf16, #tpu.memory_space<vmem>>, vector<1x4x1xbf16>
    %30 = vector.shape_cast %29 : vector<1x4x1xbf16> to vector<4x1xbf16>
    %31 = arith.extf %30 : vector<4x1xbf16> to vector<4x1xf32>
    %32 = arith.extf %28 : vector<1x288xbf16> to vector<1x288xf32>
    %33 = vector.broadcast %31 : vector<4x1xf32> to vector<4x288xf32>
    %34 = vector.broadcast %32 : vector<1x288xf32> to vector<4x288xf32>
    %35 = arith.mulf %33, %34 : vector<4x288xf32>
    %36 = arith.addf %27, %35 : vector<4x288xf32>
    %c0_23 = arith.constant 0 : index
    %c127 = arith.constant 127 : index
    %37 = vector.load %arg30[%c0_23, %c127] : memref<16x512xbf16, #tpu.memory_space<vmem>>, vector<1x288xbf16>
    %c3 = arith.constant 3 : index
    %c0_24 = arith.constant 0 : index
    %c0_25 = arith.constant 0 : index
    %38 = vector.load %arg2[%c3, %c0_24, %c0_25] : memref<9x4x1xbf16, #tpu.memory_space<vmem>>, vector<1x4x1xbf16>
    %39 = vector.shape_cast %38 : vector<1x4x1xbf16> to vector<4x1xbf16>
    %40 = arith.extf %39 : vector<4x1xbf16> to vector<4x1xf32>
    %41 = arith.extf %37 : vector<1x288xbf16> to vector<1x288xf32>
    %42 = vector.broadcast %40 : vector<4x1xf32> to vector<4x288xf32>
    %43 = vector.broadcast %41 : vector<1x288xf32> to vector<4x288xf32>
    %44 = arith.mulf %42, %43 : vector<4x288xf32>
    %45 = arith.addf %36, %44 : vector<4x288xf32>
    %c0_26 = arith.constant 0 : index
    %c128_27 = arith.constant 128 : index
    %46 = vector.load %arg30[%c0_26, %c128_27] : memref<16x512xbf16, #tpu.memory_space<vmem>>, vector<1x288xbf16>
    %c4 = arith.constant 4 : index
    %c0_28 = arith.constant 0 : index
    %c0_29 = arith.constant 0 : index
    %47 = vector.load %arg2[%c4, %c0_28, %c0_29] : memref<9x4x1xbf16, #tpu.memory_space<vmem>>, vector<1x4x1xbf16>
    %48 = vector.shape_cast %47 : vector<1x4x1xbf16> to vector<4x1xbf16>
    %49 = arith.extf %48 : vector<4x1xbf16> to vector<4x1xf32>
    %50 = arith.extf %46 : vector<1x288xbf16> to vector<1x288xf32>
    %51 = vector.broadcast %49 : vector<4x1xf32> to vector<4x288xf32>
    %52 = vector.broadcast %50 : vector<1x288xf32> to vector<4x288xf32>
    %53 = arith.mulf %51, %52 : vector<4x288xf32>
    %54 = arith.addf %45, %53 : vector<4x288xf32>
    %c0_30 = arith.constant 0 : index
    %c129 = arith.constant 129 : index
    %55 = vector.load %arg30[%c0_30, %c129] : memref<16x512xbf16, #tpu.memory_space<vmem>>, vector<1x288xbf16>
    %c5 = arith.constant 5 : index
    %c0_31 = arith.constant 0 : index
    %c0_32 = arith.constant 0 : index
    %56 = vector.load %arg2[%c5, %c0_31, %c0_32] : memref<9x4x1xbf16, #tpu.memory_space<vmem>>, vector<1x4x1xbf16>
    %57 = vector.shape_cast %56 : vector<1x4x1xbf16> to vector<4x1xbf16>
    %58 = arith.extf %57 : vector<4x1xbf16> to vector<4x1xf32>
    %59 = arith.extf %55 : vector<1x288xbf16> to vector<1x288xf32>
    %60 = vector.broadcast %58 : vector<4x1xf32> to vector<4x288xf32>
    %61 = vector.broadcast %59 : vector<1x288xf32> to vector<4x288xf32>
    %62 = arith.mulf %60, %61 : vector<4x288xf32>
    %63 = arith.addf %54, %62 : vector<4x288xf32>
    %c0_33 = arith.constant 0 : index
    %c145 = arith.constant 145 : index
    %64 = vector.load %arg30[%c0_33, %c145] : memref<16x512xbf16, #tpu.memory_space<vmem>>, vector<1x288xbf16>
    %c6 = arith.constant 6 : index
    %c0_34 = arith.constant 0 : index
    %c0_35 = arith.constant 0 : index
    %65 = vector.load %arg2[%c6, %c0_34, %c0_35] : memref<9x4x1xbf16, #tpu.memory_space<vmem>>, vector<1x4x1xbf16>
    %66 = vector.shape_cast %65 : vector<1x4x1xbf16> to vector<4x1xbf16>
    %67 = arith.extf %66 : vector<4x1xbf16> to vector<4x1xf32>
    %68 = arith.extf %64 : vector<1x288xbf16> to vector<1x288xf32>
    %69 = vector.broadcast %67 : vector<4x1xf32> to vector<4x288xf32>
    %70 = vector.broadcast %68 : vector<1x288xf32> to vector<4x288xf32>
    %71 = arith.mulf %69, %70 : vector<4x288xf32>
    %72 = arith.addf %63, %71 : vector<4x288xf32>
    %c0_36 = arith.constant 0 : index
    %c146 = arith.constant 146 : index
    %73 = vector.load %arg30[%c0_36, %c146] : memref<16x512xbf16, #tpu.memory_space<vmem>>, vector<1x288xbf16>
    %c7 = arith.constant 7 : index
    %c0_37 = arith.constant 0 : index
    %c0_38 = arith.constant 0 : index
    %74 = vector.load %arg2[%c7, %c0_37, %c0_38] : memref<9x4x1xbf16, #tpu.memory_space<vmem>>, vector<1x4x1xbf16>
    %75 = vector.shape_cast %74 : vector<1x4x1xbf16> to vector<4x1xbf16>
    %76 = arith.extf %75 : vector<4x1xbf16> to vector<4x1xf32>
    %77 = arith.extf %73 : vector<1x288xbf16> to vector<1x288xf32>
    %78 = vector.broadcast %76 : vector<4x1xf32> to vector<4x288xf32>
    %79 = vector.broadcast %77 : vector<1x288xf32> to vector<4x288xf32>
    %80 = arith.mulf %78, %79 : vector<4x288xf32>
    %81 = arith.addf %72, %80 : vector<4x288xf32>
    %c0_39 = arith.constant 0 : index
    %c147 = arith.constant 147 : index
    %82 = vector.load %arg30[%c0_39, %c147] : memref<16x512xbf16, #tpu.memory_space<vmem>>, vector<1x288xbf16>
    %c8 = arith.constant 8 : index
    %c0_40 = arith.constant 0 : index
    %c0_41 = arith.constant 0 : index
    %83 = vector.load %arg2[%c8, %c0_40, %c0_41] : memref<9x4x1xbf16, #tpu.memory_space<vmem>>, vector<1x4x1xbf16>
    %84 = vector.shape_cast %83 : vector<1x4x1xbf16> to vector<4x1xbf16>
    %85 = arith.extf %84 : vector<4x1xbf16> to vector<4x1xf32>
    %86 = arith.extf %82 : vector<1x288xbf16> to vector<1x288xf32>
    %87 = vector.broadcast %85 : vector<4x1xf32> to vector<4x288xf32>
    %88 = vector.broadcast %86 : vector<1x288xf32> to vector<4x288xf32>
    %89 = arith.mulf %87, %88 : vector<4x288xf32>
    %90 = arith.addf %81, %89 : vector<4x288xf32>
    %91 = vector.broadcast %0 : vector<1x288xf32> to vector<4x288xf32>
    %92 = arith.mulf %90, %91 : vector<4x288xf32>
    %cst_42 = arith.constant dense<0.000000e+00> : vector<4xf32>
    %93 = vector.multi_reduction <add>, %92, %cst_42 [1] : vector<4x288xf32> to vector<4xf32>
    %94 = vector.shape_cast %93 : vector<4xf32> to vector<4x1xf32>
    %95 = arith.mulf %92, %92 : vector<4x288xf32>
    %cst_43 = arith.constant dense<0.000000e+00> : vector<4xf32>
    %96 = vector.multi_reduction <add>, %95, %cst_43 [1] : vector<4x288xf32> to vector<4xf32>
    %97 = vector.shape_cast %96 : vector<4xf32> to vector<4x1xf32>
    %cst_44 = arith.constant 3.906250e-03 : f32
    %98 = vector.broadcast %cst_44 : f32 to vector<4x1xf32>
    %99 = arith.mulf %94, %98 : vector<4x1xf32>
    %cst_45 = arith.constant 3.906250e-03 : f32
    %100 = vector.broadcast %cst_45 : f32 to vector<4x1xf32>
    %101 = arith.mulf %97, %100 : vector<4x1xf32>
    %102 = arith.mulf %99, %99 : vector<4x1xf32>
    %103 = arith.subf %101, %102 : vector<4x1xf32>
    %104 = vector.broadcast %99 : vector<4x1xf32> to vector<4x288xf32>
    %105 = arith.subf %90, %104 : vector<4x288xf32>
    %106 = vector.broadcast %0 : vector<1x288xf32> to vector<4x288xf32>
    %107 = arith.mulf %105, %106 : vector<4x288xf32>
    %cst_46 = arith.constant 9.99999974E-6 : f32
    %108 = vector.broadcast %cst_46 : f32 to vector<4x1xf32>
    %109 = arith.addf %103, %108 : vector<4x1xf32>
    %110 = math.rsqrt %109 : vector<4x1xf32>
    %111 = vector.broadcast %110 : vector<4x1xf32> to vector<4x288xf32>
    %112 = arith.mulf %107, %111 : vector<4x288xf32>
    %cst_47 = arith.constant 0.000000e+00 : f32
    %113 = vector.broadcast %cst_47 : f32 to vector<4x288xf32>
    %114 = arith.cmpf oge, %112, %113 : vector<4x288xf32>
    %cst_48 = arith.constant 0.00999999977 : f32
    %115 = vector.broadcast %cst_48 : f32 to vector<4x288xf32>
    %116 = arith.mulf %115, %112 : vector<4x288xf32>
    %117 = arith.select %114, %112, %116 : vector<4x288xi1>, vector<4x288xf32>
    %cst_49 = arith.constant 0.000000e+00 : bf16
    %118 = vector.broadcast %cst_49 : bf16 to vector<4x19xbf16>
    %c0_50 = arith.constant 0 : index
    %c109_51 = arith.constant 109 : index
    %119 = vector.load %arg30[%c0_50, %c109_51] : memref<16x512xbf16, #tpu.memory_space<vmem>>, vector<4x19xbf16>
    tpu.vector_store %arg30[%c0_50, %c109_51], %118 {strides = array<i32>} : memref<16x512xbf16, #tpu.memory_space<vmem>>, vector<4x19xbf16>,
    %cst_52 = arith.constant 0.000000e+00 : bf16
    %120 = vector.broadcast %cst_52 : bf16 to vector<4x19xbf16>
    %c0_53 = arith.constant 0 : index
    %c416_54 = arith.constant 416 : index
    %121 = vector.load %arg30[%c0_53, %c416_54] : memref<16x512xbf16, #tpu.memory_space<vmem>>, vector<4x19xbf16>
    tpu.vector_store %arg30[%c0_53, %c416_54], %120 {strides = array<i32>} : memref<16x512xbf16, #tpu.memory_space<vmem>>, vector<4x19xbf16>,
    %122 = arith.truncf %117 : vector<4x288xf32> to vector<4x288xbf16>
    %c0_55 = arith.constant 0 : index
    %c128_56 = arith.constant 128 : index
    %123 = vector.load %arg30[%c0_55, %c128_56] : memref<16x512xbf16, #tpu.memory_space<vmem>>, vector<4x288xbf16>
    tpu.vector_store %arg30[%c0_55, %c128_56], %122 {strides = array<i32>} : memref<16x512xbf16, #tpu.memory_space<vmem>>, vector<4x288xbf16>,
    %c0_57 = arith.constant 0 : index
    %c109_58 = arith.constant 109 : index
    %124 = vector.load %arg30[%c0_57, %c109_58] : memref<16x512xbf16, #tpu.memory_space<vmem>>, vector<4x288xbf16>
    %c0_59 = arith.constant 0 : index
    %c0_60 = arith.constant 0 : index
    %c0_61 = arith.constant 0 : index
    %125 = vector.load %arg3[%c0_59, %c0_60, %c0_61] : memref<9x4x4xbf16, #tpu.memory_space<vmem>>, vector<1x4x4xbf16>
    %126 = vector.shape_cast %125 : vector<1x4x4xbf16> to vector<4x4xbf16>
    %cst_62 = arith.constant dense<0.000000e+00> : vector<4x288xf32>
    %127 = tpu.matmul %126, %124, %cst_62 {dimension_numbers = #tpu.dot_dimension_numbers<[1], [0], [0], [1], [0, 0, 1, 1], [], []>} : vector<4x4xbf16>, vector<4x288xbf16>, vector<4x288xf32> -> vector<4x288xf32>
    %c0_63 = arith.constant 0 : index
    %c110_64 = arith.constant 110 : index
    %128 = vector.load %arg30[%c0_63, %c110_64] : memref<16x512xbf16, #tpu.memory_space<vmem>>, vector<4x288xbf16>
    %c1_65 = arith.constant 1 : index
    %c0_66 = arith.constant 0 : index
    %c0_67 = arith.constant 0 : index
    %129 = vector.load %arg3[%c1_65, %c0_66, %c0_67] : memref<9x4x4xbf16, #tpu.memory_space<vmem>>, vector<1x4x4xbf16>
    %130 = vector.shape_cast %129 : vector<1x4x4xbf16> to vector<4x4xbf16>
    %cst_68 = arith.constant dense<0.000000e+00> : vector<4x288xf32>
    %131 = tpu.matmul %130, %128, %cst_68 {dimension_numbers = #tpu.dot_dimension_numbers<[1], [0], [0], [1], [0, 0, 1, 1], [], []>} : vector<4x4xbf16>, vector<4x288xbf16>, vector<4x288xf32> -> vector<4x288xf32>
    %132 = arith.addf %127, %131 : vector<4x288xf32>
    %c0_69 = arith.constant 0 : index
    %c111_70 = arith.constant 111 : index
    %133 = vector.load %arg30[%c0_69, %c111_70] : memref<16x512xbf16, #tpu.memory_space<vmem>>, vector<4x288xbf16>
    %c2_71 = arith.constant 2 : index
    %c0_72 = arith.constant 0 : index
    %c0_73 = arith.constant 0 : index
    %134 = vector.load %arg3[%c2_71, %c0_72, %c0_73] : memref<9x4x4xbf16, #tpu.memory_space<vmem>>, vector<1x4x4xbf16>
    %135 = vector.shape_cast %134 : vector<1x4x4xbf16> to vector<4x4xbf16>
    %cst_74 = arith.constant dense<0.000000e+00> : vector<4x288xf32>
    %136 = tpu.matmul %135, %133, %cst_74 {dimension_numbers = #tpu.dot_dimension_numbers<[1], [0], [0], [1], [0, 0, 1, 1], [], []>} : vector<4x4xbf16>, vector<4x288xbf16>, vector<4x288xf32> -> vector<4x288xf32>
    %137 = arith.addf %132, %136 : vector<4x288xf32>
    %c0_75 = arith.constant 0 : index
    %c127_76 = arith.constant 127 : index
    %138 = vector.load %arg30[%c0_75, %c127_76] : memref<16x512xbf16, #tpu.memory_space<vmem>>, vector<4x288xbf16>
    %c3_77 = arith.constant 3 : index
    %c0_78 = arith.constant 0 : index
    %c0_79 = arith.constant 0 : index
    %139 = vector.load %arg3[%c3_77, %c0_78, %c0_79] : memref<9x4x4xbf16, #tpu.memory_space<vmem>>, vector<1x4x4xbf16>
    %140 = vector.shape_cast %139 : vector<1x4x4xbf16> to vector<4x4xbf16>
    %cst_80 = arith.constant dense<0.000000e+00> : vector<4x288xf32>
    %141 = tpu.matmul %140, %138, %cst_80 {dimension_numbers = #tpu.dot_dimension_numbers<[1], [0], [0], [1], [0, 0, 1, 1], [], []>} : vector<4x4xbf16>, vector<4x288xbf16>, vector<4x288xf32> -> vector<4x288xf32>
    %142 = arith.addf %137, %141 : vector<4x288xf32>
    %c0_81 = arith.constant 0 : index
    %c128_82 = arith.constant 128 : index
    %143 = vector.load %arg30[%c0_81, %c128_82] : memref<16x512xbf16, #tpu.memory_space<vmem>>, vector<4x288xbf16>
    %c4_83 = arith.constant 4 : index
    %c0_84 = arith.constant 0 : index
    %c0_85 = arith.constant 0 : index
    %144 = vector.load %arg3[%c4_83, %c0_84, %c0_85] : memref<9x4x4xbf16, #tpu.memory_space<vmem>>, vector<1x4x4xbf16>
    %145 = vector.shape_cast %144 : vector<1x4x4xbf16> to vector<4x4xbf16>
    %cst_86 = arith.constant dense<0.000000e+00> : vector<4x288xf32>
    %146 = tpu.matmul %145, %143, %cst_86 {dimension_numbers = #tpu.dot_dimension_numbers<[1], [0], [0], [1], [0, 0, 1, 1], [], []>} : vector<4x4xbf16>, vector<4x288xbf16>, vector<4x288xf32> -> vector<4x288xf32>
    %147 = arith.addf %142, %146 : vector<4x288xf32>
    %c0_87 = arith.constant 0 : index
    %c129_88 = arith.constant 129 : index
    %148 = vector.load %arg30[%c0_87, %c129_88] : memref<16x512xbf16, #tpu.memory_space<vmem>>, vector<4x288xbf16>
    %c5_89 = arith.constant 5 : index
    %c0_90 = arith.constant 0 : index
    %c0_91 = arith.constant 0 : index
    %149 = vector.load %arg3[%c5_89, %c0_90, %c0_91] : memref<9x4x4xbf16, #tpu.memory_space<vmem>>, vector<1x4x4xbf16>
    %150 = vector.shape_cast %149 : vector<1x4x4xbf16> to vector<4x4xbf16>
    %cst_92 = arith.constant dense<0.000000e+00> : vector<4x288xf32>
    %151 = tpu.matmul %150, %148, %cst_92 {dimension_numbers = #tpu.dot_dimension_numbers<[1], [0], [0], [1], [0, 0, 1, 1], [], []>} : vector<4x4xbf16>, vector<4x288xbf16>, vector<4x288xf32> -> vector<4x288xf32>
    %152 = arith.addf %147, %151 : vector<4x288xf32>
    %c0_93 = arith.constant 0 : index
    %c145_94 = arith.constant 145 : index
    %153 = vector.load %arg30[%c0_93, %c145_94] : memref<16x512xbf16, #tpu.memory_space<vmem>>, vector<4x288xbf16>
    %c6_95 = arith.constant 6 : index
    %c0_96 = arith.constant 0 : index
    %c0_97 = arith.constant 0 : index
    %154 = vector.load %arg3[%c6_95, %c0_96, %c0_97] : memref<9x4x4xbf16, #tpu.memory_space<vmem>>, vector<1x4x4xbf16>
    %155 = vector.shape_cast %154 : vector<1x4x4xbf16> to vector<4x4xbf16>
    %cst_98 = arith.constant dense<0.000000e+00> : vector<4x288xf32>
    %156 = tpu.matmul %155, %153, %cst_98 {dimension_numbers = #tpu.dot_dimension_numbers<[1], [0], [0], [1], [0, 0, 1, 1], [], []>} : vector<4x4xbf16>, vector<4x288xbf16>, vector<4x288xf32> -> vector<4x288xf32>
    %157 = arith.addf %152, %156 : vector<4x288xf32>
    %c0_99 = arith.constant 0 : index
    %c146_100 = arith.constant 146 : index
    %158 = vector.load %arg30[%c0_99, %c146_100] : memref<16x512xbf16, #tpu.memory_space<vmem>>, vector<4x288xbf16>
    %c7_101 = arith.constant 7 : index
    %c0_102 = arith.constant 0 : index
    %c0_103 = arith.constant 0 : index
    %159 = vector.load %arg3[%c7_101, %c0_102, %c0_103] : memref<9x4x4xbf16, #tpu.memory_space<vmem>>, vector<1x4x4xbf16>
    %160 = vector.shape_cast %159 : vector<1x4x4xbf16> to vector<4x4xbf16>
    %cst_104 = arith.constant dense<0.000000e+00> : vector<4x288xf32>
    %161 = tpu.matmul %160, %158, %cst_104 {dimension_numbers = #tpu.dot_dimension_numbers<[1], [0], [0], [1], [0, 0, 1, 1], [], []>} : vector<4x4xbf16>, vector<4x288xbf16>, vector<4x288xf32> -> vector<4x288xf32>
    %162 = arith.addf %157, %161 : vector<4x288xf32>
    %c0_105 = arith.constant 0 : index
    %c147_106 = arith.constant 147 : index
    %163 = vector.load %arg30[%c0_105, %c147_106] : memref<16x512xbf16, #tpu.memory_space<vmem>>, vector<4x288xbf16>
    %c8_107 = arith.constant 8 : index
    %c0_108 = arith.constant 0 : index
    %c0_109 = arith.constant 0 : index
    %164 = vector.load %arg3[%c8_107, %c0_108, %c0_109] : memref<9x4x4xbf16, #tpu.memory_space<vmem>>, vector<1x4x4xbf16>
    %165 = vector.shape_cast %164 : vector<1x4x4xbf16> to vector<4x4xbf16>
    %cst_110 = arith.constant dense<0.000000e+00> : vector<4x288xf32>
    %166 = tpu.matmul %165, %163, %cst_110 {dimension_numbers = #tpu.dot_dimension_numbers<[1], [0], [0], [1], [0, 0, 1, 1], [], []>} : vector<4x4xbf16>, vector<4x288xbf16>, vector<4x288xf32> -> vector<4x288xf32>
    %167 = arith.addf %162, %166 : vector<4x288xf32>
    %168 = vector.broadcast %0 : vector<1x288xf32> to vector<4x288xf32>
    %169 = arith.mulf %167, %168 : vector<4x288xf32>
    %cst_111 = arith.constant dense<0.000000e+00> : vector<4xf32>
    %170 = vector.multi_reduction <add>, %169, %cst_111 [1] : vector<4x288xf32> to vector<4xf32>
    %171 = vector.shape_cast %170 : vector<4xf32> to vector<4x1xf32>
    %172 = arith.mulf %169, %169 : vector<4x288xf32>
    %cst_112 = arith.constant dense<0.000000e+00> : vector<4xf32>
    %173 = vector.multi_reduction <add>, %172, %cst_112 [1] : vector<4x288xf32> to vector<4xf32>
    %174 = vector.shape_cast %173 : vector<4xf32> to vector<4x1xf32>
    %cst_113 = arith.constant 3.906250e-03 : f32
    %175 = vector.broadcast %cst_113 : f32 to vector<4x1xf32>
    %176 = arith.mulf %171, %175 : vector<4x1xf32>
    %cst_114 = arith.constant 3.906250e-03 : f32
    %177 = vector.broadcast %cst_114 : f32 to vector<4x1xf32>
    %178 = arith.mulf %174, %177 : vector<4x1xf32>
    %179 = arith.mulf %176, %176 : vector<4x1xf32>
    %180 = arith.subf %178, %179 : vector<4x1xf32>
    %181 = vector.broadcast %176 : vector<4x1xf32> to vector<4x288xf32>
    %182 = arith.subf %167, %181 : vector<4x288xf32>
    %183 = vector.broadcast %0 : vector<1x288xf32> to vector<4x288xf32>
    %184 = arith.mulf %182, %183 : vector<4x288xf32>
    %cst_115 = arith.constant 9.99999974E-6 : f32
    %185 = vector.broadcast %cst_115 : f32 to vector<4x1xf32>
    %186 = arith.addf %180, %185 : vector<4x1xf32>
    %187 = math.rsqrt %186 : vector<4x1xf32>
    %188 = vector.broadcast %187 : vector<4x1xf32> to vector<4x288xf32>
    %189 = arith.mulf %184, %188 : vector<4x288xf32>
    %cst_116 = arith.constant 0.000000e+00 : f32
    %190 = vector.broadcast %cst_116 : f32 to vector<4x288xf32>
    %191 = arith.cmpf oge, %189, %190 : vector<4x288xf32>
    %cst_117 = arith.constant 0.00999999977 : f32
    %192 = vector.broadcast %cst_117 : f32 to vector<4x288xf32>
    %193 = arith.mulf %192, %189 : vector<4x288xf32>
    %194 = arith.select %191, %189, %193 : vector<4x288xi1>, vector<4x288xf32>
    %cst_118 = arith.constant 0.000000e+00 : bf16
    %195 = vector.broadcast %cst_118 : bf16 to vector<4x19xbf16>
    %c0_119 = arith.constant 0 : index
    %c109_120 = arith.constant 109 : index
    %196 = vector.load %arg30[%c0_119, %c109_120] : memref<16x512xbf16, #tpu.memory_space<vmem>>, vector<4x19xbf16>
    tpu.vector_store %arg30[%c0_119, %c109_120], %195 {strides = array<i32>} : memref<16x512xbf16, #tpu.memory_space<vmem>>, vector<4x19xbf16>,
    %cst_121 = arith.constant 0.000000e+00 : bf16
    %197 = vector.broadcast %cst_121 : bf16 to vector<4x19xbf16>
    %c0_122 = arith.constant 0 : index
    %c416_123 = arith.constant 416 : index
    %198 = vector.load %arg30[%c0_122, %c416_123] : memref<16x512xbf16, #tpu.memory_space<vmem>>, vector<4x19xbf16>
    tpu.vector_store %arg30[%c0_122, %c416_123], %197 {strides = array<i32>} : memref<16x512xbf16, #tpu.memory_space<vmem>>, vector<4x19xbf16>,
    %199 = arith.truncf %194 : vector<4x288xf32> to vector<4x288xbf16>
    %c0_124 = arith.constant 0 : index
    %c128_125 = arith.constant 128 : index
    %200 = vector.load %arg30[%c0_124, %c128_125] : memref<16x512xbf16, #tpu.memory_space<vmem>>, vector<4x288xbf16>
    tpu.vector_store %arg30[%c0_124, %c128_125], %199 {strides = array<i32>} : memref<16x512xbf16, #tpu.memory_space<vmem>>, vector<4x288xbf16>,
    %c0_126 = arith.constant 0 : index
    %c128_127 = arith.constant 128 : index
    %201 = vector.load %arg30[%c0_126, %c128_127] : memref<16x512xbf16, #tpu.memory_space<vmem>>, vector<4x288xbf16>
    %c0_128 = arith.constant 0 : index
    %c129_129 = arith.constant 129 : index
    %202 = vector.load %arg30[%c0_128, %c129_129] : memref<16x512xbf16, #tpu.memory_space<vmem>>, vector<4x288xbf16>
    %c0_130 = arith.constant 0 : index
    %c146_131 = arith.constant 146 : index
    %203 = vector.load %arg30[%c0_130, %c146_131] : memref<16x512xbf16, #tpu.memory_space<vmem>>, vector<4x288xbf16>
    %c0_132 = arith.constant 0 : index
    %c147_133 = arith.constant 147 : index
    %204 = vector.load %arg30[%c0_132, %c147_133] : memref<16x512xbf16, #tpu.memory_space<vmem>>, vector<4x288xbf16>
    %205 = arith.maximumf %201, %202 : vector<4x288xbf16>
    %206 = arith.maximumf %203, %204 : vector<4x288xbf16>
    %207 = arith.maximumf %205, %206 : vector<4x288xbf16>
    %c0_134 = arith.constant 0 : index
    %c0_135 = arith.constant 0 : index
    %208 = vector.load %arg16[%c0_134, %c0_135] : memref<288x80xbf16, #tpu.memory_space<vmem>>, vector<288x80xbf16>
    %cst_136 = arith.constant dense<0.000000e+00> : vector<4x80xf32>
    %209 = tpu.matmul %207, %208, %cst_136 {dimension_numbers = #tpu.dot_dimension_numbers<[1], [0], [0], [1], [0, 0, 1, 1], [], []>} : vector<4x288xbf16>, vector<288x80xbf16>, vector<4x80xf32> -> vector<4x80xf32>
    %cst_137 = arith.constant 0.000000e+00 : bf16
    %210 = vector.broadcast %cst_137 : bf16 to vector<4x11xbf16>
    %c0_138 = arith.constant 0 : index
    %c117 = arith.constant 117 : index
    %211 = vector.load %arg30[%c0_138, %c117] : memref<16x512xbf16, #tpu.memory_space<vmem>>, vector<4x11xbf16>
    tpu.vector_store %arg30[%c0_138, %c117], %210 {strides = array<i32>} : memref<16x512xbf16, #tpu.memory_space<vmem>>, vector<4x11xbf16>,
    %cst_139 = arith.constant 0.000000e+00 : bf16
    %212 = vector.broadcast %cst_139 : bf16 to vector<4x11xbf16>
    %c0_140 = arith.constant 0 : index
    %c208 = arith.constant 208 : index
    %213 = vector.load %arg30[%c0_140, %c208] : memref<16x512xbf16, #tpu.memory_space<vmem>>, vector<4x11xbf16>
    tpu.vector_store %arg30[%c0_140, %c208], %212 {strides = array<i32>} : memref<16x512xbf16, #tpu.memory_space<vmem>>, vector<4x11xbf16>,
    %214 = arith.truncf %209 : vector<4x80xf32> to vector<4x80xbf16>
    %c0_141 = arith.constant 0 : index
    %c128_142 = arith.constant 128 : index
    %215 = vector.load %arg30[%c0_141, %c128_142] : memref<16x512xbf16, #tpu.memory_space<vmem>>, vector<4x80xbf16>
    tpu.vector_store %arg30[%c0_141, %c128_142], %214 {strides = array<i32>} : memref<16x512xbf16, #tpu.memory_space<vmem>>, vector<4x80xbf16>,
    %c0_143 = arith.constant 0 : index
    %c117_144 = arith.constant 117 : index
    %216 = vector.load %arg30[%c0_143, %c117_144] : memref<16x512xbf16, #tpu.memory_space<vmem>>, vector<4x80xbf16>
    %c0_145 = arith.constant 0 : index
    %c0_146 = arith.constant 0 : index
    %c0_147 = arith.constant 0 : index
    %217 = vector.load %arg10[%c0_145, %c0_146, %c0_147] : memref<9x8x4xbf16, #tpu.memory_space<vmem>>, vector<1x8x4xbf16>
    %218 = vector.shape_cast %217 : vector<1x8x4xbf16> to vector<8x4xbf16>
    %cst_148 = arith.constant dense<0.000000e+00> : vector<8x80xf32>
    %219 = tpu.matmul %218, %216, %cst_148 {dimension_numbers = #tpu.dot_dimension_numbers<[1], [0], [0], [1], [0, 0, 1, 1], [], []>} : vector<8x4xbf16>, vector<4x80xbf16>, vector<8x80xf32> -> vector<8x80xf32>
    %c0_149 = arith.constant 0 : index
    %c118 = arith.constant 118 : index
    %220 = vector.load %arg30[%c0_149, %c118] : memref<16x512xbf16, #tpu.memory_space<vmem>>, vector<4x80xbf16>
    %c1_150 = arith.constant 1 : index
    %c0_151 = arith.constant 0 : index
    %c0_152 = arith.constant 0 : index
    %221 = vector.load %arg10[%c1_150, %c0_151, %c0_152] : memref<9x8x4xbf16, #tpu.memory_space<vmem>>, vector<1x8x4xbf16>
    %222 = vector.shape_cast %221 : vector<1x8x4xbf16> to vector<8x4xbf16>
    %cst_153 = arith.constant dense<0.000000e+00> : vector<8x80xf32>
    %223 = tpu.matmul %222, %220, %cst_153 {dimension_numbers = #tpu.dot_dimension_numbers<[1], [0], [0], [1], [0, 0, 1, 1], [], []>} : vector<8x4xbf16>, vector<4x80xbf16>, vector<8x80xf32> -> vector<8x80xf32>
    %224 = arith.addf %219, %223 : vector<8x80xf32>
    %c0_154 = arith.constant 0 : index
    %c119 = arith.constant 119 : index
    %225 = vector.load %arg30[%c0_154, %c119] : memref<16x512xbf16, #tpu.memory_space<vmem>>, vector<4x80xbf16>
    %c2_155 = arith.constant 2 : index
    %c0_156 = arith.constant 0 : index
    %c0_157 = arith.constant 0 : index
    %226 = vector.load %arg10[%c2_155, %c0_156, %c0_157] : memref<9x8x4xbf16, #tpu.memory_space<vmem>>, vector<1x8x4xbf16>
    %227 = vector.shape_cast %226 : vector<1x8x4xbf16> to vector<8x4xbf16>
    %cst_158 = arith.constant dense<0.000000e+00> : vector<8x80xf32>
    %228 = tpu.matmul %227, %225, %cst_158 {dimension_numbers = #tpu.dot_dimension_numbers<[1], [0], [0], [1], [0, 0, 1, 1], [], []>} : vector<8x4xbf16>, vector<4x80xbf16>, vector<8x80xf32> -> vector<8x80xf32>
    %229 = arith.addf %224, %228 : vector<8x80xf32>
    %c0_159 = arith.constant 0 : index
    %c127_160 = arith.constant 127 : index
    %230 = vector.load %arg30[%c0_159, %c127_160] : memref<16x512xbf16, #tpu.memory_space<vmem>>, vector<4x80xbf16>
    %c3_161 = arith.constant 3 : index
    %c0_162 = arith.constant 0 : index
    %c0_163 = arith.constant 0 : index
    %231 = vector.load %arg10[%c3_161, %c0_162, %c0_163] : memref<9x8x4xbf16, #tpu.memory_space<vmem>>, vector<1x8x4xbf16>
    %232 = vector.shape_cast %231 : vector<1x8x4xbf16> to vector<8x4xbf16>
    %cst_164 = arith.constant dense<0.000000e+00> : vector<8x80xf32>
    %233 = tpu.matmul %232, %230, %cst_164 {dimension_numbers = #tpu.dot_dimension_numbers<[1], [0], [0], [1], [0, 0, 1, 1], [], []>} : vector<8x4xbf16>, vector<4x80xbf16>, vector<8x80xf32> -> vector<8x80xf32>
    %234 = arith.addf %229, %233 : vector<8x80xf32>
    %c0_165 = arith.constant 0 : index
    %c128_166 = arith.constant 128 : index
    %235 = vector.load %arg30[%c0_165, %c128_166] : memref<16x512xbf16, #tpu.memory_space<vmem>>, vector<4x80xbf16>
    %c4_167 = arith.constant 4 : index
    %c0_168 = arith.constant 0 : index
    %c0_169 = arith.constant 0 : index
    %236 = vector.load %arg10[%c4_167, %c0_168, %c0_169] : memref<9x8x4xbf16, #tpu.memory_space<vmem>>, vector<1x8x4xbf16>
    %237 = vector.shape_cast %236 : vector<1x8x4xbf16> to vector<8x4xbf16>
    %cst_170 = arith.constant dense<0.000000e+00> : vector<8x80xf32>
    %238 = tpu.matmul %237, %235, %cst_170 {dimension_numbers = #tpu.dot_dimension_numbers<[1], [0], [0], [1], [0, 0, 1, 1], [], []>} : vector<8x4xbf16>, vector<4x80xbf16>, vector<8x80xf32> -> vector<8x80xf32>
    %239 = arith.addf %234, %238 : vector<8x80xf32>
    %c0_171 = arith.constant 0 : index
    %c129_172 = arith.constant 129 : index
    %240 = vector.load %arg30[%c0_171, %c129_172] : memref<16x512xbf16, #tpu.memory_space<vmem>>, vector<4x80xbf16>
    %c5_173 = arith.constant 5 : index
    %c0_174 = arith.constant 0 : index
    %c0_175 = arith.constant 0 : index
    %241 = vector.load %arg10[%c5_173, %c0_174, %c0_175] : memref<9x8x4xbf16, #tpu.memory_space<vmem>>, vector<1x8x4xbf16>
    %242 = vector.shape_cast %241 : vector<1x8x4xbf16> to vector<8x4xbf16>
    %cst_176 = arith.constant dense<0.000000e+00> : vector<8x80xf32>
    %243 = tpu.matmul %242, %240, %cst_176 {dimension_numbers = #tpu.dot_dimension_numbers<[1], [0], [0], [1], [0, 0, 1, 1], [], []>} : vector<8x4xbf16>, vector<4x80xbf16>, vector<8x80xf32> -> vector<8x80xf32>
    %244 = arith.addf %239, %243 : vector<8x80xf32>
    %c0_177 = arith.constant 0 : index
    %c137 = arith.constant 137 : index
    %245 = vector.load %arg30[%c0_177, %c137] : memref<16x512xbf16, #tpu.memory_space<vmem>>, vector<4x80xbf16>
    %c6_178 = arith.constant 6 : index
    %c0_179 = arith.constant 0 : index
    %c0_180 = arith.constant 0 : index
    %246 = vector.load %arg10[%c6_178, %c0_179, %c0_180] : memref<9x8x4xbf16, #tpu.memory_space<vmem>>, vector<1x8x4xbf16>
    %247 = vector.shape_cast %246 : vector<1x8x4xbf16> to vector<8x4xbf16>
    %cst_181 = arith.constant dense<0.000000e+00> : vector<8x80xf32>
    %248 = tpu.matmul %247, %245, %cst_181 {dimension_numbers = #tpu.dot_dimension_numbers<[1], [0], [0], [1], [0, 0, 1, 1], [], []>} : vector<8x4xbf16>, vector<4x80xbf16>, vector<8x80xf32> -> vector<8x80xf32>
    %249 = arith.addf %244, %248 : vector<8x80xf32>
    %c0_182 = arith.constant 0 : index
    %c138 = arith.constant 138 : index
    %250 = vector.load %arg30[%c0_182, %c138] : memref<16x512xbf16, #tpu.memory_space<vmem>>, vector<4x80xbf16>
    %c7_183 = arith.constant 7 : index
    %c0_184 = arith.constant 0 : index
    %c0_185 = arith.constant 0 : index
    %251 = vector.load %arg10[%c7_183, %c0_184, %c0_185] : memref<9x8x4xbf16, #tpu.memory_space<vmem>>, vector<1x8x4xbf16>
    %252 = vector.shape_cast %251 : vector<1x8x4xbf16> to vector<8x4xbf16>
    %cst_186 = arith.constant dense<0.000000e+00> : vector<8x80xf32>
    %253 = tpu.matmul %252, %250, %cst_186 {dimension_numbers = #tpu.dot_dimension_numbers<[1], [0], [0], [1], [0, 0, 1, 1], [], []>} : vector<8x4xbf16>, vector<4x80xbf16>, vector<8x80xf32> -> vector<8x80xf32>
    %254 = arith.addf %249, %253 : vector<8x80xf32>
    %c0_187 = arith.constant 0 : index
    %c139 = arith.constant 139 : index
    %255 = vector.load %arg30[%c0_187, %c139] : memref<16x512xbf16, #tpu.memory_space<vmem>>, vector<4x80xbf16>
    %c8_188 = arith.constant 8 : index
    %c0_189 = arith.constant 0 : index
    %c0_190 = arith.constant 0 : index
    %256 = vector.load %arg10[%c8_188, %c0_189, %c0_190] : memref<9x8x4xbf16, #tpu.memory_space<vmem>>, vector<1x8x4xbf16>
    %257 = vector.shape_cast %256 : vector<1x8x4xbf16> to vector<8x4xbf16>
    %cst_191 = arith.constant dense<0.000000e+00> : vector<8x80xf32>
    %258 = tpu.matmul %257, %255, %cst_191 {dimension_numbers = #tpu.dot_dimension_numbers<[1], [0], [0], [1], [0, 0, 1, 1], [], []>} : vector<8x4xbf16>, vector<4x80xbf16>, vector<8x80xf32> -> vector<8x80xf32>
    %259 = arith.addf %254, %258 : vector<8x80xf32>
    %260 = vector.broadcast %1 : vector<1x80xf32> to vector<8x80xf32>
    %261 = arith.mulf %259, %260 : vector<8x80xf32>
    %cst_192 = arith.constant dense<0.000000e+00> : vector<8xf32>
    %262 = vector.multi_reduction <add>, %261, %cst_192 [1] : vector<8x80xf32> to vector<8xf32>
    %263 = vector.shape_cast %262 : vector<8xf32> to vector<8x1xf32>
    %264 = arith.mulf %261, %261 : vector<8x80xf32>
    %cst_193 = arith.constant dense<0.000000e+00> : vector<8xf32>
    %265 = vector.multi_reduction <add>, %264, %cst_193 [1] : vector<8x80xf32> to vector<8xf32>
    %266 = vector.shape_cast %265 : vector<8xf32> to vector<8x1xf32>
    %cst_194 = arith.constant 1.562500e-02 : f32
    %267 = vector.broadcast %cst_194 : f32 to vector<8x1xf32>
    %268 = arith.mulf %263, %267 : vector<8x1xf32>
    %cst_195 = arith.constant 1.562500e-02 : f32
    %269 = vector.broadcast %cst_195 : f32 to vector<8x1xf32>
    %270 = arith.mulf %266, %269 : vector<8x1xf32>
    %271 = arith.mulf %268, %268 : vector<8x1xf32>
    %272 = arith.subf %270, %271 : vector<8x1xf32>
    %273 = vector.broadcast %268 : vector<8x1xf32> to vector<8x80xf32>
    %274 = arith.subf %259, %273 : vector<8x80xf32>
    %275 = vector.broadcast %1 : vector<1x80xf32> to vector<8x80xf32>
    %276 = arith.mulf %274, %275 : vector<8x80xf32>
    %cst_196 = arith.constant 9.99999974E-6 : f32
    %277 = vector.broadcast %cst_196 : f32 to vector<8x1xf32>
    %278 = arith.addf %272, %277 : vector<8x1xf32>
    %279 = math.rsqrt %278 : vector<8x1xf32>
    %280 = vector.broadcast %279 : vector<8x1xf32> to vector<8x80xf32>
    %281 = arith.mulf %276, %280 : vector<8x80xf32>
    %cst_197 = arith.constant 0.000000e+00 : f32
    %282 = vector.broadcast %cst_197 : f32 to vector<8x80xf32>
    %283 = arith.cmpf oge, %281, %282 : vector<8x80xf32>
    %cst_198 = arith.constant 0.00999999977 : f32
    %284 = vector.broadcast %cst_198 : f32 to vector<8x80xf32>
    %285 = arith.mulf %284, %281 : vector<8x80xf32>
    %286 = arith.select %283, %281, %285 : vector<8x80xi1>, vector<8x80xf32>
    %cst_199 = arith.constant 0.000000e+00 : bf16
    %287 = vector.broadcast %cst_199 : bf16 to vector<8x11xbf16>
    %c0_200 = arith.constant 0 : index
    %c117_201 = arith.constant 117 : index
    %288 = vector.load %arg30[%c0_200, %c117_201] : memref<16x512xbf16, #tpu.memory_space<vmem>>, vector<8x11xbf16>
    tpu.vector_store %arg30[%c0_200, %c117_201], %287 {strides = array<i32>} : memref<16x512xbf16, #tpu.memory_space<vmem>>, vector<8x11xbf16>,
    %cst_202 = arith.constant 0.000000e+00 : bf16
    %289 = vector.broadcast %cst_202 : bf16 to vector<8x11xbf16>
    %c0_203 = arith.constant 0 : index
    %c208_204 = arith.constant 208 : index
    %290 = vector.load %arg30[%c0_203, %c208_204] : memref<16x512xbf16, #tpu.memory_space<vmem>>, vector<8x11xbf16>
    tpu.vector_store %arg30[%c0_203, %c208_204], %289 {strides = array<i32>} : memref<16x512xbf16, #tpu.memory_space<vmem>>, vector<8x11xbf16>,
    %291 = arith.truncf %286 : vector<8x80xf32> to vector<8x80xbf16>
    %c0_205 = arith.constant 0 : index
    %c128_206 = arith.constant 128 : index
    %292 = vector.load %arg30[%c0_205, %c128_206] : memref<16x512xbf16, #tpu.memory_space<vmem>>, vector<8x80xbf16>
    tpu.vector_store %arg30[%c0_205, %c128_206], %291 {strides = array<i32>} : memref<16x512xbf16, #tpu.memory_space<vmem>>, vector<8x80xbf16>,
    %c0_207 = arith.constant 0 : index
    %c117_208 = arith.constant 117 : index
    %293 = vector.load %arg30[%c0_207, %c117_208] : memref<16x512xbf16, #tpu.memory_space<vmem>>, vector<8x80xbf16>
    %c0_209 = arith.constant 0 : index
    %c0_210 = arith.constant 0 : index
    %c0_211 = arith.constant 0 : index
    %294 = vector.load %arg11[%c0_209, %c0_210, %c0_211] : memref<9x8x8xbf16, #tpu.memory_space<vmem>>, vector<1x8x8xbf16>
    %295 = vector.shape_cast %294 : vector<1x8x8xbf16> to vector<8x8xbf16>
    %cst_212 = arith.constant dense<0.000000e+00> : vector<8x80xf32>
    %296 = tpu.matmul %295, %293, %cst_212 {dimension_numbers = #tpu.dot_dimension_numbers<[1], [0], [0], [1], [0, 0, 1, 1], [], []>} : vector<8x8xbf16>, vector<8x80xbf16>, vector<8x80xf32> -> vector<8x80xf32>
    %c0_213 = arith.constant 0 : index
    %c118_214 = arith.constant 118 : index
    %297 = vector.load %arg30[%c0_213, %c118_214] : memref<16x512xbf16, #tpu.memory_space<vmem>>, vector<8x80xbf16>
    %c1_215 = arith.constant 1 : index
    %c0_216 = arith.constant 0 : index
    %c0_217 = arith.constant 0 : index
    %298 = vector.load %arg11[%c1_215, %c0_216, %c0_217] : memref<9x8x8xbf16, #tpu.memory_space<vmem>>, vector<1x8x8xbf16>
    %299 = vector.shape_cast %298 : vector<1x8x8xbf16> to vector<8x8xbf16>
    %cst_218 = arith.constant dense<0.000000e+00> : vector<8x80xf32>
    %300 = tpu.matmul %299, %297, %cst_218 {dimension_numbers = #tpu.dot_dimension_numbers<[1], [0], [0], [1], [0, 0, 1, 1], [], []>} : vector<8x8xbf16>, vector<8x80xbf16>, vector<8x80xf32> -> vector<8x80xf32>
    %301 = arith.addf %296, %300 : vector<8x80xf32>
    %c0_219 = arith.constant 0 : index
    %c119_220 = arith.constant 119 : index
    %302 = vector.load %arg30[%c0_219, %c119_220] : memref<16x512xbf16, #tpu.memory_space<vmem>>, vector<8x80xbf16>
    %c2_221 = arith.constant 2 : index
    %c0_222 = arith.constant 0 : index
    %c0_223 = arith.constant 0 : index
    %303 = vector.load %arg11[%c2_221, %c0_222, %c0_223] : memref<9x8x8xbf16, #tpu.memory_space<vmem>>, vector<1x8x8xbf16>
    %304 = vector.shape_cast %303 : vector<1x8x8xbf16> to vector<8x8xbf16>
    %cst_224 = arith.constant dense<0.000000e+00> : vector<8x80xf32>
    %305 = tpu.matmul %304, %302, %cst_224 {dimension_numbers = #tpu.dot_dimension_numbers<[1], [0], [0], [1], [0, 0, 1, 1], [], []>} : vector<8x8xbf16>, vector<8x80xbf16>, vector<8x80xf32> -> vector<8x80xf32>
    %306 = arith.addf %301, %305 : vector<8x80xf32>
    %c0_225 = arith.constant 0 : index
    %c127_226 = arith.constant 127 : index
    %307 = vector.load %arg30[%c0_225, %c127_226] : memref<16x512xbf16, #tpu.memory_space<vmem>>, vector<8x80xbf16>
    %c3_227 = arith.constant 3 : index
    %c0_228 = arith.constant 0 : index
    %c0_229 = arith.constant 0 : index
    %308 = vector.load %arg11[%c3_227, %c0_228, %c0_229] : memref<9x8x8xbf16, #tpu.memory_space<vmem>>, vector<1x8x8xbf16>
    %309 = vector.shape_cast %308 : vector<1x8x8xbf16> to vector<8x8xbf16>
    %cst_230 = arith.constant dense<0.000000e+00> : vector<8x80xf32>
    %310 = tpu.matmul %309, %307, %cst_230 {dimension_numbers = #tpu.dot_dimension_numbers<[1], [0], [0], [1], [0, 0, 1, 1], [], []>} : vector<8x8xbf16>, vector<8x80xbf16>, vector<8x80xf32> -> vector<8x80xf32>
    %311 = arith.addf %306, %310 : vector<8x80xf32>
    %c0_231 = arith.constant 0 : index
    %c128_232 = arith.constant 128 : index
    %312 = vector.load %arg30[%c0_231, %c128_232] : memref<16x512xbf16, #tpu.memory_space<vmem>>, vector<8x80xbf16>
    %c4_233 = arith.constant 4 : index
    %c0_234 = arith.constant 0 : index
    %c0_235 = arith.constant 0 : index
    %313 = vector.load %arg11[%c4_233, %c0_234, %c0_235] : memref<9x8x8xbf16, #tpu.memory_space<vmem>>, vector<1x8x8xbf16>
    %314 = vector.shape_cast %313 : vector<1x8x8xbf16> to vector<8x8xbf16>
    %cst_236 = arith.constant dense<0.000000e+00> : vector<8x80xf32>
    %315 = tpu.matmul %314, %312, %cst_236 {dimension_numbers = #tpu.dot_dimension_numbers<[1], [0], [0], [1], [0, 0, 1, 1], [], []>} : vector<8x8xbf16>, vector<8x80xbf16>, vector<8x80xf32> -> vector<8x80xf32>
    %316 = arith.addf %311, %315 : vector<8x80xf32>
    %c0_237 = arith.constant 0 : index
    %c129_238 = arith.constant 129 : index
    %317 = vector.load %arg30[%c0_237, %c129_238] : memref<16x512xbf16, #tpu.memory_space<vmem>>, vector<8x80xbf16>
    %c5_239 = arith.constant 5 : index
    %c0_240 = arith.constant 0 : index
    %c0_241 = arith.constant 0 : index
    %318 = vector.load %arg11[%c5_239, %c0_240, %c0_241] : memref<9x8x8xbf16, #tpu.memory_space<vmem>>, vector<1x8x8xbf16>
    %319 = vector.shape_cast %318 : vector<1x8x8xbf16> to vector<8x8xbf16>
    %cst_242 = arith.constant dense<0.000000e+00> : vector<8x80xf32>
    %320 = tpu.matmul %319, %317, %cst_242 {dimension_numbers = #tpu.dot_dimension_numbers<[1], [0], [0], [1], [0, 0, 1, 1], [], []>} : vector<8x8xbf16>, vector<8x80xbf16>, vector<8x80xf32> -> vector<8x80xf32>
    %321 = arith.addf %316, %320 : vector<8x80xf32>
    %c0_243 = arith.constant 0 : index
    %c137_244 = arith.constant 137 : index
    %322 = vector.load %arg30[%c0_243, %c137_244] : memref<16x512xbf16, #tpu.memory_space<vmem>>, vector<8x80xbf16>
    %c6_245 = arith.constant 6 : index
    %c0_246 = arith.constant 0 : index
    %c0_247 = arith.constant 0 : index
    %323 = vector.load %arg11[%c6_245, %c0_246, %c0_247] : memref<9x8x8xbf16, #tpu.memory_space<vmem>>, vector<1x8x8xbf16>
    %324 = vector.shape_cast %323 : vector<1x8x8xbf16> to vector<8x8xbf16>
    %cst_248 = arith.constant dense<0.000000e+00> : vector<8x80xf32>
    %325 = tpu.matmul %324, %322, %cst_248 {dimension_numbers = #tpu.dot_dimension_numbers<[1], [0], [0], [1], [0, 0, 1, 1], [], []>} : vector<8x8xbf16>, vector<8x80xbf16>, vector<8x80xf32> -> vector<8x80xf32>
    %326 = arith.addf %321, %325 : vector<8x80xf32>
    %c0_249 = arith.constant 0 : index
    %c138_250 = arith.constant 138 : index
    %327 = vector.load %arg30[%c0_249, %c138_250] : memref<16x512xbf16, #tpu.memory_space<vmem>>, vector<8x80xbf16>
    %c7_251 = arith.constant 7 : index
    %c0_252 = arith.constant 0 : index
    %c0_253 = arith.constant 0 : index
    %328 = vector.load %arg11[%c7_251, %c0_252, %c0_253] : memref<9x8x8xbf16, #tpu.memory_space<vmem>>, vector<1x8x8xbf16>
    %329 = vector.shape_cast %328 : vector<1x8x8xbf16> to vector<8x8xbf16>
    %cst_254 = arith.constant dense<0.000000e+00> : vector<8x80xf32>
    %330 = tpu.matmul %329, %327, %cst_254 {dimension_numbers = #tpu.dot_dimension_numbers<[1], [0], [0], [1], [0, 0, 1, 1], [], []>} : vector<8x8xbf16>, vector<8x80xbf16>, vector<8x80xf32> -> vector<8x80xf32>
    %331 = arith.addf %326, %330 : vector<8x80xf32>
    %c0_255 = arith.constant 0 : index
    %c139_256 = arith.constant 139 : index
    %332 = vector.load %arg30[%c0_255, %c139_256] : memref<16x512xbf16, #tpu.memory_space<vmem>>, vector<8x80xbf16>
    %c8_257 = arith.constant 8 : index
    %c0_258 = arith.constant 0 : index
    %c0_259 = arith.constant 0 : index
    %333 = vector.load %arg11[%c8_257, %c0_258, %c0_259] : memref<9x8x8xbf16, #tpu.memory_space<vmem>>, vector<1x8x8xbf16>
    %334 = vector.shape_cast %333 : vector<1x8x8xbf16> to vector<8x8xbf16>
    %cst_260 = arith.constant dense<0.000000e+00> : vector<8x80xf32>
    %335 = tpu.matmul %334, %332, %cst_260 {dimension_numbers = #tpu.dot_dimension_numbers<[1], [0], [0], [1], [0, 0, 1, 1], [], []>} : vector<8x8xbf16>, vector<8x80xbf16>, vector<8x80xf32> -> vector<8x80xf32>
    %336 = arith.addf %331, %335 : vector<8x80xf32>
    %337 = vector.broadcast %1 : vector<1x80xf32> to vector<8x80xf32>
    %338 = arith.mulf %336, %337 : vector<8x80xf32>
    %cst_261 = arith.constant dense<0.000000e+00> : vector<8xf32>
    %339 = vector.multi_reduction <add>, %338, %cst_261 [1] : vector<8x80xf32> to vector<8xf32>
    %340 = vector.shape_cast %339 : vector<8xf32> to vector<8x1xf32>
    %341 = arith.mulf %338, %338 : vector<8x80xf32>
    %cst_262 = arith.constant dense<0.000000e+00> : vector<8xf32>
    %342 = vector.multi_reduction <add>, %341, %cst_262 [1] : vector<8x80xf32> to vector<8xf32>
    %343 = vector.shape_cast %342 : vector<8xf32> to vector<8x1xf32>
    %cst_263 = arith.constant 1.562500e-02 : f32
    %344 = vector.broadcast %cst_263 : f32 to vector<8x1xf32>
    %345 = arith.mulf %340, %344 : vector<8x1xf32>
    %cst_264 = arith.constant 1.562500e-02 : f32
    %346 = vector.broadcast %cst_264 : f32 to vector<8x1xf32>
    %347 = arith.mulf %343, %346 : vector<8x1xf32>
    %348 = arith.mulf %345, %345 : vector<8x1xf32>
    %349 = arith.subf %347, %348 : vector<8x1xf32>
    %350 = vector.broadcast %345 : vector<8x1xf32> to vector<8x80xf32>
    %351 = arith.subf %336, %350 : vector<8x80xf32>
    %352 = vector.broadcast %1 : vector<1x80xf32> to vector<8x80xf32>
    %353 = arith.mulf %351, %352 : vector<8x80xf32>
    %cst_265 = arith.constant 9.99999974E-6 : f32
    %354 = vector.broadcast %cst_265 : f32 to vector<8x1xf32>
    %355 = arith.addf %349, %354 : vector<8x1xf32>
    %356 = math.rsqrt %355 : vector<8x1xf32>
    %357 = vector.broadcast %356 : vector<8x1xf32> to vector<8x80xf32>
    %358 = arith.mulf %353, %357 : vector<8x80xf32>
    %cst_266 = arith.constant 0.000000e+00 : f32
    %359 = vector.broadcast %cst_266 : f32 to vector<8x80xf32>
    %360 = arith.cmpf oge, %358, %359 : vector<8x80xf32>
    %cst_267 = arith.constant 0.00999999977 : f32
    %361 = vector.broadcast %cst_267 : f32 to vector<8x80xf32>
    %362 = arith.mulf %361, %358 : vector<8x80xf32>
    %363 = arith.select %360, %358, %362 : vector<8x80xi1>, vector<8x80xf32>
    %cst_268 = arith.constant 0.000000e+00 : bf16
    %364 = vector.broadcast %cst_268 : bf16 to vector<8x11xbf16>
    %c0_269 = arith.constant 0 : index
    %c117_270 = arith.constant 117 : index
    %365 = vector.load %arg30[%c0_269, %c117_270] : memref<16x512xbf16, #tpu.memory_space<vmem>>, vector<8x11xbf16>
    tpu.vector_store %arg30[%c0_269, %c117_270], %364 {strides = array<i32>} : memref<16x512xbf16, #tpu.memory_space<vmem>>, vector<8x11xbf16>,
    %cst_271 = arith.constant 0.000000e+00 : bf16
    %366 = vector.broadcast %cst_271 : bf16 to vector<8x11xbf16>
    %c0_272 = arith.constant 0 : index
    %c208_273 = arith.constant 208 : index
    %367 = vector.load %arg30[%c0_272, %c208_273] : memref<16x512xbf16, #tpu.memory_space<vmem>>, vector<8x11xbf16>
    tpu.vector_store %arg30[%c0_272, %c208_273], %366 {strides = array<i32>} : memref<16x512xbf16, #tpu.memory_space<vmem>>, vector<8x11xbf16>,
    %368 = arith.truncf %363 : vector<8x80xf32> to vector<8x80xbf16>
    %c0_274 = arith.constant 0 : index
    %c128_275 = arith.constant 128 : index
    %369 = vector.load %arg30[%c0_274, %c128_275] : memref<16x512xbf16, #tpu.memory_space<vmem>>, vector<8x80xbf16>
    tpu.vector_store %arg30[%c0_274, %c128_275], %368 {strides = array<i32>} : memref<16x512xbf16, #tpu.memory_space<vmem>>, vector<8x80xbf16>,
    %c0_276 = arith.constant 0 : index
    %c128_277 = arith.constant 128 : index
    %370 = vector.load %arg30[%c0_276, %c128_277] : memref<16x512xbf16, #tpu.memory_space<vmem>>, vector<8x80xbf16>
    %c0_278 = arith.constant 0 : index
    %c129_279 = arith.constant 129 : index
    %371 = vector.load %arg30[%c0_278, %c129_279] : memref<16x512xbf16, #tpu.memory_space<vmem>>, vector<8x80xbf16>
    %c0_280 = arith.constant 0 : index
    %c138_281 = arith.constant 138 : index
    %372 = vector.load %arg30[%c0_280, %c138_281] : memref<16x512xbf16, #tpu.memory_space<vmem>>, vector<8x80xbf16>
    %c0_282 = arith.constant 0 : index
    %c139_283 = arith.constant 139 : index
    %373 = vector.load %arg30[%c0_282, %c139_283] : memref<16x512xbf16, #tpu.memory_space<vmem>>, vector<8x80xbf16>
    %374 = arith.maximumf %370, %371 : vector<8x80xbf16>
    %375 = arith.maximumf %372, %373 : vector<8x80xbf16>
    %376 = arith.maximumf %374, %375 : vector<8x80xbf16>
    %c0_284 = arith.constant 0 : index
    %c0_285 = arith.constant 0 : index
    %377 = vector.load %arg19[%c0_284, %c0_285] : memref<80x24xbf16, #tpu.memory_space<vmem>>, vector<80x24xbf16>
    %cst_286 = arith.constant dense<0.000000e+00> : vector<8x24xf32>
    %378 = tpu.matmul %376, %377, %cst_286 {dimension_numbers = #tpu.dot_dimension_numbers<[1], [0], [0], [1], [0, 0, 1, 1], [], []>} : vector<8x80xbf16>, vector<80x24xbf16>, vector<8x24xf32> -> vector<8x24xf32>
    %cst_287 = arith.constant 0.000000e+00 : bf16
    %379 = vector.broadcast %cst_287 : bf16 to vector<8x7xbf16>
    %c0_288 = arith.constant 0 : index
    %c121 = arith.constant 121 : index
    %380 = vector.load %arg30[%c0_288, %c121] : memref<16x512xbf16, #tpu.memory_space<vmem>>, vector<8x7xbf16>
    tpu.vector_store %arg30[%c0_288, %c121], %379 {strides = array<i32>} : memref<16x512xbf16, #tpu.memory_space<vmem>>, vector<8x7xbf16>,
    %cst_289 = arith.constant 0.000000e+00 : bf16
    %381 = vector.broadcast %cst_289 : bf16 to vector<8x7xbf16>
    %c0_290 = arith.constant 0 : index
    %c152 = arith.constant 152 : index
    %382 = vector.load %arg30[%c0_290, %c152] : memref<16x512xbf16, #tpu.memory_space<vmem>>, vector<8x7xbf16>
    tpu.vector_store %arg30[%c0_290, %c152], %381 {strides = array<i32>} : memref<16x512xbf16, #tpu.memory_space<vmem>>, vector<8x7xbf16>,
    %383 = arith.truncf %378 : vector<8x24xf32> to vector<8x24xbf16>
    %c0_291 = arith.constant 0 : index
    %c128_292 = arith.constant 128 : index
    %384 = vector.load %arg30[%c0_291, %c128_292] : memref<16x512xbf16, #tpu.memory_space<vmem>>, vector<8x24xbf16>
    tpu.vector_store %arg30[%c0_291, %c128_292], %383 {strides = array<i32>} : memref<16x512xbf16, #tpu.memory_space<vmem>>, vector<8x24xbf16>,
    %c0_293 = arith.constant 0 : index
    %c121_294 = arith.constant 121 : index
    %385 = vector.load %arg30[%c0_293, %c121_294] : memref<16x512xbf16, #tpu.memory_space<vmem>>, vector<8x24xbf16>
    %c0_295 = arith.constant 0 : index
    %c0_296 = arith.constant 0 : index
    %c0_297 = arith.constant 0 : index
    %386 = vector.load %arg17[%c0_295, %c0_296, %c0_297] : memref<9x16x8xbf16, #tpu.memory_space<vmem>>, vector<1x16x8xbf16>
    %387 = vector.shape_cast %386 : vector<1x16x8xbf16> to vector<16x8xbf16>
    %cst_298 = arith.constant dense<0.000000e+00> : vector<16x24xf32>
    %388 = tpu.matmul %387, %385, %cst_298 {dimension_numbers = #tpu.dot_dimension_numbers<[1], [0], [0], [1], [0, 0, 1, 1], [], []>} : vector<16x8xbf16>, vector<8x24xbf16>, vector<16x24xf32> -> vector<16x24xf32>
    %c0_299 = arith.constant 0 : index
    %c122 = arith.constant 122 : index
    %389 = vector.load %arg30[%c0_299, %c122] : memref<16x512xbf16, #tpu.memory_space<vmem>>, vector<8x24xbf16>
    %c1_300 = arith.constant 1 : index
    %c0_301 = arith.constant 0 : index
    %c0_302 = arith.constant 0 : index
    %390 = vector.load %arg17[%c1_300, %c0_301, %c0_302] : memref<9x16x8xbf16, #tpu.memory_space<vmem>>, vector<1x16x8xbf16>
    %391 = vector.shape_cast %390 : vector<1x16x8xbf16> to vector<16x8xbf16>
    %cst_303 = arith.constant dense<0.000000e+00> : vector<16x24xf32>
    %392 = tpu.matmul %391, %389, %cst_303 {dimension_numbers = #tpu.dot_dimension_numbers<[1], [0], [0], [1], [0, 0, 1, 1], [], []>} : vector<16x8xbf16>, vector<8x24xbf16>, vector<16x24xf32> -> vector<16x24xf32>
    %393 = arith.addf %388, %392 : vector<16x24xf32>
    %c0_304 = arith.constant 0 : index
    %c123 = arith.constant 123 : index
    %394 = vector.load %arg30[%c0_304, %c123] : memref<16x512xbf16, #tpu.memory_space<vmem>>, vector<8x24xbf16>
    %c2_305 = arith.constant 2 : index
    %c0_306 = arith.constant 0 : index
    %c0_307 = arith.constant 0 : index
    %395 = vector.load %arg17[%c2_305, %c0_306, %c0_307] : memref<9x16x8xbf16, #tpu.memory_space<vmem>>, vector<1x16x8xbf16>
    %396 = vector.shape_cast %395 : vector<1x16x8xbf16> to vector<16x8xbf16>
    %cst_308 = arith.constant dense<0.000000e+00> : vector<16x24xf32>
    %397 = tpu.matmul %396, %394, %cst_308 {dimension_numbers = #tpu.dot_dimension_numbers<[1], [0], [0], [1], [0, 0, 1, 1], [], []>} : vector<16x8xbf16>, vector<8x24xbf16>, vector<16x24xf32> -> vector<16x24xf32>
    %398 = arith.addf %393, %397 : vector<16x24xf32>
    %c0_309 = arith.constant 0 : index
    %c127_310 = arith.constant 127 : index
    %399 = vector.load %arg30[%c0_309, %c127_310] : memref<16x512xbf16, #tpu.memory_space<vmem>>, vector<8x24xbf16>
    %c3_311 = arith.constant 3 : index
    %c0_312 = arith.constant 0 : index
    %c0_313 = arith.constant 0 : index
    %400 = vector.load %arg17[%c3_311, %c0_312, %c0_313] : memref<9x16x8xbf16, #tpu.memory_space<vmem>>, vector<1x16x8xbf16>
    %401 = vector.shape_cast %400 : vector<1x16x8xbf16> to vector<16x8xbf16>
    %cst_314 = arith.constant dense<0.000000e+00> : vector<16x24xf32>
    %402 = tpu.matmul %401, %399, %cst_314 {dimension_numbers = #tpu.dot_dimension_numbers<[1], [0], [0], [1], [0, 0, 1, 1], [], []>} : vector<16x8xbf16>, vector<8x24xbf16>, vector<16x24xf32> -> vector<16x24xf32>
    %403 = arith.addf %398, %402 : vector<16x24xf32>
    %c0_315 = arith.constant 0 : index
    %c128_316 = arith.constant 128 : index
    %404 = vector.load %arg30[%c0_315, %c128_316] : memref<16x512xbf16, #tpu.memory_space<vmem>>, vector<8x24xbf16>
    %c4_317 = arith.constant 4 : index
    %c0_318 = arith.constant 0 : index
    %c0_319 = arith.constant 0 : index
    %405 = vector.load %arg17[%c4_317, %c0_318, %c0_319] : memref<9x16x8xbf16, #tpu.memory_space<vmem>>, vector<1x16x8xbf16>
    %406 = vector.shape_cast %405 : vector<1x16x8xbf16> to vector<16x8xbf16>
    %cst_320 = arith.constant dense<0.000000e+00> : vector<16x24xf32>
    %407 = tpu.matmul %406, %404, %cst_320 {dimension_numbers = #tpu.dot_dimension_numbers<[1], [0], [0], [1], [0, 0, 1, 1], [], []>} : vector<16x8xbf16>, vector<8x24xbf16>, vector<16x24xf32> -> vector<16x24xf32>
    %408 = arith.addf %403, %407 : vector<16x24xf32>
    %c0_321 = arith.constant 0 : index
    %c129_322 = arith.constant 129 : index
    %409 = vector.load %arg30[%c0_321, %c129_322] : memref<16x512xbf16, #tpu.memory_space<vmem>>, vector<8x24xbf16>
    %c5_323 = arith.constant 5 : index
    %c0_324 = arith.constant 0 : index
    %c0_325 = arith.constant 0 : index
    %410 = vector.load %arg17[%c5_323, %c0_324, %c0_325] : memref<9x16x8xbf16, #tpu.memory_space<vmem>>, vector<1x16x8xbf16>
    %411 = vector.shape_cast %410 : vector<1x16x8xbf16> to vector<16x8xbf16>
    %cst_326 = arith.constant dense<0.000000e+00> : vector<16x24xf32>
    %412 = tpu.matmul %411, %409, %cst_326 {dimension_numbers = #tpu.dot_dimension_numbers<[1], [0], [0], [1], [0, 0, 1, 1], [], []>} : vector<16x8xbf16>, vector<8x24xbf16>, vector<16x24xf32> -> vector<16x24xf32>
    %413 = arith.addf %408, %412 : vector<16x24xf32>
    %c0_327 = arith.constant 0 : index
    %c133 = arith.constant 133 : index
    %414 = vector.load %arg30[%c0_327, %c133] : memref<16x512xbf16, #tpu.memory_space<vmem>>, vector<8x24xbf16>
    %c6_328 = arith.constant 6 : index
    %c0_329 = arith.constant 0 : index
    %c0_330 = arith.constant 0 : index
    %415 = vector.load %arg17[%c6_328, %c0_329, %c0_330] : memref<9x16x8xbf16, #tpu.memory_space<vmem>>, vector<1x16x8xbf16>
    %416 = vector.shape_cast %415 : vector<1x16x8xbf16> to vector<16x8xbf16>
    %cst_331 = arith.constant dense<0.000000e+00> : vector<16x24xf32>
    %417 = tpu.matmul %416, %414, %cst_331 {dimension_numbers = #tpu.dot_dimension_numbers<[1], [0], [0], [1], [0, 0, 1, 1], [], []>} : vector<16x8xbf16>, vector<8x24xbf16>, vector<16x24xf32> -> vector<16x24xf32>
    %418 = arith.addf %413, %417 : vector<16x24xf32>
    %c0_332 = arith.constant 0 : index
    %c134 = arith.constant 134 : index
    %419 = vector.load %arg30[%c0_332, %c134] : memref<16x512xbf16, #tpu.memory_space<vmem>>, vector<8x24xbf16>
    %c7_333 = arith.constant 7 : index
    %c0_334 = arith.constant 0 : index
    %c0_335 = arith.constant 0 : index
    %420 = vector.load %arg17[%c7_333, %c0_334, %c0_335] : memref<9x16x8xbf16, #tpu.memory_space<vmem>>, vector<1x16x8xbf16>
    %421 = vector.shape_cast %420 : vector<1x16x8xbf16> to vector<16x8xbf16>
    %cst_336 = arith.constant dense<0.000000e+00> : vector<16x24xf32>
    %422 = tpu.matmul %421, %419, %cst_336 {dimension_numbers = #tpu.dot_dimension_numbers<[1], [0], [0], [1], [0, 0, 1, 1], [], []>} : vector<16x8xbf16>, vector<8x24xbf16>, vector<16x24xf32> -> vector<16x24xf32>
    %423 = arith.addf %418, %422 : vector<16x24xf32>
    %c0_337 = arith.constant 0 : index
    %c135 = arith.constant 135 : index
    %424 = vector.load %arg30[%c0_337, %c135] : memref<16x512xbf16, #tpu.memory_space<vmem>>, vector<8x24xbf16>
    %c8_338 = arith.constant 8 : index
    %c0_339 = arith.constant 0 : index
    %c0_340 = arith.constant 0 : index
    %425 = vector.load %arg17[%c8_338, %c0_339, %c0_340] : memref<9x16x8xbf16, #tpu.memory_space<vmem>>, vector<1x16x8xbf16>
    %426 = vector.shape_cast %425 : vector<1x16x8xbf16> to vector<16x8xbf16>
    %cst_341 = arith.constant dense<0.000000e+00> : vector<16x24xf32>
    %427 = tpu.matmul %426, %424, %cst_341 {dimension_numbers = #tpu.dot_dimension_numbers<[1], [0], [0], [1], [0, 0, 1, 1], [], []>} : vector<16x8xbf16>, vector<8x24xbf16>, vector<16x24xf32> -> vector<16x24xf32>
    %428 = arith.addf %423, %427 : vector<16x24xf32>
    %429 = vector.broadcast %2 : vector<1x24xf32> to vector<16x24xf32>
    %430 = arith.mulf %428, %429 : vector<16x24xf32>
    %cst_342 = arith.constant dense<0.000000e+00> : vector<16xf32>
    %431 = vector.multi_reduction <add>, %430, %cst_342 [1] : vector<16x24xf32> to vector<16xf32>
    %432 = vector.shape_cast %431 : vector<16xf32> to vector<16x1xf32>
    %433 = arith.mulf %430, %430 : vector<16x24xf32>
    %cst_343 = arith.constant dense<0.000000e+00> : vector<16xf32>
    %434 = vector.multi_reduction <add>, %433, %cst_343 [1] : vector<16x24xf32> to vector<16xf32>
    %435 = vector.shape_cast %434 : vector<16xf32> to vector<16x1xf32>
    %cst_344 = arith.constant 6.250000e-02 : f32
    %436 = vector.broadcast %cst_344 : f32 to vector<16x1xf32>
    %437 = arith.mulf %432, %436 : vector<16x1xf32>
    %cst_345 = arith.constant 6.250000e-02 : f32
    %438 = vector.broadcast %cst_345 : f32 to vector<16x1xf32>
    %439 = arith.mulf %435, %438 : vector<16x1xf32>
    %440 = arith.mulf %437, %437 : vector<16x1xf32>
    %441 = arith.subf %439, %440 : vector<16x1xf32>
    %442 = vector.broadcast %437 : vector<16x1xf32> to vector<16x24xf32>
    %443 = arith.subf %428, %442 : vector<16x24xf32>
    %444 = vector.broadcast %2 : vector<1x24xf32> to vector<16x24xf32>
    %445 = arith.mulf %443, %444 : vector<16x24xf32>
    %cst_346 = arith.constant 9.99999974E-6 : f32
    %446 = vector.broadcast %cst_346 : f32 to vector<16x1xf32>
    %447 = arith.addf %441, %446 : vector<16x1xf32>
    %448 = math.rsqrt %447 : vector<16x1xf32>
    %449 = vector.broadcast %448 : vector<16x1xf32> to vector<16x24xf32>
    %450 = arith.mulf %445, %449 : vector<16x24xf32>
    %cst_347 = arith.constant 0.000000e+00 : f32
    %451 = vector.broadcast %cst_347 : f32 to vector<16x24xf32>
    %452 = arith.cmpf oge, %450, %451 : vector<16x24xf32>
    %cst_348 = arith.constant 0.00999999977 : f32
    %453 = vector.broadcast %cst_348 : f32 to vector<16x24xf32>
    %454 = arith.mulf %453, %450 : vector<16x24xf32>
    %455 = arith.select %452, %450, %454 : vector<16x24xi1>, vector<16x24xf32>
    %cst_349 = arith.constant 0.000000e+00 : bf16
    %456 = vector.broadcast %cst_349 : bf16 to vector<16x7xbf16>
    %c0_350 = arith.constant 0 : index
    %c121_351 = arith.constant 121 : index
    %457 = vector.load %arg30[%c0_350, %c121_351] : memref<16x512xbf16, #tpu.memory_space<vmem>>, vector<16x7xbf16>
    tpu.vector_store %arg30[%c0_350, %c121_351], %456 {strides = array<i32>} : memref<16x512xbf16, #tpu.memory_space<vmem>>, vector<16x7xbf16>,
    %cst_352 = arith.constant 0.000000e+00 : bf16
    %458 = vector.broadcast %cst_352 : bf16 to vector<16x7xbf16>
    %c0_353 = arith.constant 0 : index
    %c152_354 = arith.constant 152 : index
    %459 = vector.load %arg30[%c0_353, %c152_354] : memref<16x512xbf16, #tpu.memory_space<vmem>>, vector<16x7xbf16>
    tpu.vector_store %arg30[%c0_353, %c152_354], %458 {strides = array<i32>} : memref<16x512xbf16, #tpu.memory_space<vmem>>, vector<16x7xbf16>,
    %460 = arith.truncf %455 : vector<16x24xf32> to vector<16x24xbf16>
    %c0_355 = arith.constant 0 : index
    %c128_356 = arith.constant 128 : index
    %461 = vector.load %arg30[%c0_355, %c128_356] : memref<16x512xbf16, #tpu.memory_space<vmem>>, vector<16x24xbf16>
    tpu.vector_store %arg30[%c0_355, %c128_356], %460 {strides = array<i32>} : memref<16x512xbf16, #tpu.memory_space<vmem>>, vector<16x24xbf16>,
    %c0_357 = arith.constant 0 : index
    %c121_358 = arith.constant 121 : index
    %462 = vector.load %arg30[%c0_357, %c121_358] : memref<16x512xbf16, #tpu.memory_space<vmem>>, vector<16x24xbf16>
    %c0_359 = arith.constant 0 : index
    %c0_360 = arith.constant 0 : index
    %c0_361 = arith.constant 0 : index
    %463 = vector.load %arg18[%c0_359, %c0_360, %c0_361] : memref<9x16x16xbf16, #tpu.memory_space<vmem>>, vector<1x16x16xbf16>
    %464 = vector.shape_cast %463 : vector<1x16x16xbf16> to vector<16x16xbf16>
    %cst_362 = arith.constant dense<0.000000e+00> : vector<16x24xf32>
    %465 = tpu.matmul %464, %462, %cst_362 {dimension_numbers = #tpu.dot_dimension_numbers<[1], [0], [0], [1], [0, 0, 1, 1], [], []>} : vector<16x16xbf16>, vector<16x24xbf16>, vector<16x24xf32> -> vector<16x24xf32>
    %c0_363 = arith.constant 0 : index
    %c122_364 = arith.constant 122 : index
    %466 = vector.load %arg30[%c0_363, %c122_364] : memref<16x512xbf16, #tpu.memory_space<vmem>>, vector<16x24xbf16>
    %c1_365 = arith.constant 1 : index
    %c0_366 = arith.constant 0 : index
    %c0_367 = arith.constant 0 : index
    %467 = vector.load %arg18[%c1_365, %c0_366, %c0_367] : memref<9x16x16xbf16, #tpu.memory_space<vmem>>, vector<1x16x16xbf16>
    %468 = vector.shape_cast %467 : vector<1x16x16xbf16> to vector<16x16xbf16>
    %cst_368 = arith.constant dense<0.000000e+00> : vector<16x24xf32>
    %469 = tpu.matmul %468, %466, %cst_368 {dimension_numbers = #tpu.dot_dimension_numbers<[1], [0], [0], [1], [0, 0, 1, 1], [], []>} : vector<16x16xbf16>, vector<16x24xbf16>, vector<16x24xf32> -> vector<16x24xf32>
    %470 = arith.addf %465, %469 : vector<16x24xf32>
    %c0_369 = arith.constant 0 : index
    %c123_370 = arith.constant 123 : index
    %471 = vector.load %arg30[%c0_369, %c123_370] : memref<16x512xbf16, #tpu.memory_space<vmem>>, vector<16x24xbf16>
    %c2_371 = arith.constant 2 : index
    %c0_372 = arith.constant 0 : index
    %c0_373 = arith.constant 0 : index
    %472 = vector.load %arg18[%c2_371, %c0_372, %c0_373] : memref<9x16x16xbf16, #tpu.memory_space<vmem>>, vector<1x16x16xbf16>
    %473 = vector.shape_cast %472 : vector<1x16x16xbf16> to vector<16x16xbf16>
    %cst_374 = arith.constant dense<0.000000e+00> : vector<16x24xf32>
    %474 = tpu.matmul %473, %471, %cst_374 {dimension_numbers = #tpu.dot_dimension_numbers<[1], [0], [0], [1], [0, 0, 1, 1], [], []>} : vector<16x16xbf16>, vector<16x24xbf16>, vector<16x24xf32> -> vector<16x24xf32>
    %475 = arith.addf %470, %474 : vector<16x24xf32>
    %c0_375 = arith.constant 0 : index
    %c127_376 = arith.constant 127 : index
    %476 = vector.load %arg30[%c0_375, %c127_376] : memref<16x512xbf16, #tpu.memory_space<vmem>>, vector<16x24xbf16>
    %c3_377 = arith.constant 3 : index
    %c0_378 = arith.constant 0 : index
    %c0_379 = arith.constant 0 : index
    %477 = vector.load %arg18[%c3_377, %c0_378, %c0_379] : memref<9x16x16xbf16, #tpu.memory_space<vmem>>, vector<1x16x16xbf16>
    %478 = vector.shape_cast %477 : vector<1x16x16xbf16> to vector<16x16xbf16>
    %cst_380 = arith.constant dense<0.000000e+00> : vector<16x24xf32>
    %479 = tpu.matmul %478, %476, %cst_380 {dimension_numbers = #tpu.dot_dimension_numbers<[1], [0], [0], [1], [0, 0, 1, 1], [], []>} : vector<16x16xbf16>, vector<16x24xbf16>, vector<16x24xf32> -> vector<16x24xf32>
    %480 = arith.addf %475, %479 : vector<16x24xf32>
    %c0_381 = arith.constant 0 : index
    %c128_382 = arith.constant 128 : index
    %481 = vector.load %arg30[%c0_381, %c128_382] : memref<16x512xbf16, #tpu.memory_space<vmem>>, vector<16x24xbf16>
    %c4_383 = arith.constant 4 : index
    %c0_384 = arith.constant 0 : index
    %c0_385 = arith.constant 0 : index
    %482 = vector.load %arg18[%c4_383, %c0_384, %c0_385] : memref<9x16x16xbf16, #tpu.memory_space<vmem>>, vector<1x16x16xbf16>
    %483 = vector.shape_cast %482 : vector<1x16x16xbf16> to vector<16x16xbf16>
    %cst_386 = arith.constant dense<0.000000e+00> : vector<16x24xf32>
    %484 = tpu.matmul %483, %481, %cst_386 {dimension_numbers = #tpu.dot_dimension_numbers<[1], [0], [0], [1], [0, 0, 1, 1], [], []>} : vector<16x16xbf16>, vector<16x24xbf16>, vector<16x24xf32> -> vector<16x24xf32>
    %485 = arith.addf %480, %484 : vector<16x24xf32>
    %c0_387 = arith.constant 0 : index
    %c129_388 = arith.constant 129 : index
    %486 = vector.load %arg30[%c0_387, %c129_388] : memref<16x512xbf16, #tpu.memory_space<vmem>>, vector<16x24xbf16>
    %c5_389 = arith.constant 5 : index
    %c0_390 = arith.constant 0 : index
    %c0_391 = arith.constant 0 : index
    %487 = vector.load %arg18[%c5_389, %c0_390, %c0_391] : memref<9x16x16xbf16, #tpu.memory_space<vmem>>, vector<1x16x16xbf16>
    %488 = vector.shape_cast %487 : vector<1x16x16xbf16> to vector<16x16xbf16>
    %cst_392 = arith.constant dense<0.000000e+00> : vector<16x24xf32>
    %489 = tpu.matmul %488, %486, %cst_392 {dimension_numbers = #tpu.dot_dimension_numbers<[1], [0], [0], [1], [0, 0, 1, 1], [], []>} : vector<16x16xbf16>, vector<16x24xbf16>, vector<16x24xf32> -> vector<16x24xf32>
    %490 = arith.addf %485, %489 : vector<16x24xf32>
    %c0_393 = arith.constant 0 : index
    %c133_394 = arith.constant 133 : index
    %491 = vector.load %arg30[%c0_393, %c133_394] : memref<16x512xbf16, #tpu.memory_space<vmem>>, vector<16x24xbf16>
    %c6_395 = arith.constant 6 : index
    %c0_396 = arith.constant 0 : index
    %c0_397 = arith.constant 0 : index
    %492 = vector.load %arg18[%c6_395, %c0_396, %c0_397] : memref<9x16x16xbf16, #tpu.memory_space<vmem>>, vector<1x16x16xbf16>
    %493 = vector.shape_cast %492 : vector<1x16x16xbf16> to vector<16x16xbf16>
    %cst_398 = arith.constant dense<0.000000e+00> : vector<16x24xf32>
    %494 = tpu.matmul %493, %491, %cst_398 {dimension_numbers = #tpu.dot_dimension_numbers<[1], [0], [0], [1], [0, 0, 1, 1], [], []>} : vector<16x16xbf16>, vector<16x24xbf16>, vector<16x24xf32> -> vector<16x24xf32>
    %495 = arith.addf %490, %494 : vector<16x24xf32>
    %c0_399 = arith.constant 0 : index
    %c134_400 = arith.constant 134 : index
    %496 = vector.load %arg30[%c0_399, %c134_400] : memref<16x512xbf16, #tpu.memory_space<vmem>>, vector<16x24xbf16>
    %c7_401 = arith.constant 7 : index
    %c0_402 = arith.constant 0 : index
    %c0_403 = arith.constant 0 : index
    %497 = vector.load %arg18[%c7_401, %c0_402, %c0_403] : memref<9x16x16xbf16, #tpu.memory_space<vmem>>, vector<1x16x16xbf16>
    %498 = vector.shape_cast %497 : vector<1x16x16xbf16> to vector<16x16xbf16>
    %cst_404 = arith.constant dense<0.000000e+00> : vector<16x24xf32>
    %499 = tpu.matmul %498, %496, %cst_404 {dimension_numbers = #tpu.dot_dimension_numbers<[1], [0], [0], [1], [0, 0, 1, 1], [], []>} : vector<16x16xbf16>, vector<16x24xbf16>, vector<16x24xf32> -> vector<16x24xf32>
    %500 = arith.addf %495, %499 : vector<16x24xf32>
    %c0_405 = arith.constant 0 : index
    %c135_406 = arith.constant 135 : index
    %501 = vector.load %arg30[%c0_405, %c135_406] : memref<16x512xbf16, #tpu.memory_space<vmem>>, vector<16x24xbf16>
    %c8_407 = arith.constant 8 : index
    %c0_408 = arith.constant 0 : index
    %c0_409 = arith.constant 0 : index
    %502 = vector.load %arg18[%c8_407, %c0_408, %c0_409] : memref<9x16x16xbf16, #tpu.memory_space<vmem>>, vector<1x16x16xbf16>
    %503 = vector.shape_cast %502 : vector<1x16x16xbf16> to vector<16x16xbf16>
    %cst_410 = arith.constant dense<0.000000e+00> : vector<16x24xf32>
    %504 = tpu.matmul %503, %501, %cst_410 {dimension_numbers = #tpu.dot_dimension_numbers<[1], [0], [0], [1], [0, 0, 1, 1], [], []>} : vector<16x16xbf16>, vector<16x24xbf16>, vector<16x24xf32> -> vector<16x24xf32>
    %505 = arith.addf %500, %504 : vector<16x24xf32>
    %506 = vector.broadcast %2 : vector<1x24xf32> to vector<16x24xf32>
    %507 = arith.mulf %505, %506 : vector<16x24xf32>
    %cst_411 = arith.constant dense<0.000000e+00> : vector<16xf32>
    %508 = vector.multi_reduction <add>, %507, %cst_411 [1] : vector<16x24xf32> to vector<16xf32>
    %509 = vector.shape_cast %508 : vector<16xf32> to vector<16x1xf32>
    %510 = arith.mulf %507, %507 : vector<16x24xf32>
    %cst_412 = arith.constant dense<0.000000e+00> : vector<16xf32>
    %511 = vector.multi_reduction <add>, %510, %cst_412 [1] : vector<16x24xf32> to vector<16xf32>
    %512 = vector.shape_cast %511 : vector<16xf32> to vector<16x1xf32>
    %cst_413 = arith.constant 6.250000e-02 : f32
    %513 = vector.broadcast %cst_413 : f32 to vector<16x1xf32>
    %514 = arith.mulf %509, %513 : vector<16x1xf32>
    %cst_414 = arith.constant 6.250000e-02 : f32
    %515 = vector.broadcast %cst_414 : f32 to vector<16x1xf32>
    %516 = arith.mulf %512, %515 : vector<16x1xf32>
    %517 = arith.mulf %514, %514 : vector<16x1xf32>
    %518 = arith.subf %516, %517 : vector<16x1xf32>
    %519 = vector.broadcast %514 : vector<16x1xf32> to vector<16x24xf32>
    %520 = arith.subf %505, %519 : vector<16x24xf32>
    %521 = vector.broadcast %2 : vector<1x24xf32> to vector<16x24xf32>
    %522 = arith.mulf %520, %521 : vector<16x24xf32>
    %cst_415 = arith.constant 9.99999974E-6 : f32
    %523 = vector.broadcast %cst_415 : f32 to vector<16x1xf32>
    %524 = arith.addf %518, %523 : vector<16x1xf32>
    %525 = math.rsqrt %524 : vector<16x1xf32>
    %526 = vector.broadcast %525 : vector<16x1xf32> to vector<16x24xf32>
    %527 = arith.mulf %522, %526 : vector<16x24xf32>
    %cst_416 = arith.constant 0.000000e+00 : f32
    %528 = vector.broadcast %cst_416 : f32 to vector<16x24xf32>
    %529 = arith.cmpf oge, %527, %528 : vector<16x24xf32>
    %cst_417 = arith.constant 0.00999999977 : f32
    %530 = vector.broadcast %cst_417 : f32 to vector<16x24xf32>
    %531 = arith.mulf %530, %527 : vector<16x24xf32>
    %532 = arith.select %529, %527, %531 : vector<16x24xi1>, vector<16x24xf32>
    %533 = arith.truncf %532 : vector<16x24xf32> to vector<16x24xbf16>
    %c0_418 = arith.constant 0 : index
    %c0_419 = arith.constant 0 : index
    %c0_420 = arith.constant 0 : index
    %534 = vector.load %arg22[%c0_418, %c0_419, %c0_420] : memref<4x8x16xbf16, #tpu.memory_space<vmem>>, vector<1x8x16xbf16>
    %535 = vector.shape_cast %534 : vector<1x8x16xbf16> to vector<8x16xbf16>
    %cst_421 = arith.constant dense<0.000000e+00> : vector<8x24xf32>
    %536 = tpu.matmul %535, %533, %cst_421 {dimension_numbers = #tpu.dot_dimension_numbers<[1], [0], [0], [1], [0, 0, 1, 1], [], []>} : vector<8x16xbf16>, vector<16x24xbf16>, vector<8x24xf32> -> vector<8x24xf32>
    %537 = arith.truncf %536 : vector<8x24xf32> to vector<8x24xbf16>
    %c0_422 = arith.constant 0 : index
    %c0_423 = arith.constant 0 : index
    %c0_424 = arith.constant 0 : index
    %538 = vector.load %arg20[%c0_422, %c0_423, %c0_424] : memref<4x24x80xbf16, #tpu.memory_space<vmem>>, vector<1x24x80xbf16>
    %539 = vector.shape_cast %538 : vector<1x24x80xbf16> to vector<24x80xbf16>
    %cst_425 = arith.constant dense<0.000000e+00> : vector<8x80xf32>
    %540 = tpu.matmul %537, %539, %cst_425 {dimension_numbers = #tpu.dot_dimension_numbers<[1], [0], [0], [1], [0, 0, 1, 1], [], []>} : vector<8x24xbf16>, vector<24x80xbf16>, vector<8x80xf32> -> vector<8x80xf32>
    %c1_426 = arith.constant 1 : index
    %c0_427 = arith.constant 0 : index
    %c0_428 = arith.constant 0 : index
    %541 = vector.load %arg22[%c1_426, %c0_427, %c0_428] : memref<4x8x16xbf16, #tpu.memory_space<vmem>>, vector<1x8x16xbf16>
    %542 = vector.shape_cast %541 : vector<1x8x16xbf16> to vector<8x16xbf16>
    %cst_429 = arith.constant dense<0.000000e+00> : vector<8x24xf32>
    %543 = tpu.matmul %542, %533, %cst_429 {dimension_numbers = #tpu.dot_dimension_numbers<[1], [0], [0], [1], [0, 0, 1, 1], [], []>} : vector<8x16xbf16>, vector<16x24xbf16>, vector<8x24xf32> -> vector<8x24xf32>
    %544 = arith.truncf %543 : vector<8x24xf32> to vector<8x24xbf16>
    %c1_430 = arith.constant 1 : index
    %c0_431 = arith.constant 0 : index
    %c0_432 = arith.constant 0 : index
    %545 = vector.load %arg20[%c1_430, %c0_431, %c0_432] : memref<4x24x80xbf16, #tpu.memory_space<vmem>>, vector<1x24x80xbf16>
    %546 = vector.shape_cast %545 : vector<1x24x80xbf16> to vector<24x80xbf16>
    %cst_433 = arith.constant dense<0.000000e+00> : vector<8x80xf32>
    %547 = tpu.matmul %544, %546, %cst_433 {dimension_numbers = #tpu.dot_dimension_numbers<[1], [0], [0], [1], [0, 0, 1, 1], [], []>} : vector<8x24xbf16>, vector<24x80xbf16>, vector<8x80xf32> -> vector<8x80xf32>
    %548 = arith.addf %540, %547 : vector<8x80xf32>
    %c2_434 = arith.constant 2 : index
    %c0_435 = arith.constant 0 : index
    %c0_436 = arith.constant 0 : index
    %549 = vector.load %arg22[%c2_434, %c0_435, %c0_436] : memref<4x8x16xbf16, #tpu.memory_space<vmem>>, vector<1x8x16xbf16>
    %550 = vector.shape_cast %549 : vector<1x8x16xbf16> to vector<8x16xbf16>
    %cst_437 = arith.constant dense<0.000000e+00> : vector<8x24xf32>
    %551 = tpu.matmul %550, %533, %cst_437 {dimension_numbers = #tpu.dot_dimension_numbers<[1], [0], [0], [1], [0, 0, 1, 1], [], []>} : vector<8x16xbf16>, vector<16x24xbf16>, vector<8x24xf32> -> vector<8x24xf32>
    %552 = arith.truncf %551 : vector<8x24xf32> to vector<8x24xbf16>
    %c2_438 = arith.constant 2 : index
    %c0_439 = arith.constant 0 : index
    %c0_440 = arith.constant 0 : index
    %553 = vector.load %arg20[%c2_438, %c0_439, %c0_440] : memref<4x24x80xbf16, #tpu.memory_space<vmem>>, vector<1x24x80xbf16>
    %554 = vector.shape_cast %553 : vector<1x24x80xbf16> to vector<24x80xbf16>
    %cst_441 = arith.constant dense<0.000000e+00> : vector<8x80xf32>
    %555 = tpu.matmul %552, %554, %cst_441 {dimension_numbers = #tpu.dot_dimension_numbers<[1], [0], [0], [1], [0, 0, 1, 1], [], []>} : vector<8x24xbf16>, vector<24x80xbf16>, vector<8x80xf32> -> vector<8x80xf32>
    %556 = arith.addf %548, %555 : vector<8x80xf32>
    %c3_442 = arith.constant 3 : index
    %c0_443 = arith.constant 0 : index
    %c0_444 = arith.constant 0 : index
    %557 = vector.load %arg22[%c3_442, %c0_443, %c0_444] : memref<4x8x16xbf16, #tpu.memory_space<vmem>>, vector<1x8x16xbf16>
    %558 = vector.shape_cast %557 : vector<1x8x16xbf16> to vector<8x16xbf16>
    %cst_445 = arith.constant dense<0.000000e+00> : vector<8x24xf32>
    %559 = tpu.matmul %558, %533, %cst_445 {dimension_numbers = #tpu.dot_dimension_numbers<[1], [0], [0], [1], [0, 0, 1, 1], [], []>} : vector<8x16xbf16>, vector<16x24xbf16>, vector<8x24xf32> -> vector<8x24xf32>
    %560 = arith.truncf %559 : vector<8x24xf32> to vector<8x24xbf16>
    %c3_446 = arith.constant 3 : index
    %c0_447 = arith.constant 0 : index
    %c0_448 = arith.constant 0 : index
    %561 = vector.load %arg20[%c3_446, %c0_447, %c0_448] : memref<4x24x80xbf16, #tpu.memory_space<vmem>>, vector<1x24x80xbf16>
    %562 = vector.shape_cast %561 : vector<1x24x80xbf16> to vector<24x80xbf16>
    %cst_449 = arith.constant dense<0.000000e+00> : vector<8x80xf32>
    %563 = tpu.matmul %560, %562, %cst_449 {dimension_numbers = #tpu.dot_dimension_numbers<[1], [0], [0], [1], [0, 0, 1, 1], [], []>} : vector<8x24xbf16>, vector<24x80xbf16>, vector<8x80xf32> -> vector<8x80xf32>
    %564 = arith.addf %556, %563 : vector<8x80xf32>
    %c0_450 = arith.constant 0 : index
    %c0_451 = arith.constant 0 : index
    %565 = vector.load %arg21[%c0_450, %c0_451] : memref<8x1xf32, #tpu.memory_space<vmem>>, vector<8x1xf32>
    %566 = vector.broadcast %565 : vector<8x1xf32> to vector<8x80xf32>
    %567 = arith.addf %564, %566 : vector<8x80xf32>
    %568 = vector.broadcast %1 : vector<1x80xf32> to vector<8x80xf32>
    %569 = arith.mulf %567, %568 : vector<8x80xf32>
    %cst_452 = arith.constant 0.000000e+00 : bf16
    %570 = vector.broadcast %cst_452 : bf16 to vector<16x11xbf16>
    %c0_453 = arith.constant 0 : index
    %c117_454 = arith.constant 117 : index
    %571 = vector.load %arg30[%c0_453, %c117_454] : memref<16x512xbf16, #tpu.memory_space<vmem>>, vector<16x11xbf16>
    tpu.vector_store %arg30[%c0_453, %c117_454], %570 {strides = array<i32>} : memref<16x512xbf16, #tpu.memory_space<vmem>>, vector<16x11xbf16>,
    %cst_455 = arith.constant 0.000000e+00 : bf16
    %572 = vector.broadcast %cst_455 : bf16 to vector<16x11xbf16>
    %c0_456 = arith.constant 0 : index
    %c208_457 = arith.constant 208 : index
    %573 = vector.load %arg30[%c0_456, %c208_457] : memref<16x512xbf16, #tpu.memory_space<vmem>>, vector<16x11xbf16>
    tpu.vector_store %arg30[%c0_456, %c208_457], %572 {strides = array<i32>} : memref<16x512xbf16, #tpu.memory_space<vmem>>, vector<16x11xbf16>,
    %574 = arith.truncf %363 : vector<8x80xf32> to vector<8x80xbf16>
    %c0_458 = arith.constant 0 : index
    %c128_459 = arith.constant 128 : index
    %575 = vector.load %arg30[%c0_458, %c128_459] : memref<16x512xbf16, #tpu.memory_space<vmem>>, vector<8x80xbf16>
    tpu.vector_store %arg30[%c0_458, %c128_459], %574 {strides = array<i32>} : memref<16x512xbf16, #tpu.memory_space<vmem>>, vector<8x80xbf16>,
    %576 = arith.truncf %569 : vector<8x80xf32> to vector<8x80xbf16>
    %c8_460 = arith.constant 8 : index
    %c128_461 = arith.constant 128 : index
    %577 = vector.load %arg30[%c8_460, %c128_461] : memref<16x512xbf16, #tpu.memory_space<vmem>>, vector<8x80xbf16>
    tpu.vector_store %arg30[%c8_460, %c128_461], %576 {strides = array<i32>} : memref<16x512xbf16, #tpu.memory_space<vmem>>, vector<8x80xbf16>,
    %c0_462 = arith.constant 0 : index
    %c117_463 = arith.constant 117 : index
    %578 = vector.load %arg30[%c0_462, %c117_463] : memref<16x512xbf16, #tpu.memory_space<vmem>>, vector<16x80xbf16>
    %c0_464 = arith.constant 0 : index
    %c0_465 = arith.constant 0 : index
    %c0_466 = arith.constant 0 : index
    %579 = vector.load %arg13[%c0_464, %c0_465, %c0_466] : memref<9x8x16xbf16, #tpu.memory_space<vmem>>, vector<1x8x16xbf16>
    %580 = vector.shape_cast %579 : vector<1x8x16xbf16> to vector<8x16xbf16>
    %cst_467 = arith.constant dense<0.000000e+00> : vector<8x80xf32>
    %581 = tpu.matmul %580, %578, %cst_467 {dimension_numbers = #tpu.dot_dimension_numbers<[1], [0], [0], [1], [0, 0, 1, 1], [], []>} : vector<8x16xbf16>, vector<16x80xbf16>, vector<8x80xf32> -> vector<8x80xf32>
    %c0_468 = arith.constant 0 : index
    %c118_469 = arith.constant 118 : index
    %582 = vector.load %arg30[%c0_468, %c118_469] : memref<16x512xbf16, #tpu.memory_space<vmem>>, vector<16x80xbf16>
    %c1_470 = arith.constant 1 : index
    %c0_471 = arith.constant 0 : index
    %c0_472 = arith.constant 0 : index
    %583 = vector.load %arg13[%c1_470, %c0_471, %c0_472] : memref<9x8x16xbf16, #tpu.memory_space<vmem>>, vector<1x8x16xbf16>
    %584 = vector.shape_cast %583 : vector<1x8x16xbf16> to vector<8x16xbf16>
    %cst_473 = arith.constant dense<0.000000e+00> : vector<8x80xf32>
    %585 = tpu.matmul %584, %582, %cst_473 {dimension_numbers = #tpu.dot_dimension_numbers<[1], [0], [0], [1], [0, 0, 1, 1], [], []>} : vector<8x16xbf16>, vector<16x80xbf16>, vector<8x80xf32> -> vector<8x80xf32>
    %586 = arith.addf %581, %585 : vector<8x80xf32>
    %c0_474 = arith.constant 0 : index
    %c119_475 = arith.constant 119 : index
    %587 = vector.load %arg30[%c0_474, %c119_475] : memref<16x512xbf16, #tpu.memory_space<vmem>>, vector<16x80xbf16>
    %c2_476 = arith.constant 2 : index
    %c0_477 = arith.constant 0 : index
    %c0_478 = arith.constant 0 : index
    %588 = vector.load %arg13[%c2_476, %c0_477, %c0_478] : memref<9x8x16xbf16, #tpu.memory_space<vmem>>, vector<1x8x16xbf16>
    %589 = vector.shape_cast %588 : vector<1x8x16xbf16> to vector<8x16xbf16>
    %cst_479 = arith.constant dense<0.000000e+00> : vector<8x80xf32>
    %590 = tpu.matmul %589, %587, %cst_479 {dimension_numbers = #tpu.dot_dimension_numbers<[1], [0], [0], [1], [0, 0, 1, 1], [], []>} : vector<8x16xbf16>, vector<16x80xbf16>, vector<8x80xf32> -> vector<8x80xf32>
    %591 = arith.addf %586, %590 : vector<8x80xf32>
    %c0_480 = arith.constant 0 : index
    %c127_481 = arith.constant 127 : index
    %592 = vector.load %arg30[%c0_480, %c127_481] : memref<16x512xbf16, #tpu.memory_space<vmem>>, vector<16x80xbf16>
    %c3_482 = arith.constant 3 : index
    %c0_483 = arith.constant 0 : index
    %c0_484 = arith.constant 0 : index
    %593 = vector.load %arg13[%c3_482, %c0_483, %c0_484] : memref<9x8x16xbf16, #tpu.memory_space<vmem>>, vector<1x8x16xbf16>
    %594 = vector.shape_cast %593 : vector<1x8x16xbf16> to vector<8x16xbf16>
    %cst_485 = arith.constant dense<0.000000e+00> : vector<8x80xf32>
    %595 = tpu.matmul %594, %592, %cst_485 {dimension_numbers = #tpu.dot_dimension_numbers<[1], [0], [0], [1], [0, 0, 1, 1], [], []>} : vector<8x16xbf16>, vector<16x80xbf16>, vector<8x80xf32> -> vector<8x80xf32>
    %596 = arith.addf %591, %595 : vector<8x80xf32>
    %c0_486 = arith.constant 0 : index
    %c128_487 = arith.constant 128 : index
    %597 = vector.load %arg30[%c0_486, %c128_487] : memref<16x512xbf16, #tpu.memory_space<vmem>>, vector<16x80xbf16>
    %c4_488 = arith.constant 4 : index
    %c0_489 = arith.constant 0 : index
    %c0_490 = arith.constant 0 : index
    %598 = vector.load %arg13[%c4_488, %c0_489, %c0_490] : memref<9x8x16xbf16, #tpu.memory_space<vmem>>, vector<1x8x16xbf16>
    %599 = vector.shape_cast %598 : vector<1x8x16xbf16> to vector<8x16xbf16>
    %cst_491 = arith.constant dense<0.000000e+00> : vector<8x80xf32>
    %600 = tpu.matmul %599, %597, %cst_491 {dimension_numbers = #tpu.dot_dimension_numbers<[1], [0], [0], [1], [0, 0, 1, 1], [], []>} : vector<8x16xbf16>, vector<16x80xbf16>, vector<8x80xf32> -> vector<8x80xf32>
    %601 = arith.addf %596, %600 : vector<8x80xf32>
    %c0_492 = arith.constant 0 : index
    %c129_493 = arith.constant 129 : index
    %602 = vector.load %arg30[%c0_492, %c129_493] : memref<16x512xbf16, #tpu.memory_space<vmem>>, vector<16x80xbf16>
    %c5_494 = arith.constant 5 : index
    %c0_495 = arith.constant 0 : index
    %c0_496 = arith.constant 0 : index
    %603 = vector.load %arg13[%c5_494, %c0_495, %c0_496] : memref<9x8x16xbf16, #tpu.memory_space<vmem>>, vector<1x8x16xbf16>
    %604 = vector.shape_cast %603 : vector<1x8x16xbf16> to vector<8x16xbf16>
    %cst_497 = arith.constant dense<0.000000e+00> : vector<8x80xf32>
    %605 = tpu.matmul %604, %602, %cst_497 {dimension_numbers = #tpu.dot_dimension_numbers<[1], [0], [0], [1], [0, 0, 1, 1], [], []>} : vector<8x16xbf16>, vector<16x80xbf16>, vector<8x80xf32> -> vector<8x80xf32>
    %606 = arith.addf %601, %605 : vector<8x80xf32>
    %c0_498 = arith.constant 0 : index
    %c137_499 = arith.constant 137 : index
    %607 = vector.load %arg30[%c0_498, %c137_499] : memref<16x512xbf16, #tpu.memory_space<vmem>>, vector<16x80xbf16>
    %c6_500 = arith.constant 6 : index
    %c0_501 = arith.constant 0 : index
    %c0_502 = arith.constant 0 : index
    %608 = vector.load %arg13[%c6_500, %c0_501, %c0_502] : memref<9x8x16xbf16, #tpu.memory_space<vmem>>, vector<1x8x16xbf16>
    %609 = vector.shape_cast %608 : vector<1x8x16xbf16> to vector<8x16xbf16>
    %cst_503 = arith.constant dense<0.000000e+00> : vector<8x80xf32>
    %610 = tpu.matmul %609, %607, %cst_503 {dimension_numbers = #tpu.dot_dimension_numbers<[1], [0], [0], [1], [0, 0, 1, 1], [], []>} : vector<8x16xbf16>, vector<16x80xbf16>, vector<8x80xf32> -> vector<8x80xf32>
    %611 = arith.addf %606, %610 : vector<8x80xf32>
    %c0_504 = arith.constant 0 : index
    %c138_505 = arith.constant 138 : index
    %612 = vector.load %arg30[%c0_504, %c138_505] : memref<16x512xbf16, #tpu.memory_space<vmem>>, vector<16x80xbf16>
    %c7_506 = arith.constant 7 : index
    %c0_507 = arith.constant 0 : index
    %c0_508 = arith.constant 0 : index
    %613 = vector.load %arg13[%c7_506, %c0_507, %c0_508] : memref<9x8x16xbf16, #tpu.memory_space<vmem>>, vector<1x8x16xbf16>
    %614 = vector.shape_cast %613 : vector<1x8x16xbf16> to vector<8x16xbf16>
    %cst_509 = arith.constant dense<0.000000e+00> : vector<8x80xf32>
    %615 = tpu.matmul %614, %612, %cst_509 {dimension_numbers = #tpu.dot_dimension_numbers<[1], [0], [0], [1], [0, 0, 1, 1], [], []>} : vector<8x16xbf16>, vector<16x80xbf16>, vector<8x80xf32> -> vector<8x80xf32>
    %616 = arith.addf %611, %615 : vector<8x80xf32>
    %c0_510 = arith.constant 0 : index
    %c139_511 = arith.constant 139 : index
    %617 = vector.load %arg30[%c0_510, %c139_511] : memref<16x512xbf16, #tpu.memory_space<vmem>>, vector<16x80xbf16>
    %c8_512 = arith.constant 8 : index
    %c0_513 = arith.constant 0 : index
    %c0_514 = arith.constant 0 : index
    %618 = vector.load %arg13[%c8_512, %c0_513, %c0_514] : memref<9x8x16xbf16, #tpu.memory_space<vmem>>, vector<1x8x16xbf16>
    %619 = vector.shape_cast %618 : vector<1x8x16xbf16> to vector<8x16xbf16>
    %cst_515 = arith.constant dense<0.000000e+00> : vector<8x80xf32>
    %620 = tpu.matmul %619, %617, %cst_515 {dimension_numbers = #tpu.dot_dimension_numbers<[1], [0], [0], [1], [0, 0, 1, 1], [], []>} : vector<8x16xbf16>, vector<16x80xbf16>, vector<8x80xf32> -> vector<8x80xf32>
    %621 = arith.addf %616, %620 : vector<8x80xf32>
    %c0_516 = arith.constant 0 : index
    %c0_517 = arith.constant 0 : index
    %622 = vector.load %arg12[%c0_516, %c0_517] : memref<8x1xf32, #tpu.memory_space<vmem>>, vector<8x1xf32>
    %623 = vector.broadcast %622 : vector<8x1xf32> to vector<8x80xf32>
    %624 = arith.addf %621, %623 : vector<8x80xf32>
    %625 = vector.broadcast %1 : vector<1x80xf32> to vector<8x80xf32>
    %626 = arith.mulf %624, %625 : vector<8x80xf32>
    %cst_518 = arith.constant 0.000000e+00 : f32
    %627 = vector.broadcast %cst_518 : f32 to vector<8x80xf32>
    %628 = arith.cmpf oge, %626, %627 : vector<8x80xf32>
    %cst_519 = arith.constant 0.00999999977 : f32
    %629 = vector.broadcast %cst_519 : f32 to vector<8x80xf32>
    %630 = arith.mulf %629, %626 : vector<8x80xf32>
    %631 = arith.select %628, %626, %630 : vector<8x80xi1>, vector<8x80xf32>
    %cst_520 = arith.constant 0.000000e+00 : bf16
    %632 = vector.broadcast %cst_520 : bf16 to vector<8x11xbf16>
    %c0_521 = arith.constant 0 : index
    %c117_522 = arith.constant 117 : index
    %633 = vector.load %arg30[%c0_521, %c117_522] : memref<16x512xbf16, #tpu.memory_space<vmem>>, vector<8x11xbf16>
    tpu.vector_store %arg30[%c0_521, %c117_522], %632 {strides = array<i32>} : memref<16x512xbf16, #tpu.memory_space<vmem>>, vector<8x11xbf16>,
    %cst_523 = arith.constant 0.000000e+00 : bf16
    %634 = vector.broadcast %cst_523 : bf16 to vector<8x11xbf16>
    %c0_524 = arith.constant 0 : index
    %c208_525 = arith.constant 208 : index
    %635 = vector.load %arg30[%c0_524, %c208_525] : memref<16x512xbf16, #tpu.memory_space<vmem>>, vector<8x11xbf16>
    tpu.vector_store %arg30[%c0_524, %c208_525], %634 {strides = array<i32>} : memref<16x512xbf16, #tpu.memory_space<vmem>>, vector<8x11xbf16>,
    %636 = arith.truncf %631 : vector<8x80xf32> to vector<8x80xbf16>
    %c0_526 = arith.constant 0 : index
    %c128_527 = arith.constant 128 : index
    %637 = vector.load %arg30[%c0_526, %c128_527] : memref<16x512xbf16, #tpu.memory_space<vmem>>, vector<8x80xbf16>
    tpu.vector_store %arg30[%c0_526, %c128_527], %636 {strides = array<i32>} : memref<16x512xbf16, #tpu.memory_space<vmem>>, vector<8x80xbf16>,
    %c0_528 = arith.constant 0 : index
    %c117_529 = arith.constant 117 : index
    %638 = vector.load %arg30[%c0_528, %c117_529] : memref<16x512xbf16, #tpu.memory_space<vmem>>, vector<8x80xbf16>
    %c0_530 = arith.constant 0 : index
    %c0_531 = arith.constant 0 : index
    %c0_532 = arith.constant 0 : index
    %639 = vector.load %arg15[%c0_530, %c0_531, %c0_532] : memref<9x8x8xbf16, #tpu.memory_space<vmem>>, vector<1x8x8xbf16>
    %640 = vector.shape_cast %639 : vector<1x8x8xbf16> to vector<8x8xbf16>
    %cst_533 = arith.constant dense<0.000000e+00> : vector<8x80xf32>
    %641 = tpu.matmul %640, %638, %cst_533 {dimension_numbers = #tpu.dot_dimension_numbers<[1], [0], [0], [1], [0, 0, 1, 1], [], []>} : vector<8x8xbf16>, vector<8x80xbf16>, vector<8x80xf32> -> vector<8x80xf32>
    %c0_534 = arith.constant 0 : index
    %c118_535 = arith.constant 118 : index
    %642 = vector.load %arg30[%c0_534, %c118_535] : memref<16x512xbf16, #tpu.memory_space<vmem>>, vector<8x80xbf16>
    %c1_536 = arith.constant 1 : index
    %c0_537 = arith.constant 0 : index
    %c0_538 = arith.constant 0 : index
    %643 = vector.load %arg15[%c1_536, %c0_537, %c0_538] : memref<9x8x8xbf16, #tpu.memory_space<vmem>>, vector<1x8x8xbf16>
    %644 = vector.shape_cast %643 : vector<1x8x8xbf16> to vector<8x8xbf16>
    %cst_539 = arith.constant dense<0.000000e+00> : vector<8x80xf32>
    %645 = tpu.matmul %644, %642, %cst_539 {dimension_numbers = #tpu.dot_dimension_numbers<[1], [0], [0], [1], [0, 0, 1, 1], [], []>} : vector<8x8xbf16>, vector<8x80xbf16>, vector<8x80xf32> -> vector<8x80xf32>
    %646 = arith.addf %641, %645 : vector<8x80xf32>
    %c0_540 = arith.constant 0 : index
    %c119_541 = arith.constant 119 : index
    %647 = vector.load %arg30[%c0_540, %c119_541] : memref<16x512xbf16, #tpu.memory_space<vmem>>, vector<8x80xbf16>
    %c2_542 = arith.constant 2 : index
    %c0_543 = arith.constant 0 : index
    %c0_544 = arith.constant 0 : index
    %648 = vector.load %arg15[%c2_542, %c0_543, %c0_544] : memref<9x8x8xbf16, #tpu.memory_space<vmem>>, vector<1x8x8xbf16>
    %649 = vector.shape_cast %648 : vector<1x8x8xbf16> to vector<8x8xbf16>
    %cst_545 = arith.constant dense<0.000000e+00> : vector<8x80xf32>
    %650 = tpu.matmul %649, %647, %cst_545 {dimension_numbers = #tpu.dot_dimension_numbers<[1], [0], [0], [1], [0, 0, 1, 1], [], []>} : vector<8x8xbf16>, vector<8x80xbf16>, vector<8x80xf32> -> vector<8x80xf32>
    %651 = arith.addf %646, %650 : vector<8x80xf32>
    %c0_546 = arith.constant 0 : index
    %c127_547 = arith.constant 127 : index
    %652 = vector.load %arg30[%c0_546, %c127_547] : memref<16x512xbf16, #tpu.memory_space<vmem>>, vector<8x80xbf16>
    %c3_548 = arith.constant 3 : index
    %c0_549 = arith.constant 0 : index
    %c0_550 = arith.constant 0 : index
    %653 = vector.load %arg15[%c3_548, %c0_549, %c0_550] : memref<9x8x8xbf16, #tpu.memory_space<vmem>>, vector<1x8x8xbf16>
    %654 = vector.shape_cast %653 : vector<1x8x8xbf16> to vector<8x8xbf16>
    %cst_551 = arith.constant dense<0.000000e+00> : vector<8x80xf32>
    %655 = tpu.matmul %654, %652, %cst_551 {dimension_numbers = #tpu.dot_dimension_numbers<[1], [0], [0], [1], [0, 0, 1, 1], [], []>} : vector<8x8xbf16>, vector<8x80xbf16>, vector<8x80xf32> -> vector<8x80xf32>
    %656 = arith.addf %651, %655 : vector<8x80xf32>
    %c0_552 = arith.constant 0 : index
    %c128_553 = arith.constant 128 : index
    %657 = vector.load %arg30[%c0_552, %c128_553] : memref<16x512xbf16, #tpu.memory_space<vmem>>, vector<8x80xbf16>
    %c4_554 = arith.constant 4 : index
    %c0_555 = arith.constant 0 : index
    %c0_556 = arith.constant 0 : index
    %658 = vector.load %arg15[%c4_554, %c0_555, %c0_556] : memref<9x8x8xbf16, #tpu.memory_space<vmem>>, vector<1x8x8xbf16>
    %659 = vector.shape_cast %658 : vector<1x8x8xbf16> to vector<8x8xbf16>
    %cst_557 = arith.constant dense<0.000000e+00> : vector<8x80xf32>
    %660 = tpu.matmul %659, %657, %cst_557 {dimension_numbers = #tpu.dot_dimension_numbers<[1], [0], [0], [1], [0, 0, 1, 1], [], []>} : vector<8x8xbf16>, vector<8x80xbf16>, vector<8x80xf32> -> vector<8x80xf32>
    %661 = arith.addf %656, %660 : vector<8x80xf32>
    %c0_558 = arith.constant 0 : index
    %c129_559 = arith.constant 129 : index
    %662 = vector.load %arg30[%c0_558, %c129_559] : memref<16x512xbf16, #tpu.memory_space<vmem>>, vector<8x80xbf16>
    %c5_560 = arith.constant 5 : index
    %c0_561 = arith.constant 0 : index
    %c0_562 = arith.constant 0 : index
    %663 = vector.load %arg15[%c5_560, %c0_561, %c0_562] : memref<9x8x8xbf16, #tpu.memory_space<vmem>>, vector<1x8x8xbf16>
    %664 = vector.shape_cast %663 : vector<1x8x8xbf16> to vector<8x8xbf16>
    %cst_563 = arith.constant dense<0.000000e+00> : vector<8x80xf32>
    %665 = tpu.matmul %664, %662, %cst_563 {dimension_numbers = #tpu.dot_dimension_numbers<[1], [0], [0], [1], [0, 0, 1, 1], [], []>} : vector<8x8xbf16>, vector<8x80xbf16>, vector<8x80xf32> -> vector<8x80xf32>
    %666 = arith.addf %661, %665 : vector<8x80xf32>
    %c0_564 = arith.constant 0 : index
    %c137_565 = arith.constant 137 : index
    %667 = vector.load %arg30[%c0_564, %c137_565] : memref<16x512xbf16, #tpu.memory_space<vmem>>, vector<8x80xbf16>
    %c6_566 = arith.constant 6 : index
    %c0_567 = arith.constant 0 : index
    %c0_568 = arith.constant 0 : index
    %668 = vector.load %arg15[%c6_566, %c0_567, %c0_568] : memref<9x8x8xbf16, #tpu.memory_space<vmem>>, vector<1x8x8xbf16>
    %669 = vector.shape_cast %668 : vector<1x8x8xbf16> to vector<8x8xbf16>
    %cst_569 = arith.constant dense<0.000000e+00> : vector<8x80xf32>
    %670 = tpu.matmul %669, %667, %cst_569 {dimension_numbers = #tpu.dot_dimension_numbers<[1], [0], [0], [1], [0, 0, 1, 1], [], []>} : vector<8x8xbf16>, vector<8x80xbf16>, vector<8x80xf32> -> vector<8x80xf32>
    %671 = arith.addf %666, %670 : vector<8x80xf32>
    %c0_570 = arith.constant 0 : index
    %c138_571 = arith.constant 138 : index
    %672 = vector.load %arg30[%c0_570, %c138_571] : memref<16x512xbf16, #tpu.memory_space<vmem>>, vector<8x80xbf16>
    %c7_572 = arith.constant 7 : index
    %c0_573 = arith.constant 0 : index
    %c0_574 = arith.constant 0 : index
    %673 = vector.load %arg15[%c7_572, %c0_573, %c0_574] : memref<9x8x8xbf16, #tpu.memory_space<vmem>>, vector<1x8x8xbf16>
    %674 = vector.shape_cast %673 : vector<1x8x8xbf16> to vector<8x8xbf16>
    %cst_575 = arith.constant dense<0.000000e+00> : vector<8x80xf32>
    %675 = tpu.matmul %674, %672, %cst_575 {dimension_numbers = #tpu.dot_dimension_numbers<[1], [0], [0], [1], [0, 0, 1, 1], [], []>} : vector<8x8xbf16>, vector<8x80xbf16>, vector<8x80xf32> -> vector<8x80xf32>
    %676 = arith.addf %671, %675 : vector<8x80xf32>
    %c0_576 = arith.constant 0 : index
    %c139_577 = arith.constant 139 : index
    %677 = vector.load %arg30[%c0_576, %c139_577] : memref<16x512xbf16, #tpu.memory_space<vmem>>, vector<8x80xbf16>
    %c8_578 = arith.constant 8 : index
    %c0_579 = arith.constant 0 : index
    %c0_580 = arith.constant 0 : index
    %678 = vector.load %arg15[%c8_578, %c0_579, %c0_580] : memref<9x8x8xbf16, #tpu.memory_space<vmem>>, vector<1x8x8xbf16>
    %679 = vector.shape_cast %678 : vector<1x8x8xbf16> to vector<8x8xbf16>
    %cst_581 = arith.constant dense<0.000000e+00> : vector<8x80xf32>
    %680 = tpu.matmul %679, %677, %cst_581 {dimension_numbers = #tpu.dot_dimension_numbers<[1], [0], [0], [1], [0, 0, 1, 1], [], []>} : vector<8x8xbf16>, vector<8x80xbf16>, vector<8x80xf32> -> vector<8x80xf32>
    %681 = arith.addf %676, %680 : vector<8x80xf32>
    %c0_582 = arith.constant 0 : index
    %c0_583 = arith.constant 0 : index
    %682 = vector.load %arg14[%c0_582, %c0_583] : memref<8x1xf32, #tpu.memory_space<vmem>>, vector<8x1xf32>
    %683 = vector.broadcast %682 : vector<8x1xf32> to vector<8x80xf32>
    %684 = arith.addf %681, %683 : vector<8x80xf32>
    %685 = vector.broadcast %1 : vector<1x80xf32> to vector<8x80xf32>
    %686 = arith.mulf %684, %685 : vector<8x80xf32>
    %cst_584 = arith.constant 0.000000e+00 : f32
    %687 = vector.broadcast %cst_584 : f32 to vector<8x80xf32>
    %688 = arith.cmpf oge, %686, %687 : vector<8x80xf32>
    %cst_585 = arith.constant 0.00999999977 : f32
    %689 = vector.broadcast %cst_585 : f32 to vector<8x80xf32>
    %690 = arith.mulf %689, %686 : vector<8x80xf32>
    %691 = arith.select %688, %686, %690 : vector<8x80xi1>, vector<8x80xf32>
    %692 = arith.truncf %691 : vector<8x80xf32> to vector<8x80xbf16>
    %c0_586 = arith.constant 0 : index
    %c0_587 = arith.constant 0 : index
    %c0_588 = arith.constant 0 : index
    %693 = vector.load %arg25[%c0_586, %c0_587, %c0_588] : memref<4x4x8xbf16, #tpu.memory_space<vmem>>, vector<1x4x8xbf16>
    %694 = vector.shape_cast %693 : vector<1x4x8xbf16> to vector<4x8xbf16>
    %cst_589 = arith.constant dense<0.000000e+00> : vector<4x80xf32>
    %695 = tpu.matmul %694, %692, %cst_589 {dimension_numbers = #tpu.dot_dimension_numbers<[1], [0], [0], [1], [0, 0, 1, 1], [], []>} : vector<4x8xbf16>, vector<8x80xbf16>, vector<4x80xf32> -> vector<4x80xf32>
    %696 = arith.truncf %695 : vector<4x80xf32> to vector<4x80xbf16>
    %c0_590 = arith.constant 0 : index
    %c0_591 = arith.constant 0 : index
    %c0_592 = arith.constant 0 : index
    %697 = vector.load %arg23[%c0_590, %c0_591, %c0_592] : memref<4x80x288xbf16, #tpu.memory_space<vmem>>, vector<1x80x288xbf16>
    %698 = vector.shape_cast %697 : vector<1x80x288xbf16> to vector<80x288xbf16>
    %cst_593 = arith.constant dense<0.000000e+00> : vector<4x288xf32>
    %699 = tpu.matmul %696, %698, %cst_593 {dimension_numbers = #tpu.dot_dimension_numbers<[1], [0], [0], [1], [0, 0, 1, 1], [], []>} : vector<4x80xbf16>, vector<80x288xbf16>, vector<4x288xf32> -> vector<4x288xf32>
    %c1_594 = arith.constant 1 : index
    %c0_595 = arith.constant 0 : index
    %c0_596 = arith.constant 0 : index
    %700 = vector.load %arg25[%c1_594, %c0_595, %c0_596] : memref<4x4x8xbf16, #tpu.memory_space<vmem>>, vector<1x4x8xbf16>
    %701 = vector.shape_cast %700 : vector<1x4x8xbf16> to vector<4x8xbf16>
    %cst_597 = arith.constant dense<0.000000e+00> : vector<4x80xf32>
    %702 = tpu.matmul %701, %692, %cst_597 {dimension_numbers = #tpu.dot_dimension_numbers<[1], [0], [0], [1], [0, 0, 1, 1], [], []>} : vector<4x8xbf16>, vector<8x80xbf16>, vector<4x80xf32> -> vector<4x80xf32>
    %703 = arith.truncf %702 : vector<4x80xf32> to vector<4x80xbf16>
    %c1_598 = arith.constant 1 : index
    %c0_599 = arith.constant 0 : index
    %c0_600 = arith.constant 0 : index
    %704 = vector.load %arg23[%c1_598, %c0_599, %c0_600] : memref<4x80x288xbf16, #tpu.memory_space<vmem>>, vector<1x80x288xbf16>
    %705 = vector.shape_cast %704 : vector<1x80x288xbf16> to vector<80x288xbf16>
    %cst_601 = arith.constant dense<0.000000e+00> : vector<4x288xf32>
    %706 = tpu.matmul %703, %705, %cst_601 {dimension_numbers = #tpu.dot_dimension_numbers<[1], [0], [0], [1], [0, 0, 1, 1], [], []>} : vector<4x80xbf16>, vector<80x288xbf16>, vector<4x288xf32> -> vector<4x288xf32>
    %707 = arith.addf %699, %706 : vector<4x288xf32>
    %c2_602 = arith.constant 2 : index
    %c0_603 = arith.constant 0 : index
    %c0_604 = arith.constant 0 : index
    %708 = vector.load %arg25[%c2_602, %c0_603, %c0_604] : memref<4x4x8xbf16, #tpu.memory_space<vmem>>, vector<1x4x8xbf16>
    %709 = vector.shape_cast %708 : vector<1x4x8xbf16> to vector<4x8xbf16>
    %cst_605 = arith.constant dense<0.000000e+00> : vector<4x80xf32>
    %710 = tpu.matmul %709, %692, %cst_605 {dimension_numbers = #tpu.dot_dimension_numbers<[1], [0], [0], [1], [0, 0, 1, 1], [], []>} : vector<4x8xbf16>, vector<8x80xbf16>, vector<4x80xf32> -> vector<4x80xf32>
    %711 = arith.truncf %710 : vector<4x80xf32> to vector<4x80xbf16>
    %c2_606 = arith.constant 2 : index
    %c0_607 = arith.constant 0 : index
    %c0_608 = arith.constant 0 : index
    %712 = vector.load %arg23[%c2_606, %c0_607, %c0_608] : memref<4x80x288xbf16, #tpu.memory_space<vmem>>, vector<1x80x288xbf16>
    %713 = vector.shape_cast %712 : vector<1x80x288xbf16> to vector<80x288xbf16>
    %cst_609 = arith.constant dense<0.000000e+00> : vector<4x288xf32>
    %714 = tpu.matmul %711, %713, %cst_609 {dimension_numbers = #tpu.dot_dimension_numbers<[1], [0], [0], [1], [0, 0, 1, 1], [], []>} : vector<4x80xbf16>, vector<80x288xbf16>, vector<4x288xf32> -> vector<4x288xf32>
    %715 = arith.addf %707, %714 : vector<4x288xf32>
    %c3_610 = arith.constant 3 : index
    %c0_611 = arith.constant 0 : index
    %c0_612 = arith.constant 0 : index
    %716 = vector.load %arg25[%c3_610, %c0_611, %c0_612] : memref<4x4x8xbf16, #tpu.memory_space<vmem>>, vector<1x4x8xbf16>
    %717 = vector.shape_cast %716 : vector<1x4x8xbf16> to vector<4x8xbf16>
    %cst_613 = arith.constant dense<0.000000e+00> : vector<4x80xf32>
    %718 = tpu.matmul %717, %692, %cst_613 {dimension_numbers = #tpu.dot_dimension_numbers<[1], [0], [0], [1], [0, 0, 1, 1], [], []>} : vector<4x8xbf16>, vector<8x80xbf16>, vector<4x80xf32> -> vector<4x80xf32>
    %719 = arith.truncf %718 : vector<4x80xf32> to vector<4x80xbf16>
    %c3_614 = arith.constant 3 : index
    %c0_615 = arith.constant 0 : index
    %c0_616 = arith.constant 0 : index
    %720 = vector.load %arg23[%c3_614, %c0_615, %c0_616] : memref<4x80x288xbf16, #tpu.memory_space<vmem>>, vector<1x80x288xbf16>
    %721 = vector.shape_cast %720 : vector<1x80x288xbf16> to vector<80x288xbf16>
    %cst_617 = arith.constant dense<0.000000e+00> : vector<4x288xf32>
    %722 = tpu.matmul %719, %721, %cst_617 {dimension_numbers = #tpu.dot_dimension_numbers<[1], [0], [0], [1], [0, 0, 1, 1], [], []>} : vector<4x80xbf16>, vector<80x288xbf16>, vector<4x288xf32> -> vector<4x288xf32>
    %723 = arith.addf %715, %722 : vector<4x288xf32>
    %c0_618 = arith.constant 0 : index
    %c0_619 = arith.constant 0 : index
    %724 = vector.load %arg24[%c0_618, %c0_619] : memref<4x1xf32, #tpu.memory_space<vmem>>, vector<4x1xf32>
    %725 = vector.broadcast %724 : vector<4x1xf32> to vector<4x288xf32>
    %726 = arith.addf %723, %725 : vector<4x288xf32>
    %727 = vector.broadcast %0 : vector<1x288xf32> to vector<4x288xf32>
    %728 = arith.mulf %726, %727 : vector<4x288xf32>
    %cst_620 = arith.constant 0.000000e+00 : bf16
    %729 = vector.broadcast %cst_620 : bf16 to vector<8x19xbf16>
    %c0_621 = arith.constant 0 : index
    %c109_622 = arith.constant 109 : index
    %730 = vector.load %arg30[%c0_621, %c109_622] : memref<16x512xbf16, #tpu.memory_space<vmem>>, vector<8x19xbf16>
    tpu.vector_store %arg30[%c0_621, %c109_622], %729 {strides = array<i32>} : memref<16x512xbf16, #tpu.memory_space<vmem>>, vector<8x19xbf16>,
    %cst_623 = arith.constant 0.000000e+00 : bf16
    %731 = vector.broadcast %cst_623 : bf16 to vector<8x19xbf16>
    %c0_624 = arith.constant 0 : index
    %c416_625 = arith.constant 416 : index
    %732 = vector.load %arg30[%c0_624, %c416_625] : memref<16x512xbf16, #tpu.memory_space<vmem>>, vector<8x19xbf16>
    tpu.vector_store %arg30[%c0_624, %c416_625], %731 {strides = array<i32>} : memref<16x512xbf16, #tpu.memory_space<vmem>>, vector<8x19xbf16>,
    %733 = arith.truncf %194 : vector<4x288xf32> to vector<4x288xbf16>
    %c0_626 = arith.constant 0 : index
    %c128_627 = arith.constant 128 : index
    %734 = vector.load %arg30[%c0_626, %c128_627] : memref<16x512xbf16, #tpu.memory_space<vmem>>, vector<4x288xbf16>
    tpu.vector_store %arg30[%c0_626, %c128_627], %733 {strides = array<i32>} : memref<16x512xbf16, #tpu.memory_space<vmem>>, vector<4x288xbf16>,
    %735 = arith.truncf %728 : vector<4x288xf32> to vector<4x288xbf16>
    %c4_628 = arith.constant 4 : index
    %c128_629 = arith.constant 128 : index
    %736 = vector.load %arg30[%c4_628, %c128_629] : memref<16x512xbf16, #tpu.memory_space<vmem>>, vector<4x288xbf16>
    tpu.vector_store %arg30[%c4_628, %c128_629], %735 {strides = array<i32>} : memref<16x512xbf16, #tpu.memory_space<vmem>>, vector<4x288xbf16>,
    %c0_630 = arith.constant 0 : index
    %c109_631 = arith.constant 109 : index
    %737 = vector.load %arg30[%c0_630, %c109_631] : memref<16x512xbf16, #tpu.memory_space<vmem>>, vector<8x288xbf16>
    %c0_632 = arith.constant 0 : index
    %c0_633 = arith.constant 0 : index
    %c0_634 = arith.constant 0 : index
    %738 = vector.load %arg5[%c0_632, %c0_633, %c0_634] : memref<9x4x8xbf16, #tpu.memory_space<vmem>>, vector<1x4x8xbf16>
    %739 = vector.shape_cast %738 : vector<1x4x8xbf16> to vector<4x8xbf16>
    %cst_635 = arith.constant dense<0.000000e+00> : vector<4x288xf32>
    %740 = tpu.matmul %739, %737, %cst_635 {dimension_numbers = #tpu.dot_dimension_numbers<[1], [0], [0], [1], [0, 0, 1, 1], [], []>} : vector<4x8xbf16>, vector<8x288xbf16>, vector<4x288xf32> -> vector<4x288xf32>
    %c0_636 = arith.constant 0 : index
    %c110_637 = arith.constant 110 : index
    %741 = vector.load %arg30[%c0_636, %c110_637] : memref<16x512xbf16, #tpu.memory_space<vmem>>, vector<8x288xbf16>
    %c1_638 = arith.constant 1 : index
    %c0_639 = arith.constant 0 : index
    %c0_640 = arith.constant 0 : index
    %742 = vector.load %arg5[%c1_638, %c0_639, %c0_640] : memref<9x4x8xbf16, #tpu.memory_space<vmem>>, vector<1x4x8xbf16>
    %743 = vector.shape_cast %742 : vector<1x4x8xbf16> to vector<4x8xbf16>
    %cst_641 = arith.constant dense<0.000000e+00> : vector<4x288xf32>
    %744 = tpu.matmul %743, %741, %cst_641 {dimension_numbers = #tpu.dot_dimension_numbers<[1], [0], [0], [1], [0, 0, 1, 1], [], []>} : vector<4x8xbf16>, vector<8x288xbf16>, vector<4x288xf32> -> vector<4x288xf32>
    %745 = arith.addf %740, %744 : vector<4x288xf32>
    %c0_642 = arith.constant 0 : index
    %c111_643 = arith.constant 111 : index
    %746 = vector.load %arg30[%c0_642, %c111_643] : memref<16x512xbf16, #tpu.memory_space<vmem>>, vector<8x288xbf16>
    %c2_644 = arith.constant 2 : index
    %c0_645 = arith.constant 0 : index
    %c0_646 = arith.constant 0 : index
    %747 = vector.load %arg5[%c2_644, %c0_645, %c0_646] : memref<9x4x8xbf16, #tpu.memory_space<vmem>>, vector<1x4x8xbf16>
    %748 = vector.shape_cast %747 : vector<1x4x8xbf16> to vector<4x8xbf16>
    %cst_647 = arith.constant dense<0.000000e+00> : vector<4x288xf32>
    %749 = tpu.matmul %748, %746, %cst_647 {dimension_numbers = #tpu.dot_dimension_numbers<[1], [0], [0], [1], [0, 0, 1, 1], [], []>} : vector<4x8xbf16>, vector<8x288xbf16>, vector<4x288xf32> -> vector<4x288xf32>
    %750 = arith.addf %745, %749 : vector<4x288xf32>
    %c0_648 = arith.constant 0 : index
    %c127_649 = arith.constant 127 : index
    %751 = vector.load %arg30[%c0_648, %c127_649] : memref<16x512xbf16, #tpu.memory_space<vmem>>, vector<8x288xbf16>
    %c3_650 = arith.constant 3 : index
    %c0_651 = arith.constant 0 : index
    %c0_652 = arith.constant 0 : index
    %752 = vector.load %arg5[%c3_650, %c0_651, %c0_652] : memref<9x4x8xbf16, #tpu.memory_space<vmem>>, vector<1x4x8xbf16>
    %753 = vector.shape_cast %752 : vector<1x4x8xbf16> to vector<4x8xbf16>
    %cst_653 = arith.constant dense<0.000000e+00> : vector<4x288xf32>
    %754 = tpu.matmul %753, %751, %cst_653 {dimension_numbers = #tpu.dot_dimension_numbers<[1], [0], [0], [1], [0, 0, 1, 1], [], []>} : vector<4x8xbf16>, vector<8x288xbf16>, vector<4x288xf32> -> vector<4x288xf32>
    %755 = arith.addf %750, %754 : vector<4x288xf32>
    %c0_654 = arith.constant 0 : index
    %c128_655 = arith.constant 128 : index
    %756 = vector.load %arg30[%c0_654, %c128_655] : memref<16x512xbf16, #tpu.memory_space<vmem>>, vector<8x288xbf16>
    %c4_656 = arith.constant 4 : index
    %c0_657 = arith.constant 0 : index
    %c0_658 = arith.constant 0 : index
    %757 = vector.load %arg5[%c4_656, %c0_657, %c0_658] : memref<9x4x8xbf16, #tpu.memory_space<vmem>>, vector<1x4x8xbf16>
    %758 = vector.shape_cast %757 : vector<1x4x8xbf16> to vector<4x8xbf16>
    %cst_659 = arith.constant dense<0.000000e+00> : vector<4x288xf32>
    %759 = tpu.matmul %758, %756, %cst_659 {dimension_numbers = #tpu.dot_dimension_numbers<[1], [0], [0], [1], [0, 0, 1, 1], [], []>} : vector<4x8xbf16>, vector<8x288xbf16>, vector<4x288xf32> -> vector<4x288xf32>
    %760 = arith.addf %755, %759 : vector<4x288xf32>
    %c0_660 = arith.constant 0 : index
    %c129_661 = arith.constant 129 : index
    %761 = vector.load %arg30[%c0_660, %c129_661] : memref<16x512xbf16, #tpu.memory_space<vmem>>, vector<8x288xbf16>
    %c5_662 = arith.constant 5 : index
    %c0_663 = arith.constant 0 : index
    %c0_664 = arith.constant 0 : index
    %762 = vector.load %arg5[%c5_662, %c0_663, %c0_664] : memref<9x4x8xbf16, #tpu.memory_space<vmem>>, vector<1x4x8xbf16>
    %763 = vector.shape_cast %762 : vector<1x4x8xbf16> to vector<4x8xbf16>
    %cst_665 = arith.constant dense<0.000000e+00> : vector<4x288xf32>
    %764 = tpu.matmul %763, %761, %cst_665 {dimension_numbers = #tpu.dot_dimension_numbers<[1], [0], [0], [1], [0, 0, 1, 1], [], []>} : vector<4x8xbf16>, vector<8x288xbf16>, vector<4x288xf32> -> vector<4x288xf32>
    %765 = arith.addf %760, %764 : vector<4x288xf32>
    %c0_666 = arith.constant 0 : index
    %c145_667 = arith.constant 145 : index
    %766 = vector.load %arg30[%c0_666, %c145_667] : memref<16x512xbf16, #tpu.memory_space<vmem>>, vector<8x288xbf16>
    %c6_668 = arith.constant 6 : index
    %c0_669 = arith.constant 0 : index
    %c0_670 = arith.constant 0 : index
    %767 = vector.load %arg5[%c6_668, %c0_669, %c0_670] : memref<9x4x8xbf16, #tpu.memory_space<vmem>>, vector<1x4x8xbf16>
    %768 = vector.shape_cast %767 : vector<1x4x8xbf16> to vector<4x8xbf16>
    %cst_671 = arith.constant dense<0.000000e+00> : vector<4x288xf32>
    %769 = tpu.matmul %768, %766, %cst_671 {dimension_numbers = #tpu.dot_dimension_numbers<[1], [0], [0], [1], [0, 0, 1, 1], [], []>} : vector<4x8xbf16>, vector<8x288xbf16>, vector<4x288xf32> -> vector<4x288xf32>
    %770 = arith.addf %765, %769 : vector<4x288xf32>
    %c0_672 = arith.constant 0 : index
    %c146_673 = arith.constant 146 : index
    %771 = vector.load %arg30[%c0_672, %c146_673] : memref<16x512xbf16, #tpu.memory_space<vmem>>, vector<8x288xbf16>
    %c7_674 = arith.constant 7 : index
    %c0_675 = arith.constant 0 : index
    %c0_676 = arith.constant 0 : index
    %772 = vector.load %arg5[%c7_674, %c0_675, %c0_676] : memref<9x4x8xbf16, #tpu.memory_space<vmem>>, vector<1x4x8xbf16>
    %773 = vector.shape_cast %772 : vector<1x4x8xbf16> to vector<4x8xbf16>
    %cst_677 = arith.constant dense<0.000000e+00> : vector<4x288xf32>
    %774 = tpu.matmul %773, %771, %cst_677 {dimension_numbers = #tpu.dot_dimension_numbers<[1], [0], [0], [1], [0, 0, 1, 1], [], []>} : vector<4x8xbf16>, vector<8x288xbf16>, vector<4x288xf32> -> vector<4x288xf32>
    %775 = arith.addf %770, %774 : vector<4x288xf32>
    %c0_678 = arith.constant 0 : index
    %c147_679 = arith.constant 147 : index
    %776 = vector.load %arg30[%c0_678, %c147_679] : memref<16x512xbf16, #tpu.memory_space<vmem>>, vector<8x288xbf16>
    %c8_680 = arith.constant 8 : index
    %c0_681 = arith.constant 0 : index
    %c0_682 = arith.constant 0 : index
    %777 = vector.load %arg5[%c8_680, %c0_681, %c0_682] : memref<9x4x8xbf16, #tpu.memory_space<vmem>>, vector<1x4x8xbf16>
    %778 = vector.shape_cast %777 : vector<1x4x8xbf16> to vector<4x8xbf16>
    %cst_683 = arith.constant dense<0.000000e+00> : vector<4x288xf32>
    %779 = tpu.matmul %778, %776, %cst_683 {dimension_numbers = #tpu.dot_dimension_numbers<[1], [0], [0], [1], [0, 0, 1, 1], [], []>} : vector<4x8xbf16>, vector<8x288xbf16>, vector<4x288xf32> -> vector<4x288xf32>
    %780 = arith.addf %775, %779 : vector<4x288xf32>
    %c0_684 = arith.constant 0 : index
    %c0_685 = arith.constant 0 : index
    %781 = vector.load %arg4[%c0_684, %c0_685] : memref<4x1xf32, #tpu.memory_space<vmem>>, vector<4x1xf32>
    %782 = vector.broadcast %781 : vector<4x1xf32> to vector<4x288xf32>
    %783 = arith.addf %780, %782 : vector<4x288xf32>
    %784 = vector.broadcast %0 : vector<1x288xf32> to vector<4x288xf32>
    %785 = arith.mulf %783, %784 : vector<4x288xf32>
    %cst_686 = arith.constant 0.000000e+00 : f32
    %786 = vector.broadcast %cst_686 : f32 to vector<4x288xf32>
    %787 = arith.cmpf oge, %785, %786 : vector<4x288xf32>
    %cst_687 = arith.constant 0.00999999977 : f32
    %788 = vector.broadcast %cst_687 : f32 to vector<4x288xf32>
    %789 = arith.mulf %788, %785 : vector<4x288xf32>
    %790 = arith.select %787, %785, %789 : vector<4x288xi1>, vector<4x288xf32>
    %cst_688 = arith.constant 0.000000e+00 : bf16
    %791 = vector.broadcast %cst_688 : bf16 to vector<4x19xbf16>
    %c0_689 = arith.constant 0 : index
    %c109_690 = arith.constant 109 : index
    %792 = vector.load %arg30[%c0_689, %c109_690] : memref<16x512xbf16, #tpu.memory_space<vmem>>, vector<4x19xbf16>
    tpu.vector_store %arg30[%c0_689, %c109_690], %791 {strides = array<i32>} : memref<16x512xbf16, #tpu.memory_space<vmem>>, vector<4x19xbf16>,
    %cst_691 = arith.constant 0.000000e+00 : bf16
    %793 = vector.broadcast %cst_691 : bf16 to vector<4x19xbf16>
    %c0_692 = arith.constant 0 : index
    %c416_693 = arith.constant 416 : index
    %794 = vector.load %arg30[%c0_692, %c416_693] : memref<16x512xbf16, #tpu.memory_space<vmem>>, vector<4x19xbf16>
    tpu.vector_store %arg30[%c0_692, %c416_693], %793 {strides = array<i32>} : memref<16x512xbf16, #tpu.memory_space<vmem>>, vector<4x19xbf16>,
    %795 = arith.truncf %790 : vector<4x288xf32> to vector<4x288xbf16>
    %c0_694 = arith.constant 0 : index
    %c128_695 = arith.constant 128 : index
    %796 = vector.load %arg30[%c0_694, %c128_695] : memref<16x512xbf16, #tpu.memory_space<vmem>>, vector<4x288xbf16>
    tpu.vector_store %arg30[%c0_694, %c128_695], %795 {strides = array<i32>} : memref<16x512xbf16, #tpu.memory_space<vmem>>, vector<4x288xbf16>,
    %c0_696 = arith.constant 0 : index
    %c109_697 = arith.constant 109 : index
    %797 = vector.load %arg30[%c0_696, %c109_697] : memref<16x512xbf16, #tpu.memory_space<vmem>>, vector<4x288xbf16>
    %c0_698 = arith.constant 0 : index
    %c0_699 = arith.constant 0 : index
    %c0_700 = arith.constant 0 : index
    %798 = vector.load %arg7[%c0_698, %c0_699, %c0_700] : memref<9x4x4xbf16, #tpu.memory_space<vmem>>, vector<1x4x4xbf16>
    %799 = vector.shape_cast %798 : vector<1x4x4xbf16> to vector<4x4xbf16>
    %cst_701 = arith.constant dense<0.000000e+00> : vector<4x288xf32>
    %800 = tpu.matmul %799, %797, %cst_701 {dimension_numbers = #tpu.dot_dimension_numbers<[1], [0], [0], [1], [0, 0, 1, 1], [], []>} : vector<4x4xbf16>, vector<4x288xbf16>, vector<4x288xf32> -> vector<4x288xf32>
    %c0_702 = arith.constant 0 : index
    %c110_703 = arith.constant 110 : index
    %801 = vector.load %arg30[%c0_702, %c110_703] : memref<16x512xbf16, #tpu.memory_space<vmem>>, vector<4x288xbf16>
    %c1_704 = arith.constant 1 : index
    %c0_705 = arith.constant 0 : index
    %c0_706 = arith.constant 0 : index
    %802 = vector.load %arg7[%c1_704, %c0_705, %c0_706] : memref<9x4x4xbf16, #tpu.memory_space<vmem>>, vector<1x4x4xbf16>
    %803 = vector.shape_cast %802 : vector<1x4x4xbf16> to vector<4x4xbf16>
    %cst_707 = arith.constant dense<0.000000e+00> : vector<4x288xf32>
    %804 = tpu.matmul %803, %801, %cst_707 {dimension_numbers = #tpu.dot_dimension_numbers<[1], [0], [0], [1], [0, 0, 1, 1], [], []>} : vector<4x4xbf16>, vector<4x288xbf16>, vector<4x288xf32> -> vector<4x288xf32>
    %805 = arith.addf %800, %804 : vector<4x288xf32>
    %c0_708 = arith.constant 0 : index
    %c111_709 = arith.constant 111 : index
    %806 = vector.load %arg30[%c0_708, %c111_709] : memref<16x512xbf16, #tpu.memory_space<vmem>>, vector<4x288xbf16>
    %c2_710 = arith.constant 2 : index
    %c0_711 = arith.constant 0 : index
    %c0_712 = arith.constant 0 : index
    %807 = vector.load %arg7[%c2_710, %c0_711, %c0_712] : memref<9x4x4xbf16, #tpu.memory_space<vmem>>, vector<1x4x4xbf16>
    %808 = vector.shape_cast %807 : vector<1x4x4xbf16> to vector<4x4xbf16>
    %cst_713 = arith.constant dense<0.000000e+00> : vector<4x288xf32>
    %809 = tpu.matmul %808, %806, %cst_713 {dimension_numbers = #tpu.dot_dimension_numbers<[1], [0], [0], [1], [0, 0, 1, 1], [], []>} : vector<4x4xbf16>, vector<4x288xbf16>, vector<4x288xf32> -> vector<4x288xf32>
    %810 = arith.addf %805, %809 : vector<4x288xf32>
    %c0_714 = arith.constant 0 : index
    %c127_715 = arith.constant 127 : index
    %811 = vector.load %arg30[%c0_714, %c127_715] : memref<16x512xbf16, #tpu.memory_space<vmem>>, vector<4x288xbf16>
    %c3_716 = arith.constant 3 : index
    %c0_717 = arith.constant 0 : index
    %c0_718 = arith.constant 0 : index
    %812 = vector.load %arg7[%c3_716, %c0_717, %c0_718] : memref<9x4x4xbf16, #tpu.memory_space<vmem>>, vector<1x4x4xbf16>
    %813 = vector.shape_cast %812 : vector<1x4x4xbf16> to vector<4x4xbf16>
    %cst_719 = arith.constant dense<0.000000e+00> : vector<4x288xf32>
    %814 = tpu.matmul %813, %811, %cst_719 {dimension_numbers = #tpu.dot_dimension_numbers<[1], [0], [0], [1], [0, 0, 1, 1], [], []>} : vector<4x4xbf16>, vector<4x288xbf16>, vector<4x288xf32> -> vector<4x288xf32>
    %815 = arith.addf %810, %814 : vector<4x288xf32>
    %c0_720 = arith.constant 0 : index
    %c128_721 = arith.constant 128 : index
    %816 = vector.load %arg30[%c0_720, %c128_721] : memref<16x512xbf16, #tpu.memory_space<vmem>>, vector<4x288xbf16>
    %c4_722 = arith.constant 4 : index
    %c0_723 = arith.constant 0 : index
    %c0_724 = arith.constant 0 : index
    %817 = vector.load %arg7[%c4_722, %c0_723, %c0_724] : memref<9x4x4xbf16, #tpu.memory_space<vmem>>, vector<1x4x4xbf16>
    %818 = vector.shape_cast %817 : vector<1x4x4xbf16> to vector<4x4xbf16>
    %cst_725 = arith.constant dense<0.000000e+00> : vector<4x288xf32>
    %819 = tpu.matmul %818, %816, %cst_725 {dimension_numbers = #tpu.dot_dimension_numbers<[1], [0], [0], [1], [0, 0, 1, 1], [], []>} : vector<4x4xbf16>, vector<4x288xbf16>, vector<4x288xf32> -> vector<4x288xf32>
    %820 = arith.addf %815, %819 : vector<4x288xf32>
    %c0_726 = arith.constant 0 : index
    %c129_727 = arith.constant 129 : index
    %821 = vector.load %arg30[%c0_726, %c129_727] : memref<16x512xbf16, #tpu.memory_space<vmem>>, vector<4x288xbf16>
    %c5_728 = arith.constant 5 : index
    %c0_729 = arith.constant 0 : index
    %c0_730 = arith.constant 0 : index
    %822 = vector.load %arg7[%c5_728, %c0_729, %c0_730] : memref<9x4x4xbf16, #tpu.memory_space<vmem>>, vector<1x4x4xbf16>
    %823 = vector.shape_cast %822 : vector<1x4x4xbf16> to vector<4x4xbf16>
    %cst_731 = arith.constant dense<0.000000e+00> : vector<4x288xf32>
    %824 = tpu.matmul %823, %821, %cst_731 {dimension_numbers = #tpu.dot_dimension_numbers<[1], [0], [0], [1], [0, 0, 1, 1], [], []>} : vector<4x4xbf16>, vector<4x288xbf16>, vector<4x288xf32> -> vector<4x288xf32>
    %825 = arith.addf %820, %824 : vector<4x288xf32>
    %c0_732 = arith.constant 0 : index
    %c145_733 = arith.constant 145 : index
    %826 = vector.load %arg30[%c0_732, %c145_733] : memref<16x512xbf16, #tpu.memory_space<vmem>>, vector<4x288xbf16>
    %c6_734 = arith.constant 6 : index
    %c0_735 = arith.constant 0 : index
    %c0_736 = arith.constant 0 : index
    %827 = vector.load %arg7[%c6_734, %c0_735, %c0_736] : memref<9x4x4xbf16, #tpu.memory_space<vmem>>, vector<1x4x4xbf16>
    %828 = vector.shape_cast %827 : vector<1x4x4xbf16> to vector<4x4xbf16>
    %cst_737 = arith.constant dense<0.000000e+00> : vector<4x288xf32>
    %829 = tpu.matmul %828, %826, %cst_737 {dimension_numbers = #tpu.dot_dimension_numbers<[1], [0], [0], [1], [0, 0, 1, 1], [], []>} : vector<4x4xbf16>, vector<4x288xbf16>, vector<4x288xf32> -> vector<4x288xf32>
    %830 = arith.addf %825, %829 : vector<4x288xf32>
    %c0_738 = arith.constant 0 : index
    %c146_739 = arith.constant 146 : index
    %831 = vector.load %arg30[%c0_738, %c146_739] : memref<16x512xbf16, #tpu.memory_space<vmem>>, vector<4x288xbf16>
    %c7_740 = arith.constant 7 : index
    %c0_741 = arith.constant 0 : index
    %c0_742 = arith.constant 0 : index
    %832 = vector.load %arg7[%c7_740, %c0_741, %c0_742] : memref<9x4x4xbf16, #tpu.memory_space<vmem>>, vector<1x4x4xbf16>
    %833 = vector.shape_cast %832 : vector<1x4x4xbf16> to vector<4x4xbf16>
    %cst_743 = arith.constant dense<0.000000e+00> : vector<4x288xf32>
    %834 = tpu.matmul %833, %831, %cst_743 {dimension_numbers = #tpu.dot_dimension_numbers<[1], [0], [0], [1], [0, 0, 1, 1], [], []>} : vector<4x4xbf16>, vector<4x288xbf16>, vector<4x288xf32> -> vector<4x288xf32>
    %835 = arith.addf %830, %834 : vector<4x288xf32>
    %c0_744 = arith.constant 0 : index
    %c147_745 = arith.constant 147 : index
    %836 = vector.load %arg30[%c0_744, %c147_745] : memref<16x512xbf16, #tpu.memory_space<vmem>>, vector<4x288xbf16>
    %c8_746 = arith.constant 8 : index
    %c0_747 = arith.constant 0 : index
    %c0_748 = arith.constant 0 : index
    %837 = vector.load %arg7[%c8_746, %c0_747, %c0_748] : memref<9x4x4xbf16, #tpu.memory_space<vmem>>, vector<1x4x4xbf16>
    %838 = vector.shape_cast %837 : vector<1x4x4xbf16> to vector<4x4xbf16>
    %cst_749 = arith.constant dense<0.000000e+00> : vector<4x288xf32>
    %839 = tpu.matmul %838, %836, %cst_749 {dimension_numbers = #tpu.dot_dimension_numbers<[1], [0], [0], [1], [0, 0, 1, 1], [], []>} : vector<4x4xbf16>, vector<4x288xbf16>, vector<4x288xf32> -> vector<4x288xf32>
    %840 = arith.addf %835, %839 : vector<4x288xf32>
    %c0_750 = arith.constant 0 : index
    %c0_751 = arith.constant 0 : index
    %841 = vector.load %arg6[%c0_750, %c0_751] : memref<4x1xf32, #tpu.memory_space<vmem>>, vector<4x1xf32>
    %842 = vector.broadcast %841 : vector<4x1xf32> to vector<4x288xf32>
    %843 = arith.addf %840, %842 : vector<4x288xf32>
    %844 = vector.broadcast %0 : vector<1x288xf32> to vector<4x288xf32>
    %845 = arith.mulf %843, %844 : vector<4x288xf32>
    %cst_752 = arith.constant 0.000000e+00 : f32
    %846 = vector.broadcast %cst_752 : f32 to vector<4x288xf32>
    %847 = arith.cmpf oge, %845, %846 : vector<4x288xf32>
    %cst_753 = arith.constant 0.00999999977 : f32
    %848 = vector.broadcast %cst_753 : f32 to vector<4x288xf32>
    %849 = arith.mulf %848, %845 : vector<4x288xf32>
    %850 = arith.select %847, %845, %849 : vector<4x288xi1>, vector<4x288xf32>
    %cst_754 = arith.constant 0.000000e+00 : bf16
    %851 = vector.broadcast %cst_754 : bf16 to vector<4x19xbf16>
    %c0_755 = arith.constant 0 : index
    %c109_756 = arith.constant 109 : index
    %852 = vector.load %arg30[%c0_755, %c109_756] : memref<16x512xbf16, #tpu.memory_space<vmem>>, vector<4x19xbf16>
    tpu.vector_store %arg30[%c0_755, %c109_756], %851 {strides = array<i32>} : memref<16x512xbf16, #tpu.memory_space<vmem>>, vector<4x19xbf16>,
    %cst_757 = arith.constant 0.000000e+00 : bf16
    %853 = vector.broadcast %cst_757 : bf16 to vector<4x96xbf16>
    %c0_758 = arith.constant 0 : index
    %c416_759 = arith.constant 416 : index
    %854 = vector.load %arg30[%c0_758, %c416_759] : memref<16x512xbf16, #tpu.memory_space<vmem>>, vector<4x96xbf16>
    tpu.vector_store %arg30[%c0_758, %c416_759], %853 {strides = array<i32>} : memref<16x512xbf16, #tpu.memory_space<vmem>>, vector<4x96xbf16>,
    %855 = arith.truncf %850 : vector<4x288xf32> to vector<4x288xbf16>
    %c0_760 = arith.constant 0 : index
    %c128_761 = arith.constant 128 : index
    %856 = vector.load %arg30[%c0_760, %c128_761] : memref<16x512xbf16, #tpu.memory_space<vmem>>, vector<4x288xbf16>
    tpu.vector_store %arg30[%c0_760, %c128_761], %855 {strides = array<i32>} : memref<16x512xbf16, #tpu.memory_space<vmem>>, vector<4x288xbf16>,
    %c0_762 = arith.constant 0 : index
    %c128_763 = arith.constant 128 : index
    %857 = vector.load %arg30[%c0_762, %c128_763] : memref<16x512xbf16, #tpu.memory_space<vmem>>, vector<4x384xbf16>
    %c0_764 = arith.constant 0 : index
    %c0_765 = arith.constant 0 : index
    %858 = vector.load %arg9[%c0_764, %c0_765] : memref<8x4xbf16, #tpu.memory_space<vmem>>, vector<8x4xbf16>
    %cst_766 = arith.constant dense<0.000000e+00> : vector<8x384xf32>
    %859 = tpu.matmul %858, %857, %cst_766 {dimension_numbers = #tpu.dot_dimension_numbers<[1], [0], [0], [1], [0, 0, 1, 1], [], []>} : vector<8x4xbf16>, vector<4x384xbf16>, vector<8x384xf32> -> vector<8x384xf32>
    %c0_767 = arith.constant 0 : index
    %c0_768 = arith.constant 0 : index
    %860 = vector.load %arg8[%c0_767, %c0_768] : memref<8x1xf32, #tpu.memory_space<vmem>>, vector<8x1xf32>
    %861 = vector.broadcast %860 : vector<8x1xf32> to vector<8x384xf32>
    %862 = arith.addf %859, %861 : vector<8x384xf32>
    %cst_769 = arith.constant dense<0xFF800000> : vector<384xf32>
    %863 = vector.multi_reduction <maximumf>, %862, %cst_769 [0] : vector<8x384xf32> to vector<384xf32>
    %864 = vector.shape_cast %863 : vector<384xf32> to vector<1x384xf32>
    %865 = vector.broadcast %864 : vector<1x384xf32> to vector<8x384xf32>
    %866 = arith.subf %862, %865 : vector<8x384xf32>
    %867 = math.exp %866 : vector<8x384xf32>
    %cst_770 = arith.constant dense<0.000000e+00> : vector<384xf32>
    %868 = vector.multi_reduction <add>, %867, %cst_770 [0] : vector<8x384xf32> to vector<384xf32>
    %869 = vector.shape_cast %868 : vector<384xf32> to vector<1x384xf32>
    %870 = math.log %869 : vector<1x384xf32>
    %871 = vector.broadcast %870 : vector<1x384xf32> to vector<8x384xf32>
    %872 = arith.subf %866, %871 : vector<8x384xf32>
    %c0_771 = arith.constant 0 : index
    %c0_772 = arith.constant 0 : index
    %c0_773 = arith.constant 0 : index
    %873 = vector.load %arg29[%c0_771, %c0_772, %c0_773] : memref<1x8x384xf32, #tpu.memory_space<vmem>>, vector<1x8x384xf32>
    %874 = vector.shape_cast %873 : vector<1x8x384xf32> to vector<8x384xf32>
    %875 = vector.shape_cast %872 : vector<8x384xf32> to vector<1x8x384xf32>
    tpu.vector_store %arg29[%c0_771, %c0_772, %c0_773], %875 {strides = array<i32>} : memref<1x8x384xf32, #tpu.memory_space<vmem>>, vector<1x8x384xf32>,
    return
  }
  func.func @transform_0(%arg0: i32) -> (i32, i32, i32) {
    %c0_i32 = arith.constant 0 : i32
    %c0_i32_0 = arith.constant 0 : i32
    %c0_i32_1 = arith.constant 0 : i32
    return %arg0, %c0_i32, %c0_i32_0 : i32, i32, i32
  }
  func.func @transform_1(%arg0: i32) -> (i32, i32, i32) {
    %c0_i32 = arith.constant 0 : i32
    %c0_i32_0 = arith.constant 0 : i32
    %c0_i32_1 = arith.constant 0 : i32
    %c0_i32_2 = arith.constant 0 : i32
    return %c0_i32, %c0_i32_0, %c0_i32_1 : i32, i32, i32
  }
  func.func @transform_2(%arg0: i32) -> (i32, i32, i32) {
    %c0_i32 = arith.constant 0 : i32
    %c0_i32_0 = arith.constant 0 : i32
    %c0_i32_1 = arith.constant 0 : i32
    %c0_i32_2 = arith.constant 0 : i32
    return %c0_i32, %c0_i32_0, %c0_i32_1 : i32, i32, i32
  }
  func.func @transform_3(%arg0: i32) -> (i32, i32) {
    %c0_i32 = arith.constant 0 : i32
    %c0_i32_0 = arith.constant 0 : i32
    %c0_i32_1 = arith.constant 0 : i32
    return %c0_i32, %c0_i32_0 : i32, i32
  }
  func.func @transform_4(%arg0: i32) -> (i32, i32, i32) {
    %c0_i32 = arith.constant 0 : i32
    %c0_i32_0 = arith.constant 0 : i32
    %c0_i32_1 = arith.constant 0 : i32
    %c0_i32_2 = arith.constant 0 : i32
    return %c0_i32, %c0_i32_0, %c0_i32_1 : i32, i32, i32
  }
  func.func @transform_5(%arg0: i32) -> (i32, i32) {
    %c0_i32 = arith.constant 0 : i32
    %c0_i32_0 = arith.constant 0 : i32
    %c0_i32_1 = arith.constant 0 : i32
    return %c0_i32, %c0_i32_0 : i32, i32
  }
  func.func @transform_6(%arg0: i32) -> (i32, i32, i32) {
    %c0_i32 = arith.constant 0 : i32
    %c0_i32_0 = arith.constant 0 : i32
    %c0_i32_1 = arith.constant 0 : i32
    %c0_i32_2 = arith.constant 0 : i32
    return %c0_i32, %c0_i32_0, %c0_i32_1 : i32, i32, i32
  }
  func.func @transform_7(%arg0: i32) -> (i32, i32) {
    %c0_i32 = arith.constant 0 : i32
    %c0_i32_0 = arith.constant 0 : i32
    %c0_i32_1 = arith.constant 0 : i32
    return %c0_i32, %c0_i32_0 : i32, i32
  }
  func.func @transform_8(%arg0: i32) -> (i32, i32) {
    %c0_i32 = arith.constant 0 : i32
    %c0_i32_0 = arith.constant 0 : i32
    %c0_i32_1 = arith.constant 0 : i32
    return %c0_i32, %c0_i32_0 : i32, i32
  }
  func.func @transform_9(%arg0: i32) -> (i32, i32, i32) {
    %c0_i32 = arith.constant 0 : i32
    %c0_i32_0 = arith.constant 0 : i32
    %c0_i32_1 = arith.constant 0 : i32
    %c0_i32_2 = arith.constant 0 : i32
    return %c0_i32, %c0_i32_0, %c0_i32_1 : i32, i32, i32
  }
  func.func @transform_10(%arg0: i32) -> (i32, i32, i32) {
    %c0_i32 = arith.constant 0 : i32
    %c0_i32_0 = arith.constant 0 : i32
    %c0_i32_1 = arith.constant 0 : i32
    %c0_i32_2 = arith.constant 0 : i32
    return %c0_i32, %c0_i32_0, %c0_i32_1 : i32, i32, i32
  }
  func.func @transform_11(%arg0: i32) -> (i32, i32) {
    %c0_i32 = arith.constant 0 : i32
    %c0_i32_0 = arith.constant 0 : i32
    %c0_i32_1 = arith.constant 0 : i32
    return %c0_i32, %c0_i32_0 : i32, i32
  }
  func.func @transform_12(%arg0: i32) -> (i32, i32, i32) {
    %c0_i32 = arith.constant 0 : i32
    %c0_i32_0 = arith.constant 0 : i32
    %c0_i32_1 = arith.constant 0 : i32
    %c0_i32_2 = arith.constant 0 : i32
    return %c0_i32, %c0_i32_0, %c0_i32_1 : i32, i32, i32
  }
  func.func @transform_13(%arg0: i32) -> (i32, i32) {
    %c0_i32 = arith.constant 0 : i32
    %c0_i32_0 = arith.constant 0 : i32
    %c0_i32_1 = arith.constant 0 : i32
    return %c0_i32, %c0_i32_0 : i32, i32
  }
  func.func @transform_14(%arg0: i32) -> (i32, i32, i32) {
    %c0_i32 = arith.constant 0 : i32
    %c0_i32_0 = arith.constant 0 : i32
    %c0_i32_1 = arith.constant 0 : i32
    %c0_i32_2 = arith.constant 0 : i32
    return %c0_i32, %c0_i32_0, %c0_i32_1 : i32, i32, i32
  }
  func.func @transform_15(%arg0: i32) -> (i32, i32) {
    %c0_i32 = arith.constant 0 : i32
    %c0_i32_0 = arith.constant 0 : i32
    %c0_i32_1 = arith.constant 0 : i32
    return %c0_i32, %c0_i32_0 : i32, i32
  }
  func.func @transform_16(%arg0: i32) -> (i32, i32, i32) {
    %c0_i32 = arith.constant 0 : i32
    %c0_i32_0 = arith.constant 0 : i32
    %c0_i32_1 = arith.constant 0 : i32
    %c0_i32_2 = arith.constant 0 : i32
    return %c0_i32, %c0_i32_0, %c0_i32_1 : i32, i32, i32
  }
  func.func @transform_17(%arg0: i32) -> (i32, i32, i32) {
    %c0_i32 = arith.constant 0 : i32
    %c0_i32_0 = arith.constant 0 : i32
    %c0_i32_1 = arith.constant 0 : i32
    %c0_i32_2 = arith.constant 0 : i32
    return %c0_i32, %c0_i32_0, %c0_i32_1 : i32, i32, i32
  }
  func.func @transform_18(%arg0: i32) -> (i32, i32) {
    %c0_i32 = arith.constant 0 : i32
    %c0_i32_0 = arith.constant 0 : i32
    %c0_i32_1 = arith.constant 0 : i32
    return %c0_i32, %c0_i32_0 : i32, i32
  }
  func.func @transform_19(%arg0: i32) -> (i32, i32, i32) {
    %c0_i32 = arith.constant 0 : i32
    %c0_i32_0 = arith.constant 0 : i32
    %c0_i32_1 = arith.constant 0 : i32
    %c0_i32_2 = arith.constant 0 : i32
    return %c0_i32, %c0_i32_0, %c0_i32_1 : i32, i32, i32
  }
  func.func @transform_20(%arg0: i32) -> (i32, i32) {
    %c0_i32 = arith.constant 0 : i32
    %c0_i32_0 = arith.constant 0 : i32
    %c0_i32_1 = arith.constant 0 : i32
    return %c0_i32, %c0_i32_0 : i32, i32
  }
  func.func @transform_21(%arg0: i32) -> (i32, i32, i32) {
    %c0_i32 = arith.constant 0 : i32
    %c0_i32_0 = arith.constant 0 : i32
    %c0_i32_1 = arith.constant 0 : i32
    %c0_i32_2 = arith.constant 0 : i32
    return %c0_i32, %c0_i32_0, %c0_i32_1 : i32, i32, i32
  }
  func.func @transform_22(%arg0: i32) -> (i32, i32, i32) {
    %c0_i32 = arith.constant 0 : i32
    %c0_i32_0 = arith.constant 0 : i32
    %c0_i32_1 = arith.constant 0 : i32
    %c0_i32_2 = arith.constant 0 : i32
    return %c0_i32, %c0_i32_0, %c0_i32_1 : i32, i32, i32
  }
  func.func @transform_23(%arg0: i32) -> (i32, i32) {
    %c0_i32 = arith.constant 0 : i32
    %c0_i32_0 = arith.constant 0 : i32
    %c0_i32_1 = arith.constant 0 : i32
    return %c0_i32, %c0_i32_0 : i32, i32
  }
  func.func @transform_24(%arg0: i32) -> (i32, i32, i32) {
    %c0_i32 = arith.constant 0 : i32
    %c0_i32_0 = arith.constant 0 : i32
    %c0_i32_1 = arith.constant 0 : i32
    %c0_i32_2 = arith.constant 0 : i32
    return %c0_i32, %c0_i32_0, %c0_i32_1 : i32, i32, i32
  }
  func.func @transform_25(%arg0: i32) -> (i32, i32) {
    %c0_i32 = arith.constant 0 : i32
    %c0_i32_0 = arith.constant 0 : i32
    %c0_i32_1 = arith.constant 0 : i32
    return %c0_i32, %c0_i32_0 : i32, i32
  }
  func.func @transform_26(%arg0: i32) -> (i32, i32) {
    %c0_i32 = arith.constant 0 : i32
    %c0_i32_0 = arith.constant 0 : i32
    %c0_i32_1 = arith.constant 0 : i32
    return %c0_i32, %c0_i32_0 : i32, i32
  }
  func.func @transform_27(%arg0: i32) -> (i32, i32) {
    %c0_i32 = arith.constant 0 : i32
    %c0_i32_0 = arith.constant 0 : i32
    %c0_i32_1 = arith.constant 0 : i32
    return %c0_i32, %c0_i32_0 : i32, i32
  }
  func.func @transform_28(%arg0: i32) -> (i32, i32, i32) {
    %c0_i32 = arith.constant 0 : i32
    %c0_i32_0 = arith.constant 0 : i32
    %c0_i32_1 = arith.constant 0 : i32
    return %arg0, %c0_i32, %c0_i32_0 : i32, i32, i32
  }
}

</mosaic_0001>

<bundles_post_ra>
// kernel: forward.1
= control target key start
LH: loop header
LB: loop body
LE: loop exit
PB: predicated region body
PF: predicated region fallthrough
CT: control target
= control target key end

     0   :  { %s13371_s0 = inlined_call_operand.vmem [shape: f32[2,1,288], index: 0, kind: input, shape index: {}]   ;;  %s13372_s1 = inlined_call_operand.vmem [shape: bf16[9,4,1], index: 1, kind: input, shape index: {}]   ;;  %s13373_s2 = inlined_call_operand.vmem [shape: bf16[9,4,4], index: 2, kind: input, shape index: {}]   ;;  %s13374_s3 = inlined_call_operand.vmem [shape: f32[4,1], index: 3, kind: input, shape index: {}, may-alias: {3,5}]   ;;  %s13375_s4 = inlined_call_operand.vmem [shape: bf16[9,4,8], index: 4, kind: input, shape index: {}]   ;;  %s13376_s5 = inlined_call_operand.vmem [shape: f32[4,1], index: 5, kind: input, shape index: {}, may-alias: {3,5}]   ;;  %s13377_s6 = inlined_call_operand.vmem [shape: bf16[9,4,4], index: 6, kind: input, shape index: {}]   ;;  %s13378_s7 = inlined_call_operand.vmem [shape: f32[8,1], index: 7, kind: input, shape index: {}]   ;;  %s13379_s8 = inlined_call_operand.vmem [shape: bf16[8,4], index: 8, kind: input, shape index: {}]   ;;  %s13380_s9 = inlined_call_operand.vmem [shape: bf16[9,8,4], index: 9, kind: input, shape index: {}]   ;;  %s13381_s10 = inlined_call_operand.vmem [shape: bf16[9,8,8], index: 10, kind: input, shape index: {}]   ;;  %s13382_s11 = inlined_call_operand.vmem [shape: f32[8,1], index: 11, kind: input, shape index: {}, may-alias: {11,13}]   ;;  %s13383_s12 = inlined_call_operand.vmem [shape: bf16[9,8,16], index: 12, kind: input, shape index: {}]   ;;  %s13384_s13 = inlined_call_operand.vmem [shape: f32[8,1], index: 13, kind: input, shape index: {}, may-alias: {11,13}]   ;;  %s13385_s14 = inlined_call_operand.vmem [shape: bf16[9,8,8], index: 14, kind: input, shape index: {}]   ;;  %s13386_s15 = inlined_call_operand.vmem [shape: bf16[288,80], index: 15, kind: input, shape index: {}]   ;;  %s13387_s16 = inlined_call_operand.vmem [shape: bf16[9,16,8], index: 16, kind: input, shape index: {}]   ;;  %s13388_s17 = inlined_call_operand.vmem [shape: bf16[9,16,16], index: 17, kind: input, shape index: {}]   ;;  %s13389_s18 = inlined_call_operand.vmem [shape: bf16[80,24], index: 18, kind: input, shape index: {}]   ;;  %s13390_s19 = inlined_call_operand.vmem [shape: bf16[4,24,80], index: 19, kind: input, shape index: {}]   ;;  %s13391_s20 = inlined_call_operand.vmem [shape: f32[8,1], index: 20, kind: input, shape index: {}]   ;;  %s13392_s21 = inlined_call_operand.vmem [shape: bf16[4,8,16], index: 21, kind: input, shape index: {}]   ;;  %s13393_s22 = inlined_call_operand.vmem [shape: bf16[4,80,288], index: 22, kind: input, shape index: {}]   ;;  %s13394_s23 = inlined_call_operand.vmem [shape: f32[4,1], index: 23, kind: input, shape index: {}]   ;;  %s13395_s24 = inlined_call_operand.vmem [shape: bf16[4,4,8], index: 24, kind: input, shape index: {}]   ;;  %s13396_s25 = inlined_call_operand.vmem [shape: f32[1,288], index: 25, kind: input, shape index: {}]   ;;  %s13397_s26 = inlined_call_operand.vmem [shape: f32[1,80], index: 26, kind: input, shape index: {}]   ;;  %s13398_s27 = inlined_call_operand.vmem [shape: f32[1,24], index: 27, kind: input, shape index: {}]   ;;  %s13399_s28 = inlined_call_operand.vmem [shape: f32[2,8,384], index: 28, kind: output, shape index: {}]  }
   0x1   :  { %13458 = sst [smem:[#allocation3_spill]] %s13371_s0 }
   0x2   :  { %13459 = sst [smem:[#allocation4_spill]] %s13372_s1 }
   0x3   :  { %13460 = sst [smem:[#allocation5_spill]] %s13373_s2 }
   0x4   :  { %13461 = sst [smem:[#allocation6_spill]] %s13374_s3 }
   0x5   :  { %13462 = sst [smem:[#allocation7_spill]] %s13375_s4 }
   0x6   :  { %13463 = sst [smem:[#allocation8_spill]] %s13376_s5 }
   0x7   :  { %13464 = sst [smem:[#allocation9_spill]] %s13377_s6 }
   0x8   :  { %13465 = sst [smem:[#allocation10_spill]] %s13378_s7 }
   0x9   :  { %13466 = sst [smem:[#allocation11_spill]] %s13379_s8  ;;  %s11505_s8 = smov 0  }
   0xa   :  { %13467 = sst [smem:[#allocation12_spill]] %s13380_s9 }
   0xb   :  { %13468 = sst [smem:[#allocation13_spill]] %s13381_s10 }
   0xc   :  { %13469 = sst [smem:[#allocation14_spill]] %s13382_s11 }
   0xd   :  { %13470 = sst [smem:[#allocation15_spill]] %s13383_s12 }
   0xe   :  { %13471 = sst [smem:[#allocation16_spill]] %s13386_s15 }
   0xf   :  { %13472 = sst [smem:[#allocation17_spill]] %s13387_s16 }
  0x10 LB: > { %s9575_s5 = sadd.s32 4294967295, %s11334_s8   ;;  %p9579_p0 = scmp.ge.s32.totalorder %s11334_s8, 1  ;;  %s11334_s8 = sphi %s11505_s8, %s38_s8  }
  0x11   : > { %p761_p1 = scmp.lt.s32.totalorder %s11334_s8, 3 }
  0x13   : > { %p762_p2 = pnand %p9579_p0, %p761_p1 }
  0x14   : > { %s13473_s3 = sld [smem:[#allocation4_spill]] (!%p762_p2)  ;;  %p11519_p3 = scmp.lt.s32.totalorder (!%p762_p2), %s9575_s5, 1  ;;  %v860_v2 = vlaneseq (!%p762_p2)  ;;  %v11336_v3 = vmov (!%p762_p2), 0   ;;  %v856_v18 = vld [vmem:[#allocation2 + $0x18] sm:$0x1] (!%p762_p2)  ;;  %vm854_vm1 = vcmask (!%p762_p2), 409856  }
  0x15   : > { %765 = sbr.rel (%p762_p2) target bundleno = 7824 (0x1e90), region = 132  ;;  %11148 = vset.pattern.permute.xlu0 (!%p762_p2), %v11336_v3  ;;  %11164 = vset.pattern.permute.xlu1 (!%p762_p2), %v11336_v3  ;;  %vm849_vm0 = vsmask.f32 (!%p762_p2), 256  ;;  %vm886_vm3 = vcmask (!%p762_p2), 253952   ;;  %vm848_vm4 = vcmask (!%p762_p2), 1041256   ;;  %vm878_vm5 = vcmask (!%p762_p2), 1040384  }
  0x16   : > { %1544 = vmatprep.mubr.bf16.mxu0 (!%p762_p2), %v11336_v3  ;;  %v11548_v20 = vshrl.u32 (!%p762_p2), %v860_v2, 7  ;;  %vm855_vm2 = vmand (!%p762_p2), %vm854_vm1, %vm849_vm0  ;;  %v851_v23 = vld [vmem:[#allocation2] sm:$0x1] (!%p762_p2)  ;;  %s13475_s7 = sld [smem:[#allocation3_spill]] (!%p762_p2)  ;;  %v880_v31 = vld [vmem:[#allocation2 + $0x8] sm:$0x1] (!%p762_p2) }
  0x17   : > { %v857_v24 = vsel (!%p762_p2), %vm855_vm2, 0, %v856_v18  ;;  %vm850_vm6 = vmand (!%p762_p2), %vm848_vm4, %vm849_vm0  ;;  %v883_v36 = vld [vmem:[#allocation2 + $0x10] sm:$0x1] (!%p762_p2)  ;;  %vm13453_vm9 = vcmask (!%p762_p2), 1042280   ;;  %vm13452_vm10 = vcmask (!%p762_p2), 410880   ;;  %s13427_s1 = smov (!%p762_p2), 127  }
  0x18   : > { %v11553_v25 = vsub.s32 (!%p762_p2), 0, %v11548_v20  ;;  %v870_v26 = vsub.s32 (!%p762_p2), 2, %v11548_v20  ;;  %858 = vst [vmem:[#allocation2 + $0x18] sm:$0x1] (!%p762_p2), %v857_v24  ;;  %v866_v27 = vsub.s32 (!%p762_p2), 1, %v11548_v20  ;;  %vm11562_vm7 = vmand (!%p762_p2), %vm886_vm3, %vm849_vm0  ;;  %v852_v30 = vsel (!%p762_p2), %vm850_vm6, 0, %v851_v23 }
  0x19   : > { %853 = vst [vmem:[#allocation2] sm:$0x1] (!%p762_p2), %v852_v30  ;;  %vm879_vm8 = vmand (!%p762_p2), %vm878_vm5, %vm849_vm0  ;;  %s13417_s4 = smov (!%p762_p2), 18   ;;  %s13415_s9 = smov (!%p762_p2), 19   ;;  %vm13449_vm11 = vcmask (!%p762_p2), 146432   ;;  %vm13445_vm12 = vcmask (!%p762_p2), 154624  }
  0x1a   : > { %v895_v0 = vld [vmem:[%s13473_s3] sm:$0x3] (!%p762_p2)  ;;  %v9581_v1 = vld [vmem:[%s13473_s3 + $0x2] sm:$0x3] (!%p762_p2)  ;;  %v9586_v6 = vld [vmem:[%s13473_s3 + $0xc] sm:$0x3] (!%p762_p2) }
  0x1b   : > { %v896_v4 = vunpack.c.l.bf16 (!%p762_p2), %v895_v0  ;;  %v956_v5 = vunpack.c.l.bf16 (!%p762_p2), %v9581_v1  ;;  %v9587_v7 = vld [vmem:[%s13473_s3 + $0xe] sm:$0x3] (!%p762_p2)  ;;  %v9582_v8 = vld [vmem:[%s13473_s3 + $0x4] sm:$0x3] (!%p762_p2)  ;;  %v1231_v9 = vunpack.c.l.bf16 (!%p762_p2), %v9586_v6  ;;  %v9583_v12 = vld [vmem:[%s13473_s3 + $0x6] sm:$0x3] (!%p762_p2) }
  0x1c   : > { %v1283_v10 = vunpack.c.l.bf16 %v9587_v7  ;;  %v1017_v11 = vunpack.c.l.bf16 %v9582_v8  ;;  %v9584_v13 = vld [vmem:[%s13473_s3 + $0x8] sm:$0x3]  ;;  %v9585_v14 = vld [vmem:[%s13473_s3 + $0xa] sm:$0x3]  ;;  %v1078_v16 = vunpack.c.l.bf16 %v9583_v12  ;;  %s13634_s5 = smov (!%p11519_p3, %s9575_s5), 1  ;;  %s13413_s30 = smov 17  }
  0x1d   : > { %v11149_v15 = vpack.i.bf16 %v956_v5, %v896_v4  ;;  %v1138_v17 = vunpack.c.l.bf16 %v9584_v13  ;;  %v1179_v22 = vunpack.c.l.bf16 %v9585_v14  ;;  %s11114_s29 = smul.u32 3, %s13634_s5  ;;  %s13419_s11 = smov 1   ;;  %vm941_vm13 = vcmask 1043456  }
  0x1e   : > { %v11165_v19 = vpack.i.bf16 %v1283_v10, %v1231_v9  ;;  %v11154_v21 = vpack.i.bf16 %v1078_v16, %v1017_v11  ;;  %s13421_s0 = smov 110   ;;  %s13409_s2 = smov 109   ;;  %vm13442_vm14 = vcmask 138240   ;;  %vm1124_vm15 = vcmask 7168  }
  0x1f   : > { %11150 = vperm.xlu0 %11148, %v11149_v15   ;;  %s837_s12 = scalar_lea.vmem %s13475_s7, %s11114_s29  ;;  %v11159_v32 = vpack.i.bf16 %v1179_v22, %v1138_v17  ;;  %v888_v42 = vld [vmem:[#allocation2 + $0x18] sm:$0x1]  ;;  %s13411_s29 = smov 111   ;;  %vm13433_vm0 = vcmask 1039360   ;;  %vm13408_vm1 = vcmask 908288   ;;  %vm13426_vm2 = vcmask 900096  }
  0x20   : > { %11166 = vperm.xlu1 %11164, %v11165_v19   ;;  %v847_v28 = vld [vmem:[%s837_s12] sm:$0x7]  ;;  %vm13407_vm3 = vcmask 891904   ;;  %vm1408_vm4 = vcmask 257024   ;;  %s13478_s7 = sld [smem:[#allocation5_spill]]  ;;  %s13479_s15 = sld [smem:[#allocation16_spill]] }
  0x21   : > { %v871_v33 = vrot.slane %v847_v28, %v870_v26  ;;  %v863_v34 = vrot.slane %v847_v28, %v11553_v25  ;;  %v867_v35 = vrot.slane %v847_v28, %v866_v27  ;;  %v950_v44 = vld [vmem:[#allocation2] sm:$0x1]  ;;  %s13440_s10 = smov 11   ;;  %s13436_s12 = smov 9  }
  0x22   : > { %v891_v45 = vld [vmem:[#allocation2] sm:$0x1]  ;;  %v957_v48 = vunpack.c.l.bf16 %v950_v44  ;;  %s13424_s6 = smov 118   ;;  %s13487_s16 = sld [smem:[#allocation17_spill]] }
  0x23   : > { %11155 = vperm.xlu0 %11148, %v11154_v21   ;;  %v877_v37 = vpack.c.bf16 %v871_v33, %v871_v33  ;;  %v875_v38 = vpack.c.bf16 %v863_v34, %v863_v34  ;;  %v876_v39 = vpack.c.bf16 %v867_v35, %v867_v35  ;;  %v11574_v46 = vld [vmem:[#allocation2] sm:$0x1]  ;;  %v897_v49 = vunpack.c.l.bf16 %v891_v45  ;;  %v9588_v45 = vld [vmem:[%s13473_s3 + $0x10] sm:$0x3]  ;;  %s11354_s3 = smov 6  }
  0x24   : > { %v11576_v47 = vld [vmem:[#allocation2] sm:$0x1]  ;;  %v976_v54 = vrot.slane %v957_v48, %v11553_v25 }
  0x25   : > { %v881_v40 = vsel %vm879_vm8, %v875_v38, %v880_v31  ;;  %v884_v41 = vsel %vm879_vm8, %v876_v39, %v883_v36  ;;  %v889_v43 = vsel %vm11562_vm7, %v877_v37, %v888_v42  ;;  %1462 = vst.msk [vmem:[#allocation2] sm:$0x3] %vm13453_vm9, %v11336_v3  ;;  %v916_v61 = vrot.slane %v897_v49, %v11553_v25 }
  0x26   : > { %882 = vst [vmem:[#allocation2 + $0x8] sm:$0x1] %v881_v40  ;;  %885 = vst [vmem:[#allocation2 + $0x10] sm:$0x1] %v884_v41  ;;  %v1018_v39 = vunpack.c.l.bf16 %v11574_v46  ;;  %v1079_v49 = vunpack.c.l.bf16 %v11576_v47  ;;  %vm13423_vm7 = vcmask 254976   ;;  %vm11347_vm8 = vmmov 0  }
  0x27   : > { %11160 = vperm.xlu0 %11148, %v11159_v32   ;;  %890 = vst [vmem:[#allocation2 + $0x18] sm:$0x1] %v889_v43 }
  0x28   : > { %v1037_v46 = vrot.slane %v1018_v39, %v11553_v25 }
  0x2d   : > { %v951_v50 = vld [vmem:[#allocation2 + $0x8] sm:$0x1]  ;;  %v1013_v52 = vld [vmem:[#allocation2 + $0x10] sm:$0x1] }
  0x2e   : > { %v892_v51 = vld [vmem:[#allocation2 + $0x8] sm:$0x1]  ;;  %v958_v53 = vunpack.c.l.bf16 %v951_v50  ;;  %v1020_v56 = vunpack.c.l.bf16 %v1013_v52  ;;  %v893_v57 = vld [vmem:[#allocation2 + $0x10] sm:$0x1]  ;;  %v1176_v60 = vld [vmem:[#allocation2 + $0x18] sm:$0x1] }
  0x2f   : > { %v898_v55 = vunpack.c.l.bf16 %v892_v51  ;;  %v1074_v58 = vld [vmem:[#allocation2 + $0x10] sm:$0x1]  ;;  %v1014_v62 = vld [vmem:[#allocation2 + $0x18] sm:$0x1]  ;;  %v899_v0 = vunpack.c.l.bf16 %v893_v57  ;;  %v1182_v2 = vunpack.c.l.bf16 %v1176_v60  ;;  %v1174_v13 = vld [vmem:[#allocation2 + $0x8] sm:$0x1] }
  0x30   : > { %v952_v59 = vld [vmem:[#allocation2 + $0x10] sm:$0x1]  ;;  %v894_v63 = vld [vmem:[#allocation2 + $0x18] sm:$0x1]  ;;  %v1081_v1 = vunpack.c.l.bf16 %v1074_v58  ;;  %v980_v4 = vrot.slane %v958_v53, %v11553_v25  ;;  %v1021_v6 = vunpack.c.l.bf16 %v1014_v62  ;;  %v1045_v8 = vrot.slane %v1020_v56, %v11553_v25  ;;  %v1012_v31 = vld [vmem:[#allocation2 + $0x8] sm:$0x1] }
  0x31   : > { %v920_v5 = vrot.slane %v898_v55, %v11553_v25  ;;  %v1075_v7 = vld [vmem:[#allocation2 + $0x18] sm:$0x1]  ;;  %v900_v9 = vunpack.c.l.bf16 %v894_v63  ;;  %v959_v12 = vunpack.c.l.bf16 %v952_v59  ;;  %v1175_v14 = vld [vmem:[#allocation2 + $0x10] sm:$0x1]  ;;  %v1206_v15 = vrot.slane %v1182_v2, %v11553_v25  ;;  %v1073_v44 = vld [vmem:[#allocation2 + $0x8] sm:$0x1] }
  0x32   : > { %v1082_v10 = vunpack.c.l.bf16 %v1075_v7  ;;  %v953_v11 = vld [vmem:[#allocation2 + $0x18] sm:$0x1]  ;;  %v993_v16 = vcombine.low %v976_v54, %v980_v4  ;;  %v1049_v17 = vrot.slane %v1021_v6, %v11553_v25  ;;  %v924_v18 = vrot.slane %v899_v0, %v11553_v25  ;;  %v1226_v48 = vld [vmem:[#allocation2 + $0x8] sm:$0x1]  ;;  %v1227_v54 = vld [vmem:[#allocation2 + $0x10] sm:$0x1] }
  0x33   : > { %v933_v19 = vcombine.low %v916_v61, %v920_v5  ;;  %v928_v21 = vrot.slane %v900_v9, %v11553_v25  ;;  %v1106_v22 = vrot.slane %v1081_v1, %v11553_v25  ;;  %1213 = vrot.lane.b32.xlu1 %v1206_v15, %s13427_s1  ;;  %v960_v28 = vunpack.c.l.bf16 %v953_v11  ;;  %v1228_v32 = vld [vmem:[#allocation2 + $0x18] sm:$0x1]  ;;  %v1278_v58 = vld [vmem:[#allocation2 + $0x8] sm:$0x1]  ;;  %v1279_v62 = vld [vmem:[#allocation2 + $0x10] sm:$0x1] }
  0x34   : > { %v1110_v23 = vrot.slane %v1082_v10, %v11553_v25  ;;  %995 = vrot.lane.b32.xlu0 %v993_v16, %s13417_s4  ;;  %v1055_v24 = vcombine.low %v1045_v8, %v1049_v17  ;;  %v1180_v29 = vunpack.c.l.bf16 %v1174_v13  ;;  %v1181_v30 = vunpack.c.l.bf16 %v1175_v14  ;;  %v1280_v33 = vld [vmem:[#allocation2 + $0x18] sm:$0x1]  ;;  %v1330_v2 = vld [vmem:[#allocation2 + $0x8] sm:$0x1]  ;;  %v1331_v4 = vld [vmem:[#allocation2 + $0x10] sm:$0x1] }
  0x35   : > { %v1332_v34 = vld [vmem:[#allocation2 + $0x18] sm:$0x1]  ;;  %v934_v36 = vcombine.low %v924_v18, %v928_v21  ;;  %v984_v38 = vrot.slane %v959_v12, %v11553_v25  ;;  %v988_v40 = vrot.slane %v960_v28, %v11553_v25  ;;  %v1019_v43 = vunpack.c.l.bf16 %v1012_v31 }
  0x36   : > { %v11593_v35 = vld [vmem:[#allocation2 + $0x18] sm:$0x1]  ;;  %v1116_v37 = vcombine.low %v1106_v22, %v1110_v23  ;;  %v1198_v41 = vrot.slane %v1180_v29, %v11553_v25  ;;  %v1202_v42 = vrot.slane %v1181_v30, %v11553_v25  ;;  %v1080_v53 = vunpack.c.l.bf16 %v1073_v44 }
  0x37   : > { %1464 = vst.msk [vmem:[#allocation2 + $0x18] sm:$0x3] %vm13452_vm10, %v11336_v3  ;;  %935 = vrot.lane.b32.xlu1 %v933_v19, %s13415_s9  ;;  %v994_v50 = vcombine.low %v984_v38, %v988_v40  ;;  %v1041_v52 = vrot.slane %v1019_v43, %v11553_v25  ;;  %v1335_v55 = vunpack.c.l.bf16 %v9588_v45  ;;  %v1232_v56 = vunpack.c.l.bf16 %v1226_v48 }
  0x38   : > { %1058 = vrot.lane.b32.xlu0 %v1055_v24, %s13413_s30  ;;  %v1210_v51 = vcombine.low %v1198_v41, %v1202_v42  ;;  %v1233_v57 = vunpack.c.l.bf16 %v1227_v54  ;;  %v1098_v59 = vrot.slane %v1079_v49, %v11553_v25  ;;  %v1102_v60 = vrot.slane %v1080_v53, %v11553_v25  ;;  %v1133_v49 = vld [vmem:[#allocation2 + $0x8] sm:$0x1] }
  0x39   : > { %v1054_v47 = vcombine.low %v1037_v46, %v1041_v52  ;;  %v1234_v61 = vunpack.c.l.bf16 %v1228_v32  ;;  %v1250_v63 = vrot.slane %v1232_v56, %v11553_v25  ;;  %v1286_v1 = vunpack.c.l.bf16 %v1280_v33 }
  0x3a   : > { %v1254_v0 = vrot.slane %v1233_v57, %v11553_v25  ;;  %v1115_v5 = vcombine.low %v1098_v59, %v1102_v60  ;;  %v1284_v7 = vunpack.c.l.bf16 %v1278_v58  ;;  %v1285_v8 = vunpack.c.l.bf16 %v1279_v62  ;;  %v1134_v57 = vld [vmem:[#allocation2 + $0x10] sm:$0x1] }
  0x3b   : > { %937 = vrot.lane.b32.xlu1 %v934_v36, %s13415_s9  ;;  %v1258_v6 = vrot.slane %v1234_v61, %v11553_v25  ;;  %v1310_v10 = vrot.slane %v1286_v1, %v11553_v25  ;;  %v1338_v11 = vunpack.c.l.bf16 %v1332_v34  ;;  %v1336_v14 = vunpack.c.l.bf16 %v1330_v2 }
  0x3c   : > { %1119 = vrot.lane.b32.xlu0 %v1116_v37, %s13419_s11  ;;  %v1262_v9 = vcombine.low %v1250_v63, %v1254_v0  ;;  %v1302_v12 = vrot.slane %v1284_v7, %v11553_v25  ;;  %v1306_v13 = vrot.slane %v1285_v8, %v11553_v25  ;;  %v1337_v15 = vunpack.c.l.bf16 %v1331_v4 }
  0x3d   : > { %v1362_v16 = vrot.slane %v1338_v11, %v11553_v25  ;;  %v1354_v18 = vrot.slane %v1336_v14, %v11553_v25  ;;  %v11345_v31 = vmov 839922192   ;;  %v1139_v59 = vunpack.c.l.bf16 %v1133_v49 }
  0x3e   : > { %v1314_v17 = vcombine.low %v1302_v12, %v1306_v13  ;;  %v1358_v19 = vrot.slane %v1337_v15, %v11553_v25  ;;  %v907_v32 = vunpack.c.l.s4 %v11345_v31  ;;  %v1140_v2 = vunpack.c.l.bf16 %v1134_v57 }
  0x3f   : > { %997 = vrot.lane.b32.xlu1 %v994_v50, %s13417_s4  ;;  %v1141_v11 = vunpack.c.l.bf16 %v11593_v35 }
  0x40   : > { %1211 = vrot.lane.b32.xlu0 %v1210_v51, %s13427_s1  ;;  %v1366_v21 = vcombine.low %v1354_v18, %v1358_v19  ;;  %v908_v36 = vunpack.c.0.s8 %v907_v32  ;;  %v1157_v18 = vrot.slane %v1139_v59, %v11553_v25  ;;  %v1161_v19 = vrot.slane %v1140_v2, %v11553_v25 }
  0x42   : > { %v11642_v40 = vsub.s32 %v908_v36, %v11548_v20 }
  0x43   : > { %1056 = vrot.lane.b32.xlu1 %v1054_v47, %s13413_s30 }
  0x44   : > { %1341 = vperm.xlu0 %11148, %v1335_v55  }
  0x47   : > { %1117 = vrot.lane.b32.xlu1 %v1115_v5, %s13419_s11 }
  0x48   : > { %1265 = vrot.lane.b32.xlu0 %v1258_v6, %s13411_s29 }
  0x4b   : > { %1263 = vrot.lane.b32.xlu1 %v1262_v9, %s13411_s29 }
  0x4c   : > { %1317 = vrot.lane.b32.xlu0 %v1310_v10, %s13421_s0 }
  0x4f   : > { %1315 = vrot.lane.b32.xlu1 %v1314_v17, %s13421_s0 }
  0x50   : > { %1369 = vrot.lane.b32.xlu0 %v1362_v16, %s13409_s2 }
  0x53   : > { %1367 = vrot.lane.b32.xlu1 %v1366_v21, %s13409_s2 }
  0x9e   : > { %v11151_v22 = vpop.permute.xlu0 %11150 }
  0x9f   : > { %v11633_v23 = vpop.permute.xlu1 %11166  ;;  %v11153_v39 = vunpack.i.h.bf16 %v11151_v22  ;;  %v11152_v43 = vunpack.i.l.bf16 %v11151_v22 }
  0xa1   : > { %v972_v46 = vrot.slane %v11153_v39, %v11642_v40  ;;  %v912_v55 = vrot.slane %v11152_v43, %v11642_v40  ;;  %v1168_v43 = vcombine.low %v1157_v18, %v1161_v19 }
  0xa2   : > { %v11635_v24 = vpop.permute.xlu0 %11155 }
  0xa3   : > { %v11157_v56 = vunpack.i.l.bf16 %v11635_v24  ;;  %v11158_v6 = vunpack.i.h.bf16 %v11635_v24 }
  0xa5   : > { %v11637_v28 = vpop.permute.xlu1 %1213  ;;  %v1033_v7 = vrot.slane %v11157_v56, %v11642_v40  ;;  %v1094_v24 = vrot.slane %v11158_v6, %v11642_v40 }
  0xa6   : > { %v11639_v29 = vpop.permute.xlu0 %11160 }
  0xa7   : > { %v11162_v10 = vunpack.i.l.bf16 %v11639_v29 }
  0xa9   : > { %v936_v30 = vpop.permute.xlu1 %935 }
  0xaa   : > { %v996_v33 = vpop.permute.xlu0 %995  ;;  %v939_v44 = vrot.slane %v936_v30, 4 }
  0xab   : > { %v999_v50 = vrot.slane %v996_v33, 4 }
  0xad   : > { %v938_v34 = vpop.permute.xlu1 %937 }
  0xae   : > { %v1059_v37 = vpop.permute.xlu0 %1058  ;;  %v940_v42 = vrot.slane %v938_v34, 4 }
  0xaf   : > { %v1061_v53 = vrot.slane %v1059_v37, 4 }
  0xb0   : > { %v945_v52 = vsel %vm13445_vm12, %v938_v34, %v940_v42  ;;  %v942_v60 = vsel %vm941_vm13, %v939_v44, %v940_v42  ;;  %v1165_v34 = vrot.slane %v1141_v11, %v11553_v25  ;;  %v1216_v42 = vrot.slane %v11637_v28, 4 }
  0xb1   : > { %v998_v38 = vpop.permute.xlu1 %997  ;;  %v949_v62 = vmul.f32 %v945_v52, %v912_v55  ;;  %v1065_v4 = vsel %vm13442_vm14, %v1059_v37, %v1061_v53  ;;  %v944_v12 = vsel %vm13445_vm12, %v936_v30, %v942_v60  ;;  %v11163_v30 = vunpack.i.h.bf16 %v11639_v29 }
  0xb2   : > { %v1000_v41 = vrot.slane %v998_v38, 4  ;;  %v1120_v54 = vpop.permute.xlu0 %1119  ;;  %v1069_v14 = vmul.f32 %v1065_v4, %v1033_v7  ;;  %v948_v35 = vmul.f32 %v944_v12, %v912_v55 }
  0xb3   : > { %v1122_v63 = vrot.slane %v1120_v54, 4 }
  0xb4   : > { %v1004_v45 = vsel %vm13449_vm11, %v998_v38, %v1000_v41  ;;  %v1001_v58 = vsel %vm941_vm13, %v999_v50, %v1000_v41  ;;  %v1194_v50 = vrot.slane %v11163_v30, %v11642_v40 }
  0xb5   : > { %v1057_v48 = vpop.permute.xlu1 %1056  ;;  %v1008_v47 = vmul.f32 %v1004_v45, %v972_v46  ;;  %v1003_v5 = vsel %vm13449_vm11, %v996_v33, %v1001_v58  ;;  %v1126_v21 = vsel %vm1124_vm15, %v1120_v54, %v1122_v63  ;;  %v1153_v33 = vrot.slane %v11162_v10, %v11642_v40 }
  0xb6   : > { %v1060_v51 = vrot.slane %v1057_v48, 4  ;;  %v1007_v15 = vmul.f32 %v1003_v5, %v972_v46  ;;  %v1212_v16 = vpop.permute.xlu0 %1211  ;;  %v1130_v36 = vmul.f32 %v1126_v21, %v1094_v24  ;;  %v11168_v46 = vunpack.i.l.bf16 %v11633_v23 }
  0xb7   : > { %v1010_v8 = vadd.f32 %v1008_v47, %v949_v62  ;;  %v1215_v38 = vrot.slane %v1212_v16, 4  ;;  %v1171_v29 = vmul.f32 %v1165_v34, %v1153_v33  ;;  %v11169_v54 = vunpack.i.h.bf16 %v11633_v23 }
  0xb8   : > { %v1062_v0 = vsel %vm941_vm13, %v1060_v51, %v1061_v53  ;;  %v1009_v37 = vadd.f32 %v1007_v15, %v948_v35  ;;  %v1170_v56 = vmul.f32 %v1168_v43, %v1153_v33  ;;  %v1246_v47 = vrot.slane %v11168_v46, %v11642_v40 }
  0xb9   : > { %v1118_v61 = vpop.permute.xlu1 %1117  ;;  %v1064_v13 = vsel %vm13442_vm14, %v1057_v48, %v1062_v0  ;;  %v1071_v31 = vadd.f32 %v1069_v14, %v1010_v8  ;;  %v1217_v51 = vsel %vm941_vm13, %v1215_v38, %v1216_v42  ;;  %v1298_v23 = vrot.slane %v11169_v54, %v11642_v40 }
  0xba   : > { %v1121_v1 = vrot.slane %v1118_v61, 4  ;;  %v1068_v32 = vmul.f32 %v1064_v13, %v1033_v7  ;;  %v1219_v58 = vsel %vm13433_vm0, %v1212_v16, %v1217_v51  ;;  %v1475_v51 = vld [vmem:[#allocation2] sm:$0x3] }
  0xbb   : > { %v1132_v44 = vadd.f32 %v1130_v36, %v1071_v31  ;;  %v1222_v5 = vmul.f32 %v1219_v58, %v1194_v50  ;;  %2488 = vst.msk [vmem:[#allocation2] sm:$0x3] %vm13453_vm9, %v11336_v3  ;;  %vm4463_vm9 = vcmask 253120  }
  0xbc   : > { %v1123_v9 = vsel %vm941_vm13, %v1121_v1, %v1122_v63  ;;  %v1070_v45 = vadd.f32 %v1068_v32, %v1009_v37 }
  0xbd   : > { %v1264_v17 = vpop.permute.xlu1 %1263  ;;  %v1125_v22 = vsel %vm1124_vm15, %v1118_v61, %v1123_v9  ;;  %v1173_v57 = vadd.f32 %v1171_v29, %v1132_v44  ;;  %v1223_v61 = vmul.f32 %v11637_v28, %v1194_v50  ;;  %v844_v28 = vld [vmem:[%s13396_s25] sm:$0x7] }
  0xbe   : > { %v1129_v39 = vmul.f32 %v1125_v22, %v1094_v24  ;;  %v1267_v49 = vrot.slane %v1264_v17, 4  ;;  %v11687_v15 = vrot.slane %v844_v28, %v11553_v25  ;;  %v11691_v16 = vrot.slane %v844_v28, %v866_v27 }
  0xbf   : > { %v1225_v7 = vadd.f32 %v1223_v61, %v1173_v57  ;;  %v11697_v32 = vrot.slane %v844_v28, %v870_v26  ;;  %v11346_v28 = vmov 0.0  }
  0xc0   : > { %v1131_v52 = vadd.f32 %v1129_v39, %v1070_v45  ;;  %v1398_v27 = vcombine.low %v11687_v15, %v11691_v16  ;;  %10272 = vmatprep.subr.bf16.mxu1 %v11346_v28  ;;  %10274 = vmatprep.mubr.msk.bf16.mxu1 %vm11347_vm8, %v11346_v28 }
  0xc1   : > { %v1316_v48 = vpop.permute.xlu1 %1315 }
  0xc2   : > { %v1319_v60 = vrot.slane %v1316_v48, 4  ;;  %v1172_v62 = vadd.f32 %v1170_v56, %v1131_v52 }
  0xc3   : > { %v1342_v41 = vpop.permute.xlu0 %1341 }
  0xc4   : > { %v1350_v6 = vrot.slane %v1342_v41, %v11642_v40  ;;  %v1224_v12 = vadd.f32 %v1222_v5, %v1172_v62 }
  0xc5   : > { %v1368_v1 = vpop.permute.xlu1 %1367 }
  0xc6   : > { %v1371_v11 = vrot.slane %v1368_v1, 4 }
  0xc7   : > { %v1266_v53 = vpop.permute.xlu0 %1265 }
  0xc8   : > { %v1268_v55 = vrot.slane %v1266_v53, 4  ;;  %v1275_v2 = vmul.f32 %v1266_v53, %v1246_v47 }
  0xca   : > { %v1269_v59 = vsel %vm941_vm13, %v1267_v49, %v1268_v55 }
  0xcb   : > { %v1271_v63 = vsel %vm13408_vm1, %v1264_v17, %v1269_v59  ;;  %v1318_v0 = vpop.permute.xlu0 %1317  ;;  %v1277_v17 = vadd.f32 %v1275_v2, %v1225_v7 }
  0xcc   : > { %v1320_v4 = vrot.slane %v1318_v0, 4  ;;  %v1274_v8 = vmul.f32 %v1271_v63, %v1246_v47  ;;  %v1327_v9 = vmul.f32 %v1318_v0, %v1298_v23 }
  0xce   : > { %v1321_v10 = vsel %vm941_vm13, %v1319_v60, %v1320_v4  ;;  %v1276_v22 = vadd.f32 %v1274_v8, %v1224_v12  ;;  %v1329_v24 = vadd.f32 %v1327_v9, %v1277_v17 }
  0xcf   : > { %v1323_v13 = vsel %vm13426_vm2, %v1316_v48, %v1321_v10  ;;  %v1370_v14 = vpop.permute.xlu0 %1369 }
  0xd0   : > { %v1326_v18 = vmul.f32 %v1323_v13, %v1298_v23  ;;  %v1372_v19 = vrot.slane %v1370_v14, 4  ;;  %v1379_v21 = vmul.f32 %v1370_v14, %v1350_v6 }
  0xd2   : > { %v1373_v31 = vsel %vm941_vm13, %v1371_v11, %v1372_v19  ;;  %v1328_v25 = vadd.f32 %v1326_v18, %v1276_v22  ;;  %v1381_v30 = vadd.f32 %v1379_v21, %v1329_v24 }
  0xd3   : > { %v1375_v35 = vsel %vm13407_vm3, %v1368_v1, %v1373_v31 }
  0xd4   : > { %v1378_v33 = vmul.f32 %v1375_v35, %v1350_v6  ;;  %v1401_v37 = vmul.f32 %v11697_v32, %v1381_v30 }
  0xd6   : > { %v1380_v34 = vadd.f32 %v1378_v33, %v1328_v25  ;;  %v1414_v20 = vmul.f32 %v1401_v37, %v1401_v37  ;;  %v1409_v44 = vsel %vm1408_vm4, %v1401_v37, 0.0  ;;  %v9589_v25 = vld [vmem:[%s13478_s7 + $0x2] sm:$0x3] }
  0xd8   : > { %v1400_v36 = vmul.f32 %v1398_v27, %v1380_v34  ;;  %v1421_v29 = vsel %vm1408_vm4, %v1414_v20, 0.0 }
  0xda   : > { %v1403_v38 = vcombine.high %v1400_v36, %v1400_v36  ;;  %v1413_v39 = vmul.f32 %v1400_v36, %v1400_v36  ;;  %v1405_v41 = vsel %vm941_vm13, %v1400_v36, 0.0 }
  0xdc   : > { %v1406_v42 = vsel %vm941_vm13, %v1403_v38, 0.0  ;;  %v1416_v26 = vcombine.high %v1413_v39, %v1413_v39  ;;  %v1418_v45 = vsel %vm941_vm13, %v1413_v39, 0.0 }
  0xdd   : > { %v1407_v43 = vadd.f32 %v1406_v42, %v1405_v41 }
  0xde   : > { %v1419_v48 = vsel %vm941_vm13, %v1416_v26, 0.0  ;;  %v1479_v26 = vld [vmem:[%s13478_s7] sm:$0x3] }
  0xdf   : > { %v1410_v46 = vadd.f32 %v1409_v44, %v1407_v43  ;;  %v1420_v49 = vadd.f32 %v1419_v48, %v1418_v45 }
  0xe1   : > { %1411 = vadd.xlane.f32.xlu1 %v1410_v46  ;;  %v1422_v50 = vadd.f32 %v1421_v29, %v1420_v49 }
  0xe3   : > { %1423 = vadd.xlane.f32.xlu0 %v1422_v50 }
  0xf9   : > { %1486 = vrot.lane.b32.xlu0 %v1475_v51, %s13417_s4 }
 0x16e   : > { %v1412_v52 = vpop.xlane.xlu1 %1411 }
 0x16f   : > { %v1425_v53 = vmul.f32 0.00390625, %v1412_v52 }
 0x170   : > { %v1424_v54 = vpop.xlane.xlu0 %1423 }
 0x171   : > { %v1427_v55 = vmul.f32 %v1425_v53, %v1425_v53  ;;  %v1426_v56 = vmul.f32 0.00390625, %v1424_v54  ;;  %v1436_v47 = vrot.slane %v1425_v53, %v11642_v40 }
 0x173   : > { %v1428_v57 = vsub.f32 %v1426_v56, %v1427_v55  ;;  %v1438_v59 = vsub.f32 %v1380_v34, %v1436_v47  ;;  %v1439_v60 = vsub.f32 %v1381_v30, %v1436_v47  ;;  %v9596_v56 = vld [vmem:[%s13478_s7 + $0x4] sm:$0x3] }
 0x174   : > { %v1487_v13 = vpop.permute.xlu0 %1486 }
 0x175   : > { %v1442_v58 = vadd.f32 1e-05, %v1428_v57  ;;  %v1440_v62 = vmul.f32 %v1438_v59, %v1398_v27  ;;  %v1441_v63 = vmul.f32 %v1439_v60, %v11697_v32  ;;  %v9600_v59 = vld [vmem:[%s13478_s7 + $0x6] sm:$0x3] }
 0x177   : > { %11299 = vrsqrt.f32 %v1442_v58 }
 0x181   : > { %v11300_v61 = vpop.eup %11299 }
 0x182   : > { %v1451_v0 = vrot.slane %v11300_v61, %v11642_v40 }
 0x184   : > { %v1453_v1 = vmul.f32 %v1451_v0, %v1440_v62  ;;  %v1454_v2 = vmul.f32 %v1451_v0, %v1441_v63 }
 0x186   : > { %vm1455_vm5 = vcmp.ge.f32.partialorder %v1453_v1, 0.0  ;;  %vm1456_vm6 = vcmp.ge.f32.partialorder %v1454_v2, 0.0  ;;  %v1457_v23 = vmul.f32 0.01, %v1453_v1  ;;  %v1458_v4 = vmul.f32 0.01, %v1454_v2 }
 0x188   : > { %v1459_v5 = vsel %vm1455_vm5, %v1453_v1, %v1457_v23  ;;  %v1460_v6 = vsel %vm1456_vm6, %v1454_v2, %v1458_v4  ;;  %vm13431_vm5 = vcmask 1041408   ;;  %vm13432_vm6 = vcmask 31744   ;;  %v9604_v23 = vld [vmem:[%s13478_s7 + $0x8] sm:$0x3] }
 0x189   : > { %v1466_v7 = vcombine.high %v1459_v5, %v1459_v5  ;;  %v1468_v8 = vpack.c.bf16 %v1459_v5, %v1459_v5  ;;  %v1470_v9 = vpack.c.bf16 %v1460_v6, %v1460_v6 }
 0x18b   : > { %v1469_v10 = vpack.c.bf16 %v1466_v7, %v1466_v7  ;;  %1471 = vst [vmem:[#allocation2 + $0x8] sm:$0x3] %v1468_v8  ;;  %1474 = vst.msk [vmem:[#allocation2 + $0x18] sm:$0x3] %vm13423_vm7, %v1470_v9 }
 0x18d   : > { %1472 = vst [vmem:[#allocation2 + $0x10] sm:$0x3] %v1469_v10 }
 0x192   : > { %v11718_v40 = vld [vmem:[#allocation2 + $0x18] sm:$0x3]  ;;  %v11720_v11 = vld [vmem:[#allocation2 + $0x8] sm:$0x3] }
 0x193   : > { %1492 = vrot.lane.b32.xlu0 %v11718_v40, %s13417_s4  ;;  %2489 = vst.msk [vmem:[#allocation2 + $0x18] sm:$0x3] %vm13452_vm10, %v11336_v3  ;;  %1488 = vrot.lane.b32.xlu1 %v11720_v11, %s13417_s4  ;;  %v1924_v62 = vsel %vm13431_vm5, %v11720_v11, 0  ;;  %v1930_v63 = vsel %vm13431_vm5, %v11718_v40, 0  ;;  %vm4422_vm10 = vcmask 195584  }
 0x194   : > { %v11728_v12 = vld [vmem:[#allocation2 + $0x10] sm:$0x3] }
 0x197   : > { %1595 = vrot.lane.b32.xlu0 %v11720_v11, %s13415_s9  ;;  %1490 = vrot.lane.b32.xlu1 %v11728_v12, %s13417_s4  ;;  %s13485_s4 = smov 118  }
 0x19b   : > { %1599 = vrot.lane.b32.xlu0 %v11718_v40, %s13415_s9  ;;  %1593 = vrot.lane.b32.xlu1 %v1475_v51, %s13415_s9 }
 0x19f   : > { %1702 = vrot.lane.b32.xlu0 %v11720_v11, %s13413_s30  ;;  %1597 = vrot.lane.b32.xlu1 %v11728_v12, %s13415_s9  ;;  %s13446_s9 = smov 122  }
 0x1a3   : > { %1706 = vrot.lane.b32.xlu0 %v11718_v40, %s13413_s30  ;;  %1700 = vrot.lane.b32.xlu1 %v1475_v51, %s13413_s30 }
 0x1a7   : > { %1812 = vrot.lane.b32.xlu0 %v11720_v11, %s13419_s11  ;;  %1704 = vrot.lane.b32.xlu1 %v11728_v12, %s13413_s30  ;;  %s13438_s30 = smov 119  }
 0x1ab   : > { %1816 = vrot.lane.b32.xlu0 %v11718_v40, %s13419_s11  ;;  %1810 = vrot.lane.b32.xlu1 %v1475_v51, %s13419_s11 }
 0x1af   : > { %2020 = vrot.lane.b32.xlu0 %v11728_v12, %s13427_s1  ;;  %1814 = vrot.lane.b32.xlu1 %v11728_v12, %s13419_s11  ;;  %s13480_s11 = smov 110  }
 0x1b3   : > { %2125 = vrot.lane.b32.xlu0 %v11720_v11, %s13411_s29  ;;  %2018 = vrot.lane.b32.xlu1 %v11720_v11, %s13427_s1 }
 0x1b7   : > { %2129 = vrot.lane.b32.xlu0 %v11718_v40, %s13411_s29  ;;  %2022 = vrot.lane.b32.xlu1 %v11718_v40, %s13427_s1 }
 0x1bb   : > { %2234 = vrot.lane.b32.xlu0 %v11728_v12, %s13421_s0  ;;  %2127 = vrot.lane.b32.xlu1 %v11728_v12, %s13411_s29  ;;  %s13429_s29 = smov 117  }
 0x1bf   : > { %2339 = vrot.lane.b32.xlu0 %v11720_v11, %s13409_s2  ;;  %2232 = vrot.lane.b32.xlu1 %v11720_v11, %s13421_s0 }
 0x1c3   : > { %2343 = vrot.lane.b32.xlu0 %v11718_v40, %s13409_s2  ;;  %2236 = vrot.lane.b32.xlu1 %v11718_v40, %s13421_s0  ;;  %v9608_v40 = vld [vmem:[%s13478_s7 + $0xa] sm:$0x3]  ;;  %s13434_s0 = smov 10  }
 0x1c7   : > { %2341 = vrot.lane.b32.xlu1 %v11728_v12, %s13409_s2  ;;  %s13481_s2 = smov 1  }
 0x205   : > { %v1493_v14 = vpop.permute.xlu0 %1492  ;;  %v1489_v17 = vpop.permute.xlu1 %1488 }
 0x206   : > { %v1495_v18 = vsel %vm13449_vm11, %v1487_v13, %v1489_v17 }
 0x207   : > { %v1504_v31 = vsel %vm13431_vm5, %v1495_v18, 0 }
 0x209   : > { %v1596_v19 = vpop.permute.xlu0 %1595  ;;  %v1491_v21 = vpop.permute.xlu1 %1490 }
 0x20a   : > { %v1496_v22 = vsel %vm13449_vm11, %v1489_v17, %v1491_v21  ;;  %v1497_v24 = vsel %vm13449_vm11, %v1491_v21, %v1493_v14  ;;  %v9612_v21 = vld [vmem:[%s13478_s7 + $0xc] sm:$0x3]  ;;  %vm4008_vm11 = vcmask 39936  }
 0x20b   : > { %9590 = vmatprep.subr.msk.bf16.mxu0 %vm13431_vm5, %v1496_v22  ;;  %v1510_v35 = vsel %vm13431_vm5, %v1497_v24, 0 }
 0x20c   : > { %1513 = vmatpush1.bf16.msra.mxu0 %v1504_v31  ;;  %10273 = vmatpush3.bf16.msra.mxu1 %v1510_v35 }
 0x20d   : > { %v1600_v30 = vpop.permute.xlu0 %1599  ;;  %v1594_v27 = vpop.permute.xlu1 %1593  ;;  %10278 = vmatprep.subr.bf16.mxu1 %v11346_v28 }
 0x20e   : > { %v1602_v33 = vsel %vm13445_vm12, %v1594_v27, %v1596_v19  ;;  %v9616_v27 = vld [vmem:[%s13478_s7 + $0xe] sm:$0x3] }
 0x20f   : > { %9591 = vmatmul.mubr.msk.bf16.vlgmr.msra.gmra.mrb[0].mxu0 %vm13432_vm6, %v9589_v25  ;;  %10275 = vmatmul.mubr.msk.bf16.vlgmr.msra.gmra.mrb[0].mxu1 %vm13432_vm6, %v9589_v25  ;;  %v1609_v39 = vsel %vm13431_vm5, %v1602_v33, 0 }
 0x210   : > { %1649 = vmatprep.mubr.bf16.mxu0 %v11336_v3  ;;  %10280 = vmatprep.mubr.msk.bf16.mxu1 %vm11347_vm8, %v11346_v28 }
 0x211   : > { %v1703_v34 = vpop.permute.xlu0 %1702  ;;  %v1598_v36 = vpop.permute.xlu1 %1597 }
 0x212   : > { %v1604_v37 = vsel %vm13445_vm12, %v1598_v36, %v1600_v30  ;;  %v1603_v38 = vsel %vm13445_vm12, %v1596_v19, %v1598_v36  ;;  %v9620_v36 = vld [vmem:[%s13478_s7 + $0x10] sm:$0x3]  ;;  %vm3864_vm12 = vcmask 1044424   ;;  %s13494_s7 = smov 9  }
 0x213   : > { %9593 = vmatprep.subr.msk.bf16.mxu0 %vm13431_vm5, %v1603_v38  ;;  %v1615_v41 = vsel %vm13431_vm5, %v1604_v37, 0 }
 0x214   : > { %1618 = vmatpush1.bf16.msra.mxu0 %v1609_v39  ;;  %10279 = vmatpush3.bf16.msra.mxu1 %v1615_v41 }
 0x215   : > { %v1701_v42 = vpop.permute.xlu1 %1700  ;;  %10284 = vmatprep.subr.bf16.mxu1 %v11346_v28  ;;  %v1707_v20 = vpop.permute.xlu0 %1706 }
 0x216   : > { %v1709_v43 = vsel %vm13442_vm14, %v1701_v42, %v1703_v34 }
 0x217   : > { %v1716_v49 = vsel %vm13431_vm5, %v1709_v43, 0 }
 0x219   : > { %v1705_v44 = vpop.permute.xlu1 %1704  ;;  %v1813_v29 = vpop.permute.xlu0 %1812 }
 0x21a   : > { %v1711_v45 = vsel %vm13442_vm14, %v1705_v44, %v1707_v20  ;;  %v1710_v48 = vsel %vm13442_vm14, %v1703_v34, %v1705_v44 }
 0x21b   : > { %9594 = vmatmul.mubr.msk.bf16.vlgmr.msra.gmra.mrb[0].mxu0 %vm13432_vm6, %v1479_v26  ;;  %10281 = vmatmul.mubr.msk.bf16.vlgmr.msra.gmra.mrb[0].mxu1 %vm13432_vm6, %v1479_v26  ;;  %v1722_v46 = vsel %vm13431_vm5, %v1711_v45, 0 }
 0x21c   : > { %9597 = vmatprep.subr.msk.bf16.mxu0 %vm13431_vm5, %v1710_v48  ;;  %10285 = vmatpush3.bf16.msra.mxu1 %v1722_v46 }
 0x21d   : > { %1725 = vmatpush1.bf16.msra.mxu0 %v1716_v49  ;;  %v1811_v50 = vpop.permute.xlu1 %1810  ;;  %1756 = vmatprep.mubr.bf16.mxu0 %v11336_v3  ;;  %v1817_v53 = vpop.permute.xlu0 %1816 }
 0x21e   : > { %10286 = vmatprep.mubr.msk.bf16.mxu1 %vm11347_vm8, %v11346_v28  ;;  %10290 = vmatprep.subr.bf16.mxu1 %v11346_v28  ;;  %v1819_v54 = vsel %vm1124_vm15, %v1811_v50, %v1813_v29 }
 0x21f   : > { %v1826_v57 = vsel %vm13431_vm5, %v1819_v54, 0 }
 0x221   : > { %v1815_v51 = vpop.permute.xlu1 %1814  ;;  %v2021_v61 = vpop.permute.xlu0 %2020 }
 0x222   : > { %v1820_v52 = vsel %vm1124_vm15, %v1813_v29, %v1815_v51  ;;  %v1821_v55 = vsel %vm1124_vm15, %v1815_v51, %v1817_v53 }
 0x223   : > { %9601 = vmatprep.subr.msk.bf16.mxu0 %vm13431_vm5, %v1820_v52  ;;  %v1832_v58 = vsel %vm13431_vm5, %v1821_v55, 0 }
 0x225   : > { %v2019_v47 = vpop.permute.xlu1 %2018  ;;  %v2126_v1 = vpop.permute.xlu0 %2125 }
 0x226   : > { %v2025_v2 = vsel %vm13433_vm0, %v2019_v47, %v2021_v61 }
 0x227   : > { %9598 = vmatmul.mubr.msk.bf16.vlgmr.msra.gmra.mrb[0].mxu0 %vm13432_vm6, %v9596_v56  ;;  %10287 = vmatmul.mubr.msk.bf16.vlgmr.msra.gmra.mrb[0].mxu1 %vm13432_vm6, %v9596_v56  ;;  %v2031_v5 = vsel %vm13431_vm5, %v2025_v2, 0 }
 0x228   : > { %1835 = vmatpush1.bf16.msra.mxu0 %v1826_v57  ;;  %10291 = vmatpush3.bf16.msra.mxu1 %v1832_v58 }
 0x229   : > { %9605 = vmatprep.subr.msk.bf16.mxu0 %vm13431_vm5, %v11728_v12  ;;  %1866 = vmatprep.mubr.bf16.mxu0 %v11336_v3  ;;  %v2023_v60 = vpop.permute.xlu1 %2022  ;;  %v2130_v6 = vpop.permute.xlu0 %2129 }
 0x22a   : > { %10292 = vmatprep.mubr.msk.bf16.mxu1 %vm11347_vm8, %v11346_v28  ;;  %10296 = vmatprep.subr.bf16.mxu1 %v11346_v28  ;;  %v2026_v0 = vsel %vm13433_vm0, %v2021_v61, %v2023_v60  ;;  %v2037_v7 = vsel %vm13431_vm5, %v2023_v60, 0  ;;  %v2144_v14 = vsel %vm13431_vm5, %v2130_v6, 0 }
 0x22d   : > { %v2128_v4 = vpop.permute.xlu1 %2127  ;;  %v2235_v12 = vpop.permute.xlu0 %2234 }
 0x22e   : > { %v2133_v8 = vsel %vm13408_vm1, %v2128_v4, %v2130_v6  ;;  %v2132_v10 = vsel %vm13408_vm1, %v2126_v1, %v2128_v4 }
 0x22f   : > { %v2138_v13 = vsel %vm13431_vm5, %v2132_v10, 0 }
 0x231   : > { %v2233_v9 = vpop.permute.xlu1 %2232  ;;  %v2340_v18 = vpop.permute.xlu0 %2339 }
 0x232   : > { %v2239_v19 = vsel %vm13426_vm2, %v2233_v9, %v2235_v12 }
 0x233   : > { %9602 = vmatmul.mubr.msk.bf16.vlgmr.msra.gmra.mrb[0].mxu0 %vm13432_vm6, %v9600_v59  ;;  %10293 = vmatmul.mubr.msk.bf16.vlgmr.msra.gmra.mrb[0].mxu1 %vm13432_vm6, %v9600_v59  ;;  %v2245_v24 = vsel %vm13431_vm5, %v2239_v19, 0 }
 0x234   : > { %1933 = vmatpush1.bf16.msra.mxu0 %v1924_v62  ;;  %10297 = vmatpush3.bf16.msra.mxu1 %v1930_v63 }
 0x235   : > { %9609 = vmatprep.subr.msk.bf16.mxu0 %vm13431_vm5, %v2026_v0  ;;  %1964 = vmatprep.mubr.bf16.mxu0 %v11336_v3  ;;  %v2237_v11 = vpop.permute.xlu1 %2236  ;;  %v2344_v31 = vpop.permute.xlu0 %2343 }
 0x236   : > { %10298 = vmatprep.mubr.msk.bf16.mxu1 %vm11347_vm8, %v11346_v28  ;;  %10302 = vmatprep.subr.bf16.mxu1 %v11346_v28  ;;  %v2240_v17 = vsel %vm13426_vm2, %v2235_v12, %v2237_v11  ;;  %v2251_v35 = vsel %vm13431_vm5, %v2237_v11, 0  ;;  %v2358_v34 = vsel %vm13431_vm5, %v2344_v31, 0 }
 0x239   : > { %v2342_v22 = vpop.permute.xlu1 %2341 }
 0x23a   : > { %v2347_v25 = vsel %vm13407_vm3, %v2342_v22, %v2344_v31  ;;  %v2346_v30 = vsel %vm13407_vm3, %v2340_v18, %v2342_v22  ;;  %v11171_v31 = vld [vmem:[%s13479_s15] sm:$0xff]  }
 0x23b   : > { %v2352_v33 = vsel %vm13431_vm5, %v2346_v30, 0  ;;  %v11180_v30 = vld [vmem:[%s13479_s15 + $0x80] sm:$0xff]  }
 0x23f   : > { %9606 = vmatmul.mubr.msk.bf16.vlgmr.msra.gmra.mrb[0].mxu0 %vm13432_vm6, %v9604_v23  ;;  %10299 = vmatmul.mubr.msk.bf16.vlgmr.msra.gmra.mrb[0].mxu1 %vm13432_vm6, %v9604_v23 }
 0x240   : > { %2040 = vmatpush1.bf16.msra.mxu0 %v2031_v5  ;;  %10303 = vmatpush3.bf16.msra.mxu1 %v2037_v7 }
 0x241   : > { %9613 = vmatprep.subr.msk.bf16.mxu0 %vm13431_vm5, %v2133_v8  ;;  %2071 = vmatprep.mubr.bf16.mxu0 %v11336_v3 }
 0x242   : > { %10304 = vmatprep.mubr.msk.bf16.mxu1 %vm11347_vm8, %v11346_v28  ;;  %10308 = vmatprep.subr.bf16.mxu1 %v11346_v28 }
 0x24b   : > { %9610 = vmatmul.mubr.msk.bf16.vlgmr.msra.gmra.mrb[0].mxu0 %vm13432_vm6, %v9608_v40  ;;  %10305 = vmatmul.mubr.msk.bf16.vlgmr.msra.gmra.mrb[0].mxu1 %vm13432_vm6, %v9608_v40 }
 0x24c   : > { %2147 = vmatpush1.bf16.msra.mxu0 %v2138_v13  ;;  %10309 = vmatpush3.bf16.msra.mxu1 %v2144_v14 }
 0x24d   : > { %9617 = vmatprep.subr.msk.bf16.mxu0 %vm13431_vm5, %v2240_v17  ;;  %2178 = vmatprep.mubr.bf16.mxu0 %v11336_v3 }
 0x24e   : > { %10310 = vmatprep.mubr.msk.bf16.mxu1 %vm11347_vm8, %v11346_v28  ;;  %10314 = vmatprep.subr.bf16.mxu1 %v11346_v28 }
 0x257   : > { %9614 = vmatmul.mubr.msk.bf16.vlgmr.msra.gmra.mrb[0].mxu0 %vm13432_vm6, %v9612_v21  ;;  %10311 = vmatmul.mubr.msk.bf16.vlgmr.msra.gmra.mrb[0].mxu1 %vm13432_vm6, %v9612_v21 }
 0x258   : > { %2254 = vmatpush1.bf16.msra.mxu0 %v2245_v24  ;;  %10315 = vmatpush3.bf16.msra.mxu1 %v2251_v35  ;;  %v11170_v24 = vld [vmem:[%s13479_s15 + $0x40] sm:$0xff]   ;;  %v11172_v35 = vld [vmem:[%s13479_s15 + $0x48] sm:$0xff]  }
 0x259   : > { %9621 = vmatprep.subr.msk.bf16.mxu0 %vm13431_vm5, %v2347_v25  ;;  %2285 = vmatprep.mubr.bf16.mxu0 %v11336_v3  ;;  %v11173_v25 = vld [vmem:[%s13479_s15 + $0x8] sm:$0xff]  }
 0x25a   : > { %10316 = vmatprep.mubr.msk.bf16.mxu1 %vm11347_vm8, %v11346_v28  ;;  %10320 = vmatprep.subr.bf16.mxu1 %v11346_v28 }
 0x263   : > { %9618 = vmatmul.mubr.msk.bf16.vlgmr.msra.gmra.mrb[0].mxu0 %vm13432_vm6, %v9616_v27  ;;  %10317 = vmatmul.mubr.msk.bf16.vlgmr.msra.gmra.mrb[0].mxu1 %vm13432_vm6, %v9616_v27 }
 0x264   : > { %2361 = vmatpush1.bf16.msra.mxu0 %v2352_v33  ;;  %10321 = vmatpush3.bf16.msra.mxu1 %v2358_v34  ;;  %v11174_v33 = vld [vmem:[%s13479_s15 + $0x50] sm:$0xff]  }
 0x265   : > { %2392 = vmatprep.mubr.bf16.mxu0 %v11336_v3  ;;  %10322 = vmatprep.mubr.msk.bf16.mxu1 %vm11347_vm8, %v11346_v28 }
 0x266   : > { %10326 = vmatprep.subr.bf16.mxu1 %v11346_v28  ;;  %10043 = vmatprep.subr.bf16.mxu0 %v11170_v24 }
 0x26f   : > { %9622 = vmatmul.mubr.msk.bf16.vlgmr.msra.gmra.mrb[0].mxu0 %vm13432_vm6, %v9620_v36  ;;  %10323 = vmatmul.mubr.msk.bf16.vlgmr.msra.gmra.mrb[0].mxu1 %vm13432_vm6, %v9620_v36 }
 0x270   : > { %10330 = vmatprep.mubr.msk.bf16.mxu1 %vm11347_vm8, %v11346_v28  ;;  %10044 = vmatpush3.bf16.msra.mxu0 %v11171_v31 }
 0x271   : > { %10045 = vmatprep.subr.bf16.mxu0 %v11172_v35  ;;  %10327 = vmatpush3.bf16.msra.mxu1 %v11180_v30 }
 0x272   : > { %10328 = vmatprep.subr.bf16.mxu1 %v11346_v28 }
 0x274   : > { %10046 = vmatpush3.bf16.msra.mxu0 %v11173_v25 }
 0x275   : > { %10047 = vmatprep.subr.bf16.mxu0 %v11174_v33 }
 0x342   : > { %v2394_v37 = vpop.f32.mrb[0].mxu0  ;;  %v2435_v38 = vpop.f32.mrb[0].mxu1 }
 0x343   : > { %v2444_v39 = vmul.f32 %v2394_v37, %v11687_v15  ;;  %v2446_v41 = vmul.f32 %v2435_v38, %v11697_v32  ;;  %v2396_v42 = vpop.f32.mrb[1].mxu0  ;;  %v10324_v20 = vpop.f32.mrb[1].mxu1 }
 0x344   : > { %v2445_v26 = vmul.f32 %v2396_v42, %v11691_v16  ;;  %v2398_v43 = vpop.f32.mrb[2].mxu0  ;;  %v2438_v44 = vpop.f32.mrb[2].mxu1  ;;  %v11179_v20 = vld [vmem:[%s13479_s15 + $0x20] sm:$0xff]  }
 0x345   : > { %v2447_v45 = vsel %vm941_vm13, %v2444_v39, 0.0  ;;  %v2454_v48 = vmul.f32 %v2444_v39, %v2444_v39  ;;  %v2399_v46 = vpop.f32.mrb[3].mxu0  ;;  %v10325_v49 = vpop.f32.mrb[3].mxu1  ;;  %v2456_v29 = vmul.f32 %v2446_v41, %v2446_v41  ;;  %v2450_v54 = vsel %vm1408_vm4, %v2446_v41, 0.0  ;;  %v11176_v39 = vld [vmem:[%s13479_s15 + $0x58] sm:$0xff]   ;;  %v11182_v43 = vld [vmem:[%s13479_s15 + $0x28] sm:$0xff]  }
 0x346   : > { %v2448_v50 = vsel %vm941_vm13, %v2445_v26, 0.0  ;;  %v2455_v51 = vmul.f32 %v2445_v26, %v2445_v26  ;;  %v11177_v41 = vld [vmem:[%s13479_s15 + $0x18] sm:$0xff]   ;;  %v11181_v26 = vld [vmem:[%s13479_s15 + $0x68] sm:$0xff]   ;;  %v11184_v44 = vld [vmem:[%s13479_s15 + $0x70] sm:$0xff]  }
 0x347   : > { %v2449_v52 = vadd.f32 %v2448_v50, %v2447_v45  ;;  %v2457_v53 = vsel %vm941_vm13, %v2454_v48, 0.0  ;;  %v2460_v58 = vsel %vm1408_vm4, %v2456_v29, 0.0  ;;  %v11185_v45 = vld [vmem:[%s13479_s15 + $0x30] sm:$0xff]   ;;  %v11186_v48 = vld [vmem:[%s13479_s15 + $0x78] sm:$0xff]  }
 0x348   : > { %v2458_v55 = vsel %vm941_vm13, %v2455_v51, 0.0  ;;  %v11187_v46 = vld [vmem:[%s13479_s15 + $0x38] sm:$0xff]  }
 0x349   : > { %v2451_v56 = vadd.f32 %v2450_v54, %v2449_v52  ;;  %v2459_v57 = vadd.f32 %v2458_v55, %v2457_v53 }
 0x34b   : > { %2452 = vadd.xlane.f32.xlu1 %v2451_v56  ;;  %v2461_v47 = vadd.f32 %v2460_v58, %v2459_v57 }
 0x34d   : > { %2462 = vadd.xlane.f32.xlu0 %v2461_v47 }
 0x3d8   : > { %v2453_v59 = vpop.xlane.xlu1 %2452 }
 0x3d9   : > { %v2464_v60 = vmul.f32 0.00390625, %v2453_v59 }
 0x3da   : > { %v2463_v61 = vpop.xlane.xlu0 %2462 }
 0x3db   : > { %v2465_v62 = vmul.f32 0.00390625, %v2463_v61  ;;  %v2466_v63 = vmul.f32 %v2464_v60, %v2464_v60  ;;  %v2468_v2 = vsub.f32 %v2394_v37, %v2464_v60  ;;  %v2469_v23 = vsub.f32 %v2396_v42, %v2464_v60  ;;  %v11183_v37 = vld [vmem:[%s13479_s15 + $0x88] sm:$0xff]   ;;  %v11178_v42 = vld [vmem:[%s13479_s15 + $0x60] sm:$0xff]  }
 0x3dc   : > { %v2470_v4 = vsub.f32 %v2435_v38, %v2464_v60  ;;  %v11175_v38 = vld [vmem:[%s13479_s15 + $0x10] sm:$0xff]   ;;  %10329 = vmatpush3.bf16.msra.mxu1 %v11183_v37 }
 0x3dd   : > { %v2467_v0 = vsub.f32 %v2465_v62, %v2466_v63  ;;  %v2471_v5 = vmul.f32 %v2468_v2, %v11687_v15  ;;  %v2472_v6 = vmul.f32 %v2469_v23, %v11691_v16  ;;  %10334 = vmatprep.subr.bf16.mxu1 %v11346_v28  ;;  %10048 = vmatpush3.bf16.msra.mxu0 %v11175_v38 }
 0x3de   : > { %v2473_v7 = vmul.f32 %v2470_v4, %v11697_v32  ;;  %10049 = vmatprep.subr.bf16.mxu0 %v11176_v39 }
 0x3df   : > { %v2474_v1 = vadd.f32 1e-05, %v2467_v0 }
 0x3e1   : > { %11301 = vrsqrt.f32 %v2474_v1  ;;  %10050 = vmatpush3.bf16.msra.mxu0 %v11177_v41 }
 0x3e2   : > { %10051 = vmatprep.subr.bf16.mxu0 %v11178_v42 }
 0x3e5   : > { %10052 = vmatpush3.bf16.msra.mxu0 %v11179_v20 }
 0x3e6   : > { %10053 = vmatprep.subr.bf16.mxu0 %v11181_v26 }
 0x3e9   : > { %10054 = vmatpush3.bf16.msra.mxu0 %v11182_v43 }
 0x3ea   : > { %10055 = vmatprep.subr.bf16.mxu0 %v11184_v44 }
 0x3eb   : > { %v11302_v8 = vpop.eup %11301 }
 0x3ec   : > { %v2476_v9 = vmul.f32 %v11302_v8, %v2471_v5  ;;  %v2477_v10 = vmul.f32 %v11302_v8, %v2472_v6  ;;  %v2478_v40 = vmul.f32 %v11302_v8, %v2473_v7 }
 0x3ed   : > { %10056 = vmatpush3.bf16.msra.mxu0 %v11185_v45 }
 0x3ee   : > { %vm2479_vm4 = vcmp.ge.f32.partialorder %v2476_v9, 0.0  ;;  %vm2480_vm3 = vcmp.ge.f32.partialorder %v2477_v10, 0.0  ;;  %vm2481_vm1 = vcmp.ge.f32.partialorder %v2478_v40, 0.0  ;;  %v2482_v11 = vmul.f32 0.01, %v2476_v9  ;;  %10057 = vmatprep.subr.bf16.mxu0 %v11186_v48 }
 0x3ef   : > { %v2483_v12 = vmul.f32 0.01, %v2477_v10  ;;  %v2484_v13 = vmul.f32 0.01, %v2478_v40 }
 0x3f0   : > { %v2485_v14 = vsel %vm2479_vm4, %v2476_v9, %v2482_v11  ;;  %vm2677_vm4 = vcmask 261120  }
 0x3f1   : > { %v2486_v17 = vsel %vm2480_vm3, %v2477_v10, %v2483_v12  ;;  %v2487_v18 = vsel %vm2481_vm1, %v2478_v40, %v2484_v13  ;;  %v11919_v19 = vpack.c.bf16 %v2485_v14, %v2485_v14  ;;  %vm2763_vm1 = vcmask 738944   ;;  %10058 = vmatpush3.bf16.msra.mxu0 %v11187_v46 }
 0x3f2   : > { %v2491_v21 = vpack.c.bf16 %v2486_v17, %v2486_v17  ;;  %v2492_v22 = vpack.c.bf16 %v2487_v18, %v2487_v18  ;;  %vm7362_vm3 = vcmask 412928   ;;  %10388 = vmatprep.subr.bf16.mxu0 %v11346_v28 }
 0x3f3   : > { %2493 = vst [vmem:[#allocation2 + $0x8] sm:$0x3] %v11919_v19 }
 0x3f4   : > { %2494 = vst [vmem:[#allocation2 + $0x10] sm:$0x3] %v2491_v21  ;;  %2495 = vst.msk [vmem:[#allocation2 + $0x18] sm:$0x3] %vm13423_vm7, %v2492_v22 }
 0x3fa   : > { %v2496_v27 = vld [vmem:[#allocation2 + $0x8] sm:$0x3] }
 0x3fb   : > { %v2498_v34 = vld [vmem:[#allocation2 + $0x18] sm:$0x3]  ;;  %v2497_v36 = vld [vmem:[#allocation2 + $0x10] sm:$0x3]  ;;  %2764 = vst.msk [vmem:[#allocation2 + $0x8] sm:$0x3] %vm2763_vm1, %v11336_v3 }
 0x3fc   : > { %2506 = vrot.lane.b32.xlu1 %v2498_v34, %s13427_s1  ;;  %2504 = vrot.lane.b32.xlu0 %v2497_v36, %s13427_s1  ;;  %7365 = vst [vmem:[#allocation2 + $0x10] sm:$0x3] %v2491_v21  ;;  %7363 = vst.msk [vmem:[#allocation2 + $0x18] sm:$0xf] %vm7362_vm3, %v11336_v3  ;;  %vm2761_vm1 = vcmask 1042344   ;;  %vm3268_vm3 = vcmask 1044392  }
 0x3fd   : > { %7366 = vst.msk [vmem:[#allocation2 + $0x18] sm:$0x3] %vm13423_vm7, %v2492_v22  ;;  %vm2831_vm7 = vcmask 89088  }
 0x3fe   : > { %2762 = vst.msk [vmem:[#allocation2] sm:$0x3] %vm2761_vm1, %v11336_v3  ;;  %vm3270_vm1 = vcmask 740992  }
 0x400   : > { %2502 = vrot.lane.b32.xlu1 %v2496_v27, %s13427_s1 }
 0x405   : > { %v2768_v63 = vld [vmem:[#allocation2] sm:$0x3] }
 0x406   : > { %3269 = vst.msk [vmem:[#allocation2] sm:$0xf] %vm3268_vm3, %v11336_v3 }
 0x46e   : > { %v2507_v49 = vpop.permute.xlu1 %2506  ;;  %v2505_v29 = vpop.permute.xlu0 %2504 }
 0x46f   : > { %v2515_v50 = vmax.bf16 %v2507_v49, %v2498_v34  ;;  %v2509_v51 = vsel %vm13433_vm0, %v2505_v29, %v2507_v49 }
 0x470   : > { %v2514_v52 = vmax.bf16 %v2509_v51, %v2497_v36 }
 0x471   : > { %2523 = vrot.lane.b32.xlu1 %v2515_v50, %s13480_s11 }
 0x472   : > { %2521 = vrot.lane.b32.xlu0 %v2514_v52, %s13480_s11  ;;  %v2503_v53 = vpop.permute.xlu1 %2502 }
 0x473   : > { %v2508_v54 = vsel %vm13433_vm0, %v2503_v53, %v2505_v29  ;;  %v12093_v53 = vld [vmem:[%s13397_s26] ss:$0 sm:$0xff]  ;;  %vm3273_vm0 = vcmask 650240  }
 0x474   : > { %v2513_v55 = vmax.bf16 %v2508_v54, %v2496_v27 }
 0x475   : > { %2775 = vrot.lane.b32.xlu1 %v2768_v63, %s13434_s0 }
 0x476   : > { %2519 = vrot.lane.b32.xlu0 %v2513_v55, %s13480_s11 }
 0x479   : > { %2827 = vrot.lane.b32.xlu1 %v2768_v63, %s13440_s10 }
 0x47d   : > { %2881 = vrot.lane.b32.xlu1 %v2768_v63, %s13436_s12 }
 0x481   : > { %2936 = vrot.lane.b32.xlu1 %v2768_v63, %s13481_s2 }
 0x4e3   : > { %v2524_v56 = vpop.permute.xlu1 %2523 }
 0x4e4   : > { %v2532_v57 = vmax.bf16 %v2524_v56, %v2515_v50  ;;  %v2522_v58 = vpop.permute.xlu0 %2521 }
 0x4e5   : > { %v2526_v47 = vsel %vm13426_vm2, %v2522_v58, %v2524_v56 }
 0x4e6   : > { %10331 = vmatmul.mubr.msk.bf16.vlgmr.msra.gmra.mrb[4].mxu1 %vm2677_vm4, %v2532_v57  ;;  %v2531_v59 = vmax.bf16 %v2526_v47, %v2514_v52  ;;  %vm2766_vm4 = vcmask 648192  }
 0x4e7   : > { %10336 = vmatprep.mubr.msk.bf16.mxu1 %vm11347_vm8, %v11346_v28  ;;  %v2776_v11 = vpop.permute.xlu1 %2775 }
 0x4e8   : > { %v2520_v60 = vpop.permute.xlu0 %2519  ;;  %2713 = vmatprep.mubr.bf16.mxu0 %v2531_v59 }
 0x4e9   : > { %v2525_v61 = vsel %vm13426_vm2, %v2520_v60, %v2522_v58  ;;  %vm2885_vm2 = vcmask 72704  }
 0x4ea   : > { %v2530_v62 = vmax.bf16 %v2525_v61, %v2513_v55  ;;  %v3275_v61 = vld [vmem:[#allocation2] sm:$0xf] }
 0x4eb   : > { %v2828_v18 = vpop.permute.xlu1 %2827  ;;  %3766 = vst.msk [vmem:[#allocation2] sm:$0xf] %vm3268_vm3, %v11336_v3 }
 0x4ec   : > { %2714 = vmatmul.mubr.bf16.vlgmr.msra.gmra.mrb[4].mxu0 %v2530_v62  ;;  %3865 = vst.msk [vmem:[#allocation2] sm:$0xf] %vm3864_vm12, %v11336_v3  ;;  %vm3869_vm12 = vcmask 191488  }
 0x4ed   : > { %10390 = vmatprep.mubr.msk.bf16.mxu0 %vm11347_vm8, %v11346_v28 }
 0x4ef   : > { %v2882_v35 = vpop.permute.xlu1 %2881 }
 0x4f3   : > { %v2937_v34 = vpop.permute.xlu1 %2936 }
 0x5b9   : > { %v2755_v0 = vpop.f32.mrb[4].mxu1 }
 0x5ba   : > { %v10332_v1 = vpop.f32.mrb[5].mxu1 }
 0x5bb   : > { %v2758_v2 = vpop.f32.mrb[6].mxu1 }
 0x5bc   : > { %v10333_v23 = vpop.f32.mrb[7].mxu1 }
 0x5bf   : > { %v10059_v4 = vpop.f32.mrb[4].mxu0 }
 0x5c0   : > { %v10060_v5 = vpop.f32.mrb[5].mxu0 }
 0x5c1   : > { %v10061_v6 = vadd.f32 %v10060_v5, %v10059_v4  ;;  %v10062_v7 = vpop.f32.mrb[6].mxu0 }
 0x5c2   : > { %v10063_v8 = vpop.f32.mrb[7].mxu0 }
 0x5c3   : > { %v2756_v9 = vadd.f32 %v10061_v6, %v2755_v0 }
 0x5c5   : > { %v2765_v10 = vpack.c.bf16 %v2756_v9, %v2756_v9 }
 0x5c7   : > { %2767 = vst.msk [vmem:[#allocation2 + $0x8] sm:$0x3] %vm2766_vm4, %v2765_v10  ;;  %vm2779_vm4 = vcmask 80896  }
 0x5ce   : > { %v2769_v40 = vld [vmem:[#allocation2 + $0x8] sm:$0x3] }
 0x5cf   : > { %3039 = vrot.lane.b32.xlu1 %v2769_v40, %s13427_s1  ;;  %3271 = vst.msk [vmem:[#allocation2 + $0x8] sm:$0xf] %vm3270_vm1, %v11336_v3  ;;  %2777 = vrot.lane.b32.xlu0 %v2769_v40, %s13434_s0  ;;  %v2994_v41 = vsel %vm13431_vm5, %v2769_v40, 0  ;;  %s13483_s1 = smov 117  }
 0x5d3   : > { %3141 = vrot.lane.b32.xlu1 %v2769_v40, %s13424_s6  ;;  %2829 = vrot.lane.b32.xlu0 %v2769_v40, %s13440_s10  ;;  %s13482_s6 = sld [smem:[#allocation12_spill]] }
 0x5d7   : > { %2883 = vrot.lane.b32.xlu0 %v2769_v40, %s13436_s12 }
 0x5d9   : > { %v9643_v17 = vld [vmem:[%s13482_s6 + $0x4] sm:$0xf]  ;;  %v2770_v30 = vld [vmem:[%s13482_s6] sm:$0xf]  ;;  %v9646_v37 = vld [vmem:[%s13482_s6 + $0x8] sm:$0xf] }
 0x5da   : > { %v9648_v39 = vld [vmem:[%s13482_s6 + $0xc] sm:$0xf]  ;;  %v9650_v20 = vld [vmem:[%s13482_s6 + $0x10] sm:$0xf]  ;;  %v9652_v44 = vld [vmem:[%s13482_s6 + $0x14] sm:$0xf] }
 0x5db   : > { %2938 = vrot.lane.b32.xlu0 %v2769_v40, %s13481_s2  ;;  %v9654_v46 = vld [vmem:[%s13482_s6 + $0x18] sm:$0xf]  ;;  %v9656_v50 = vld [vmem:[%s13482_s6 + $0x1c] sm:$0xf]  ;;  %v9658_v52 = vld [vmem:[%s13482_s6 + $0x20] sm:$0xf] }
 0x5dc   : > { %s13447_s6 = smov 7  }
 0x5df   : > { %3090 = vrot.lane.b32.xlu0 %v2769_v40, %s13438_s30 }
 0x5e3   : > { %3192 = vrot.lane.b32.xlu0 %v2769_v40, %s13429_s29  ;;  %s13484_s29 = smov 127  }
 0x641   : > { %v2778_v12 = vpop.permute.xlu0 %2777  ;;  %v3040_v42 = vpop.permute.xlu1 %3039 }
 0x642   : > { %v2780_v13 = vsel %vm2779_vm4, %v2776_v11, %v2778_v12  ;;  %v3045_v26 = vsel %vm13431_vm5, %v3040_v42, 0 }
 0x643   : > { %v2785_v14 = vsel %vm13431_vm5, %v2780_v13, 0 }
 0x644   : > { %10335 = vmatpush3.bf16.msra.mxu1 %v2785_v14 }
 0x645   : > { %v2830_v21 = vpop.permute.xlu0 %2829  ;;  %10340 = vmatprep.subr.bf16.mxu1 %v11346_v28  ;;  %v3142_v48 = vpop.permute.xlu1 %3141 }
 0x646   : > { %v2832_v22 = vsel %vm2831_vm7, %v2828_v18, %v2830_v21  ;;  %v3147_v49 = vsel %vm13431_vm5, %v3142_v48, 0 }
 0x647   : > { %v2837_v24 = vsel %vm13431_vm5, %v2832_v22, 0  ;;  %10337 = vmatmul.mubr.msk.bf16.vlgmr.msra.gmra.mrb[8].mxu1 %vm13432_vm6, %v9643_v17 }
 0x648   : > { %10341 = vmatpush3.bf16.msra.mxu1 %v2837_v24  ;;  %10342 = vmatprep.mubr.msk.bf16.mxu1 %vm11347_vm8, %v11346_v28 }
 0x649   : > { %10346 = vmatprep.subr.bf16.mxu1 %v11346_v28  ;;  %v2884_v31 = vpop.permute.xlu0 %2883 }
 0x64a   : > { %v2886_v25 = vsel %vm2885_vm2, %v2882_v35, %v2884_v31 }
 0x64b   : > { %v2891_v27 = vsel %vm13431_vm5, %v2886_v25, 0 }
 0x64d   : > { %v2939_v33 = vpop.permute.xlu0 %2938 }
 0x64e   : > { %v2940_v36 = vsel %vm1124_vm15, %v2937_v34, %v2939_v33 }
 0x64f   : > { %v2945_v38 = vsel %vm13431_vm5, %v2940_v36, 0 }
 0x651   : > { %v3091_v43 = vpop.permute.xlu0 %3090 }
 0x652   : > { %v3096_v45 = vsel %vm13431_vm5, %v3091_v43, 0 }
 0x653   : > { %10343 = vmatmul.mubr.msk.bf16.vlgmr.msra.gmra.mrb[8].mxu1 %vm13432_vm6, %v2770_v30 }
 0x654   : > { %10347 = vmatpush3.bf16.msra.mxu1 %v2891_v27  ;;  %10348 = vmatprep.mubr.msk.bf16.mxu1 %vm11347_vm8, %v11346_v28 }
 0x655   : > { %10352 = vmatprep.subr.bf16.mxu1 %v11346_v28  ;;  %v3193_v29 = vpop.permute.xlu0 %3192 }
 0x656   : > { %v3198_v51 = vsel %vm13431_vm5, %v3193_v29, 0  ;;  %vm13454_vm5 = vcmask 654336  }
 0x65f   : > { %10349 = vmatmul.mubr.msk.bf16.vlgmr.msra.gmra.mrb[8].mxu1 %vm13432_vm6, %v9646_v37 }
 0x660   : > { %10353 = vmatpush3.bf16.msra.mxu1 %v2945_v38  ;;  %10354 = vmatprep.mubr.msk.bf16.mxu1 %vm11347_vm8, %v11346_v28 }
 0x661   : > { %10358 = vmatprep.subr.bf16.mxu1 %v11346_v28 }
 0x66b   : > { %10355 = vmatmul.mubr.msk.bf16.vlgmr.msra.gmra.mrb[8].mxu1 %vm13432_vm6, %v9648_v39 }
 0x66c   : > { %10359 = vmatpush3.bf16.msra.mxu1 %v2994_v41  ;;  %10360 = vmatprep.mubr.msk.bf16.mxu1 %vm11347_vm8, %v11346_v28 }
 0x66d   : > { %10364 = vmatprep.subr.bf16.mxu1 %v11346_v28 }
 0x677   : > { %10361 = vmatmul.mubr.msk.bf16.vlgmr.msra.gmra.mrb[8].mxu1 %vm13432_vm6, %v9650_v20 }
 0x678   : > { %10365 = vmatpush3.bf16.msra.mxu1 %v3045_v26  ;;  %10366 = vmatprep.mubr.msk.bf16.mxu1 %vm11347_vm8, %v11346_v28 }
 0x679   : > { %10370 = vmatprep.subr.bf16.mxu1 %v11346_v28 }
 0x683   : > { %10367 = vmatmul.mubr.msk.bf16.vlgmr.msra.gmra.mrb[8].mxu1 %vm13432_vm6, %v9652_v44 }
 0x684   : > { %10371 = vmatpush3.bf16.msra.mxu1 %v3096_v45  ;;  %10372 = vmatprep.mubr.msk.bf16.mxu1 %vm11347_vm8, %v11346_v28 }
 0x685   : > { %10376 = vmatprep.subr.bf16.mxu1 %v11346_v28 }
 0x68f   : > { %10373 = vmatmul.mubr.msk.bf16.vlgmr.msra.gmra.mrb[8].mxu1 %vm13432_vm6, %v9654_v46 }
 0x690   : > { %10377 = vmatpush3.bf16.msra.mxu1 %v3147_v49  ;;  %10378 = vmatprep.mubr.msk.bf16.mxu1 %vm11347_vm8, %v11346_v28 }
 0x691   : > { %10382 = vmatprep.subr.bf16.mxu1 %v11346_v28 }
 0x69b   : > { %10379 = vmatmul.mubr.msk.bf16.vlgmr.msra.gmra.mrb[8].mxu1 %vm13432_vm6, %v9656_v50 }
 0x69c   : > { %10383 = vmatpush3.bf16.msra.mxu1 %v3198_v51  ;;  %10384 = vmatprep.mubr.msk.bf16.mxu1 %vm11347_vm8, %v11346_v28 }
 0x69d   : > { %10442 = vmatprep.subr.bf16.mxu1 %v11346_v28 }
 0x6a7   : > { %10385 = vmatmul.mubr.msk.bf16.vlgmr.msra.gmra.mrb[8].mxu1 %vm13432_vm6, %v9658_v52 }
 0x6a8   : > { %10452 = vmatprep.mubr.msk.bf16.mxu1 %vm11347_vm8, %v11346_v28 }
 0x77a   : > { %v3234_v54 = vpop.f32.mrb[8].mxu1 }
 0x77b   : > { %v3247_v55 = vmul.f32 %v12093_v53, %v3234_v54  ;;  %v10386_v56 = vpop.f32.mrb[9].mxu1 }
 0x77c   : > { %v3237_v57 = vpop.f32.mrb[10].mxu1 }
 0x77d   : > { %v10387_v58 = vpop.f32.mrb[11].mxu1  ;;  %v3249_v47 = vsel %vm13454_vm5, %v3247_v55, 0.0  ;;  %v3252_v59 = vmul.f32 %v3247_v55, %v3247_v55 }
 0x77e   : > { %3250 = vadd.xlane.f32.xlu1 %v3249_v47 }
 0x77f   : > { %v3253_v60 = vsel %vm13454_vm5, %v3252_v59, 0.0 }
 0x780   : > { %3254 = vadd.xlane.f32.xlu0 %v3253_v60 }
 0x796   : > { %3282 = vrot.lane.b32.xlu0 %v3275_v61, %s13434_s0 }
 0x80b   : > { %v3251_v62 = vpop.xlane.xlu1 %3250 }
 0x80c   : > { %v3256_v63 = vmul.f32 0.015625, %v3251_v62 }
 0x80d   : > { %v3255_v0 = vpop.xlane.xlu0 %3254 }
 0x80e   : > { %v3258_v1 = vmul.f32 %v3256_v63, %v3256_v63  ;;  %v3257_v2 = vmul.f32 0.015625, %v3255_v0  ;;  %v3260_v5 = vsub.f32 %v3234_v54, %v3256_v63 }
 0x810   : > { %v3259_v23 = vsub.f32 %v3257_v2, %v3258_v1  ;;  %v3261_v6 = vmul.f32 %v12093_v53, %v3260_v5 }
 0x811   : > { %v3283_v12 = vpop.permute.xlu0 %3282 }
 0x812   : > { %v3262_v4 = vadd.f32 1e-05, %v3259_v23 }
 0x814   : > { %11303 = vrsqrt.f32 %v3262_v4 }
 0x81e   : > { %v11304_v7 = vpop.eup %11303 }
 0x81f   : > { %v3264_v8 = vmul.f32 %v11304_v7, %v3261_v6 }
 0x821   : > { %vm3265_vm6 = vcmp.ge.f32.partialorder %v3264_v8, 0.0  ;;  %v3266_v9 = vmul.f32 0.01, %v3264_v8 }
 0x823   : > { %v3267_v10 = vsel %vm3265_vm6, %v3264_v8, %v3266_v9  ;;  %vm13455_vm6 = vcmask 64512  }
 0x824   : > { %v3272_v40 = vpack.c.bf16 %v3267_v10, %v3267_v10 }
 0x826   : > { %3274 = vst.msk [vmem:[#allocation2 + $0x8] sm:$0xf] %vm3273_vm0, %v3272_v40  ;;  %v11188_v40 = vld [vmem:[%s13389_s18] sm:$0xff]  }
 0x827   : > { %10443 = vmatpush3.bf16.msra.mxu1 %v11188_v40 }
 0x828   : > { %10444 = vmatprep.subr.bf16.mxu1 %v11346_v28 }
 0x82d   : > { %v3276_v11 = vld [vmem:[#allocation2 + $0x8] sm:$0xf] }
 0x82e   : > { %3336 = vrot.lane.b32.xlu0 %v3276_v11, %s13440_s10  ;;  %3767 = vst.msk [vmem:[#allocation2 + $0x8] sm:$0xf] %vm3270_vm1, %v11336_v3  ;;  %3284 = vrot.lane.b32.xlu1 %v3276_v11, %s13434_s0  ;;  %v3499_v42 = vsel %vm941_vm13, %v3276_v11, 0  ;;  %s11356_s0 = smov 5  }
 0x832   : > { %3389 = vrot.lane.b32.xlu0 %v3276_v11, %s13436_s12  ;;  %3334 = vrot.lane.b32.xlu1 %v3275_v61, %s13440_s10  ;;  %s13451_s10 = smov 123  }
 0x836   : > { %3443 = vrot.lane.b32.xlu0 %v3276_v11, %s13481_s2  ;;  %3387 = vrot.lane.b32.xlu1 %v3275_v61, %s13436_s12  ;;  %s13486_s12 = sld [smem:[#allocation13_spill]] }
 0x83a   : > { %3595 = vrot.lane.b32.xlu0 %v3276_v11, %s13438_s30  ;;  %3441 = vrot.lane.b32.xlu1 %v3275_v61, %s13481_s2  ;;  %s13450_s30 = smov 121  }
 0x83c   : > { %v9661_v18 = vld [vmem:[%s13486_s12 + $0x4] sm:$0xf]  ;;  %v3277_v27 = vld [vmem:[%s13486_s12] sm:$0xf]  ;;  %v9664_v38 = vld [vmem:[%s13486_s12 + $0x8] sm:$0xf] }
 0x83d   : > { %v9666_v41 = vld [vmem:[%s13486_s12 + $0xc] sm:$0xf]  ;;  %v9668_v26 = vld [vmem:[%s13486_s12 + $0x10] sm:$0xf]  ;;  %v9670_v45 = vld [vmem:[%s13486_s12 + $0x14] sm:$0xf] }
 0x83e   : > { %3697 = vrot.lane.b32.xlu0 %v3276_v11, %s13483_s1  ;;  %3544 = vrot.lane.b32.xlu1 %v3276_v11, %s13484_s29  ;;  %v9672_v49 = vld [vmem:[%s13486_s12 + $0x18] sm:$0xf]  ;;  %v9674_v51 = vld [vmem:[%s13486_s12 + $0x1c] sm:$0xf] }
 0x83f   : > { %v9676_v54 = vld [vmem:[%s13486_s12 + $0x20] sm:$0xf]  ;;  %s13496_s12 = smov 119  }
 0x842   : > { %3646 = vrot.lane.b32.xlu1 %v3276_v11, %s13485_s4 }
 0x8a0   : > { %v3285_v13 = vpop.permute.xlu1 %3284  ;;  %v3337_v21 = vpop.permute.xlu0 %3336 }
 0x8a1   : > { %v3286_v14 = vsel %vm2779_vm4, %v3283_v12, %v3285_v13  ;;  %v11189_v12 = vld [vmem:[%s13389_s18 + $0x8] sm:$0xff]  }
 0x8a2   : > { %v3292_v17 = vsel %vm941_vm13, %v3286_v14, 0  ;;  %10445 = vmatpush3.bf16.msra.mxu1 %v11189_v12  ;;  %v11191_v14 = vld [vmem:[%s13389_s18 + $0x18] sm:$0xff]  }
 0x8a3   : > { %10389 = vmatpush3.bf16.msra.mxu0 %v3292_v17  ;;  %10446 = vmatprep.subr.bf16.mxu1 %v11346_v28  ;;  %v11192_v17 = vld [vmem:[%s13389_s18 + $0x20] sm:$0xff]  }
 0x8a4   : > { %v3335_v22 = vpop.permute.xlu1 %3334  ;;  %10394 = vmatprep.subr.bf16.mxu0 %v11346_v28  ;;  %v3390_v25 = vpop.permute.xlu0 %3389 }
 0x8a5   : > { %v3338_v24 = vsel %vm2831_vm7, %v3335_v22, %v3337_v21  ;;  %v3871_v22 = vld [vmem:[#allocation2] sm:$0xf] }
 0x8a6   : > { %v3343_v31 = vsel %vm941_vm13, %v3338_v24, 0  ;;  %10391 = vmatmul.mubr.msk.bf16.vlgmr.msra.gmra.mrb[8].mxu0 %vm13455_vm6, %v9661_v18 }
 0x8a7   : > { %10395 = vmatpush3.bf16.msra.mxu0 %v3343_v31  ;;  %10396 = vmatprep.mubr.msk.bf16.mxu0 %vm11347_vm8, %v11346_v28 }
 0x8a8   : > { %10400 = vmatprep.subr.bf16.mxu0 %v11346_v28  ;;  %v3388_v35 = vpop.permute.xlu1 %3387  ;;  %v3444_v36 = vpop.permute.xlu0 %3443 }
 0x8a9   : > { %v3391_v30 = vsel %vm2885_vm2, %v3388_v35, %v3390_v25 }
 0x8aa   : > { %v3396_v33 = vsel %vm941_vm13, %v3391_v30, 0 }
 0x8ac   : > { %v3442_v34 = vpop.permute.xlu1 %3441  ;;  %v3596_v44 = vpop.permute.xlu0 %3595 }
 0x8ad   : > { %v3445_v37 = vsel %vm1124_vm15, %v3442_v34, %v3444_v36  ;;  %v3601_v48 = vsel %vm941_vm13, %v3596_v44, 0 }
 0x8ae   : > { %v3450_v39 = vsel %vm941_vm13, %v3445_v37, 0 }
 0x8b0   : > { %v3545_v20 = vpop.permute.xlu1 %3544  ;;  %v3698_v50 = vpop.permute.xlu0 %3697 }
 0x8b1   : > { %v3550_v43 = vsel %vm941_vm13, %v3545_v20, 0  ;;  %v3703_v52 = vsel %vm941_vm13, %v3698_v50, 0 }
 0x8b2   : > { %10397 = vmatmul.mubr.msk.bf16.vlgmr.msra.gmra.mrb[8].mxu0 %vm13455_vm6, %v3277_v27 }
 0x8b3   : > { %10401 = vmatpush3.bf16.msra.mxu0 %v3396_v33  ;;  %10402 = vmatprep.mubr.msk.bf16.mxu0 %vm11347_vm8, %v11346_v28 }
 0x8b4   : > { %10406 = vmatprep.subr.bf16.mxu0 %v11346_v28  ;;  %v3647_v46 = vpop.permute.xlu1 %3646 }
 0x8b5   : > { %v3652_v29 = vsel %vm941_vm13, %v3647_v46, 0 }
 0x8be   : > { %10403 = vmatmul.mubr.msk.bf16.vlgmr.msra.gmra.mrb[8].mxu0 %vm13455_vm6, %v9664_v38 }
 0x8bf   : > { %10407 = vmatpush3.bf16.msra.mxu0 %v3450_v39  ;;  %10408 = vmatprep.mubr.msk.bf16.mxu0 %vm11347_vm8, %v11346_v28 }
 0x8c0   : > { %10412 = vmatprep.subr.bf16.mxu0 %v11346_v28 }
 0x8ca   : > { %10409 = vmatmul.mubr.msk.bf16.vlgmr.msra.gmra.mrb[8].mxu0 %vm13455_vm6, %v9666_v41  ;;  %v11193_v41 = vld [vmem:[%s13487_s16 + $0x8] sm:$0xff]  }
 0x8cb   : > { %10413 = vmatpush3.bf16.msra.mxu0 %v3499_v42  ;;  %10414 = vmatprep.mubr.msk.bf16.mxu0 %vm11347_vm8, %v11346_v28 }
 0x8cc   : > { %10418 = vmatprep.subr.bf16.mxu0 %v11346_v28 }
 0x8d6   : > { %10415 = vmatmul.mubr.msk.bf16.vlgmr.msra.gmra.mrb[8].mxu0 %vm13455_vm6, %v9668_v26 }
 0x8d7   : > { %10419 = vmatpush3.bf16.msra.mxu0 %v3550_v43  ;;  %10420 = vmatprep.mubr.msk.bf16.mxu0 %vm11347_vm8, %v11346_v28 }
 0x8d8   : > { %10424 = vmatprep.subr.bf16.mxu0 %v11346_v28 }
 0x8e2   : > { %10421 = vmatmul.mubr.msk.bf16.vlgmr.msra.gmra.mrb[8].mxu0 %vm13455_vm6, %v9670_v45 }
 0x8e3   : > { %10425 = vmatpush3.bf16.msra.mxu0 %v3601_v48  ;;  %10426 = vmatprep.mubr.msk.bf16.mxu0 %vm11347_vm8, %v11346_v28  ;;  %v11194_v48 = vld [vmem:[%s13487_s16] sm:$0xff]  }
 0x8e4   : > { %10430 = vmatprep.subr.bf16.mxu0 %v11346_v28 }
 0x8ee   : > { %10427 = vmatmul.mubr.msk.bf16.vlgmr.msra.gmra.mrb[8].mxu0 %vm13455_vm6, %v9672_v49 }
 0x8ef   : > { %10431 = vmatpush3.bf16.msra.mxu0 %v3652_v29  ;;  %10432 = vmatprep.mubr.msk.bf16.mxu0 %vm11347_vm8, %v11346_v28 }
 0x8f0   : > { %10436 = vmatprep.subr.bf16.mxu0 %v11346_v28 }
 0x8fa   : > { %10433 = vmatmul.mubr.msk.bf16.vlgmr.msra.gmra.mrb[8].mxu0 %vm13455_vm6, %v9674_v51  ;;  %v11195_v51 = vld [vmem:[%s13487_s16 + $0x10] sm:$0xff]  }
 0x8fb   : > { %10437 = vmatpush3.bf16.msra.mxu0 %v3703_v52  ;;  %10438 = vmatprep.mubr.msk.bf16.mxu0 %vm11347_vm8, %v11346_v28 }
 0x8fc   : > { %10510 = vmatprep.subr.bf16.mxu0 %v11346_v28 }
 0x906   : > { %10439 = vmatmul.mubr.msk.bf16.vlgmr.msra.gmra.mrb[8].mxu0 %vm13455_vm6, %v9676_v54 }
 0x907   : > { %10512 = vmatprep.mubr.msk.bf16.mxu0 %vm11347_vm8, %v11346_v28 }
 0x9d9   : > { %v3739_v55 = vpop.f32.mrb[8].mxu0 }
 0x9da   : > { %v3746_v56 = vmul.f32 %v12093_v53, %v3739_v55  ;;  %v10440_v57 = vpop.f32.mrb[9].mxu0 }
 0x9db   : > { %v3742_v58 = vpop.f32.mrb[10].mxu0  ;;  %v11197_v57 = vld [vmem:[%s13487_s16 + $0x20] sm:$0xff]  }
 0x9dc   : > { %v10441_v47 = vpop.f32.mrb[11].mxu0  ;;  %v3747_v59 = vsel %vm13454_vm5, %v3746_v56, 0.0  ;;  %v3750_v60 = vmul.f32 %v3746_v56, %v3746_v56 }
 0x9dd   : > { %3748 = vadd.xlane.f32.xlu1 %v3747_v59  ;;  %v11198_v59 = vld [vmem:[%s13487_s16 + $0x28] sm:$0xff]  }
 0x9de   : > { %v3751_v61 = vsel %vm13454_vm5, %v3750_v60, 0.0 }
 0x9df   : > { %3752 = vadd.xlane.f32.xlu0 %v3751_v61 }
 0xa6a   : > { %v3749_v62 = vpop.xlane.xlu1 %3748 }
 0xa6b   : > { %v3754_v63 = vmul.f32 0.015625, %v3749_v62  ;;  %v11199_v62 = vld [vmem:[%s13487_s16 + $0x30] sm:$0xff]  }
 0xa6c   : > { %v3753_v0 = vpop.xlane.xlu0 %3752 }
 0xa6d   : > { %v3756_v1 = vmul.f32 %v3754_v63, %v3754_v63  ;;  %v3755_v2 = vmul.f32 0.015625, %v3753_v0  ;;  %v3758_v5 = vsub.f32 %v3739_v55, %v3754_v63  ;;  %v11196_v55 = vld [vmem:[%s13487_s16 + $0x18] sm:$0xff]  }
 0xa6f   : > { %v3757_v23 = vsub.f32 %v3755_v2, %v3756_v1  ;;  %v3759_v6 = vmul.f32 %v12093_v53, %v3758_v5  ;;  %v11190_v53 = vld [vmem:[%s13389_s18 + $0x10] sm:$0xff]   ;;  %v11200_v1 = vld [vmem:[%s13487_s16 + $0x38] sm:$0xff]   ;;  %v12318_v5 = vld [vmem:[%s13398_s27] ss:$0 sm:$0xff] }
 0xa70   : > { %10447 = vmatpush3.bf16.msra.mxu1 %v11190_v53 }
 0xa71   : > { %v3760_v4 = vadd.f32 1e-05, %v3757_v23  ;;  %10448 = vmatprep.subr.bf16.mxu1 %v11346_v28 }
 0xa73   : > { %11305 = vrsqrt.f32 %v3760_v4  ;;  %v11201_v4 = vld [vmem:[%s13487_s16 + $0x40] sm:$0xff]   ;;  %s13497_s16 = sld [smem:[#allocation15_spill]] }
 0xa74   : > { %10449 = vmatpush3.bf16.msra.mxu1 %v11191_v14 }
 0xa75   : > { %10450 = vmatprep.subr.bf16.mxu1 %v11346_v28 }
 0xa78   : > { %10451 = vmatpush3.bf16.msra.mxu1 %v11192_v17 }
 0xa79   : > { %10456 = vmatprep.subr.bf16.mxu1 %v11346_v28 }
 0xa7d   : > { %v11306_v7 = vpop.eup %11305 }
 0xa7e   : > { %v3762_v8 = vmul.f32 %v11306_v7, %v3759_v6 }
 0xa80   : > { %vm3763_vm14 = vcmp.ge.f32.partialorder %v3762_v8, 0.0  ;;  %v3764_v9 = vmul.f32 0.01, %v3762_v8 }
 0xa82   : > { %v3765_v10 = vsel %vm3763_vm14, %v3762_v8, %v3764_v9  ;;  %vm3866_vm14 = vcmask 249024  }
 0xa83   : > { %v12199_v11 = vpack.c.bf16 %v3765_v10, %v3765_v10 }
 0xa85   : > { %3769 = vst.msk [vmem:[#allocation2 + $0x8] sm:$0xf] %vm3273_vm0, %v12199_v11 }
 0xa8c   : > { %v3770_v13 = vld [vmem:[#allocation2 + $0x8] sm:$0xf] }
 0xa8d   : > { %3772 = vrot.lane.b32.xlu0 %v3770_v13, %s13484_s29  ;;  %3867 = vst.msk [vmem:[#allocation2 + $0x8] sm:$0xf] %vm3866_vm14, %v11336_v3  ;;  %vm3889_vm14 = vcmask 48128  }
 0xaff   : > { %v3773_v18 = vpop.permute.xlu0 %3772 }
 0xb00   : > { %v3775_v21 = vmax.bf16 %v3773_v18, %v3770_v13 }
 0xb02   : > { %3777 = vrot.lane.b32.xlu1 %v3775_v21, %s13485_s4 }
 0xb06   : > { %3885 = vrot.lane.b32.xlu1 %v3871_v22, %s11354_s3 }
 0xb0a   : > { %3943 = vrot.lane.b32.xlu1 %v3871_v22, %s13447_s6 }
 0xb0e   : > { %4004 = vrot.lane.b32.xlu1 %v3871_v22, %s11356_s0 }
 0xb12   : > { %4067 = vrot.lane.b32.xlu1 %v3871_v22, %s13481_s2 }
 0xb74   : > { %v3778_v24 = vpop.permute.xlu1 %3777 }
 0xb75   : > { %v3780_v31 = vmax.bf16 %v3778_v24, %v3775_v21 }
 0xb77   : > { %10453 = vmatmul.mubr.msk.bf16.vlgmr.msra.gmra.mrb[12].mxu1 %vm13454_vm5, %v3780_v31  ;;  %vm4461_vm5 = vcmask 1048520  }
 0xb78   : > { %10458 = vmatprep.mubr.msk.bf16.mxu1 %vm11347_vm8, %v11346_v28  ;;  %v3886_v36 = vpop.permute.xlu1 %3885  ;;  %4462 = vst.msk [vmem:[#allocation2] sm:$0xff] %vm4461_vm5, %v11336_v3 }
 0xb7c   : > { %v3944_v42 = vpop.permute.xlu1 %3943 }
 0xb7f   : > { %v4467_v21 = vld [vmem:[#allocation2] sm:$0xff] }
 0xb80   : > { %v4005_v45 = vpop.permute.xlu1 %4004 }
 0xb84   : > { %v4068_v50 = vpop.permute.xlu1 %4067 }
 0xc4a   : > { %v3858_v35 = vpop.f32.mrb[12].mxu1 }
 0xc4b   : > { %v3868_v25 = vpack.c.bf16 %v3858_v35, %v3858_v35  ;;  %v10454_v30 = vpop.f32.mrb[13].mxu1 }
 0xc4c   : > { %v3861_v27 = vpop.f32.mrb[14].mxu1 }
 0xc4d   : > { %v10455_v33 = vpop.f32.mrb[15].mxu1  ;;  %3870 = vst.msk [vmem:[#allocation2 + $0x8] sm:$0xf] %vm3869_vm12, %v3868_v25  ;;  %vm3947_vm12 = vcmask 56320  }
 0xc54   : > { %v3872_v34 = vld [vmem:[#allocation2 + $0x8] sm:$0xf] }
 0xc55   : > { %4186 = vrot.lane.b32.xlu1 %v3872_v34, %s13484_s29  ;;  %3887 = vrot.lane.b32.xlu0 %v3872_v34, %s11354_s3  ;;  %v4133_v56 = vsel %vm941_vm13, %v3872_v34, 0  ;;  %4464 = vst.msk [vmem:[#allocation2 + $0x8] sm:$0xff] %vm4463_vm9, %v11336_v3 }
 0xc59   : > { %4304 = vrot.lane.b32.xlu1 %v3872_v34, %s13446_s9  ;;  %3945 = vrot.lane.b32.xlu0 %v3872_v34, %s13447_s6  ;;  %s13490_s6 = smov 121   ;;  %s13525_s9 = smov 109  }
 0xc5d   : > { %4006 = vrot.lane.b32.xlu0 %v3872_v34, %s11356_s0 }
 0xc61   : > { %4069 = vrot.lane.b32.xlu0 %v3872_v34, %s13481_s2 }
 0xc65   : > { %4245 = vrot.lane.b32.xlu0 %v3872_v34, %s13451_s10  ;;  %s13488_s10 = smov 7  }
 0xc69   : > { %4363 = vrot.lane.b32.xlu0 %v3872_v34, %s13450_s30  ;;  %s13489_s30 = smov 123  }
 0xcc7   : > { %v3888_v37 = vpop.permute.xlu0 %3887  ;;  %v4187_v58 = vpop.permute.xlu1 %4186 }
 0xcc8   : > { %v3890_v38 = vsel %vm3889_vm14, %v3886_v36, %v3888_v37  ;;  %v4192_v47 = vsel %vm941_vm13, %v4187_v58, 0 }
 0xcc9   : > { %v3895_v39 = vsel %vm941_vm13, %v3890_v38, 0 }
 0xcca   : > { %10457 = vmatpush3.bf16.msra.mxu1 %v3895_v39 }
 0xccb   : > { %v3946_v20 = vpop.permute.xlu0 %3945  ;;  %10462 = vmatprep.subr.bf16.mxu1 %v11346_v28  ;;  %v4305_v63 = vpop.permute.xlu1 %4304 }
 0xccc   : > { %v3948_v26 = vsel %vm3947_vm12, %v3944_v42, %v3946_v20  ;;  %v4310_v0 = vsel %vm941_vm13, %v4305_v63, 0 }
 0xccd   : > { %v3953_v43 = vsel %vm941_vm13, %v3948_v26, 0  ;;  %10459 = vmatmul.mubr.msk.bf16.vlgmr.msra.gmra.mrb[16].mxu1 %vm13455_vm6, %v11193_v41 }
 0xcce   : > { %10463 = vmatpush3.bf16.msra.mxu1 %v3953_v43  ;;  %10464 = vmatprep.mubr.msk.bf16.mxu1 %vm11347_vm8, %v11346_v28 }
 0xccf   : > { %10468 = vmatprep.subr.bf16.mxu1 %v11346_v28  ;;  %v4007_v44 = vpop.permute.xlu0 %4006 }
 0xcd0   : > { %v4009_v46 = vsel %vm4008_vm11, %v4005_v45, %v4007_v44 }
 0xcd1   : > { %v4014_v49 = vsel %vm941_vm13, %v4009_v46, 0 }
 0xcd3   : > { %v4070_v29 = vpop.permute.xlu0 %4069 }
 0xcd4   : > { %v4071_v52 = vsel %vm1124_vm15, %v4068_v50, %v4070_v29 }
 0xcd5   : > { %v4076_v54 = vsel %vm941_vm13, %v4071_v52, 0 }
 0xcd7   : > { %v4246_v60 = vpop.permute.xlu0 %4245 }
 0xcd8   : > { %v4251_v61 = vsel %vm941_vm13, %v4246_v60, 0  ;;  %v11203_v60 = vld [vmem:[%s13388_s17] sm:$0xff]  }
 0xcd9   : > { %10465 = vmatmul.mubr.msk.bf16.vlgmr.msra.gmra.mrb[16].mxu1 %vm13455_vm6, %v11194_v48 }
 0xcda   : > { %10469 = vmatpush3.bf16.msra.mxu1 %v4014_v49  ;;  %10470 = vmatprep.mubr.msk.bf16.mxu1 %vm11347_vm8, %v11346_v28 }
 0xcdb   : > { %10474 = vmatprep.subr.bf16.mxu1 %v11346_v28  ;;  %v4364_v2 = vpop.permute.xlu0 %4363 }
 0xcdc   : > { %v4369_v23 = vsel %vm941_vm13, %v4364_v2, 0 }
 0xce5   : > { %10471 = vmatmul.mubr.msk.bf16.vlgmr.msra.gmra.mrb[16].mxu1 %vm13455_vm6, %v11195_v51 }
 0xce6   : > { %10475 = vmatpush3.bf16.msra.mxu1 %v4076_v54  ;;  %10476 = vmatprep.mubr.msk.bf16.mxu1 %vm11347_vm8, %v11346_v28 }
 0xce7   : > { %10480 = vmatprep.subr.bf16.mxu1 %v11346_v28 }
 0xcf1   : > { %10477 = vmatmul.mubr.msk.bf16.vlgmr.msra.gmra.mrb[16].mxu1 %vm13455_vm6, %v11196_v55 }
 0xcf2   : > { %10481 = vmatpush3.bf16.msra.mxu1 %v4133_v56  ;;  %10482 = vmatprep.mubr.msk.bf16.mxu1 %vm11347_vm8, %v11346_v28 }
 0xcf3   : > { %10486 = vmatprep.subr.bf16.mxu1 %v11346_v28 }
 0xcfd   : > { %10483 = vmatmul.mubr.msk.bf16.vlgmr.msra.gmra.mrb[16].mxu1 %vm13455_vm6, %v11197_v57  ;;  %v11202_v57 = vld [vmem:[%s13388_s17 + $0x8] sm:$0xff]  }
 0xcfe   : > { %10487 = vmatpush3.bf16.msra.mxu1 %v4192_v47  ;;  %10488 = vmatprep.mubr.msk.bf16.mxu1 %vm11347_vm8, %v11346_v28 }
 0xcff   : > { %10492 = vmatprep.subr.bf16.mxu1 %v11346_v28 }
 0xd09   : > { %10489 = vmatmul.mubr.msk.bf16.vlgmr.msra.gmra.mrb[16].mxu1 %vm13455_vm6, %v11198_v59 }
 0xd0a   : > { %10493 = vmatpush3.bf16.msra.mxu1 %v4251_v61  ;;  %10494 = vmatprep.mubr.msk.bf16.mxu1 %vm11347_vm8, %v11346_v28 }
 0xd0b   : > { %10498 = vmatprep.subr.bf16.mxu1 %v11346_v28 }
 0xd15   : > { %10495 = vmatmul.mubr.msk.bf16.vlgmr.msra.gmra.mrb[16].mxu1 %vm13455_vm6, %v11199_v62 }
 0xd16   : > { %10499 = vmatpush3.bf16.msra.mxu1 %v4310_v0  ;;  %10500 = vmatprep.mubr.msk.bf16.mxu1 %vm11347_vm8, %v11346_v28  ;;  %v11204_v0 = vld [vmem:[%s13388_s17 + $0x10] sm:$0xff]  }
 0xd17   : > { %10504 = vmatprep.subr.bf16.mxu1 %v11346_v28 }
 0xd21   : > { %10501 = vmatmul.mubr.msk.bf16.vlgmr.msra.gmra.mrb[16].mxu1 %vm13455_vm6, %v11200_v1 }
 0xd22   : > { %10505 = vmatpush3.bf16.msra.mxu1 %v4369_v23  ;;  %10506 = vmatprep.mubr.msk.bf16.mxu1 %vm11347_vm8, %v11346_v28 }
 0xd23   : > { %10564 = vmatprep.subr.bf16.mxu1 %v11346_v28 }
 0xd2d   : > { %10507 = vmatmul.mubr.msk.bf16.vlgmr.msra.gmra.mrb[16].mxu1 %vm13455_vm6, %v11201_v4  ;;  %vm5458_vm6 = vcmask 1048488   ;;  %v11205_v4 = vld [vmem:[%s13388_s17 + $0x18] sm:$0xff]  }
 0xd2e   : > { %10566 = vmatprep.mubr.msk.bf16.mxu1 %vm11347_vm8, %v11346_v28  ;;  %5459 = vst.msk [vmem:[#allocation2] sm:$0xff] %vm5458_vm6, %v11336_v3  ;;  %vm5460_vm6 = vcmask 745088  }
 0xe00   : > { %v4405_v6 = vpop.f32.mrb[16].mxu1 }
 0xe01   : > { %v4420_v7 = vmul.f32 %v12318_v5, %v4405_v6  ;;  %v10508_v8 = vpop.f32.mrb[17].mxu1 }
 0xe02   : > { %v4408_v9 = vpop.f32.mrb[18].mxu1  ;;  %v11207_v8 = vld [vmem:[%s13388_s17 + $0x28] sm:$0xff]  }
 0xe03   : > { %v4421_v10 = vmul.f32 %v12318_v5, %v4408_v9  ;;  %v10509_v40 = vpop.f32.mrb[19].mxu1  ;;  %v4423_v12 = vsel %vm4422_vm10, %v4420_v7, 0.0  ;;  %v4429_v14 = vmul.f32 %v4420_v7, %v4420_v7 }
 0xe04   : > { %4424 = vadd.xlane.f32.xlu1 %v4423_v12  ;;  %v11209_v12 = vld [vmem:[%s13388_s17 + $0x38] sm:$0xff]  }
 0xe05   : > { %v4426_v53 = vsel %vm4422_vm10, %v4421_v10, 0.0  ;;  %v4430_v13 = vmul.f32 %v4421_v10, %v4421_v10  ;;  %v4431_v18 = vsel %vm4422_vm10, %v4429_v14, 0.0  ;;  %v11208_v10 = vld [vmem:[%s13388_s17 + $0x30] sm:$0xff]  }
 0xe06   : > { %4427 = vadd.xlane.f32.xlu0 %v4426_v53 }
 0xe07   : > { %v4434_v17 = vsel %vm4422_vm10, %v4430_v13, 0.0  ;;  %v11210_v13 = vld [vmem:[%s13388_s17 + $0x40] sm:$0xff]  }
 0xe08   : > { %4435 = vadd.xlane.f32.xlu1 %v4434_v17 }
 0xe0a   : > { %4432 = vadd.xlane.f32.xlu0 %v4431_v18 }
 0xe20   : > { %4481 = vrot.lane.b32.xlu0 %v4467_v21, %s11354_s3 }
 0xe91   : > { %v4425_v22 = vpop.xlane.xlu1 %4424 }
 0xe92   : > { %v4437_v31 = vmul.f32 0.0625, %v4425_v22 }
 0xe93   : > { %v4428_v24 = vpop.xlane.xlu0 %4427 }
 0xe94   : > { %v4438_v35 = vmul.f32 0.0625, %v4428_v24  ;;  %v4441_v34 = vmul.f32 %v4437_v31, %v4437_v31  ;;  %v4445_v20 = vsub.f32 %v4405_v6, %v4437_v31  ;;  %v11206_v6 = vld [vmem:[%s13388_s17 + $0x20] sm:$0xff]  }
 0xe95   : > { %v4436_v25 = vpop.xlane.xlu1 %4435 }
 0xe96   : > { %v4442_v30 = vmul.f32 %v4438_v35, %v4438_v35  ;;  %v4440_v27 = vmul.f32 0.0625, %v4436_v25  ;;  %v4446_v42 = vsub.f32 %v4408_v9, %v4438_v35  ;;  %v4447_v44 = vmul.f32 %v12318_v5, %v4445_v20 }
 0xe97   : > { %v4433_v33 = vpop.xlane.xlu0 %4432 }
 0xe98   : > { %v4444_v36 = vsub.f32 %v4440_v27, %v4442_v30  ;;  %v4439_v37 = vmul.f32 0.0625, %v4433_v33  ;;  %v4448_v26 = vmul.f32 %v12318_v5, %v4446_v42 }
 0xe9a   : > { %v4450_v38 = vadd.f32 1e-05, %v4444_v36  ;;  %v4443_v39 = vsub.f32 %v4439_v37, %v4441_v34  ;;  %v5450_v34 = vld [vmem:[%s13391_s20] sm:$0xff] }
 0xe9b   : > { %v4482_v55 = vpop.permute.xlu0 %4481 }
 0xe9c   : > { %11307 = vrsqrt.f32 %v4450_v38  ;;  %v4449_v41 = vadd.f32 1e-05, %v4443_v39 }
 0xe9e   : > { %11309 = vrsqrt.f32 %v4449_v41 }
 0xea6   : > { %v11308_v43 = vpop.eup %11307 }
 0xea7   : > { %v4454_v45 = vmul.f32 %v11308_v43, %v4448_v26 }
 0xea8   : > { %v11310_v48 = vpop.eup %11309 }
 0xea9   : > { %v4458_v46 = vmul.f32 0.01, %v4454_v45  ;;  %v4453_v49 = vmul.f32 %v11310_v48, %v4447_v44  ;;  %vm4456_vm9 = vcmp.ge.f32.partialorder %v4454_v45, 0.0 }
 0xeab   : > { %vm4455_vm5 = vcmp.ge.f32.partialorder %v4453_v49, 0.0  ;;  %v4457_v29 = vmul.f32 0.01, %v4453_v49  ;;  %v4460_v50 = vsel %vm4456_vm9, %v4454_v45, %v4458_v46  ;;  %vm4487_vm9 = vcmask 130048  }
 0xead   : > { %v4459_v51 = vsel %vm4455_vm5, %v4453_v49, %v4457_v29 }
 0xeae   : > { %v4465_v52 = vpack.c.bf16 %v4460_v50, %v4459_v51 }
 0xeb0   : > { %4466 = vst.msk [vmem:[#allocation2 + $0x8] sm:$0xff] %vm4422_vm10, %v4465_v52 }
 0xeb7   : > { %v4468_v54 = vld [vmem:[#allocation2 + $0x8] sm:$0xff] }
 0xeb8   : > { %4539 = vrot.lane.b32.xlu0 %v4468_v54, %s13488_s10  ;;  %4483 = vrot.lane.b32.xlu1 %v4468_v54, %s11354_s3  ;;  %5461 = vst.msk [vmem:[#allocation2 + $0x8] sm:$0xff] %vm5460_vm6, %v11336_v3  ;;  %s13491_s3 = smov 122  }
 0xeb9   : > { %5462 = vst.msk [vmem:[#allocation2 + $0x8] sm:$0xf] %vm3273_vm0, %v12199_v11 }
 0xebc   : > { %4597 = vrot.lane.b32.xlu0 %v4468_v54, %s11356_s0  ;;  %4537 = vrot.lane.b32.xlu1 %v4467_v21, %s13488_s10  ;;  %s13495_s10 = sld [smem:[#allocation14_spill]] }
 0xec0   : > { %4657 = vrot.lane.b32.xlu0 %v4468_v54, %s13481_s2  ;;  %4595 = vrot.lane.b32.xlu1 %v4467_v21, %s11356_s0  ;;  %s13492_s0 = smov 11  }
 0xec4   : > { %4826 = vrot.lane.b32.xlu0 %v4468_v54, %s13489_s30  ;;  %4655 = vrot.lane.b32.xlu1 %v4467_v21, %s13481_s2  ;;  %s13493_s30 = smov 10  }
 0xec8   : > { %4940 = vrot.lane.b32.xlu0 %v4468_v54, %s13490_s6  ;;  %4769 = vrot.lane.b32.xlu1 %v4468_v54, %s13484_s29  ;;  %s13526_s6 = sld [smem:[#allocation6_spill]] }
 0xecc   : > { %4883 = vrot.lane.b32.xlu1 %v4468_v54, %s13491_s3  ;;  %s13524_s3 = smov 111  }
 0xf2a   : > { %v4484_v11 = vpop.permute.xlu1 %4483  ;;  %v4540_v58 = vpop.permute.xlu0 %4539 }
 0xf2b   : > { %v4485_v56 = vsel %vm3889_vm14, %v4482_v55, %v4484_v11 }
 0xf2c   : > { %10511 = vmatpush3.bf16.msra.mxu0 %v4485_v56 }
 0xf2d   : > { %10516 = vmatprep.subr.bf16.mxu0 %v11346_v28 }
 0xf2e   : > { %v4538_v47 = vpop.permute.xlu1 %4537  ;;  %v4598_v62 = vpop.permute.xlu0 %4597 }
 0xf2f   : > { %v4541_v59 = vsel %vm3947_vm12, %v4538_v47, %v4540_v58  ;;  %10513 = vmatmul.mubr.msk.bf16.vlgmr.msra.gmra.mrb[12].mxu0 %vm4487_vm9, %v11202_v57 }
 0xf30   : > { %10517 = vmatpush3.bf16.msra.mxu0 %v4541_v59  ;;  %10518 = vmatprep.mubr.msk.bf16.mxu0 %vm11347_vm8, %v11346_v28 }
 0xf31   : > { %10522 = vmatprep.subr.bf16.mxu0 %v11346_v28 }
 0xf32   : > { %v4596_v61 = vpop.permute.xlu1 %4595  ;;  %v4658_v2 = vpop.permute.xlu0 %4657 }
 0xf33   : > { %v4599_v63 = vsel %vm4008_vm11, %v4596_v61, %v4598_v62  ;;  %v5030_v61 = vld [vmem:[%s13392_s21] sm:$0xf]  ;;  %v11211_v62 = vld [vmem:[%s13390_s19 + $0xc] sm:$0xff]  }
 0xf36   : > { %v4656_v1 = vpop.permute.xlu1 %4655  ;;  %v4827_v9 = vpop.permute.xlu0 %4826 }
 0xf37   : > { %v4659_v23 = vsel %vm1124_vm15, %v4656_v1, %v4658_v2  ;;  %v11214_v2 = vld [vmem:[%s13390_s19 + $0x8] ss:$0 sps:$4 sm:$0xff]  }
 0xf3a   : > { %v4770_v7 = vpop.permute.xlu1 %4769  ;;  %v4941_v53 = vpop.permute.xlu0 %4940 }
 0xf3b   : > { %10519 = vmatmul.mubr.msk.bf16.vlgmr.msra.gmra.mrb[12].mxu0 %vm4487_vm9, %v11203_v60 }
 0xf3c   : > { %10523 = vmatpush3.bf16.msra.mxu0 %v4599_v63  ;;  %10524 = vmatprep.mubr.msk.bf16.mxu0 %vm11347_vm8, %v11346_v28  ;;  %v11212_v63 = vld [vmem:[%s13390_s19] sm:$0xff]  }
 0xf3d   : > { %10528 = vmatprep.subr.bf16.mxu0 %v11346_v28 }
 0xf3e   : > { %v4884_v40 = vpop.permute.xlu1 %4883 }
 0xf47   : > { %10525 = vmatmul.mubr.msk.bf16.vlgmr.msra.gmra.mrb[12].mxu0 %vm4487_vm9, %v11204_v0  ;;  %v11213_v0 = vld [vmem:[%s13390_s19 + $0x14] ss:$0 sps:$4 sm:$0xff]  }
 0xf48   : > { %10529 = vmatpush3.bf16.msra.mxu0 %v4659_v23  ;;  %10530 = vmatprep.mubr.msk.bf16.mxu0 %vm11347_vm8, %v11346_v28  ;;  %v5141_v1 = vsel %vm941_vm13, %v11213_v0, 0  ;;  %v5196_v23 = vsel %vm941_vm13, %v11214_v2, 0 }
 0xf49   : > { %10534 = vmatprep.subr.bf16.mxu0 %v11346_v28 }
 0xf53   : > { %10531 = vmatmul.mubr.msk.bf16.vlgmr.msra.gmra.mrb[12].mxu0 %vm4487_vm9, %v11205_v4 }
 0xf54   : > { %10535 = vmatpush3.bf16.msra.mxu0 %v4468_v54  ;;  %10536 = vmatprep.mubr.msk.bf16.mxu0 %vm11347_vm8, %v11346_v28 }
 0xf55   : > { %10540 = vmatprep.subr.bf16.mxu0 %v11346_v28 }
 0xf5f   : > { %10537 = vmatmul.mubr.msk.bf16.vlgmr.msra.gmra.mrb[12].mxu0 %vm4487_vm9, %v11206_v6 }
 0xf60   : > { %10541 = vmatpush3.bf16.msra.mxu0 %v4770_v7  ;;  %10542 = vmatprep.mubr.msk.bf16.mxu0 %vm11347_vm8, %v11346_v28 }
 0xf61   : > { %10546 = vmatprep.subr.bf16.mxu0 %v11346_v28 }
 0xf6b   : > { %10543 = vmatmul.mubr.msk.bf16.vlgmr.msra.gmra.mrb[12].mxu0 %vm4487_vm9, %v11207_v8 }
 0xf6c   : > { %10547 = vmatpush3.bf16.msra.mxu0 %v4827_v9  ;;  %10548 = vmatprep.mubr.msk.bf16.mxu0 %vm11347_vm8, %v11346_v28 }
 0xf6d   : > { %10552 = vmatprep.subr.bf16.mxu0 %v11346_v28 }
 0xf77   : > { %10549 = vmatmul.mubr.msk.bf16.vlgmr.msra.gmra.mrb[12].mxu0 %vm4487_vm9, %v11208_v10 }
 0xf78   : > { %10553 = vmatpush3.bf16.msra.mxu0 %v4884_v40  ;;  %10554 = vmatprep.mubr.msk.bf16.mxu0 %vm11347_vm8, %v11346_v28 }
 0xf79   : > { %10558 = vmatprep.subr.bf16.mxu0 %v11346_v28 }
 0xf83   : > { %10555 = vmatmul.mubr.msk.bf16.vlgmr.msra.gmra.mrb[12].mxu0 %vm4487_vm9, %v11209_v12 }
 0xf84   : > { %10559 = vmatpush3.bf16.msra.mxu0 %v4941_v53  ;;  %10560 = vmatprep.mubr.msk.bf16.mxu0 %vm11347_vm8, %v11346_v28 }
 0xf85   : > { %10570 = vmatprep.subr.bf16.mxu0 %v11346_v28 }
 0xf8f   : > { %10561 = vmatmul.mubr.msk.bf16.vlgmr.msra.gmra.mrb[12].mxu0 %vm4487_vm9, %v11210_v13 }
 0xf90   : > { %10572 = vmatprep.mubr.msk.bf16.mxu0 %vm11347_vm8, %v11346_v28 }
0x1062   : > { %v4980_v14 = vpop.f32.mrb[12].mxu0 }
0x1063   : > { %v4989_v17 = vmul.f32 %v12318_v5, %v4980_v14  ;;  %v10562_v18 = vpop.f32.mrb[13].mxu0 }
0x1064   : > { %v4983_v21 = vpop.f32.mrb[14].mxu0  ;;  %v11215_v18 = vld [vmem:[%s13390_s19 + $0x18] sm:$0xff]  }
0x1065   : > { %v4990_v22 = vmul.f32 %v12318_v5, %v4983_v21  ;;  %v10563_v24 = vpop.f32.mrb[15].mxu0  ;;  %v4991_v31 = vsel %vm4422_vm10, %v4989_v17, 0.0  ;;  %v4997_v30 = vmul.f32 %v4989_v17, %v4989_v17  ;;  %v9773_v17 = vld [vmem:[%s13392_s21 + $0xc] sm:$0xf] }
0x1066   : > { %4992 = vadd.xlane.f32.xlu1 %v4991_v31 }
0x1067   : > { %v4994_v35 = vsel %vm4422_vm10, %v4990_v22, 0.0  ;;  %v4998_v25 = vmul.f32 %v4990_v22, %v4990_v22  ;;  %v4999_v33 = vsel %vm4422_vm10, %v4997_v30, 0.0 }
0x1068   : > { %4995 = vadd.xlane.f32.xlu0 %v4994_v35 }
0x1069   : > { %v5002_v27 = vsel %vm4422_vm10, %v4998_v25, 0.0 }
0x106a   : > { %5003 = vadd.xlane.f32.xlu1 %v5002_v27 }
0x106c   : > { %5000 = vadd.xlane.f32.xlu0 %v4999_v33 }
0x1082   : > { %5453 = vperm.xlu0 %11148, %v5450_v34  }
0x10f3   : > { %v4993_v36 = vpop.xlane.xlu1 %4992 }
0x10f4   : > { %v5005_v38 = vmul.f32 0.0625, %v4993_v36 }
0x10f5   : > { %v4996_v37 = vpop.xlane.xlu0 %4995 }
0x10f6   : > { %v5006_v39 = vmul.f32 0.0625, %v4996_v37  ;;  %v5009_v43 = vmul.f32 %v5005_v38, %v5005_v38  ;;  %v5013_v50 = vsub.f32 %v4980_v14, %v5005_v38  ;;  %v9765_v14 = vld [vmem:[%s13392_s21 + $0x8] sm:$0xf] }
0x10f7   : > { %v5004_v41 = vpop.xlane.xlu1 %5003  ;;  %v11217_v38 = vld [vmem:[%s13390_s19 + $0x24] sm:$0xff]  }
0x10f8   : > { %v5010_v42 = vmul.f32 %v5006_v39, %v5006_v39  ;;  %v5008_v20 = vmul.f32 0.0625, %v5004_v41  ;;  %v5014_v29 = vsub.f32 %v4983_v21, %v5006_v39  ;;  %v5015_v54 = vmul.f32 %v12318_v5, %v5013_v50  ;;  %v11216_v21 = vld [vmem:[%s13390_s19 + $0x20] ss:$0 sps:$4 sm:$0xff]  }
0x10f9   : > { %v5001_v26 = vpop.xlane.xlu0 %5000  ;;  %v5301_v22 = vsel %vm941_vm13, %v11216_v21, 0  ;;  %v9786_v21 = vld [vmem:[%s13497_s16 + $0xc] sm:$0xf] }
0x10fa   : > { %v5012_v44 = vsub.f32 %v5008_v20, %v5010_v42  ;;  %v5007_v45 = vmul.f32 0.0625, %v5001_v26  ;;  %v5016_v51 = vmul.f32 %v12318_v5, %v5014_v29  ;;  %v9754_v5 = vld [vmem:[%s13392_s21 + $0x4] sm:$0xf]  ;;  %v11218_v42 = vld [vmem:[%s13390_s19 + $0x2c] ss:$0 sps:$4 sm:$0xff]  }
0x10fb   : > { %v5469_v29 = vld [vmem:[#allocation2] sm:$0xff] }
0x10fc   : > { %v5018_v48 = vadd.f32 1e-05, %v5012_v44  ;;  %v5011_v46 = vsub.f32 %v5007_v45, %v5009_v43  ;;  %v5407_v43 = vsel %vm941_vm13, %v11218_v42, 0  ;;  %5931 = vst.msk [vmem:[#allocation2] sm:$0xf] %vm3268_vm3, %v11336_v3  ;;  %5525 = vrot.lane.b32.xlu0 %v5469_v29, %s13492_s0  ;;  %5476 = vrot.lane.b32.xlu1 %v5469_v29, %s13493_s30  ;;  %vm7360_vm3 = vcmask 1044328  }
0x10fe   : > { %11311 = vrsqrt.f32 %v5018_v48  ;;  %v5017_v49 = vadd.f32 1e-05, %v5011_v46 }
0x1100   : > { %11313 = vrsqrt.f32 %v5017_v49  ;;  %5576 = vrot.lane.b32.xlu0 %v5469_v29, %s13494_s7 }
0x1104   : > { %5628 = vrot.lane.b32.xlu0 %v5469_v29, %s13481_s2 }
0x1108   : > { %v11312_v52 = vpop.eup %11311 }
0x1109   : > { %v5022_v55 = vmul.f32 %v11312_v52, %v5016_v51 }
0x110a   : > { %v11314_v11 = vpop.eup %11313 }
0x110b   : > { %v5021_v56 = vmul.f32 %v11314_v11, %v5015_v54  ;;  %v5026_v57 = vmul.f32 0.01, %v5022_v55  ;;  %vm5024_vm11 = vcmp.ge.f32.partialorder %v5022_v55, 0.0 }
0x110d   : > { %vm5023_vm14 = vcmp.ge.f32.partialorder %v5021_v56, 0.0  ;;  %v5025_v58 = vmul.f32 0.01, %v5021_v56  ;;  %v5028_v59 = vsel %vm5024_vm11, %v5022_v55, %v5026_v57 }
0x110f   : > { %v5027_v47 = vsel %vm5023_vm14, %v5021_v56, %v5025_v58  ;;  %v5454_v58 = vpop.permute.xlu0 %5453 }
0x1110   : > { %v5029_v60 = vpack.c.bf16 %v5028_v59, %v5027_v47 }
0x1112   : > { %10565 = vmatpush3.bf16.msra.mxu1 %v5029_v60  ;;  %10571 = vmatpush3.bf16.msra.mxu0 %v5029_v60 }
0x1113   : > { %10576 = vmatprep.subr.bf16.mxu1 %v11346_v28  ;;  %10584 = vmatprep.subr.bf16.mxu0 %v11346_v28 }
0x1115   : > { %10567 = vmatmul.mubr.msk.bf16.vlgmr.msra.gmra.mrb[20].mxu1 %vm4487_vm9, %v5030_v61  ;;  %10573 = vmatmul.mubr.msk.bf16.vlgmr.msra.gmra.mrb[16].mxu0 %vm4487_vm9, %v9754_v5  ;;  %v12510_v61 = vld [vmem:[%s13397_s26] ss:$0 sm:$0xff] }
0x1116   : > { %10577 = vmatpush3.bf16.msra.mxu1 %v11211_v62  ;;  %10585 = vmatpush3.bf16.msra.mxu0 %v11212_v63 }
0x1117   : > { %10578 = vmatprep.subr.bf16.mxu1 %v11346_v28  ;;  %10586 = vmatprep.subr.bf16.mxu0 %v11346_v28 }
0x1118   : > { %10580 = vmatprep.mubr.msk.bf16.mxu1 %vm11347_vm8, %v11346_v28  ;;  %10588 = vmatprep.mubr.msk.bf16.mxu0 %vm11347_vm8, %v11346_v28 }
0x111a   : > { %10579 = vmatpush3.bf16.msra.mxu1 %v5141_v1  ;;  %10587 = vmatpush3.bf16.msra.mxu0 %v5196_v23  ;;  %v5920_v1 = vld [vmem:[%s13495_s10] sm:$0xff]  ;;  %s13570_s10 = sld [smem:[#allocation9_spill]] }
0x111b   : > { %10592 = vmatprep.subr.bf16.mxu1 %v11346_v28  ;;  %10598 = vmatprep.subr.bf16.mxu0 %v11346_v28 }
0x116e   : > { %v5477_v2 = vpop.permute.xlu1 %5476  ;;  %v5526_v23 = vpop.permute.xlu0 %5525 }
0x11e8   : > { %v5068_v4 = vpop.f32.mrb[20].mxu1  ;;  %v5117_v6 = vpop.f32.mrb[16].mxu0 }
0x11e9   : > { %v5074_v7 = vpack.c.bf16 %v5068_v4, %v5068_v4  ;;  %v5123_v8 = vpack.c.bf16 %v5117_v6, %v5117_v6  ;;  %v10574_v9 = vpop.f32.mrb[17].mxu0  ;;  %v10568_v10 = vpop.f32.mrb[21].mxu1 }
0x11ea   : > { %v5120_v40 = vpop.f32.mrb[18].mxu0  ;;  %v5071_v12 = vpop.f32.mrb[22].mxu1 }
0x11eb   : > { %v10575_v53 = vpop.f32.mrb[19].mxu0  ;;  %10581 = vmatmul.mubr.msk.bf16.vlgmr.msra.gmra.mrb[24].mxu1 %vm4422_vm10, %v5123_v8  ;;  %10589 = vmatmul.mubr.msk.bf16.vlgmr.msra.gmra.mrb[20].mxu0 %vm4422_vm10, %v5074_v7  ;;  %v10569_v13 = vpop.f32.mrb[23].mxu1  ;;  %v9781_v7 = vld [vmem:[%s13497_s16 + $0x4] sm:$0xf]  ;;  %v5471_v40 = vld [vmem:[%s13497_s16] sm:$0xf] }
0x11ec   : > { %10593 = vmatpush3.bf16.msra.mxu1 %v5029_v60  ;;  %10594 = vmatprep.mubr.msk.bf16.mxu1 %vm11347_vm8, %v11346_v28  ;;  %v5577_v9 = vpop.permute.xlu0 %5576  ;;  %v9784_v13 = vld [vmem:[%s13497_s16 + $0x8] sm:$0xf] }
0x11ed   : > { %10606 = vmatprep.subr.bf16.mxu1 %v11346_v28  ;;  %10602 = vmatprep.mubr.msk.bf16.mxu0 %vm11347_vm8, %v11346_v28 }
0x11ee   : > { %10599 = vmatpush3.bf16.msra.mxu0 %v11215_v18 }
0x11ef   : > { %10600 = vmatprep.subr.bf16.mxu0 %v11346_v28 }
0x11f2   : > { %10601 = vmatpush3.bf16.msra.mxu0 %v5301_v22 }
0x11f3   : > { %10595 = vmatmul.mubr.msk.bf16.vlgmr.msra.gmra.mrb[28].mxu1 %vm4487_vm9, %v9765_v14  ;;  %10612 = vmatprep.subr.bf16.mxu0 %v11346_v28  ;;  %v5629_v14 = vpop.permute.xlu0 %5628 }
0x11f4   : > { %10607 = vmatpush3.bf16.msra.mxu1 %v5029_v60  ;;  %10608 = vmatprep.mubr.msk.bf16.mxu1 %vm11347_vm8, %v11346_v28 }
0x11f5   : > { %10620 = vmatprep.subr.bf16.mxu1 %v11346_v28 }
0x11fb   : > { %10609 = vmatmul.mubr.msk.bf16.vlgmr.msra.gmra.mrb[32].mxu1 %vm4487_vm9, %v9773_v17 }
0x11fc   : > { %10622 = vmatprep.mubr.msk.bf16.mxu1 %vm11347_vm8, %v11346_v28 }
0x12be   : > { %v5177_v24 = vpop.f32.mrb[24].mxu1  ;;  %v5232_v31 = vpop.f32.mrb[20].mxu0 }
0x12bf   : > { %v5233_v35 = vadd.f32 %v5232_v31, %v5177_v24  ;;  %v10582_v25 = vpop.f32.mrb[25].mxu1  ;;  %v10590_v30 = vpop.f32.mrb[21].mxu0  ;;  %v9788_v24 = vld [vmem:[%s13497_s16 + $0x10] sm:$0xf] }
0x12c0   : > { %v5180_v27 = vpop.f32.mrb[26].mxu1  ;;  %v5235_v33 = vpop.f32.mrb[22].mxu0  ;;  %v9792_v30 = vld [vmem:[%s13497_s16 + $0x18] sm:$0xf] }
0x12c1   : > { %v10583_v34 = vpop.f32.mrb[27].mxu1  ;;  %v10591_v36 = vpop.f32.mrb[23].mxu0  ;;  %v9794_v33 = vld [vmem:[%s13497_s16 + $0x1c] sm:$0xf] }
0x12c2   : > { %v9796_v34 = vld [vmem:[%s13497_s16 + $0x20] sm:$0xf] }
0x12c3   : > { %v5935_v36 = vld [vmem:[#allocation2] sm:$0xf] }
0x12c4   : > { %7361 = vst.msk [vmem:[#allocation2] sm:$0xf] %vm7360_vm3, %v11336_v3 }
0x12c6   : > { %v5277_v37 = vpop.f32.mrb[28].mxu1 }
0x12c7   : > { %v5283_v39 = vpack.c.bf16 %v5277_v37, %v5277_v37  ;;  %v10596_v41 = vpop.f32.mrb[29].mxu1 }
0x12c8   : > { %v5280_v20 = vpop.f32.mrb[30].mxu1 }
0x12c9   : > { %v10597_v26 = vpop.f32.mrb[31].mxu1  ;;  %10603 = vmatmul.mubr.msk.bf16.vlgmr.msra.gmra.mrb[24].mxu0 %vm4422_vm10, %v5283_v39 }
0x12ca   : > { %10613 = vmatpush3.bf16.msra.mxu0 %v11217_v38  ;;  %10616 = vmatprep.mubr.msk.bf16.mxu0 %vm11347_vm8, %v11346_v28 }
0x12cb   : > { %10614 = vmatprep.subr.bf16.mxu0 %v11346_v28 }
0x12ce   : > { %v5383_v44 = vpop.f32.mrb[32].mxu1  ;;  %10615 = vmatpush3.bf16.msra.mxu0 %v5407_v43 }
0x12cf   : > { %v5389_v45 = vpack.c.bf16 %v5383_v44, %v5383_v44  ;;  %v10610_v48 = vpop.f32.mrb[33].mxu1  ;;  %10626 = vmatprep.subr.bf16.mxu0 %v11346_v28 }
0x12d0   : > { %v5386_v46 = vpop.f32.mrb[34].mxu1 }
0x12d1   : > { %v10611_v49 = vpop.f32.mrb[35].mxu1  ;;  %10617 = vmatmul.mubr.msk.bf16.vlgmr.msra.gmra.mrb[28].mxu0 %vm4422_vm10, %v5389_v45  ;;  %vm5467_vm10 = vcmask 654340  }
0x12d2   : > { %10628 = vmatprep.mubr.msk.bf16.mxu0 %vm11347_vm8, %v11346_v28 }
0x139c   : > { %v5337_v50 = vpop.f32.mrb[24].mxu0 }
0x139d   : > { %v5343_v51 = vadd.f32 %v5337_v50, %v5233_v35  ;;  %v10604_v52 = vpop.f32.mrb[25].mxu0  ;;  %v9790_v35 = vld [vmem:[%s13497_s16 + $0x14] sm:$0xf] }
0x139e   : > { %v5340_v54 = vpop.f32.mrb[26].mxu0 }
0x139f   : > { %v10605_v55 = vpop.f32.mrb[27].mxu0 }
0x13a4   : > { %v5443_v11 = vpop.f32.mrb[28].mxu0 }
0x13a5   : > { %v5449_v56 = vadd.f32 %v5443_v11, %v5343_v51  ;;  %v10618_v57 = vpop.f32.mrb[29].mxu0 }
0x13a6   : > { %v5446_v47 = vpop.f32.mrb[30].mxu0 }
0x13a7   : > { %v5456_v59 = vadd.f32 %v5454_v58, %v5449_v56  ;;  %v10619_v60 = vpop.f32.mrb[31].mxu0 }
0x13a9   : > { %v5457_v5 = vmul.f32 %v12510_v61, %v5456_v59 }
0x13ab   : > { %v5463_v62 = vpack.c.bf16 %v5457_v5, %v5457_v5 }
0x13ad   : > { %v5465_v63 = vrot.slane %v5463_v62, 4 }
0x13af   : > { %5468 = vst.msk [vmem:[#allocation2 + $0x8] sm:$0xf0] %vm5467_vm10, %v5465_v63 }
0x13b6   : > { %v5470_v0 = vld [vmem:[#allocation2 + $0x8] sm:$0xff] }
0x13b7   : > { %5932 = vst.msk [vmem:[#allocation2 + $0x8] sm:$0xf] %vm3270_vm1, %v11336_v3  ;;  %5726 = vrot.lane.b32.xlu0 %v5470_v0, %s13484_s29  ;;  %5478 = vrot.lane.b32.xlu1 %v5470_v0, %s13493_s30 }
0x13bb   : > { %5824 = vrot.lane.b32.xlu0 %v5470_v0, %s13485_s4  ;;  %5527 = vrot.lane.b32.xlu1 %v5470_v0, %s13492_s0 }
0x13bf   : > { %5923 = vperm.xlu0 %11148, %v5920_v1   ;;  %5578 = vrot.lane.b32.xlu1 %v5470_v0, %s13494_s7 }
0x13c3   : > { %5630 = vrot.lane.b32.xlu1 %v5470_v0, %s13481_s2 }
0x13c7   : > { %5775 = vrot.lane.b32.xlu1 %v5470_v0, %s13496_s12 }
0x13cb   : > { %5873 = vrot.lane.b32.xlu1 %v5470_v0, %s13483_s1 }
0x13cf   : > { %5942 = vrot.lane.b32.xlu1 %v5935_v36, %s13493_s30 }
0x13d3   : > { %5993 = vrot.lane.b32.xlu1 %v5935_v36, %s13492_s0 }
0x13d7   : > { %6046 = vrot.lane.b32.xlu1 %v5935_v36, %s13494_s7 }
0x13db   : > { %6100 = vrot.lane.b32.xlu1 %v5935_v36, %s13481_s2 }
0x1429   : > { %v5479_v4 = vpop.permute.xlu1 %5478  ;;  %v5727_v22 = vpop.permute.xlu0 %5726 }
0x142a   : > { %v5480_v6 = vsel %vm2779_vm4, %v5477_v2, %v5479_v4 }
0x142b   : > { %10621 = vmatpush3.bf16.msra.mxu1 %v5480_v6 }
0x142c   : > { %10632 = vmatprep.subr.bf16.mxu1 %v11346_v28 }
0x142d   : > { %v5528_v8 = vpop.permute.xlu1 %5527  ;;  %v5825_v25 = vpop.permute.xlu0 %5824 }
0x142e   : > { %v5529_v10 = vsel %vm2831_vm7, %v5526_v23, %v5528_v8  ;;  %10623 = vmatmul.mubr.msk.bf16.vlgmr.msra.gmra.mrb[36].mxu1 %vm4487_vm9, %v9781_v7 }
0x142f   : > { %10627 = vmatpush3.bf16.msra.mxu0 %v5529_v10  ;;  %10634 = vmatprep.mubr.msk.bf16.mxu1 %vm11347_vm8, %v11346_v28 }
0x1430   : > { %10638 = vmatprep.subr.bf16.mxu0 %v11346_v28 }
0x1431   : > { %v5579_v12 = vpop.permute.xlu1 %5578 }
0x1432   : > { %v5580_v53 = vsel %vm2885_vm2, %v5577_v9, %v5579_v12  ;;  %10629 = vmatmul.mubr.msk.bf16.vlgmr.msra.gmra.mrb[32].mxu0 %vm4487_vm9, %v5471_v40 }
0x1433   : > { %10633 = vmatpush3.bf16.msra.mxu1 %v5580_v53  ;;  %10640 = vmatprep.mubr.msk.bf16.mxu0 %vm11347_vm8, %v11346_v28 }
0x1434   : > { %10644 = vmatprep.subr.bf16.mxu1 %v11346_v28 }
0x1435   : > { %v5631_v17 = vpop.permute.xlu1 %5630 }
0x1436   : > { %v5632_v18 = vsel %vm1124_vm15, %v5629_v14, %v5631_v17  ;;  %10635 = vmatmul.mubr.msk.bf16.vlgmr.msra.gmra.mrb[40].mxu1 %vm4487_vm9, %v9784_v13 }
0x1437   : > { %10639 = vmatpush3.bf16.msra.mxu0 %v5632_v18  ;;  %10645 = vmatpush3.bf16.msra.mxu1 %v5470_v0 }
0x1438   : > { %10650 = vmatprep.subr.bf16.mxu0 %v11346_v28  ;;  %10646 = vmatprep.mubr.msk.bf16.mxu1 %vm11347_vm8, %v11346_v28 }
0x1439   : > { %10656 = vmatprep.subr.bf16.mxu1 %v11346_v28  ;;  %v5776_v31 = vpop.permute.xlu1 %5775 }
0x143a   : > { %10641 = vmatmul.mubr.msk.bf16.vlgmr.msra.gmra.mrb[36].mxu0 %vm4487_vm9, %v9786_v21 }
0x143b   : > { %10651 = vmatpush3.bf16.msra.mxu0 %v5727_v22  ;;  %10652 = vmatprep.mubr.msk.bf16.mxu0 %vm11347_vm8, %v11346_v28 }
0x143c   : > { %10662 = vmatprep.subr.bf16.mxu0 %v11346_v28 }
0x143d   : > { %v5874_v27 = vpop.permute.xlu1 %5873 }
0x143e   : > { %10647 = vmatmul.mubr.msk.bf16.vlgmr.msra.gmra.mrb[44].mxu1 %vm4487_vm9, %v9788_v24  ;;  %v5924_v13 = vpop.permute.xlu0 %5923 }
0x143f   : > { %10657 = vmatpush3.bf16.msra.mxu1 %v5776_v31  ;;  %10658 = vmatprep.mubr.msk.bf16.mxu1 %vm11347_vm8, %v11346_v28 }
0x1440   : > { %10668 = vmatprep.subr.bf16.mxu1 %v11346_v28 }
0x1442   : > { %10653 = vmatmul.mubr.msk.bf16.vlgmr.msra.gmra.mrb[40].mxu0 %vm4487_vm9, %v9790_v35 }
0x1443   : > { %10663 = vmatpush3.bf16.msra.mxu0 %v5825_v25  ;;  %10664 = vmatprep.mubr.msk.bf16.mxu0 %vm11347_vm8, %v11346_v28  ;;  %v6405_v25 = vld [vmem:[%s13384_s13] sm:$0xff] }
0x1444   : > { %10674 = vmatprep.subr.bf16.mxu0 %v11346_v28 }
0x1446   : > { %10659 = vmatmul.mubr.msk.bf16.vlgmr.msra.gmra.mrb[48].mxu1 %vm4487_vm9, %v9792_v30  ;;  %v5943_v30 = vpop.permute.xlu1 %5942 }
0x1447   : > { %10669 = vmatpush3.bf16.msra.mxu1 %v5874_v27  ;;  %10670 = vmatprep.mubr.msk.bf16.mxu1 %vm11347_vm8, %v11346_v28 }
0x1448   : > { %10680 = vmatprep.subr.bf16.mxu1 %v11346_v28 }
0x144a   : > { %10665 = vmatmul.mubr.msk.bf16.vlgmr.msra.gmra.mrb[44].mxu0 %vm4487_vm9, %v9794_v33  ;;  %v5994_v27 = vpop.permute.xlu1 %5993 }
0x144b   : > { %10676 = vmatprep.mubr.msk.bf16.mxu0 %vm11347_vm8, %v11346_v28 }
0x144e   : > { %10671 = vmatmul.mubr.msk.bf16.vlgmr.msra.gmra.mrb[52].mxu1 %vm4487_vm9, %v9796_v34 }
0x144f   : > { %10682 = vmatprep.mubr.msk.bf16.mxu1 %vm11347_vm8, %v11346_v28 }
0x1501   : > { %v5519_v37 = vpop.f32.mrb[36].mxu1 }
0x1502   : > { %v10624_v38 = vpop.f32.mrb[37].mxu1 }
0x1503   : > { %v5522_v39 = vpop.f32.mrb[38].mxu1  ;;  %v9798_v38 = vld [vmem:[%s13385_s14 + $0x4] sm:$0xf] }
0x1504   : > { %v10625_v41 = vpop.f32.mrb[39].mxu1 }
0x1505   : > { %v5568_v42 = vpop.f32.mrb[32].mxu0 }
0x1506   : > { %v5569_v20 = vadd.f32 %v5568_v42, %v5519_v37  ;;  %v10630_v26 = vpop.f32.mrb[33].mxu0  ;;  %v6047_v37 = vpop.permute.xlu1 %6046 }
0x1507   : > { %v5571_v43 = vpop.f32.mrb[34].mxu0 }
0x1508   : > { %v10631_v44 = vpop.f32.mrb[35].mxu0 }
0x1509   : > { %v5619_v45 = vpop.f32.mrb[40].mxu1 }
0x150a   : > { %v5625_v48 = vadd.f32 %v5619_v45, %v5569_v20  ;;  %v10636_v46 = vpop.f32.mrb[41].mxu1  ;;  %v5937_v20 = vld [vmem:[%s13385_s14] sm:$0xf]  ;;  %v6101_v43 = vpop.permute.xlu1 %6100 }
0x150b   : > { %v5622_v49 = vpop.f32.mrb[42].mxu1 }
0x150c   : > { %v10637_v29 = vpop.f32.mrb[43].mxu1 }
0x150d   : > { %v5671_v50 = vpop.f32.mrb[36].mxu0 }
0x150e   : > { %v5677_v51 = vadd.f32 %v5671_v50, %v5625_v48  ;;  %v10642_v52 = vpop.f32.mrb[37].mxu0  ;;  %v9801_v48 = vld [vmem:[%s13385_s14 + $0x8] sm:$0xf] }
0x150f   : > { %v5674_v54 = vpop.f32.mrb[38].mxu0  ;;  %v9803_v52 = vld [vmem:[%s13385_s14 + $0xc] sm:$0xf] }
0x1510   : > { %v10643_v55 = vpop.f32.mrb[39].mxu0 }
0x1511   : > { %v5717_v11 = vpop.f32.mrb[44].mxu1 }
0x1512   : > { %v5723_v56 = vadd.f32 %v5717_v11, %v5677_v51  ;;  %v10648_v57 = vpop.f32.mrb[45].mxu1  ;;  %v9805_v11 = vld [vmem:[%s13385_s14 + $0x10] sm:$0xf] }
0x1513   : > { %v5720_v58 = vpop.f32.mrb[46].mxu1 }
0x1514   : > { %v10649_v47 = vpop.f32.mrb[47].mxu1  ;;  %v9807_v58 = vld [vmem:[%s13385_s14 + $0x14] sm:$0xf] }
0x1515   : > { %v5766_v59 = vpop.f32.mrb[40].mxu0 }
0x1516   : > { %v5772_v60 = vadd.f32 %v5766_v59, %v5723_v56  ;;  %v10654_v5 = vpop.f32.mrb[41].mxu0 }
0x1517   : > { %v5769_v62 = vpop.f32.mrb[42].mxu0 }
0x1518   : > { %v10655_v63 = vpop.f32.mrb[43].mxu0  ;;  %v9811_v62 = vld [vmem:[%s13385_s14 + $0x1c] sm:$0xf] }
0x1519   : > { %v5815_v0 = vpop.f32.mrb[48].mxu1  ;;  %v9813_v63 = vld [vmem:[%s13385_s14 + $0x20] sm:$0xf] }
0x151a   : > { %v5821_v1 = vadd.f32 %v5815_v0, %v5772_v60  ;;  %v10660_v2 = vpop.f32.mrb[49].mxu1  ;;  %v9809_v60 = vld [vmem:[%s13385_s14 + $0x18] sm:$0xf] }
0x151b   : > { %v5818_v23 = vpop.f32.mrb[50].mxu1 }
0x151c   : > { %v10661_v4 = vpop.f32.mrb[51].mxu1 }
0x151d   : > { %v5864_v6 = vpop.f32.mrb[44].mxu0 }
0x151e   : > { %v5870_v7 = vadd.f32 %v5864_v6, %v5821_v1  ;;  %v10666_v8 = vpop.f32.mrb[45].mxu0 }
0x151f   : > { %v5867_v9 = vpop.f32.mrb[46].mxu0 }
0x1520   : > { %v10667_v10 = vpop.f32.mrb[47].mxu0 }
0x1521   : > { %v5913_v40 = vpop.f32.mrb[52].mxu1 }
0x1522   : > { %v5919_v12 = vadd.f32 %v5913_v40, %v5870_v7  ;;  %v10672_v53 = vpop.f32.mrb[53].mxu1 }
0x1523   : > { %v5916_v14 = vpop.f32.mrb[54].mxu1 }
0x1524   : > { %v5926_v17 = vadd.f32 %v5924_v13, %v5919_v12  ;;  %v10673_v18 = vpop.f32.mrb[55].mxu1 }
0x1526   : > { %v5927_v21 = vmul.f32 %v12510_v61, %v5926_v17 }
0x1528   : > { %vm5928_vm1 = vcmp.ge.f32.partialorder %v5927_v21, 0.0  ;;  %v5929_v22 = vmul.f32 0.01, %v5927_v21 }
0x152a   : > { %v5930_v24 = vsel %vm5928_vm1, %v5927_v21, %v5929_v22  ;;  %vm13509_vm1 = vcmask 654336  }
0x152b   : > { %v5933_v31 = vpack.c.bf16 %v5930_v24, %v5930_v24 }
0x152d   : > { %5934 = vst.msk [vmem:[#allocation2 + $0x8] sm:$0xf] %vm3273_vm0, %v5933_v31  ;;  %vm13498_vm0 = vcmask 64512  }
0x152e   : > { %vm13502_vm12 = vmmov %vm13498_vm0 }
0x152f   : > { %vm13503_vm5 = vmmov %vm13498_vm0 }
0x1530   : > { %vm13504_vm6 = vmmov %vm13498_vm0 }
0x1531   : > { %vm13505_vm9 = vmmov %vm13498_vm0 }
0x1532   : > { %vm13506_vm11 = vmmov %vm13498_vm0 }
0x1533   : > { %vm13507_vm10 = vmmov %vm13498_vm0 }
0x1534   : > { %v5936_v35 = vld [vmem:[#allocation2 + $0x8] sm:$0xf]  ;;  %vm13508_vm3 = vmmov %vm13498_vm0 }
0x1535   : > { %7364 = vst [vmem:[#allocation2 + $0x8] sm:$0x3] %v11919_v19  ;;  %6203 = vrot.lane.b32.xlu1 %v5936_v35, %s13484_s29  ;;  %5944 = vrot.lane.b32.xlu0 %v5936_v35, %s13493_s30  ;;  %v7348_v19 = vld [vmem:[%s13394_s23] sm:$0xf]  ;;  %v6158_v50 = vsel %vm941_vm13, %v5936_v35, 0  ;;  %s13520_s30 = smov 18  }
0x1539   : > { %6305 = vrot.lane.b32.xlu1 %v5936_v35, %s13485_s4  ;;  %5995 = vrot.lane.b32.xlu0 %v5936_v35, %s13492_s0 }
0x153d   : > { %6408 = vperm.xlu1 %11164, %v6405_v25   ;;  %6048 = vrot.lane.b32.xlu0 %v5936_v35, %s13494_s7  ;;  %s13522_s7 = smov 19  }
0x1541   : > { %6102 = vrot.lane.b32.xlu0 %v5936_v35, %s13481_s2 }
0x1545   : > { %6254 = vrot.lane.b32.xlu0 %v5936_v35, %s13496_s12  ;;  %s13523_s12 = smov 17  }
0x1549   : > { %6356 = vrot.lane.b32.xlu0 %v5936_v35, %s13483_s1  ;;  %s13529_s1 = sld [smem:[#allocation7_spill]] }
0x154d   : > { %7351 = vperm.xlu0 %11148, %v7348_v19  }
0x15a7   : > { %v5945_v33 = vpop.permute.xlu0 %5944  ;;  %v6204_v51 = vpop.permute.xlu1 %6203 }
0x15a8   : > { %v5946_v34 = vsel %vm2779_vm4, %v5943_v30, %v5945_v33  ;;  %v6209_v54 = vsel %vm941_vm13, %v6204_v51, 0  ;;  %vm13501_vm4 = vmmov %vm13498_vm0 }
0x15a9   : > { %v5951_v36 = vsel %vm941_vm13, %v5946_v34, 0 }
0x15aa   : > { %10675 = vmatpush3.bf16.msra.mxu0 %v5951_v36 }
0x15ab   : > { %v5996_v39 = vpop.permute.xlu0 %5995  ;;  %10686 = vmatprep.subr.bf16.mxu0 %v11346_v28  ;;  %v6306_v57 = vpop.permute.xlu1 %6305 }
0x15ac   : > { %v5997_v41 = vsel %vm2831_vm7, %v5994_v27, %v5996_v39  ;;  %vm13499_vm7 = vmmov %vm13498_vm0  ;;  %v6311_v47 = vsel %vm941_vm13, %v6306_v57, 0  ;;  %v11221_v57 = vld [vmem:[%s13393_s22 + $0x7c] ss:$12 sps:$4 sm:$0xff]  }
0x15ad   : > { %v6002_v42 = vsel %vm941_vm13, %v5997_v41, 0  ;;  %10677 = vmatmul.mubr.msk.bf16.vlgmr.msra.gmra.mrb[48].mxu0 %vm13498_vm0, %v9798_v38 }
0x15ae   : > { %10681 = vmatpush3.bf16.msra.mxu1 %v6002_v42  ;;  %10688 = vmatprep.mubr.msk.bf16.mxu0 %vm11347_vm8, %v11346_v28 }
0x15af   : > { %v6049_v26 = vpop.permute.xlu0 %6048  ;;  %10692 = vmatprep.subr.bf16.mxu1 %v11346_v28 }
0x15b0   : > { %v6050_v44 = vsel %vm2885_vm2, %v6047_v37, %v6049_v26  ;;  %vm13500_vm2 = vmmov %vm13498_vm0 }
0x15b1   : > { %v6055_v45 = vsel %vm941_vm13, %v6050_v44, 0  ;;  %10683 = vmatmul.mubr.msk.bf16.vlgmr.msra.gmra.mrb[56].mxu1 %vm13499_vm7, %v5937_v20  ;;  %vm13510_vm0 = vmmov %vm13509_vm1 }
0x15b2   : > { %10687 = vmatpush3.bf16.msra.mxu0 %v6055_v45  ;;  %10694 = vmatprep.mubr.msk.bf16.mxu1 %vm11347_vm8, %v11346_v28  ;;  %vm13511_vm7 = vmmov %vm13510_vm0 }
0x15b3   : > { %v6103_v46 = vpop.permute.xlu0 %6102  ;;  %10698 = vmatprep.subr.bf16.mxu0 %v11346_v28 }
0x15b4   : > { %v6104_v49 = vsel %vm1124_vm15, %v6101_v43, %v6103_v46 }
0x15b5   : > { %v6109_v29 = vsel %vm941_vm13, %v6104_v49, 0  ;;  %10689 = vmatmul.mubr.msk.bf16.vlgmr.msra.gmra.mrb[52].mxu0 %vm13500_vm2, %v9801_v48  ;;  %vm13512_vm2 = vmmov %vm13510_vm0 }
0x15b6   : > { %10693 = vmatpush3.bf16.msra.mxu1 %v6109_v29  ;;  %10699 = vmatpush3.bf16.msra.mxu0 %v6158_v50 }
0x15b7   : > { %10704 = vmatprep.subr.bf16.mxu1 %v11346_v28  ;;  %10700 = vmatprep.mubr.msk.bf16.mxu0 %vm11347_vm8, %v11346_v28  ;;  %v6255_v55 = vpop.permute.xlu0 %6254 }
0x15b8   : > { %10710 = vmatprep.subr.bf16.mxu0 %v11346_v28  ;;  %v6260_v56 = vsel %vm941_vm13, %v6255_v55, 0 }
0x15b9   : > { %10695 = vmatmul.mubr.msk.bf16.vlgmr.msra.gmra.mrb[60].mxu1 %vm13501_vm4, %v9803_v52  ;;  %vm13513_vm4 = vmmov %vm13508_vm3 }
0x15ba   : > { %10705 = vmatpush3.bf16.msra.mxu1 %v6209_v54  ;;  %10706 = vmatprep.mubr.msk.bf16.mxu1 %vm11347_vm8, %v11346_v28 }
0x15bb   : > { %10716 = vmatprep.subr.bf16.mxu1 %v11346_v28  ;;  %v6357_v59 = vpop.permute.xlu0 %6356 }
0x15bc   : > { %v6362_v5 = vsel %vm941_vm13, %v6357_v59, 0  ;;  %v6409_v29 = vpop.permute.xlu1 %6408  ;;  %v11219_v59 = vld [vmem:[%s13393_s22 + $0x78] ss:$12 sps:$4 sm:$0xff]  }
0x15bd   : > { %10701 = vmatmul.mubr.msk.bf16.vlgmr.msra.gmra.mrb[56].mxu0 %vm13502_vm12, %v9805_v11  ;;  %vm13514_vm12 = vmmov %vm13510_vm0 }
0x15be   : > { %10711 = vmatpush3.bf16.msra.mxu0 %v6260_v56  ;;  %10712 = vmatprep.mubr.msk.bf16.mxu0 %vm11347_vm8, %v11346_v28 }
0x15bf   : > { %10722 = vmatprep.subr.bf16.mxu0 %v11346_v28 }
0x15c1   : > { %10707 = vmatmul.mubr.msk.bf16.vlgmr.msra.gmra.mrb[64].mxu1 %vm13503_vm5, %v9807_v58  ;;  %vm13515_vm5 = vmmov %vm13510_vm0 }
0x15c2   : > { %10717 = vmatpush3.bf16.msra.mxu1 %v6311_v47  ;;  %10718 = vmatprep.mubr.msk.bf16.mxu1 %vm11347_vm8, %v11346_v28  ;;  %v9816_v47 = vld [vmem:[%s13395_s24 + $0x2] sm:$0x3] }
0x15c3   : > { %10728 = vmatprep.subr.bf16.mxu1 %v11346_v28 }
0x15c5   : > { %10713 = vmatmul.mubr.msk.bf16.vlgmr.msra.gmra.mrb[60].mxu0 %vm13504_vm6, %v9809_v60  ;;  %v11222_v60 = vld [vmem:[%s13393_s22 + $0x80] ss:$12 sps:$4 sm:$0xff]   ;;  %vm13516_vm6 = vmmov %vm13508_vm3 }
0x15c6   : > { %10723 = vmatpush3.bf16.msra.mxu0 %v6362_v5  ;;  %10724 = vmatprep.mubr.msk.bf16.mxu0 %vm11347_vm8, %v11346_v28  ;;  %v11225_v5 = vld [vmem:[%s13393_s22 + $0x94] ss:$12 sps:$4 sm:$0xff]  }
0x15c7   : > { %10734 = vmatprep.subr.bf16.mxu0 %v11346_v28 }
0x15c9   : > { %10719 = vmatmul.mubr.msk.bf16.vlgmr.msra.gmra.mrb[68].mxu1 %vm13505_vm9, %v9811_v62  ;;  %v11223_v62 = vld [vmem:[%s13393_s22 + $0x90] ss:$12 sps:$4 sm:$0xff]   ;;  %vm13517_vm9 = vmmov %vm13510_vm0 }
0x15ca   : > { %10730 = vmatprep.mubr.msk.bf16.mxu1 %vm11347_vm8, %v11346_v28 }
0x15cd   : > { %10725 = vmatmul.mubr.msk.bf16.vlgmr.msra.gmra.mrb[64].mxu0 %vm13506_vm11, %v9813_v63  ;;  %v11226_v63 = vld [vmem:[%s13393_s22 + $0x98] ss:$12 sps:$4 sm:$0xff]   ;;  %vm13518_vm11 = vmmov %vm13510_vm0 }
0x15ce   : > { %10736 = vmatprep.mubr.msk.bf16.mxu0 %vm11347_vm8, %v11346_v28 }
0x1680   : > { %v5987_v0 = vpop.f32.mrb[48].mxu0 }
0x1681   : > { %v10678_v1 = vpop.f32.mrb[49].mxu0 }
0x1682   : > { %v5990_v2 = vpop.f32.mrb[50].mxu0  ;;  %v11227_v1 = vld [vmem:[%s13393_s22 + $0xa8] ss:$12 sps:$4 sm:$0xff]  }
0x1683   : > { %v10679_v23 = vpop.f32.mrb[51].mxu0  ;;  %v11230_v2 = vld [vmem:[%s13393_s22 + $0xb0] ss:$12 sps:$4 sm:$0xff]  }
0x1684   : > { %v6038_v4 = vpop.f32.mrb[56].mxu1  ;;  %v11233_v23 = vld [vmem:[%s13393_s22 + $0xc4] ss:$12 sps:$4 sm:$0xff]  }
0x1685   : > { %v6039_v6 = vadd.f32 %v6038_v4, %v5987_v0  ;;  %v10684_v7 = vpop.f32.mrb[57].mxu1  ;;  %v11229_v0 = vld [vmem:[%s13393_s22 + $0xac] ss:$12 sps:$4 sm:$0xff]  }
0x1686   : > { %v6041_v8 = vpop.f32.mrb[58].mxu1  ;;  %v11231_v4 = vld [vmem:[%s13393_s22 + $0xc0] ss:$12 sps:$4 sm:$0xff]   ;;  %v11237_v7 = vld [vmem:[%s13393_s22 + $0xdc] ss:$12 sps:$4 sm:$0xff]  }
0x1687   : > { %v10685_v9 = vpop.f32.mrb[59].mxu1  ;;  %v11235_v8 = vld [vmem:[%s13393_s22 + $0xd8] ss:$12 sps:$4 sm:$0xff]  }
0x1688   : > { %v6091_v10 = vpop.f32.mrb[52].mxu0  ;;  %v11238_v9 = vld [vmem:[%s13393_s22 + $0xe0] ss:$12 sps:$4 sm:$0xff]  }
0x1689   : > { %v6097_v40 = vadd.f32 %v6091_v10, %v6039_v6  ;;  %v10690_v12 = vpop.f32.mrb[53].mxu0  ;;  %v11234_v6 = vld [vmem:[%s13393_s22 + $0xc8] ss:$12 sps:$4 sm:$0xff]   ;;  %v11241_v10 = vld [vmem:[%s13393_s22 + $0x4] ss:$12 sps:$4 sm:$0xff]  }
0x168a   : > { %v6094_v53 = vpop.f32.mrb[54].mxu0  ;;  %v11239_v12 = vld [vmem:[%s13393_s22] ss:$12 sps:$4 sm:$0xff]  }
0x168b   : > { %v10691_v13 = vpop.f32.mrb[55].mxu0  ;;  %v11242_v53 = vld [vmem:[%s13393_s22 + $0x8] ss:$12 sps:$4 sm:$0xff]  }
0x168c   : > { %v6145_v14 = vpop.f32.mrb[60].mxu1 }
0x168d   : > { %v6151_v17 = vadd.f32 %v6145_v14, %v6097_v40  ;;  %v10696_v18 = vpop.f32.mrb[61].mxu1 }
0x168e   : > { %v6148_v21 = vpop.f32.mrb[62].mxu1  ;;  %v11245_v18 = vld [vmem:[%s13393_s22 + $0x1c] ss:$12 sps:$4 sm:$0xff]  }
0x168f   : > { %v10697_v22 = vpop.f32.mrb[63].mxu1 }
0x1690   : > { %v6194_v24 = vpop.f32.mrb[56].mxu0 }
0x1691   : > { %v6200_v31 = vadd.f32 %v6194_v24, %v6151_v17  ;;  %v10702_v35 = vpop.f32.mrb[57].mxu0 }
0x1692   : > { %v6197_v25 = vpop.f32.mrb[58].mxu0 }
0x1693   : > { %v10703_v19 = vpop.f32.mrb[59].mxu0  ;;  %v11243_v25 = vld [vmem:[%s13393_s22 + $0x18] ss:$12 sps:$4 sm:$0xff]  }
0x1694   : > { %v6245_v30 = vpop.f32.mrb[64].mxu1  ;;  %v11246_v19 = vld [vmem:[%s13393_s22 + $0x20] ss:$12 sps:$4 sm:$0xff]  }
0x1695   : > { %v6251_v27 = vadd.f32 %v6245_v30, %v6200_v31  ;;  %v10708_v33 = vpop.f32.mrb[65].mxu1  ;;  %v11249_v30 = vld [vmem:[%s13393_s22 + $0x34] ss:$12 sps:$4 sm:$0xff]  }
0x1696   : > { %v6248_v34 = vpop.f32.mrb[66].mxu1  ;;  %v11250_v33 = vld [vmem:[%s13393_s22 + $0x38] ss:$12 sps:$4 sm:$0xff]  }
0x1697   : > { %v10709_v36 = vpop.f32.mrb[67].mxu1  ;;  %v11253_v34 = vld [vmem:[%s13393_s22 + $0x4c] ss:$12 sps:$4 sm:$0xff]  }
0x1698   : > { %v6296_v37 = vpop.f32.mrb[60].mxu0  ;;  %v11251_v36 = vld [vmem:[%s13393_s22 + $0x48] ss:$12 sps:$4 sm:$0xff]  }
0x1699   : > { %v6302_v38 = vadd.f32 %v6296_v37, %v6251_v27  ;;  %v10714_v39 = vpop.f32.mrb[61].mxu0  ;;  %v11247_v27 = vld [vmem:[%s13393_s22 + $0x30] ss:$12 sps:$4 sm:$0xff]  }
0x169a   : > { %v6299_v41 = vpop.f32.mrb[62].mxu0  ;;  %v11254_v37 = vld [vmem:[%s13393_s22 + $0x50] ss:$12 sps:$4 sm:$0xff]   ;;  %v11255_v39 = vld [vmem:[%s13393_s22 + $0x60] ss:$12 sps:$4 sm:$0xff]  }
0x169b   : > { %v10715_v42 = vpop.f32.mrb[63].mxu0  ;;  %v11258_v41 = vld [vmem:[%s13393_s22 + $0x68] ss:$12 sps:$4 sm:$0xff]  }
0x169c   : > { %v6347_v20 = vpop.f32.mrb[68].mxu1 }
0x169d   : > { %v6353_v26 = vadd.f32 %v6347_v20, %v6302_v38  ;;  %v10720_v43 = vpop.f32.mrb[69].mxu1  ;;  %v11257_v38 = vld [vmem:[%s13393_s22 + $0x64] ss:$12 sps:$4 sm:$0xff]  }
0x169e   : > { %v6350_v44 = vpop.f32.mrb[70].mxu1  ;;  %v9872_v20 = vld [vmem:[%s13395_s24 + $0x4] sm:$0x3]  ;;  %v11261_v43 = vld [vmem:[%s13393_s22 + $0xf4] ss:$12 sps:$4 sm:$0xff]  }
0x169f   : > { %v10721_v45 = vpop.f32.mrb[71].mxu1  ;;  %v11262_v44 = vld [vmem:[%s13393_s22 + $0xf8] ss:$12 sps:$4 sm:$0xff]  }
0x16a0   : > { %v6398_v48 = vpop.f32.mrb[64].mxu0  ;;  %v11265_v45 = vld [vmem:[%s13393_s22 + $0x10c] ss:$12 sps:$4 sm:$0xff]  }
0x16a1   : > { %v6404_v46 = vadd.f32 %v6398_v48, %v6353_v26  ;;  %v10726_v49 = vpop.f32.mrb[65].mxu0  ;;  %v11259_v26 = vld [vmem:[%s13393_s22 + $0xf0] ss:$12 sps:$4 sm:$0xff]  }
0x16a2   : > { %v6401_v50 = vpop.f32.mrb[66].mxu0  ;;  %v11266_v48 = vld [vmem:[%s13393_s22 + $0x110] ss:$12 sps:$4 sm:$0xff]  }
0x16a3   : > { %v6411_v51 = vadd.f32 %v6409_v29, %v6404_v46  ;;  %v10727_v52 = vpop.f32.mrb[67].mxu0  ;;  %v11263_v46 = vld [vmem:[%s13393_s22 + $0x108] ss:$12 sps:$4 sm:$0xff]   ;;  %v11269_v49 = vld [vmem:[%s13393_s22 + $0x124] ss:$12 sps:$4 sm:$0xff]  }
0x16a4   : > { %v11267_v29 = vld [vmem:[%s13393_s22 + $0x120] ss:$12 sps:$4 sm:$0xff]   ;;  %v11270_v50 = vld [vmem:[%s13393_s22 + $0x128] ss:$12 sps:$4 sm:$0xff]   ;;  %v11271_v52 = vld [vmem:[%s13393_s22 + $0x138] ss:$12 sps:$4 sm:$0xff]  }
0x16a5   : > { %v6412_v54 = vmul.f32 %v12510_v61, %v6411_v51  ;;  %v6417_v61 = vld [vmem:[%s13395_s24] sm:$0x3]  ;;  %v11273_v51 = vld [vmem:[%s13393_s22 + $0x13c] ss:$12 sps:$4 sm:$0xff]  }
0x16a7   : > { %v6414_v55 = vmul.f32 0.01, %v6412_v54  ;;  %vm6413_vm14 = vcmp.ge.f32.partialorder %v6412_v54, 0.0 }
0x16a9   : > { %v6415_v11 = vsel %vm6413_vm14, %v6412_v54, %v6414_v55  ;;  %v11274_v54 = vld [vmem:[%s13393_s22 + $0x140] ss:$12 sps:$4 sm:$0xff]   ;;  %v11275_v55 = vld [vmem:[%s13393_s22 + $0x150] ss:$12 sps:$4 sm:$0xff]   ;;  %vm13519_vm14 = vcmask 1042280  }
0x16aa   : > { %v6416_v56 = vpack.c.bf16 %v6415_v11, %v6415_v11  ;;  %v11277_v11 = vld [vmem:[%s13393_s22 + $0x154] ss:$12 sps:$4 sm:$0xff]  }
0x16ac   : > { %v12696_v58 = vsel %vm941_vm13, %v6416_v56, 0  ;;  %v11278_v56 = vld [vmem:[%s13393_s22 + $0x158] ss:$12 sps:$4 sm:$0xff]  }
0x16ad   : > { %10729 = vmatpush3.bf16.msra.mxu1 %v12696_v58  ;;  %10735 = vmatpush3.bf16.msra.mxu0 %v12696_v58 }
0x16ae   : > { %6635 = vmatprep.subr.bf16.mxu1 %v11221_v57  ;;  %10740 = vmatprep.subr.bf16.mxu0 %v11346_v28  ;;  %v11281_v57 = vld [vmem:[%s13393_s22 + $0x16c] ss:$12 sps:$4 sm:$0xff]  }
0x16b0   : > { %10737 = vmatmul.mubr.msk.bf16.vlgmr.msra.gmra.mrb[68].mxu0 %vm13507_vm10, %v9816_v47  ;;  %10731 = vmatmul.mubr.msk.bf16.vlgmr.msra.gmra.mrb[72].mxu1 %vm13508_vm3, %v6417_v61  ;;  %vm7381_vm10 = vcmask 257026   ;;  %vm13521_vm3 = vcmask 410880  }
0x16b1   : > { %6636 = vmatpush1.bf16.msra.mxu1 %v11219_v59  ;;  %10741 = vmatpush3.bf16.msra.mxu0 %v11222_v60 }
0x16b2   : > { %6637 = vmatprep.subr.bf16.mxu1 %v11225_v5  ;;  %10742 = vmatprep.subr.bf16.mxu0 %v11346_v28 }
0x16b3   : > { %6667 = vmatprep.mubr.bf16.mxu1 %v11336_v3  ;;  %10750 = vmatprep.mubr.msk.bf16.mxu0 %vm11347_vm8, %v11346_v28 }
0x16b5   : > { %6638 = vmatpush1.bf16.msra.mxu1 %v11223_v62  ;;  %10743 = vmatpush3.bf16.msra.mxu0 %v11226_v63 }
0x16b6   : > { %6639 = vmatprep.subr.bf16.mxu1 %v11229_v0  ;;  %10744 = vmatprep.subr.bf16.mxu0 %v11346_v28 }
0x16b9   : > { %6640 = vmatpush1.bf16.msra.mxu1 %v11227_v1  ;;  %10745 = vmatpush3.bf16.msra.mxu0 %v11230_v2 }
0x16ba   : > { %6641 = vmatprep.subr.bf16.mxu1 %v11233_v23  ;;  %10746 = vmatprep.subr.bf16.mxu0 %v11346_v28 }
0x16bd   : > { %6642 = vmatpush1.bf16.msra.mxu1 %v11231_v4  ;;  %10747 = vmatpush3.bf16.msra.mxu0 %v11234_v6 }
0x16be   : > { %6643 = vmatprep.subr.bf16.mxu1 %v11237_v7  ;;  %10748 = vmatprep.subr.bf16.mxu0 %v11346_v28 }
0x16c1   : > { %6644 = vmatpush1.bf16.msra.mxu1 %v11235_v8  ;;  %10749 = vmatpush3.bf16.msra.mxu0 %v11238_v9 }
0x16c2   : > { %10754 = vmatprep.subr.bf16.mxu0 %v11346_v28  ;;  %6799 = vmatprep.subr.bf16.mxu1 %v11241_v10 }
0x1783   : > { %v6524_v40 = vpop.f32.mrb[68].mxu0  ;;  %v6458_v13 = vpop.f32.mrb[72].mxu1 }
0x1784   : > { %v6530_v14 = vpack.c.bf16 %v6524_v40, %v6524_v40  ;;  %v10738_v17 = vpop.f32.mrb[69].mxu0  ;;  %v10732_v21 = vpop.f32.mrb[73].mxu1  ;;  %v6464_v42 = vpack.c.bf16 %v6458_v13, %v6458_v13 }
0x1785   : > { %v6527_v22 = vpop.f32.mrb[70].mxu0  ;;  %v6461_v24 = vpop.f32.mrb[74].mxu1  ;;  %v11279_v17 = vld [vmem:[%s13393_s22 + $0x168] ss:$12 sps:$4 sm:$0xff]   ;;  %v11285_v21 = vld [vmem:[%s13393_s22 + $0x184] ss:$12 sps:$4 sm:$0xff]  }
0x1786   : > { %v10739_v31 = vpop.f32.mrb[71].mxu0  ;;  %9853 = vmatmul.mubr.msk.bf16.vlgmr.msra.gmra.mrb[76].mxu1 %vm13509_vm1, %v6530_v14  ;;  %10751 = vmatmul.mubr.msk.bf16.vlgmr.msra.gmra.mrb[72].mxu0 %vm13510_vm0, %v6530_v14  ;;  %v10733_v35 = vpop.f32.mrb[75].mxu1  ;;  %v11283_v24 = vld [vmem:[%s13393_s22 + $0x180] ss:$12 sps:$4 sm:$0xff]   ;;  %vm13527_vm1 = vcmask 146432  }
0x1787   : > { %6800 = vmatpush1.bf16.msra.mxu1 %v11239_v12  ;;  %10755 = vmatpush3.bf16.msra.mxu0 %v11242_v53  ;;  %v11289_v31 = vld [vmem:[%s13393_s22 + $0x19c] ss:$12 sps:$4 sm:$0xff]   ;;  %vm13528_vm0 = vmmov %vm13527_vm1 }
0x1788   : > { %6801 = vmatprep.subr.bf16.mxu1 %v11245_v18  ;;  %10756 = vmatprep.subr.bf16.mxu0 %v11346_v28  ;;  %v11282_v35 = vld [vmem:[%s13393_s22 + $0x170] ss:$12 sps:$4 sm:$0xff]  }
0x1789   : > { %6831 = vmatprep.mubr.bf16.mxu1 %v11336_v3  ;;  %10764 = vmatprep.mubr.msk.bf16.mxu0 %vm11347_vm8, %v11346_v28 }
0x178b   : > { %6802 = vmatpush1.bf16.msra.mxu1 %v11243_v25  ;;  %10757 = vmatpush3.bf16.msra.mxu0 %v11246_v19  ;;  %v11287_v25 = vld [vmem:[%s13393_s22 + $0x198] ss:$12 sps:$4 sm:$0xff]   ;;  %v11286_v19 = vld [vmem:[%s13393_s22 + $0x188] ss:$12 sps:$4 sm:$0xff]  }
0x178c   : > { %6803 = vmatprep.subr.bf16.mxu1 %v11249_v30  ;;  %10758 = vmatprep.subr.bf16.mxu0 %v11346_v28  ;;  %v11290_v30 = vld [vmem:[%s13393_s22 + $0x1a0] ss:$12 sps:$4 sm:$0xff]  }
0x178f   : > { %6804 = vmatpush1.bf16.msra.mxu1 %v11247_v27  ;;  %10759 = vmatpush3.bf16.msra.mxu0 %v11250_v33  ;;  %v11293_v27 = vld [vmem:[%s13393_s22 + $0x1b4] ss:$12 sps:$4 sm:$0xff]   ;;  %v11291_v33 = vld [vmem:[%s13393_s22 + $0x1b0] ss:$12 sps:$4 sm:$0xff]  }
0x1790   : > { %6805 = vmatprep.subr.bf16.mxu1 %v11253_v34  ;;  %10760 = vmatprep.subr.bf16.mxu0 %v11346_v28  ;;  %v11294_v34 = vld [vmem:[%s13393_s22 + $0x1b8] ss:$12 sps:$4 sm:$0xff]  }
0x1793   : > { %6806 = vmatpush1.bf16.msra.mxu1 %v11251_v36  ;;  %10761 = vmatpush3.bf16.msra.mxu0 %v11254_v37  ;;  %v11297_v36 = vld [vmem:[%s13393_s22 + $0x1cc] ss:$12 sps:$4 sm:$0xff]   ;;  %v11295_v37 = vld [vmem:[%s13393_s22 + $0x1c8] ss:$12 sps:$4 sm:$0xff]  }
0x1794   : > { %6807 = vmatprep.subr.bf16.mxu1 %v11257_v38  ;;  %10762 = vmatprep.subr.bf16.mxu0 %v11346_v28  ;;  %v11298_v38 = vld [vmem:[%s13393_s22 + $0x1d0] ss:$12 sps:$4 sm:$0xff]  }
0x1797   : > { %6808 = vmatpush1.bf16.msra.mxu1 %v11255_v39  ;;  %10763 = vmatpush3.bf16.msra.mxu0 %v11258_v41 }
0x1798   : > { %10768 = vmatprep.subr.bf16.mxu1 %v11346_v28  ;;  %7030 = vmatprep.subr.bf16.mxu0 %v11261_v43 }
0x179a   : > { %9870 = vmatmul.mubr.msk.bf16.vlgmr.msra.gmra.mrb[80].mxu1 %vm13511_vm7, %v6464_v42  ;;  %10765 = vmatmul.mubr.msk.bf16.vlgmr.msra.gmra.mrb[76].mxu0 %vm13512_vm2, %v6464_v42  ;;  %vm13530_vm7 = vmmov %vm13528_vm0 }
0x179b   : > { %10769 = vmatpush3.bf16.msra.mxu1 %v12696_v58  ;;  %10770 = vmatprep.mubr.msk.bf16.mxu1 %vm11347_vm8, %v11346_v28  ;;  %vm13531_vm2 = vmmov %vm13513_vm4 }
0x179c   : > { %10774 = vmatprep.subr.bf16.mxu1 %v11346_v28  ;;  %7062 = vmatprep.mubr.bf16.mxu0 %v11336_v3 }
0x179d   : > { %7031 = vmatpush1.bf16.msra.mxu0 %v11259_v26 }
0x179e   : > { %7032 = vmatprep.subr.bf16.mxu0 %v11265_v45 }
0x17a1   : > { %7033 = vmatpush1.bf16.msra.mxu0 %v11263_v46 }
0x17a2   : > { %10771 = vmatmul.mubr.msk.bf16.vlgmr.msra.gmra.mrb[84].mxu1 %vm13513_vm4, %v9872_v20  ;;  %7034 = vmatprep.subr.bf16.mxu0 %v11269_v49  ;;  %vm13532_vm4 = vcmask 154624  }
0x17a3   : > { %10784 = vmatprep.mubr.msk.bf16.mxu1 %vm11347_vm8, %v11346_v28  ;;  %10775 = vmatpush3.bf16.msra.mxu1 %v11262_v44 }
0x17a4   : > { %10776 = vmatprep.subr.bf16.mxu1 %v11346_v28 }
0x17a5   : > { %7035 = vmatpush1.bf16.msra.mxu0 %v11267_v29 }
0x17a6   : > { %7036 = vmatprep.subr.bf16.mxu0 %v11273_v51 }
0x17a7   : > { %10777 = vmatpush3.bf16.msra.mxu1 %v11266_v48 }
0x17a8   : > { %10778 = vmatprep.subr.bf16.mxu1 %v11346_v28 }
0x17a9   : > { %7037 = vmatpush1.bf16.msra.mxu0 %v11271_v52 }
0x17aa   : > { %7038 = vmatprep.subr.bf16.mxu0 %v11277_v11  ;;  %v7352_v11 = vpop.permute.xlu0 %7351 }
0x17ab   : > { %10779 = vmatpush3.bf16.msra.mxu1 %v11270_v50 }
0x17ac   : > { %10780 = vmatprep.subr.bf16.mxu1 %v11346_v28 }
0x17ad   : > { %7039 = vmatpush1.bf16.msra.mxu0 %v11275_v55  ;;  %v7383_v55 = vld [vmem:[#allocation2] sm:$0xf] }
0x17ae   : > { %10788 = vmatprep.subr.bf16.mxu0 %v11346_v28  ;;  %8363 = vst.msk [vmem:[#allocation2] sm:$0x3] %vm13519_vm14, %v11336_v3  ;;  %7394 = vrot.lane.b32.xlu1 %v7383_v55, %s13520_s30 }
0x17af   : > { %10781 = vmatpush3.bf16.msra.mxu1 %v11274_v54 }
0x17b0   : > { %10782 = vmatprep.subr.bf16.mxu1 %v11346_v28 }
0x17b3   : > { %10783 = vmatpush3.bf16.msra.mxu1 %v11278_v56 }
0x17b4   : > { %7264 = vmatprep.subr.bf16.mxu1 %v11281_v57 }
0x1859   : > { %v6669_v47 = vpop.f32.mrb[76].mxu1  ;;  %v6710_v61 = vpop.f32.mrb[72].mxu0 }
0x185a   : > { %v6671_v59 = vpop.f32.mrb[77].mxu1  ;;  %v10752_v60 = vpop.f32.mrb[73].mxu0 }
0x185b   : > { %v6673_v5 = vpop.f32.mrb[78].mxu1  ;;  %v6713_v62 = vpop.f32.mrb[74].mxu0 }
0x185c   : > { %v6674_v63 = vpop.f32.mrb[79].mxu1  ;;  %v10753_v0 = vpop.f32.mrb[75].mxu0 }
0x186d   : > { %v6833_v1 = vpop.f32.mrb[80].mxu1  ;;  %v6874_v2 = vpop.f32.mrb[76].mxu0 }
0x186e   : > { %v6834_v23 = vadd.f32 %v6833_v1, %v6669_v47  ;;  %v6875_v4 = vadd.f32 %v6874_v2, %v6710_v61  ;;  %v6835_v6 = vpop.f32.mrb[81].mxu1  ;;  %v10766_v7 = vpop.f32.mrb[77].mxu0 }
0x186f   : > { %v6836_v8 = vadd.f32 %v6835_v6, %v6671_v59  ;;  %v6837_v9 = vpop.f32.mrb[82].mxu1  ;;  %v6877_v10 = vpop.f32.mrb[78].mxu0 }
0x1870   : > { %v6838_v40 = vpop.f32.mrb[83].mxu1  ;;  %v10767_v12 = vpop.f32.mrb[79].mxu0 }
0x1875   : > { %v6919_v53 = vpop.f32.mrb[84].mxu1 }
0x1876   : > { %v6925_v13 = vpack.c.bf16 %v6919_v53, %v6919_v53  ;;  %v10772_v14 = vpop.f32.mrb[85].mxu1 }
0x1877   : > { %v6922_v18 = vpop.f32.mrb[86].mxu1 }
0x1878   : > { %v10773_v22 = vpop.f32.mrb[87].mxu1  ;;  %9909 = vmatmul.mubr.msk.bf16.vlgmr.msra.gmra.mrb[80].mxu0 %vm13514_vm12, %v6925_v13  ;;  %10785 = vmatmul.mubr.msk.bf16.vlgmr.msra.gmra.mrb[88].mxu1 %vm13515_vm5, %v6925_v13  ;;  %vm13533_vm12 = vmmov %vm13532_vm4 }
0x1879   : > { %10789 = vmatpush3.bf16.msra.mxu0 %v12696_v58  ;;  %10790 = vmatprep.mubr.msk.bf16.mxu0 %vm11347_vm8, %v11346_v28  ;;  %v9911_v58 = vld [vmem:[%s13395_s24 + $0x6] sm:$0x3]  ;;  %v7395_v22 = vpop.permute.xlu1 %7394  ;;  %vm13534_vm5 = vmmov %vm13531_vm2 }
0x187a   : > { %10794 = vmatprep.subr.bf16.mxu0 %v11346_v28  ;;  %7265 = vmatpush1.bf16.msra.mxu1 %v11279_v17 }
0x187b   : > { %7266 = vmatprep.subr.bf16.mxu1 %v11285_v21  ;;  %7296 = vmatprep.mubr.bf16.mxu1 %v11336_v3  ;;  %v8342_v21 = vld [vmem:[%s13526_s6] sm:$0xf] }
0x187e   : > { %7267 = vmatpush1.bf16.msra.mxu1 %v11283_v24 }
0x187f   : > { %7268 = vmatprep.subr.bf16.mxu1 %v11289_v31 }
0x1880   : > { %10791 = vmatmul.mubr.msk.bf16.vlgmr.msra.gmra.mrb[84].mxu0 %vm13516_vm6, %v9911_v58  ;;  %vm13535_vm6 = vmmov %vm13532_vm4 }
0x1881   : > { %10795 = vmatpush3.bf16.msra.mxu0 %v11282_v35  ;;  %10804 = vmatprep.mubr.msk.bf16.mxu0 %vm11347_vm8, %v11346_v28 }
0x1882   : > { %10796 = vmatprep.subr.bf16.mxu0 %v11346_v28  ;;  %7269 = vmatpush1.bf16.msra.mxu1 %v11287_v25 }
0x1883   : > { %7270 = vmatprep.subr.bf16.mxu1 %v11293_v27 }
0x1885   : > { %10797 = vmatpush3.bf16.msra.mxu0 %v11286_v19 }
0x1886   : > { %10798 = vmatprep.subr.bf16.mxu0 %v11346_v28  ;;  %7271 = vmatpush1.bf16.msra.mxu1 %v11291_v33 }
0x1887   : > { %7272 = vmatprep.subr.bf16.mxu1 %v11297_v36 }
0x1889   : > { %10799 = vmatpush3.bf16.msra.mxu0 %v11290_v30  ;;  %v9950_v30 = vld [vmem:[%s13529_s1 + $0x2] sm:$0x3] }
0x188a   : > { %10800 = vmatprep.subr.bf16.mxu0 %v11346_v28  ;;  %7273 = vmatpush1.bf16.msra.mxu1 %v11295_v37 }
0x188d   : > { %10801 = vmatpush3.bf16.msra.mxu0 %v11294_v34 }
0x188e   : > { %10802 = vmatprep.subr.bf16.mxu0 %v11346_v28 }
0x1891   : > { %10803 = vmatpush3.bf16.msra.mxu0 %v11298_v38 }
0x1892   : > { %10808 = vmatprep.subr.bf16.mxu0 %v11346_v28 }
0x194b   : > { %v7064_v39 = vpop.f32.mrb[80].mxu0  ;;  %v7105_v41 = vpop.f32.mrb[88].mxu1 }
0x194c   : > { %v7111_v42 = vadd.f32 %v7064_v39, %v6834_v23  ;;  %v7113_v20 = vadd.f32 %v7105_v41, %v6875_v4  ;;  %v7066_v26 = vpop.f32.mrb[81].mxu0  ;;  %v10786_v43 = vpop.f32.mrb[89].mxu1 }
0x194d   : > { %v7112_v44 = vadd.f32 %v7066_v26, %v6836_v8  ;;  %v7068_v45 = vpop.f32.mrb[82].mxu0  ;;  %v7108_v48 = vpop.f32.mrb[90].mxu1 }
0x194e   : > { %v7069_v46 = vpop.f32.mrb[83].mxu0  ;;  %v10787_v49 = vpop.f32.mrb[91].mxu1 }
0x1953   : > { %v7153_v29 = vpop.f32.mrb[84].mxu0 }
0x1954   : > { %v7159_v50 = vpack.c.bf16 %v7153_v29, %v7153_v29  ;;  %v10792_v51 = vpop.f32.mrb[85].mxu0 }
0x1955   : > { %v7156_v52 = vpop.f32.mrb[86].mxu0  ;;  %v9957_v51 = vld [vmem:[%s13529_s1 + $0x4] sm:$0x3] }
0x1956   : > { %v10793_v54 = vpop.f32.mrb[87].mxu0  ;;  %9948 = vmatmul.mubr.msk.bf16.vlgmr.msra.gmra.mrb[92].mxu1 %vm13517_vm9, %v7159_v50  ;;  %10805 = vmatmul.mubr.msk.bf16.vlgmr.msra.gmra.mrb[88].mxu0 %vm13518_vm11, %v7159_v50  ;;  %vm13536_vm9 = vmmov %vm13531_vm2  ;;  %vm13537_vm11 = vcmask 138240  }
0x1957   : > { %7449 = vmatprep.mubr.bf16.mxu1 %v11336_v3  ;;  %10810 = vmatprep.mubr.msk.bf16.mxu0 %vm11347_vm8, %v11346_v28  ;;  %vm13538_vm14 = vmmov %vm13537_vm11 }
0x1a29   : > { %v7298_v56 = vpop.f32.mrb[92].mxu1  ;;  %v7339_v57 = vpop.f32.mrb[88].mxu0 }
0x1a2a   : > { %v7345_v47 = vadd.f32 %v7298_v56, %v7111_v42  ;;  %v7347_v61 = vadd.f32 %v7339_v57, %v7113_v20  ;;  %v7300_v59 = vpop.f32.mrb[93].mxu1  ;;  %v10806_v60 = vpop.f32.mrb[89].mxu0  ;;  %v7387_v20 = vld [vmem:[%s13529_s1] sm:$0x3] }
0x1a2b   : > { %v7346_v5 = vadd.f32 %v7300_v59, %v7112_v44  ;;  %v7302_v62 = vpop.f32.mrb[94].mxu1  ;;  %v7342_v63 = vpop.f32.mrb[90].mxu0  ;;  %v9961_v60 = vld [vmem:[%s13529_s1 + $0x6] sm:$0x3] }
0x1a2c   : > { %v7354_v0 = vadd.f32 %v7352_v11, %v7345_v47  ;;  %v7356_v1 = vadd.f32 %v7352_v11, %v7347_v61  ;;  %v7303_v2 = vpop.f32.mrb[95].mxu1  ;;  %v10807_v23 = vpop.f32.mrb[91].mxu0 }
0x1a2d   : > { %v7355_v4 = vadd.f32 %v7352_v11, %v7346_v5 }
0x1a2e   : > { %v7357_v6 = vmul.f32 %v7354_v0, %v11687_v15  ;;  %v7359_v7 = vmul.f32 %v7356_v1, %v11697_v32 }
0x1a2f   : > { %v7358_v8 = vmul.f32 %v7355_v4, %v11691_v16 }
0x1a30   : > { %v7367_v9 = vpack.c.bf16 %v7357_v6, %v7357_v6  ;;  %v7369_v10 = vpack.c.bf16 %v7359_v7, %v7359_v7 }
0x1a31   : > { %v7368_v40 = vpack.c.bf16 %v7358_v8, %v7358_v8  ;;  %v9965_v8 = vld [vmem:[%s13529_s1 + $0x8] sm:$0x3] }
0x1a32   : > { %v7373_v12 = vrot.slane %v7367_v9, 6  ;;  %v7375_v53 = vrot.slane %v7369_v10, 6 }
0x1a33   : > { %v7374_v13 = vrot.slane %v7368_v40, 6 }
0x1a34   : > { %7379 = vst [vmem:[#allocation2 + $0x8] sm:$0xc] %v7373_v12  ;;  %7382 = vst.msk [vmem:[#allocation2 + $0x18] sm:$0xc] %vm7381_vm10, %v7375_v53 }
0x1a35   : > { %7380 = vst [vmem:[#allocation2 + $0x10] sm:$0xc] %v7374_v13  ;;  %vm13539_vm10 = vmmov %vm13531_vm2 }
0x1a3b   : > { %v12951_v14 = vld [vmem:[#allocation2 + $0x8] sm:$0xf]  ;;  %v12953_v17 = vld [vmem:[#allocation2 + $0x18] sm:$0xf] }
0x1a3c   : > { %7396 = vrot.lane.b32.xlu0 %v12951_v14, %s13520_s30  ;;  %v12957_v18 = vld [vmem:[#allocation2 + $0x10] sm:$0xf]  ;;  %8364 = vst.msk [vmem:[#allocation2 + $0x18] sm:$0x3] %vm13521_vm3, %v11336_v3  ;;  %vm13540_vm3 = vmmov %vm13537_vm11  ;;  %v7826_v0 = vsel %vm941_vm13, %v12951_v14, 0  ;;  %v7832_v4 = vsel %vm941_vm13, %v12953_v17, 0 }
0x1a3d   : > { %7398 = vrot.lane.b32.xlu1 %v12957_v18, %s13520_s30 }
0x1a40   : > { %7400 = vrot.lane.b32.xlu0 %v12953_v17, %s13520_s30 }
0x1a41   : > { %7498 = vrot.lane.b32.xlu1 %v7383_v55, %s13522_s7 }
0x1a44   : > { %7500 = vrot.lane.b32.xlu0 %v12951_v14, %s13522_s7 }
0x1a45   : > { %7502 = vrot.lane.b32.xlu1 %v12957_v18, %s13522_s7 }
0x1a48   : > { %7504 = vrot.lane.b32.xlu0 %v12953_v17, %s13522_s7 }
0x1a49   : > { %7604 = vrot.lane.b32.xlu1 %v7383_v55, %s13523_s12 }
0x1a4c   : > { %7606 = vrot.lane.b32.xlu0 %v12951_v14, %s13523_s12 }
0x1a4d   : > { %7608 = vrot.lane.b32.xlu1 %v12957_v18, %s13523_s12 }
0x1a50   : > { %7610 = vrot.lane.b32.xlu0 %v12953_v17, %s13523_s12 }
0x1a51   : > { %7713 = vrot.lane.b32.xlu1 %v7383_v55, %s13481_s2 }
0x1a54   : > { %7715 = vrot.lane.b32.xlu0 %v12951_v14, %s13481_s2 }
0x1a55   : > { %7717 = vrot.lane.b32.xlu1 %v12957_v18, %s13481_s2 }
0x1a58   : > { %7719 = vrot.lane.b32.xlu0 %v12953_v17, %s13481_s2 }
0x1a59   : > { %7920 = vrot.lane.b32.xlu1 %v12951_v14, %s13484_s29 }
0x1a5c   : > { %7922 = vrot.lane.b32.xlu0 %v12957_v18, %s13484_s29 }
0x1a5d   : > { %7924 = vrot.lane.b32.xlu1 %v12953_v17, %s13484_s29 }
0x1a60   : > { %8026 = vrot.lane.b32.xlu0 %v12951_v14, %s13524_s3 }
0x1a61   : > { %8028 = vrot.lane.b32.xlu1 %v12957_v18, %s13524_s3 }
0x1a64   : > { %8030 = vrot.lane.b32.xlu0 %v12953_v17, %s13524_s3 }
0x1a65   : > { %8132 = vrot.lane.b32.xlu1 %v12951_v14, %s13480_s11 }
0x1a68   : > { %8134 = vrot.lane.b32.xlu0 %v12957_v18, %s13480_s11 }
0x1a69   : > { %8136 = vrot.lane.b32.xlu1 %v12953_v17, %s13480_s11 }
0x1a6c   : > { %8238 = vrot.lane.b32.xlu0 %v12951_v14, %s13525_s9 }
0x1a6d   : > { %8240 = vrot.lane.b32.xlu1 %v12957_v18, %s13525_s9 }
0x1a70   : > { %8242 = vrot.lane.b32.xlu0 %v12953_v17, %s13525_s9 }
0x1a71   : > { %8345 = vperm.xlu1 %11164, %v8342_v21  }
0x1aae   : > { %v7397_v24 = vpop.permute.xlu0 %7396 }
0x1aaf   : > { %v7402_v31 = vsel %vm13527_vm1, %v7395_v22, %v7397_v24  ;;  %v7399_v58 = vpop.permute.xlu1 %7398  ;;  %vm13541_vm1 = vmmov %vm13531_vm2 }
0x1ab0   : > { %v7409_v35 = vsel %vm941_vm13, %v7402_v31, 0  ;;  %v7403_v25 = vsel %vm13528_vm0, %v7397_v24, %v7399_v58  ;;  %vm13542_vm0 = vmmov %vm13541_vm1 }
0x1ab1   : > { %9951 = vmatprep.subr.msk.bf16.mxu1 %vm941_vm13, %v7403_v25  ;;  %v9973_v25 = vld [vmem:[%s13529_s1 + $0xc] sm:$0x3] }
0x1ab2   : > { %7418 = vmatpush1.bf16.msra.mxu1 %v7409_v35  ;;  %v7401_v19 = vpop.permute.xlu0 %7400 }
0x1ab3   : > { %v7404_v27 = vsel %vm13530_vm7, %v7399_v58, %v7401_v19  ;;  %v7499_v33 = vpop.permute.xlu1 %7498  ;;  %vm13543_vm7 = vmmov %vm13542_vm0 }
0x1ab4   : > { %v7415_v34 = vsel %vm941_vm13, %v7404_v27, 0 }
0x1ab5   : > { %9952 = vmatmul.mubr.msk.bf16.vlgmr.msra.gmra.mrb[96].mxu1 %vm13531_vm2, %v9950_v30  ;;  %10809 = vmatpush3.bf16.msra.mxu0 %v7415_v34  ;;  %vm13544_vm2 = vcmask 1039360  }
0x1ab6   : > { %v7501_v36 = vpop.permute.xlu0 %7500  ;;  %7553 = vmatprep.mubr.bf16.mxu1 %v11336_v3  ;;  %10814 = vmatprep.subr.bf16.mxu0 %v11346_v28 }
0x1ab7   : > { %v7506_v37 = vsel %vm13532_vm4, %v7499_v33, %v7501_v36  ;;  %v7503_v38 = vpop.permute.xlu1 %7502  ;;  %vm13545_vm4 = vmmov %vm13542_vm0 }
0x1ab8   : > { %v7513_v39 = vsel %vm941_vm13, %v7506_v37, 0  ;;  %v7507_v41 = vsel %vm13533_vm12, %v7501_v36, %v7503_v38  ;;  %10811 = vmatmul.mubr.msk.bf16.vlgmr.msra.gmra.mrb[92].mxu0 %vm13534_vm5, %v9950_v30  ;;  %vm13546_vm12 = vmmov %vm13544_vm2  ;;  %v9977_v37 = vld [vmem:[%s13529_s1 + $0xe] sm:$0x3] }
0x1ab9   : > { %9954 = vmatprep.subr.msk.bf16.mxu1 %vm941_vm13, %v7507_v41  ;;  %10816 = vmatprep.mubr.msk.bf16.mxu0 %vm11347_vm8, %v11346_v28  ;;  %vm13547_vm5 = vmmov %vm13542_vm0  ;;  %v9981_v41 = vld [vmem:[%s13529_s1 + $0x10] sm:$0x3] }
0x1aba   : > { %7522 = vmatpush1.bf16.msra.mxu1 %v7513_v39  ;;  %v7505_v42 = vpop.permute.xlu0 %7504 }
0x1abb   : > { %v7508_v26 = vsel %vm13535_vm6, %v7503_v38, %v7505_v42  ;;  %v7605_v43 = vpop.permute.xlu1 %7604  ;;  %vm13548_vm6 = vcmask 908288   ;;  %v13144_v42 = vld [vmem:[#allocation2] sm:$0x3] }
0x1abc   : > { %v7519_v44 = vsel %vm941_vm13, %v7508_v26, 0  ;;  %8382 = vrot.lane.b32.xlu0 %v13144_v42, %s13520_s30 }
0x1abd   : > { %9955 = vmatmul.mubr.msk.bf16.vlgmr.msra.gmra.mrb[100].mxu1 %vm13536_vm9, %v7387_v20  ;;  %10815 = vmatpush3.bf16.msra.mxu0 %v7519_v44  ;;  %vm13549_vm9 = vmmov %vm13542_vm0 }
0x1abe   : > { %v7607_v45 = vpop.permute.xlu0 %7606  ;;  %7659 = vmatprep.mubr.bf16.mxu1 %v11336_v3  ;;  %10820 = vmatprep.subr.bf16.mxu0 %v11346_v28 }
0x1abf   : > { %v7612_v48 = vsel %vm13537_vm11, %v7605_v43, %v7607_v45  ;;  %v7609_v46 = vpop.permute.xlu1 %7608  ;;  %vm13550_vm11 = vmmov %vm13548_vm6 }
0x1ac0   : > { %v7619_v49 = vsel %vm941_vm13, %v7612_v48, 0  ;;  %v7613_v29 = vsel %vm13538_vm14, %v7607_v45, %v7609_v46  ;;  %10817 = vmatmul.mubr.msk.bf16.vlgmr.msra.gmra.mrb[96].mxu0 %vm13539_vm10, %v7387_v20  ;;  %vm13551_vm14 = vcmask 900096   ;;  %vm13552_vm10 = vmmov %vm13542_vm0 }
0x1ac1   : > { %9958 = vmatprep.subr.msk.bf16.mxu1 %vm941_vm13, %v7613_v29  ;;  %10822 = vmatprep.mubr.msk.bf16.mxu0 %vm11347_vm8, %v11346_v28 }
0x1ac2   : > { %7628 = vmatpush1.bf16.msra.mxu1 %v7619_v49  ;;  %v7611_v50 = vpop.permute.xlu0 %7610 }
0x1ac3   : > { %v7614_v52 = vsel %vm13540_vm3, %v7609_v46, %v7611_v50  ;;  %v7714_v54 = vpop.permute.xlu1 %7713  ;;  %vm13553_vm3 = vmmov %vm13542_vm0 }
0x1ac4   : > { %v7625_v55 = vsel %vm941_vm13, %v7614_v52, 0 }
0x1ac5   : > { %9959 = vmatmul.mubr.msk.bf16.vlgmr.msra.gmra.mrb[104].mxu1 %vm13541_vm1, %v9957_v51  ;;  %10821 = vmatpush3.bf16.msra.mxu0 %v7625_v55  ;;  %vm13554_vm1 = vmmov %vm13551_vm14 }
0x1ac6   : > { %v7716_v11 = vpop.permute.xlu0 %7715  ;;  %7768 = vmatprep.mubr.bf16.mxu1 %v11336_v3  ;;  %10826 = vmatprep.subr.bf16.mxu0 %v11346_v28 }
0x1ac7   : > { %v7721_v56 = vsel %vm1124_vm15, %v7714_v54, %v7716_v11  ;;  %v7718_v57 = vpop.permute.xlu1 %7717 }
0x1ac8   : > { %v7728_v47 = vsel %vm941_vm13, %v7721_v56, 0  ;;  %v7722_v61 = vsel %vm1124_vm15, %v7716_v11, %v7718_v57  ;;  %10823 = vmatmul.mubr.msk.bf16.vlgmr.msra.gmra.mrb[100].mxu0 %vm13542_vm0, %v9957_v51 }
0x1ac9   : > { %9962 = vmatprep.subr.msk.bf16.mxu1 %vm941_vm13, %v7722_v61  ;;  %10828 = vmatprep.mubr.msk.bf16.mxu0 %vm11347_vm8, %v11346_v28 }
0x1aca   : > { %7737 = vmatpush1.bf16.msra.mxu1 %v7728_v47  ;;  %v7720_v59 = vpop.permute.xlu0 %7719 }
0x1acb   : > { %v7723_v5 = vsel %vm1124_vm15, %v7718_v57, %v7720_v59  ;;  %v7921_v62 = vpop.permute.xlu1 %7920  ;;  %9966 = vmatprep.subr.msk.bf16.mxu1 %vm941_vm13, %v12957_v18  ;;  %v9969_v18 = vld [vmem:[%s13529_s1 + $0xa] sm:$0x3] }
0x1acc   : > { %v7734_v63 = vsel %vm941_vm13, %v7723_v5, 0 }
0x1acd   : > { %9963 = vmatmul.mubr.msk.bf16.vlgmr.msra.gmra.mrb[108].mxu1 %vm13543_vm7, %v9961_v60  ;;  %10827 = vmatpush3.bf16.msra.mxu0 %v7734_v63  ;;  %vm13555_vm7 = vcmask 891904  }
0x1ace   : > { %v7923_v1 = vpop.permute.xlu0 %7922  ;;  %7835 = vmatpush1.bf16.msra.mxu1 %v7826_v0  ;;  %10832 = vmatprep.subr.bf16.mxu0 %v11346_v28 }
0x1acf   : > { %v7925_v2 = vpop.permute.xlu1 %7924  ;;  %7866 = vmatprep.mubr.bf16.mxu1 %v11336_v3  ;;  %v7926_v6 = vsel %vm13546_vm12, %v7921_v62, %v7923_v1  ;;  %vm13558_vm12 = vmmov %vm13542_vm0 }
0x1ad0   : > { %v7927_v23 = vsel %vm13544_vm2, %v7923_v1, %v7925_v2  ;;  %10829 = vmatmul.mubr.msk.bf16.vlgmr.msra.gmra.mrb[104].mxu0 %vm13545_vm4, %v9961_v60  ;;  %v7932_v10 = vsel %vm941_vm13, %v7926_v6, 0  ;;  %v7938_v13 = vsel %vm941_vm13, %v7925_v2, 0  ;;  %vm13556_vm2 = vmmov %vm13542_vm0 }
0x1ad1   : > { %10833 = vmatpush3.bf16.msra.mxu0 %v7832_v4  ;;  %9970 = vmatprep.subr.msk.bf16.mxu1 %vm941_vm13, %v7927_v23  ;;  %vm13557_vm4 = vmmov %vm13555_vm7 }
0x1ad2   : > { %v8027_v7 = vpop.permute.xlu0 %8026  ;;  %10834 = vmatprep.mubr.msk.bf16.mxu0 %vm11347_vm8, %v11346_v28  ;;  %10838 = vmatprep.subr.bf16.mxu0 %v11346_v28 }
0x1ad3   : > { %v8029_v9 = vpop.permute.xlu1 %8028 }
0x1ad4   : > { %v8032_v14 = vsel %vm13550_vm11, %v8027_v7, %v8029_v9 }
0x1ad5   : > { %9967 = vmatmul.mubr.msk.bf16.vlgmr.msra.gmra.mrb[112].mxu1 %vm13547_vm5, %v9965_v8  ;;  %v8038_v24 = vsel %vm941_vm13, %v8032_v14, 0  ;;  %vm13559_vm5 = vmmov %vm13542_vm0 }
0x1ad6   : > { %7941 = vmatpush1.bf16.msra.mxu1 %v7932_v10  ;;  %v8031_v40 = vpop.permute.xlu0 %8030  ;;  %7972 = vmatprep.mubr.bf16.mxu1 %v11336_v3 }
0x1ad7   : > { %v8033_v12 = vsel %vm13548_vm6, %v8029_v9, %v8031_v40  ;;  %v8133_v53 = vpop.permute.xlu1 %8132  ;;  %v8044_v58 = vsel %vm941_vm13, %v8031_v40, 0  ;;  %vm13560_vm6 = vmmov %vm13542_vm0 }
0x1ad8   : > { %10835 = vmatmul.mubr.msk.bf16.vlgmr.msra.gmra.mrb[108].mxu0 %vm13549_vm9, %v9965_v8  ;;  %9974 = vmatprep.subr.msk.bf16.mxu1 %vm941_vm13, %v8033_v12  ;;  %vm13561_vm9 = vmmov %vm13542_vm0 }
0x1ad9   : > { %10839 = vmatpush3.bf16.msra.mxu0 %v7938_v13  ;;  %10840 = vmatprep.mubr.msk.bf16.mxu0 %vm11347_vm8, %v11346_v28 }
0x1ada   : > { %v8135_v17 = vpop.permute.xlu0 %8134  ;;  %10844 = vmatprep.subr.bf16.mxu0 %v11346_v28 }
0x1adb   : > { %v8137_v21 = vpop.permute.xlu1 %8136  ;;  %v8138_v35 = vsel %vm13554_vm1, %v8133_v53, %v8135_v17  ;;  %vm9352_vm1 = vcmask 1041664  }
0x1adc   : > { %v8139_v22 = vsel %vm13551_vm14, %v8135_v17, %v8137_v21  ;;  %v8144_v30 = vsel %vm941_vm13, %v8138_v35, 0  ;;  %v8150_v34 = vsel %vm941_vm13, %v8137_v21, 0 }
0x1add   : > { %9971 = vmatmul.mubr.msk.bf16.vlgmr.msra.gmra.mrb[116].mxu1 %vm13552_vm10, %v9969_v18 }
0x1ade   : > { %8047 = vmatpush1.bf16.msra.mxu1 %v8038_v24  ;;  %v8239_v31 = vpop.permute.xlu0 %8238  ;;  %8078 = vmatprep.mubr.bf16.mxu1 %v11336_v3 }
0x1adf   : > { %9978 = vmatprep.subr.msk.bf16.mxu1 %vm941_vm13, %v8139_v22  ;;  %v8241_v27 = vpop.permute.xlu1 %8240 }
0x1ae0   : > { %10841 = vmatmul.mubr.msk.bf16.vlgmr.msra.gmra.mrb[112].mxu0 %vm13553_vm3, %v9969_v18  ;;  %v8244_v36 = vsel %vm13557_vm4, %v8239_v31, %v8241_v27  ;;  %vm13563_vm3 = vcmask 254976  }
0x1ae1   : > { %10845 = vmatpush3.bf16.msra.mxu0 %v8044_v58  ;;  %10846 = vmatprep.mubr.msk.bf16.mxu0 %vm11347_vm8, %v11346_v28  ;;  %v8250_v38 = vsel %vm941_vm13, %v8244_v36, 0 }
0x1ae2   : > { %10850 = vmatprep.subr.bf16.mxu0 %v11346_v28  ;;  %v8243_v19 = vpop.permute.xlu0 %8242 }
0x1ae3   : > { %v8245_v33 = vsel %vm13555_vm7, %v8241_v27, %v8243_v19  ;;  %v8256_v39 = vsel %vm941_vm13, %v8243_v19, 0  ;;  %vm13567_vm7 = vcmask 1041408  }
0x1ae4   : > { %vm13569_vm4 = vmmov %vm13567_vm7 }
0x1ae5   : > { %9975 = vmatmul.mubr.msk.bf16.vlgmr.msra.gmra.mrb[120].mxu1 %vm13542_vm0, %v9973_v25  ;;  %vm13566_vm0 = vcmask 146432  }
0x1ae6   : > { %8153 = vmatpush1.bf16.msra.mxu1 %v8144_v30  ;;  %8184 = vmatprep.mubr.bf16.mxu1 %v11336_v3 }
0x1ae7   : > { %9982 = vmatprep.subr.msk.bf16.mxu1 %vm941_vm13, %v8245_v33  ;;  %vm13562_vm13 = vcmask 1042280  }
0x1ae8   : > { %10847 = vmatmul.mubr.msk.bf16.vlgmr.msra.gmra.mrb[116].mxu0 %vm13556_vm2, %v9973_v25  ;;  %9351 = vst.msk [vmem:[#allocation2] sm:$0x3] %vm13562_vm13, %v11336_v3  ;;  %vm13568_vm2 = vmmov %vm13566_vm0 }
0x1ae9   : > { %10851 = vmatpush3.bf16.msra.mxu0 %v8150_v34  ;;  %10852 = vmatprep.mubr.msk.bf16.mxu0 %vm11347_vm8, %v11346_v28  ;;  %vm13575_vm13 = vmmov %vm13569_vm4 }
0x1aea   : > { %10856 = vmatprep.subr.bf16.mxu0 %v11346_v28 }
0x1aed   : > { %9979 = vmatmul.mubr.msk.bf16.vlgmr.msra.gmra.mrb[124].mxu1 %vm13558_vm12, %v9977_v37  ;;  %vm13571_vm12 = vmmov %vm13566_vm0 }
0x1aee   : > { %8259 = vmatpush1.bf16.msra.mxu1 %v8250_v38  ;;  %8290 = vmatprep.mubr.bf16.mxu1 %v11336_v3 }
0x1af0   : > { %10853 = vmatmul.mubr.msk.bf16.vlgmr.msra.gmra.mrb[120].mxu0 %vm13559_vm5, %v9977_v37  ;;  %vm13572_vm5 = vmmov %vm13569_vm4 }
0x1af1   : > { %10857 = vmatpush3.bf16.msra.mxu0 %v8256_v39  ;;  %10858 = vmatprep.mubr.msk.bf16.mxu0 %vm11347_vm8, %v11346_v28 }
0x1af2   : > { %10862 = vmatprep.subr.bf16.mxu0 %v11346_v28 }
0x1af5   : > { %9983 = vmatmul.mubr.msk.bf16.vlgmr.msra.gmra.mrb[128].mxu1 %vm13560_vm6, %v9981_v41  ;;  %vm13573_vm6 = vcmask 31744  }
0x1af6   : > { %8437 = vmatprep.mubr.bf16.mxu1 %v11336_v3 }
0x1af8   : > { %10859 = vmatmul.mubr.msk.bf16.vlgmr.msra.gmra.mrb[124].mxu0 %vm13561_vm9, %v9981_v41  ;;  %vm13574_vm9 = vcmask 154624  }
0x1af9   : > { %10864 = vmatprep.mubr.msk.bf16.mxu0 %vm11347_vm8, %v11346_v28 }
0x1b88   : > { %v7451_v20 = vpop.f32.mrb[96].mxu1 }
0x1b89   : > { %v7453_v26 = vpop.f32.mrb[97].mxu1 }
0x1b8a   : > { %v7455_v43 = vpop.f32.mrb[98].mxu1 }
0x1b8b   : > { %v7456_v44 = vpop.f32.mrb[99].mxu1  ;;  %v7492_v45 = vpop.f32.mrb[92].mxu0 }
0x1b8c   : > { %v10812_v48 = vpop.f32.mrb[93].mxu0 }
0x1b8d   : > { %v7495_v46 = vpop.f32.mrb[94].mxu0 }
0x1b8e   : > { %v10813_v49 = vpop.f32.mrb[95].mxu0 }
0x1b90   : > { %v7555_v29 = vpop.f32.mrb[100].mxu1 }
0x1b91   : > { %v7556_v50 = vadd.f32 %v7555_v29, %v7451_v20  ;;  %v7557_v51 = vpop.f32.mrb[101].mxu1 }
0x1b92   : > { %v7558_v52 = vadd.f32 %v7557_v51, %v7453_v26  ;;  %v7559_v54 = vpop.f32.mrb[102].mxu1 }
0x1b93   : > { %v7560_v55 = vpop.f32.mrb[103].mxu1  ;;  %v7596_v11 = vpop.f32.mrb[96].mxu0 }
0x1b94   : > { %v7597_v56 = vadd.f32 %v7596_v11, %v7492_v45  ;;  %v10818_v57 = vpop.f32.mrb[97].mxu0 }
0x1b95   : > { %v7599_v47 = vpop.f32.mrb[98].mxu0 }
0x1b96   : > { %v10819_v61 = vpop.f32.mrb[99].mxu0 }
0x1b98   : > { %v7661_v59 = vpop.f32.mrb[104].mxu1 }
0x1b99   : > { %v7708_v60 = vadd.f32 %v7661_v59, %v7556_v50  ;;  %v7663_v5 = vpop.f32.mrb[105].mxu1 }
0x1b9a   : > { %v7709_v62 = vadd.f32 %v7663_v5, %v7558_v52  ;;  %v7665_v63 = vpop.f32.mrb[106].mxu1 }
0x1b9b   : > { %v7666_v0 = vpop.f32.mrb[107].mxu1  ;;  %v7702_v1 = vpop.f32.mrb[100].mxu0 }
0x1b9c   : > { %v7710_v2 = vadd.f32 %v7702_v1, %v7597_v56  ;;  %v10824_v23 = vpop.f32.mrb[101].mxu0 }
0x1b9d   : > { %v7705_v4 = vpop.f32.mrb[102].mxu0 }
0x1b9e   : > { %v10825_v6 = vpop.f32.mrb[103].mxu0 }
0x1ba0   : > { %v7770_v7 = vpop.f32.mrb[108].mxu1 }
0x1ba1   : > { %v7817_v8 = vadd.f32 %v7770_v7, %v7708_v60  ;;  %v7772_v9 = vpop.f32.mrb[109].mxu1  ;;  %v8346_v7 = vpop.permute.xlu1 %8345 }
0x1ba2   : > { %v7818_v10 = vadd.f32 %v7772_v9, %v7709_v62  ;;  %v7774_v40 = vpop.f32.mrb[110].mxu1 }
0x1ba3   : > { %v7775_v12 = vpop.f32.mrb[111].mxu1  ;;  %v7811_v53 = vpop.f32.mrb[104].mxu0 }
0x1ba4   : > { %v7819_v13 = vadd.f32 %v7811_v53, %v7710_v2  ;;  %v10830_v14 = vpop.f32.mrb[105].mxu0 }
0x1ba5   : > { %v7814_v17 = vpop.f32.mrb[106].mxu0 }
0x1ba6   : > { %v10831_v18 = vpop.f32.mrb[107].mxu0 }
0x1ba8   : > { %v7868_v21 = vpop.f32.mrb[112].mxu1 }
0x1ba9   : > { %v7915_v22 = vadd.f32 %v7868_v21, %v7817_v8  ;;  %v7870_v24 = vpop.f32.mrb[113].mxu1 }
0x1baa   : > { %v7916_v31 = vadd.f32 %v7870_v24, %v7818_v10  ;;  %v7872_v58 = vpop.f32.mrb[114].mxu1 }
0x1bab   : > { %v7873_v35 = vpop.f32.mrb[115].mxu1  ;;  %v7909_v25 = vpop.f32.mrb[108].mxu0 }
0x1bac   : > { %v7917_v19 = vadd.f32 %v7909_v25, %v7819_v13  ;;  %v10836_v30 = vpop.f32.mrb[109].mxu0 }
0x1bad   : > { %v7912_v27 = vpop.f32.mrb[110].mxu0 }
0x1bae   : > { %v10837_v33 = vpop.f32.mrb[111].mxu0 }
0x1bb0   : > { %v7974_v34 = vpop.f32.mrb[116].mxu1 }
0x1bb1   : > { %v8021_v36 = vadd.f32 %v7974_v34, %v7915_v22  ;;  %v7976_v37 = vpop.f32.mrb[117].mxu1 }
0x1bb2   : > { %v8022_v38 = vadd.f32 %v7976_v37, %v7916_v31  ;;  %v7978_v39 = vpop.f32.mrb[118].mxu1 }
0x1bb3   : > { %v7979_v41 = vpop.f32.mrb[119].mxu1  ;;  %v8015_v20 = vpop.f32.mrb[112].mxu0 }
0x1bb4   : > { %v8023_v26 = vadd.f32 %v8015_v20, %v7917_v19  ;;  %v10842_v43 = vpop.f32.mrb[113].mxu0  ;;  %v8383_v20 = vpop.permute.xlu0 %8382 }
0x1bb5   : > { %v8018_v44 = vpop.f32.mrb[114].mxu0 }
0x1bb6   : > { %v10843_v45 = vpop.f32.mrb[115].mxu0 }
0x1bb8   : > { %v8080_v48 = vpop.f32.mrb[120].mxu1 }
0x1bb9   : > { %v8127_v46 = vadd.f32 %v8080_v48, %v8021_v36  ;;  %v8082_v49 = vpop.f32.mrb[121].mxu1 }
0x1bba   : > { %v8128_v29 = vadd.f32 %v8082_v49, %v8022_v38  ;;  %v8084_v50 = vpop.f32.mrb[122].mxu1  ;;  %v9985_v49 = vld [vmem:[%s13570_s10 + $0x2] sm:$0x3] }
0x1bbb   : > { %v8085_v51 = vpop.f32.mrb[123].mxu1  ;;  %v8121_v52 = vpop.f32.mrb[116].mxu0 }
0x1bbc   : > { %v8129_v54 = vadd.f32 %v8121_v52, %v8023_v26  ;;  %v10848_v55 = vpop.f32.mrb[117].mxu0 }
0x1bbd   : > { %v8124_v11 = vpop.f32.mrb[118].mxu0 }
0x1bbe   : > { %v10849_v56 = vpop.f32.mrb[119].mxu0 }
0x1bc0   : > { %v8186_v57 = vpop.f32.mrb[124].mxu1 }
0x1bc1   : > { %v8233_v47 = vadd.f32 %v8186_v57, %v8127_v46  ;;  %v8188_v61 = vpop.f32.mrb[125].mxu1 }
0x1bc2   : > { %v8234_v59 = vadd.f32 %v8188_v61, %v8128_v29  ;;  %v8190_v60 = vpop.f32.mrb[126].mxu1 }
0x1bc3   : > { %v8191_v5 = vpop.f32.mrb[127].mxu1  ;;  %v8227_v62 = vpop.f32.mrb[120].mxu0 }
0x1bc4   : > { %v8235_v63 = vadd.f32 %v8227_v62, %v8129_v54  ;;  %v10854_v0 = vpop.f32.mrb[121].mxu0 }
0x1bc5   : > { %v8230_v1 = vpop.f32.mrb[122].mxu0 }
0x1bc6   : > { %v10855_v2 = vpop.f32.mrb[123].mxu0 }
0x1bc8   : > { %v8292_v23 = vpop.f32.mrb[128].mxu1 }
0x1bc9   : > { %v8339_v4 = vadd.f32 %v8292_v23, %v8233_v47  ;;  %v8294_v6 = vpop.f32.mrb[129].mxu1  ;;  %v8375_v47 = vld [vmem:[%s13570_s10] sm:$0x3]  ;;  %v9992_v23 = vld [vmem:[%s13570_s10 + $0x4] sm:$0x3] }
0x1bca   : > { %v8340_v8 = vadd.f32 %v8294_v6, %v8234_v59  ;;  %v8296_v9 = vpop.f32.mrb[130].mxu1 }
0x1bcb   : > { %v8348_v10 = vadd.f32 %v8346_v7, %v8339_v4  ;;  %v8297_v40 = vpop.f32.mrb[131].mxu1  ;;  %v8333_v12 = vpop.f32.mrb[124].mxu0 }
0x1bcc   : > { %v8349_v53 = vadd.f32 %v8346_v7, %v8340_v8  ;;  %v8341_v13 = vadd.f32 %v8333_v12, %v8235_v63  ;;  %v10860_v14 = vpop.f32.mrb[125].mxu0 }
0x1bcd   : > { %v8351_v17 = vmul.f32 %v8348_v10, %v11687_v15  ;;  %v8336_v18 = vpop.f32.mrb[126].mxu0 }
0x1bce   : > { %v8352_v21 = vmul.f32 %v8349_v53, %v11691_v16  ;;  %v8350_v22 = vadd.f32 %v8346_v7, %v8341_v13  ;;  %v10861_v24 = vpop.f32.mrb[127].mxu0  ;;  %v9996_v13 = vld [vmem:[%s13570_s10 + $0x6] sm:$0x3] }
0x1bcf   : > { %vm8354_vm11 = vcmp.ge.f32.partialorder %v8351_v17, 0.0  ;;  %v8357_v31 = vmul.f32 0.01, %v8351_v17 }
0x1bd0   : > { %vm8355_vm14 = vcmp.ge.f32.partialorder %v8352_v21, 0.0  ;;  %v8358_v58 = vmul.f32 0.01, %v8352_v21  ;;  %v8353_v35 = vmul.f32 %v8350_v22, %v11697_v32 }
0x1bd1   : > { %v8360_v25 = vsel %vm8354_vm11, %v8351_v17, %v8357_v31  ;;  %vm13576_vm11 = vmmov %vm13574_vm9 }
0x1bd2   : > { %v8365_v19 = vpack.c.bf16 %v8360_v25, %v8360_v25  ;;  %v8361_v30 = vsel %vm8355_vm14, %v8352_v21, %v8358_v58  ;;  %vm8356_vm10 = vcmp.ge.f32.partialorder %v8353_v35, 0.0  ;;  %v8359_v27 = vmul.f32 0.01, %v8353_v35  ;;  %vm13577_vm14 = vmmov %vm13573_vm6 }
0x1bd3   : > { %v8366_v33 = vpack.c.bf16 %v8361_v30, %v8361_v30 }
0x1bd4   : > { %8368 = vst [vmem:[#allocation2 + $0x8] sm:$0x3] %v8365_v19  ;;  %v8362_v34 = vsel %vm8356_vm10, %v8353_v35, %v8359_v27  ;;  %vm13578_vm10 = vmmov %vm13569_vm4  ;;  %v10000_v19 = vld [vmem:[%s13570_s10 + $0x8] sm:$0x3] }
0x1bd5   : > { %8369 = vst [vmem:[#allocation2 + $0x10] sm:$0x3] %v8366_v33  ;;  %v8367_v36 = vpack.c.bf16 %v8362_v34, %v8362_v34 }
0x1bd7   : > { %8370 = vst.msk [vmem:[#allocation2 + $0x18] sm:$0x3] %vm13563_vm3, %v8367_v36  ;;  %vm13579_vm3 = vmmov %vm13574_vm9 }
0x1bdb   : > { %v13154_v37 = vld [vmem:[#allocation2 + $0x8] sm:$0x3] }
0x1bdc   : > { %8384 = vrot.lane.b32.xlu1 %v13154_v37, %s13520_s30  ;;  %v13158_v38 = vld [vmem:[#allocation2 + $0x10] sm:$0x3] }
0x1bdd   : > { %8386 = vrot.lane.b32.xlu0 %v13158_v38, %s13520_s30 }
0x1bde   : > { %v13162_v39 = vld [vmem:[#allocation2 + $0x18] sm:$0x3] }
0x1bdf   : > { %9353 = vst.msk [vmem:[#allocation2 + $0x18] sm:$0x3] %vm9352_vm1, %v11336_v3  ;;  %vm13580_vm1 = vmmov %vm13569_vm4 }
0x1be0   : > { %8388 = vrot.lane.b32.xlu1 %v13162_v39, %s13520_s30  ;;  %s13564_s30 = sld [smem:[#allocation8_spill]] }
0x1be1   : > { %8486 = vrot.lane.b32.xlu0 %v13144_v42, %s13522_s7 }
0x1be4   : > { %8488 = vrot.lane.b32.xlu1 %v13154_v37, %s13522_s7 }
0x1be5   : > { %8490 = vrot.lane.b32.xlu0 %v13158_v38, %s13522_s7 }
0x1be8   : > { %8492 = vrot.lane.b32.xlu1 %v13162_v39, %s13522_s7  ;;  %s11115_s7 = smul.u32 24, %s13634_s5 }
0x1be9   : > { %8592 = vrot.lane.b32.xlu0 %v13144_v42, %s13523_s12 }
0x1bec   : > { %8594 = vrot.lane.b32.xlu1 %v13154_v37, %s13523_s12 }
0x1bed   : > { %8596 = vrot.lane.b32.xlu0 %v13158_v38, %s13523_s12 }
0x1bf0   : > { %8598 = vrot.lane.b32.xlu1 %v13162_v39, %s13523_s12 }
0x1bf1   : > { %8701 = vrot.lane.b32.xlu0 %v13144_v42, %s13481_s2  ;;  %v9330_v42 = vld [vmem:[%s13564_s30] sm:$0xf]  ;;  %s13629_s30 = sld [smem:[#allocation11_spill]] }
0x1bf4   : > { %8703 = vrot.lane.b32.xlu1 %v13154_v37, %s13481_s2 }
0x1bf5   : > { %8705 = vrot.lane.b32.xlu0 %v13158_v38, %s13481_s2 }
0x1bf8   : > { %8707 = vrot.lane.b32.xlu1 %v13162_v39, %s13481_s2 }
0x1bf9   : > { %8908 = vrot.lane.b32.xlu0 %v13154_v37, %s13484_s29 }
0x1bfc   : > { %8910 = vrot.lane.b32.xlu1 %v13158_v38, %s13484_s29 }
0x1bfd   : > { %8912 = vrot.lane.b32.xlu0 %v13162_v39, %s13484_s29 }
0x1c00   : > { %9014 = vrot.lane.b32.xlu1 %v13154_v37, %s13524_s3 }
0x1c01   : > { %9016 = vrot.lane.b32.xlu0 %v13158_v38, %s13524_s3 }
0x1c04   : > { %9018 = vrot.lane.b32.xlu1 %v13162_v39, %s13524_s3  ;;  %s13565_s3 = sld [smem:[#allocation10_spill]] }
0x1c05   : > { %9120 = vrot.lane.b32.xlu0 %v13154_v37, %s13480_s11 }
0x1c08   : > { %9122 = vrot.lane.b32.xlu1 %v13158_v38, %s13480_s11 }
0x1c09   : > { %9124 = vrot.lane.b32.xlu0 %v13162_v39, %s13480_s11  ;;  %s842_s11 = scalar_lea.vmem %s13399_s28, %s11115_s7 }
0x1c0a   : > { %v9364_v41 = vld [vmem:[%s13565_s3] sm:$0xff] }
0x1c0c   : > { %9226 = vrot.lane.b32.xlu1 %v13154_v37, %s13525_s9 }
0x1c0d   : > { %9228 = vrot.lane.b32.xlu0 %v13158_v38, %s13525_s9 }
0x1c10   : > { %9230 = vrot.lane.b32.xlu1 %v13162_v39, %s13525_s9 }
0x1c11   : > { %9333 = vperm.xlu0 %11148, %v9330_v42   ;;  %v10004_v42 = vld [vmem:[%s13570_s10 + $0xa] sm:$0x3] }
0x1c14   : > { %9367 = vperm.xlu1 %11164, %v9364_v41  }
0x1c4e   : > { %v8385_v26 = vpop.permute.xlu1 %8384 }
0x1c4f   : > { %v8390_v43 = vsel %vm13566_vm0, %v8383_v20, %v8385_v26  ;;  %v8387_v44 = vpop.permute.xlu0 %8386  ;;  %vm13581_vm0 = vmmov %vm13573_vm6 }
0x1c50   : > { %v8397_v45 = vsel %vm13567_vm7, %v8390_v43, 0  ;;  %v8391_v48 = vsel %vm13568_vm2, %v8385_v26, %v8387_v44  ;;  %vm13582_vm7 = vcmask 138240   ;;  %vm13583_vm2 = vmmov %vm13580_vm1 }
0x1c51   : > { %9986 = vmatprep.subr.msk.bf16.mxu1 %vm13569_vm4, %v8391_v48  ;;  %vm13584_vm4 = vmmov %vm13582_vm7  ;;  %v10008_v48 = vld [vmem:[%s13570_s10 + $0xc] sm:$0x3] }
0x1c52   : > { %v8389_v46 = vpop.permute.xlu1 %8388  ;;  %8406 = vmatpush1.bf16.msra.mxu1 %v8397_v45 }
0x1c53   : > { %v8392_v29 = vsel %vm13571_vm12, %v8387_v44, %v8389_v46  ;;  %v8487_v50 = vpop.permute.xlu0 %8486  ;;  %vm13585_vm12 = vmmov %vm13581_vm0 }
0x1c54   : > { %v8403_v51 = vsel %vm13572_vm5, %v8392_v29, 0  ;;  %vm13586_vm5 = vmmov %vm13580_vm1 }
0x1c55   : > { %9987 = vmatmul.mubr.msk.bf16.vlgmr.msra.gmra.mrb[132].mxu1 %vm13573_vm6, %v9985_v49  ;;  %10863 = vmatpush3.bf16.msra.mxu0 %v8403_v51  ;;  %vm13587_vm6 = vmmov %vm13584_vm4 }
0x1c56   : > { %v8489_v52 = vpop.permute.xlu1 %8488  ;;  %8541 = vmatprep.mubr.bf16.mxu1 %v11336_v3  ;;  %10868 = vmatprep.subr.bf16.mxu0 %v11346_v28 }
0x1c57   : > { %v8494_v54 = vsel %vm13574_vm9, %v8487_v50, %v8489_v52  ;;  %v8491_v55 = vpop.permute.xlu0 %8490  ;;  %vm13588_vm9 = vmmov %vm13580_vm1 }
0x1c58   : > { %v8501_v11 = vsel %vm13575_vm13, %v8494_v54, 0  ;;  %v8495_v56 = vsel %vm13576_vm11, %v8489_v52, %v8491_v55  ;;  %10865 = vmatmul.mubr.msk.bf16.vlgmr.msra.gmra.mrb[128].mxu0 %vm13577_vm14, %v9985_v49  ;;  %vm13589_vm13 = vmmov %vm13581_vm0  ;;  %v10012_v54 = vld [vmem:[%s13570_s10 + $0xe] sm:$0x3] }
0x1c59   : > { %9989 = vmatprep.subr.msk.bf16.mxu1 %vm13578_vm10, %v8495_v56  ;;  %10870 = vmatprep.mubr.msk.bf16.mxu0 %vm11347_vm8, %v11346_v28  ;;  %vm13590_vm11 = vmmov %vm13580_vm1  ;;  %v10016_v56 = vld [vmem:[%s13570_s10 + $0x10] sm:$0x3] }
0x1c5a   : > { %v8493_v57 = vpop.permute.xlu1 %8492  ;;  %8510 = vmatpush1.bf16.msra.mxu1 %v8501_v11  ;;  %vm13591_vm14 = vmmov %vm13581_vm0 }
0x1c5b   : > { %v8496_v61 = vsel %vm13579_vm3, %v8491_v55, %v8493_v57  ;;  %v8593_v59 = vpop.permute.xlu0 %8592  ;;  %vm13592_vm10 = vmmov %vm13580_vm1 }
0x1c5c   : > { %v8507_v60 = vsel %vm13580_vm1, %v8496_v61, 0  ;;  %vm13593_vm3 = vmmov %vm13580_vm1 }
0x1c5d   : > { %9990 = vmatmul.mubr.msk.bf16.vlgmr.msra.gmra.mrb[136].mxu1 %vm13581_vm0, %v8375_v47  ;;  %10869 = vmatpush3.bf16.msra.mxu0 %v8507_v60 }
0x1c5e   : > { %v8595_v5 = vpop.permute.xlu1 %8594  ;;  %8647 = vmatprep.mubr.bf16.mxu1 %v11336_v3  ;;  %10874 = vmatprep.subr.bf16.mxu0 %v11346_v28 }
0x1c5f   : > { %v8600_v62 = vsel %vm13582_vm7, %v8593_v59, %v8595_v5  ;;  %v8597_v63 = vpop.permute.xlu0 %8596  ;;  %vm13594_vm7 = vmmov %vm13580_vm1 }
0x1c60   : > { %v8607_v0 = vsel %vm13583_vm2, %v8600_v62, 0  ;;  %v8601_v1 = vsel %vm13584_vm4, %v8595_v5, %v8597_v63  ;;  %10871 = vmatmul.mubr.msk.bf16.vlgmr.msra.gmra.mrb[132].mxu0 %vm13585_vm12, %v8375_v47  ;;  %v8814_v21 = vsel %vm13594_vm7, %v13154_v37, 0  ;;  %vm13596_vm2 = vmmov %vm13581_vm0 }
0x1c61   : > { %9993 = vmatprep.subr.msk.bf16.mxu1 %vm13586_vm5, %v8601_v1  ;;  %10876 = vmatprep.mubr.msk.bf16.mxu0 %vm11347_vm8, %v11346_v28  ;;  %vm13597_vm4 = vmmov %vm13580_vm1 }
0x1c62   : > { %v8599_v2 = vpop.permute.xlu1 %8598  ;;  %8616 = vmatpush1.bf16.msra.mxu1 %v8607_v0  ;;  %v8820_v58 = vsel %vm13597_vm4, %v13162_v39, 0  ;;  %vm13598_vm12 = vmmov %vm13580_vm1 }
0x1c63   : > { %v8602_v4 = vsel %vm13587_vm6, %v8597_v63, %v8599_v2  ;;  %v8702_v6 = vpop.permute.xlu0 %8701  ;;  %vm13600_vm6 = vmmov %vm13580_vm1 }
0x1c64   : > { %v8613_v7 = vsel %vm13588_vm9, %v8602_v4, 0  ;;  %vm13601_vm9 = vmmov %vm13581_vm0 }
0x1c65   : > { %9994 = vmatmul.mubr.msk.bf16.vlgmr.msra.gmra.mrb[140].mxu1 %vm13589_vm13, %v9992_v23  ;;  %10875 = vmatpush3.bf16.msra.mxu0 %v8613_v7  ;;  %vm13602_vm13 = vcmask 908288   ;;  %vm13609_vm7 = vmmov %vm13596_vm2 }
0x1c66   : > { %v8704_v8 = vpop.permute.xlu1 %8703  ;;  %8756 = vmatprep.mubr.bf16.mxu1 %v11336_v3  ;;  %10880 = vmatprep.subr.bf16.mxu0 %v11346_v28 }
0x1c67   : > { %v8709_v9 = vsel %vm1124_vm15, %v8702_v6, %v8704_v8  ;;  %v8706_v10 = vpop.permute.xlu0 %8705 }
0x1c68   : > { %v8716_v40 = vsel %vm13590_vm11, %v8709_v9, 0  ;;  %v8710_v12 = vsel %vm1124_vm15, %v8704_v8, %v8706_v10  ;;  %10877 = vmatmul.mubr.msk.bf16.vlgmr.msra.gmra.mrb[136].mxu0 %vm13591_vm14, %v9992_v23  ;;  %vm13603_vm11 = vmmov %vm13580_vm1 }
0x1c69   : > { %9997 = vmatprep.subr.msk.bf16.mxu1 %vm13592_vm10, %v8710_v12  ;;  %10882 = vmatprep.mubr.msk.bf16.mxu0 %vm11347_vm8, %v11346_v28  ;;  %vm13604_vm14 = vmmov %vm13581_vm0 }
0x1c6a   : > { %v8708_v53 = vpop.permute.xlu1 %8707  ;;  %8725 = vmatpush1.bf16.msra.mxu1 %v8716_v40  ;;  %vm13605_vm10 = vmmov %vm13580_vm1 }
0x1c6b   : > { %v8711_v14 = vsel %vm1124_vm15, %v8706_v10, %v8708_v53  ;;  %10001 = vmatprep.subr.msk.bf16.mxu1 %vm13593_vm3, %v13158_v38  ;;  %v8909_v17 = vpop.permute.xlu0 %8908  ;;  %vm13595_vm15 = vcmask 1039360   ;;  %vm13606_vm3 = vmmov %vm13602_vm13 }
0x1c6c   : > { %v8722_v18 = vsel %vm13580_vm1, %v8711_v14, 0  ;;  %vm13599_vm5 = vmmov %vm13595_vm15  ;;  %vm13607_vm1 = vcmask 900096  }
0x1c6d   : > { %9998 = vmatmul.mubr.msk.bf16.vlgmr.msra.gmra.mrb[144].mxu1 %vm13581_vm0, %v9996_v13  ;;  %10881 = vmatpush3.bf16.msra.mxu0 %v8722_v18  ;;  %vm13608_vm0 = vmmov %vm13597_vm4 }
0x1c6e   : > { %v8911_v22 = vpop.permute.xlu1 %8910  ;;  %8823 = vmatpush1.bf16.msra.mxu1 %v8814_v21  ;;  %10886 = vmatprep.subr.bf16.mxu0 %v11346_v28  ;;  %vm13612_vm4 = vmmov %vm13609_vm7 }
0x1c6f   : > { %v8913_v24 = vpop.permute.xlu0 %8912  ;;  %8854 = vmatprep.mubr.bf16.mxu1 %v11336_v3  ;;  %v8914_v35 = vsel %vm13599_vm5, %v8909_v17, %v8911_v22  ;;  %vm13614_vm5 = vmmov %vm13608_vm0 }
0x1c70   : > { %v8915_v31 = vsel %vm13595_vm15, %v8911_v22, %v8913_v24  ;;  %10883 = vmatmul.mubr.msk.bf16.vlgmr.msra.gmra.mrb[140].mxu0 %vm13596_vm2, %v9996_v13  ;;  %v8920_v27 = vsel %vm13600_vm6, %v8914_v35, 0  ;;  %v8926_v37 = vsel %vm13603_vm11, %v8913_v24, 0  ;;  %vm13610_vm15 = vmmov %vm13608_vm0 }
0x1c71   : > { %10887 = vmatpush3.bf16.msra.mxu0 %v8820_v58  ;;  %10005 = vmatprep.subr.msk.bf16.mxu1 %vm13598_vm12, %v8915_v31  ;;  %vm13611_vm2 = vmmov %vm13608_vm0 }
0x1c72   : > { %v9015_v25 = vpop.permute.xlu1 %9014  ;;  %10888 = vmatprep.mubr.msk.bf16.mxu0 %vm11347_vm8, %v11346_v28  ;;  %10892 = vmatprep.subr.bf16.mxu0 %v11346_v28  ;;  %vm13613_vm12 = vmmov %vm13607_vm1 }
0x1c73   : > { %v9017_v30 = vpop.permute.xlu0 %9016  ;;  %vm13615_vm6 = vmmov %vm13612_vm4 }
0x1c74   : > { %v9020_v38 = vsel %vm13606_vm3, %v9015_v25, %v9017_v30  ;;  %vm13618_vm11 = vmmov %vm13608_vm0 }
0x1c75   : > { %10002 = vmatmul.mubr.msk.bf16.vlgmr.msra.gmra.mrb[148].mxu1 %vm13601_vm9, %v10000_v19  ;;  %v9026_v26 = vsel %vm13608_vm0, %v9020_v38, 0  ;;  %vm13616_vm9 = vcmask 891904   ;;  %vm13621_vm3 = vmmov %vm13608_vm0 }
0x1c76   : > { %8929 = vmatpush1.bf16.msra.mxu1 %v8920_v27  ;;  %v9019_v33 = vpop.permute.xlu1 %9018  ;;  %8960 = vmatprep.mubr.bf16.mxu1 %v11336_v3 }
0x1c77   : > { %v9021_v34 = vsel %vm13602_vm13, %v9017_v30, %v9019_v33  ;;  %v9121_v36 = vpop.permute.xlu0 %9120  ;;  %v9032_v44 = vsel %vm13611_vm2, %v9019_v33, 0  ;;  %vm13617_vm13 = vmmov %vm13608_vm0 }
0x1c78   : > { %10889 = vmatmul.mubr.msk.bf16.vlgmr.msra.gmra.mrb[144].mxu0 %vm13604_vm14, %v10000_v19  ;;  %10009 = vmatprep.subr.msk.bf16.mxu1 %vm13605_vm10, %v9021_v34  ;;  %vm13619_vm14 = vmmov %vm13612_vm4 }
0x1c79   : > { %10893 = vmatpush3.bf16.msra.mxu0 %v8926_v37  ;;  %10894 = vmatprep.mubr.msk.bf16.mxu0 %vm11347_vm8, %v11346_v28  ;;  %vm13620_vm10 = vmmov %vm13616_vm9 }
0x1c7a   : > { %v9123_v39 = vpop.permute.xlu1 %9122  ;;  %10898 = vmatprep.subr.bf16.mxu0 %v11346_v28 }
0x1c7b   : > { %v9125_v41 = vpop.permute.xlu0 %9124  ;;  %v9126_v45 = vsel %vm13613_vm12, %v9121_v36, %v9123_v39 }
0x1c7c   : > { %v9127_v20 = vsel %vm13607_vm1, %v9123_v39, %v9125_v41  ;;  %v9132_v49 = vsel %vm13614_vm5, %v9126_v45, 0  ;;  %v9138_v51 = vsel %vm13618_vm11, %v9125_v41, 0  ;;  %vm13622_vm1 = vmmov %vm13612_vm4  ;;  %vm13626_vm5 = vcmask 254976  }
0x1c7d   : > { %10006 = vmatmul.mubr.msk.bf16.vlgmr.msra.gmra.mrb[152].mxu1 %vm13609_vm7, %v10004_v42  ;;  %vm13623_vm7 = vmmov %vm13622_vm1 }
0x1c7e   : > { %9035 = vmatpush1.bf16.msra.mxu1 %v9026_v26  ;;  %v9227_v43 = vpop.permute.xlu1 %9226  ;;  %9066 = vmatprep.mubr.bf16.mxu1 %v11336_v3  ;;  %vm13625_vm2 = vmmov %vm13622_vm1 }
0x1c7f   : > { %10013 = vmatprep.subr.msk.bf16.mxu1 %vm13610_vm15, %v9127_v20  ;;  %v9229_v29 = vpop.permute.xlu0 %9228  ;;  %vm13624_vm15 = vmmov %vm13622_vm1 }
0x1c80   : > { %10895 = vmatmul.mubr.msk.bf16.vlgmr.msra.gmra.mrb[148].mxu0 %vm13612_vm4, %v10004_v42  ;;  %v9232_v52 = vsel %vm13620_vm10, %v9227_v43, %v9229_v29  ;;  %vm13631_vm11 = vmmov %vm13622_vm1 }
0x1c81   : > { %10899 = vmatpush3.bf16.msra.mxu0 %v9032_v44  ;;  %10900 = vmatprep.mubr.msk.bf16.mxu0 %vm11347_vm8, %v11346_v28  ;;  %v9238_v55 = vsel %vm13621_vm3, %v9232_v52, 0 }
0x1c82   : > { %10904 = vmatprep.subr.bf16.mxu0 %v11346_v28  ;;  %v9231_v46 = vpop.permute.xlu1 %9230 }
0x1c83   : > { %v9233_v50 = vsel %vm13616_vm9, %v9229_v29, %v9231_v46  ;;  %v9244_v11 = vsel %vm13608_vm0, %v9231_v46, 0  ;;  %vm13628_vm9 = vmmov %vm13608_vm0 }
0x1c85   : > { %10010 = vmatmul.mubr.msk.bf16.vlgmr.msra.gmra.mrb[156].mxu1 %vm13615_vm6, %v10008_v48  ;;  %vm13627_vm6 = vmmov %vm13608_vm0 }
0x1c86   : > { %9141 = vmatpush1.bf16.msra.mxu1 %v9132_v49  ;;  %9172 = vmatprep.mubr.bf16.mxu1 %v11336_v3 }
0x1c87   : > { %10017 = vmatprep.subr.msk.bf16.mxu1 %vm13617_vm13, %v9233_v50  ;;  %vm13630_vm13 = vmmov %vm13608_vm0 }
0x1c88   : > { %10901 = vmatmul.mubr.msk.bf16.vlgmr.msra.gmra.mrb[152].mxu0 %vm13619_vm14, %v10008_v48  ;;  %vm13632_vm14 = vmmov %vm13622_vm1 }
0x1c89   : > { %10905 = vmatpush3.bf16.msra.mxu0 %v9138_v51  ;;  %10906 = vmatprep.mubr.msk.bf16.mxu0 %vm11347_vm8, %v11346_v28 }
0x1c8a   : > { %10910 = vmatprep.subr.bf16.mxu0 %v11346_v28 }
0x1c8d   : > { %10014 = vmatmul.mubr.msk.bf16.vlgmr.msra.gmra.mrb[160].mxu1 %vm13622_vm1, %v10012_v54 }
0x1c8e   : > { %9247 = vmatpush1.bf16.msra.mxu1 %v9238_v55  ;;  %9278 = vmatprep.mubr.bf16.mxu1 %v11336_v3 }
0x1c90   : > { %10907 = vmatmul.mubr.msk.bf16.vlgmr.msra.gmra.mrb[156].mxu0 %vm13623_vm7, %v10012_v54 }
0x1c91   : > { %10911 = vmatpush3.bf16.msra.mxu0 %v9244_v11  ;;  %10912 = vmatprep.mubr.msk.bf16.mxu0 %vm11347_vm8, %v11346_v28 }
0x1c92   : > { %10916 = vmatprep.subr.bf16.mxu0 %v11346_v28 }
0x1c95   : > { %10018 = vmatmul.mubr.msk.bf16.vlgmr.msra.gmra.mrb[164].mxu1 %vm13624_vm15, %v10016_v56 }
0x1c96   : > { %9414 = vmatprep.mubr.bf16.mxu1 %v11336_v3 }
0x1c98   : > { %10913 = vmatmul.mubr.msk.bf16.vlgmr.msra.gmra.mrb[160].mxu0 %vm13625_vm2, %v10016_v56 }
0x1c99   : > { %10918 = vmatprep.mubr.msk.bf16.mxu0 %vm11347_vm8, %v11346_v28 }
0x1d28   : > { %v8439_v57 = vpop.f32.mrb[132].mxu1 }
0x1d29   : > { %v8441_v47 = vpop.f32.mrb[133].mxu1 }
0x1d2a   : > { %v8443_v61 = vpop.f32.mrb[134].mxu1 }
0x1d2b   : > { %v8444_v59 = vpop.f32.mrb[135].mxu1  ;;  %v8480_v60 = vpop.f32.mrb[128].mxu0 }
0x1d2c   : > { %v10866_v5 = vpop.f32.mrb[129].mxu0 }
0x1d2d   : > { %v8483_v62 = vpop.f32.mrb[130].mxu0 }
0x1d2e   : > { %v10867_v63 = vpop.f32.mrb[131].mxu0 }
0x1d30   : > { %v8543_v0 = vpop.f32.mrb[136].mxu1 }
0x1d31   : > { %v8544_v1 = vadd.f32 %v8543_v0, %v8439_v57  ;;  %v8545_v2 = vpop.f32.mrb[137].mxu1 }
0x1d32   : > { %v8546_v23 = vadd.f32 %v8545_v2, %v8441_v47  ;;  %v8547_v4 = vpop.f32.mrb[138].mxu1 }
0x1d33   : > { %v8548_v6 = vpop.f32.mrb[139].mxu1  ;;  %v8584_v3 = vpop.f32.mrb[132].mxu0 }
0x1d34   : > { %v8585_v7 = vadd.f32 %v8584_v3, %v8480_v60  ;;  %v10872_v8 = vpop.f32.mrb[133].mxu0 }
0x1d35   : > { %v8587_v9 = vpop.f32.mrb[134].mxu0 }
0x1d36   : > { %v10873_v10 = vpop.f32.mrb[135].mxu0 }
0x1d38   : > { %v8649_v28 = vpop.f32.mrb[140].mxu1 }
0x1d39   : > { %v8696_v40 = vadd.f32 %v8649_v28, %v8544_v1  ;;  %v8651_v12 = vpop.f32.mrb[141].mxu1 }
0x1d3a   : > { %v8697_v53 = vadd.f32 %v8651_v12, %v8546_v23  ;;  %v8653_v13 = vpop.f32.mrb[142].mxu1 }
0x1d3b   : > { %v8654_v14 = vpop.f32.mrb[143].mxu1  ;;  %v8690_v17 = vpop.f32.mrb[136].mxu0 }
0x1d3c   : > { %v8698_v18 = vadd.f32 %v8690_v17, %v8585_v7  ;;  %v10878_v21 = vpop.f32.mrb[137].mxu0 }
0x1d3d   : > { %v8693_v22 = vpop.f32.mrb[138].mxu0  ;;  %v9334_v21 = vpop.permute.xlu0 %9333 }
0x1d3e   : > { %v10879_v24 = vpop.f32.mrb[139].mxu0 }
0x1d40   : > { %v8758_v31 = vpop.f32.mrb[144].mxu1 }
0x1d41   : > { %v8805_v58 = vadd.f32 %v8758_v31, %v8696_v40  ;;  %v8760_v35 = vpop.f32.mrb[145].mxu1 }
0x1d42   : > { %v8806_v25 = vadd.f32 %v8760_v35, %v8697_v53  ;;  %v8762_v19 = vpop.f32.mrb[146].mxu1 }
0x1d43   : > { %v8763_v30 = vpop.f32.mrb[147].mxu1  ;;  %v8799_v27 = vpop.f32.mrb[140].mxu0 }
0x1d44   : > { %v8807_v33 = vadd.f32 %v8799_v27, %v8698_v18  ;;  %v10884_v34 = vpop.f32.mrb[141].mxu0 }
0x1d45   : > { %v8802_v36 = vpop.f32.mrb[142].mxu0 }
0x1d46   : > { %v10885_v37 = vpop.f32.mrb[143].mxu0 }
0x1d48   : > { %v8856_v38 = vpop.f32.mrb[148].mxu1 }
0x1d49   : > { %v8903_v39 = vadd.f32 %v8856_v38, %v8805_v58  ;;  %v8858_v42 = vpop.f32.mrb[149].mxu1 }
0x1d4a   : > { %v8904_v41 = vadd.f32 %v8858_v42, %v8806_v25  ;;  %v8860_v20 = vpop.f32.mrb[150].mxu1 }
0x1d4b   : > { %v8861_v26 = vpop.f32.mrb[151].mxu1  ;;  %v8897_v43 = vpop.f32.mrb[144].mxu0 }
0x1d4c   : > { %v8905_v44 = vadd.f32 %v8897_v43, %v8807_v33  ;;  %v10890_v45 = vpop.f32.mrb[145].mxu0 }
0x1d4d   : > { %v8900_v48 = vpop.f32.mrb[146].mxu0 }
0x1d4e   : > { %v10891_v46 = vpop.f32.mrb[147].mxu0 }
0x1d50   : > { %v8962_v49 = vpop.f32.mrb[152].mxu1 }
0x1d51   : > { %v9009_v29 = vadd.f32 %v8962_v49, %v8903_v39  ;;  %v8964_v50 = vpop.f32.mrb[153].mxu1  ;;  %v9363_v49 = vld [vmem:[%s13629_s30] sm:$0xf] }
0x1d52   : > { %v9010_v51 = vadd.f32 %v8964_v50, %v8904_v41  ;;  %v8966_v52 = vpop.f32.mrb[154].mxu1  ;;  %v9368_v50 = vpop.permute.xlu1 %9367 }
0x1d53   : > { %v8967_v54 = vpop.f32.mrb[155].mxu1  ;;  %v9003_v55 = vpop.f32.mrb[148].mxu0 }
0x1d54   : > { %v9011_v11 = vadd.f32 %v9003_v55, %v8905_v44  ;;  %v10896_v56 = vpop.f32.mrb[149].mxu0 }
0x1d55   : > { %v9006_v57 = vpop.f32.mrb[150].mxu0 }
0x1d56   : > { %v10897_v47 = vpop.f32.mrb[151].mxu0 }
0x1d58   : > { %v9068_v61 = vpop.f32.mrb[156].mxu1 }
0x1d59   : > { %v9115_v59 = vadd.f32 %v9068_v61, %v9009_v29  ;;  %v9070_v60 = vpop.f32.mrb[157].mxu1 }
0x1d5a   : > { %v9116_v5 = vadd.f32 %v9070_v60, %v9010_v51  ;;  %v9072_v62 = vpop.f32.mrb[158].mxu1 }
0x1d5b   : > { %v9073_v63 = vpop.f32.mrb[159].mxu1  ;;  %v9109_v0 = vpop.f32.mrb[152].mxu0 }
0x1d5c   : > { %v9117_v1 = vadd.f32 %v9109_v0, %v9011_v11  ;;  %v10902_v2 = vpop.f32.mrb[153].mxu0 }
0x1d5d   : > { %v9112_v23 = vpop.f32.mrb[154].mxu0 }
0x1d5e   : > { %v10903_v4 = vpop.f32.mrb[155].mxu0 }
0x1d60   : > { %v9174_v6 = vpop.f32.mrb[160].mxu1 }
0x1d61   : > { %v9221_v3 = vadd.f32 %v9174_v6, %v9115_v59  ;;  %v9176_v7 = vpop.f32.mrb[161].mxu1 }
0x1d62   : > { %v9222_v8 = vadd.f32 %v9176_v7, %v9116_v5  ;;  %v9178_v9 = vpop.f32.mrb[162].mxu1 }
0x1d63   : > { %v9179_v10 = vpop.f32.mrb[163].mxu1  ;;  %v9215_v28 = vpop.f32.mrb[156].mxu0 }
0x1d64   : > { %v9223_v40 = vadd.f32 %v9215_v28, %v9117_v1  ;;  %v10908_v12 = vpop.f32.mrb[157].mxu0 }
0x1d65   : > { %v9218_v53 = vpop.f32.mrb[158].mxu0 }
0x1d66   : > { %v10909_v13 = vpop.f32.mrb[159].mxu0 }
0x1d68   : > { %v9280_v14 = vpop.f32.mrb[164].mxu1 }
0x1d69   : > { %v9327_v17 = vadd.f32 %v9280_v14, %v9221_v3  ;;  %v9282_v18 = vpop.f32.mrb[165].mxu1 }
0x1d6a   : > { %v9328_v22 = vadd.f32 %v9282_v18, %v9222_v8  ;;  %v9284_v24 = vpop.f32.mrb[166].mxu1 }
0x1d6b   : > { %v9336_v31 = vadd.f32 %v9334_v21, %v9327_v17  ;;  %v9285_v58 = vpop.f32.mrb[167].mxu1  ;;  %v9321_v35 = vpop.f32.mrb[160].mxu0 }
0x1d6c   : > { %v9337_v25 = vadd.f32 %v9334_v21, %v9328_v22  ;;  %v9329_v19 = vadd.f32 %v9321_v35, %v9223_v40  ;;  %v10914_v30 = vpop.f32.mrb[161].mxu0 }
0x1d6d   : > { %v9339_v27 = vmul.f32 %v9336_v31, %v11687_v15  ;;  %v9324_v33 = vpop.f32.mrb[162].mxu0 }
0x1d6e   : > { %v9340_v34 = vmul.f32 %v9337_v25, %v11691_v16  ;;  %v9338_v36 = vadd.f32 %v9334_v21, %v9329_v19  ;;  %v10915_v37 = vpop.f32.mrb[163].mxu0 }
0x1d6f   : > { %vm9342_vm8 = vcmp.ge.f32.partialorder %v9339_v27, 0.0  ;;  %v9345_v38 = vmul.f32 0.01, %v9339_v27 }
0x1d70   : > { %vm9343_vm4 = vcmp.ge.f32.partialorder %v9340_v34, 0.0  ;;  %v9346_v39 = vmul.f32 0.01, %v9340_v34  ;;  %v9341_v42 = vmul.f32 %v9338_v36, %v11697_v32 }
0x1d71   : > { %v9348_v41 = vsel %vm9342_vm8, %v9339_v27, %v9345_v38 }
0x1d72   : > { %v9354_v20 = vpack.c.bf16 %v9348_v41, %v9348_v41  ;;  %v9349_v26 = vsel %vm9343_vm4, %v9340_v34, %v9346_v39  ;;  %vm9344_vm12 = vcmp.ge.f32.partialorder %v9341_v42, 0.0  ;;  %v9347_v43 = vmul.f32 0.01, %v9341_v42 }
0x1d73   : > { %v9355_v44 = vpack.c.bf16 %v9349_v26, %v9349_v26 }
0x1d74   : > { %9357 = vst [vmem:[#allocation2 + $0x8] sm:$0x3] %v9354_v20  ;;  %v9350_v45 = vsel %vm9344_vm12, %v9341_v42, %v9347_v43 }
0x1d75   : > { %9358 = vst [vmem:[#allocation2 + $0x10] sm:$0x3] %v9355_v44  ;;  %v9356_v15 = vpack.c.bf16 %v9350_v45, %v9350_v45 }
0x1d77   : > { %9359 = vst.msk [vmem:[#allocation2 + $0x18] sm:$0x3] %vm13626_vm5, %v9356_v15 }
0x1d7b   : > { %v9360_v16 = vld [vmem:[#allocation2 + $0x8] sm:$0x3] }
0x1d7c   : > { %v9361_v48 = vld [vmem:[#allocation2 + $0x10] sm:$0x3]  ;;  %v9374_v46 = vsel %vm13627_vm6, %v9360_v16, 0 }
0x1d7d   : > { %10020 = vmatprep.subr.msk.bf16.mxu1 %vm13628_vm9, %v9361_v48 }
0x1d7e   : > { %9383 = vmatpush1.bf16.msra.mxu1 %v9374_v46  ;;  %v9362_v32 = vld [vmem:[#allocation2 + $0x18] sm:$0x3] }
0x1d7f   : > { %v9380_v29 = vsel %vm13630_vm13, %v9362_v32, 0 }
0x1d80   : > { %10917 = vmatpush3.bf16.msra.mxu0 %v9380_v29 }
0x1d81   : > { %10021 = vmatmul.mubr.msk.bf16.vlgmr.msra.gmra.mrb[168].mxu1 %vm13631_vm11, %v9363_v49 }
0x1d83   : > { %10919 = vmatmul.mubr.msk.bf16.vlgmr.msra.gmra.mrb[164].mxu0 %vm13632_vm14, %v9363_v49 }
0x1e54   : > { %v9416_v51 = vpop.f32.mrb[168].mxu1 }
0x1e55   : > { %v9417_v52 = vadd.f32 %v9416_v51, %v9368_v50  ;;  %v9418_v54 = vpop.f32.mrb[169].mxu1 }
0x1e56   : > { %v9419_v55 = vadd.f32 %v9418_v54, %v9368_v50  ;;  %v9457_v11 = vpop.f32.mrb[164].mxu0  ;;  %v9420_v56 = vpop.f32.mrb[170].mxu1 }
0x1e57   : > { %v9463_v57 = vrot.slane %v9417_v52, 4  ;;  %v9458_v47 = vadd.f32 %v9457_v11, %v9368_v50  ;;  %v10920_v61 = vpop.f32.mrb[165].mxu0  ;;  %v9421_v59 = vpop.f32.mrb[171].mxu1 }
0x1e58   : > { %v9469_v60 = vrot.slane %v9419_v55, 4  ;;  %v9460_v5 = vpop.f32.mrb[166].mxu0 }
0x1e59   : > { %v9464_v62 = vmax.f32 %v9417_v52, %v9463_v57  ;;  %v9475_v63 = vrot.slane %v9458_v47, 4  ;;  %v10921_v0 = vpop.f32.mrb[167].mxu0 }
0x1e5a   : > { %v9470_v1 = vmax.f32 %v9419_v55, %v9469_v60 }
0x1e5b   : > { %v9465_v2 = vrot.slane %v9464_v62, 2  ;;  %v9476_v23 = vmax.f32 %v9458_v47, %v9475_v63 }
0x1e5c   : > { %v9471_v4 = vrot.slane %v9470_v1, 2 }
0x1e5d   : > { %v9466_v6 = vmax.f32 %v9464_v62, %v9465_v2  ;;  %v9477_v3 = vrot.slane %v9476_v23, 2 }
0x1e5e   : > { %v9472_v7 = vmax.f32 %v9470_v1, %v9471_v4 }
0x1e5f   : > { %v9467_v8 = vrot.slane %v9466_v6, 1  ;;  %v9478_v9 = vmax.f32 %v9476_v23, %v9477_v3 }
0x1e60   : > { %v9473_v10 = vrot.slane %v9472_v7, 1 }
0x1e61   : > { %v9468_v28 = vmax.f32 %v9466_v6, %v9467_v8  ;;  %v9479_v40 = vrot.slane %v9478_v9, 1 }
0x1e62   : > { %v9474_v12 = vmax.f32 %v9472_v7, %v9473_v10 }
0x1e63   : > { %v9481_v53 = vsub.f32 %v9417_v52, %v9468_v28  ;;  %v9480_v13 = vmax.f32 %v9478_v9, %v9479_v40 }
0x1e64   : > { %v9482_v14 = vsub.f32 %v9419_v55, %v9474_v12 }
0x1e65   : > { %v9484_v17 = vmul.f32 1.442695, %v9481_v53  ;;  %v9483_v18 = vsub.f32 %v9458_v47, %v9480_v13 }
0x1e66   : > { %v9486_v21 = vmul.f32 1.442695, %v9482_v14 }
0x1e67   : > { %11315 = vpow2.f32 %v9484_v17  ;;  %v9488_v22 = vmul.f32 1.442695, %v9483_v18 }
0x1e68   : > { %11317 = vpow2.f32 %v9486_v21 }
0x1e69   : > { %11319 = vpow2.f32 %v9488_v22 }
0x1e71   : > { %v11316_v24 = vpop.eup %11315 }
0x1e72   : > { %v11318_v31 = vpop.eup %11317  ;;  %v9490_v58 = vrot.slane %v11316_v24, 4 }
0x1e73   : > { %v11320_v35 = vpop.eup %11319  ;;  %v9496_v25 = vrot.slane %v11318_v31, 4 }
0x1e74   : > { %v9491_v19 = vadd.f32 %v11316_v24, %v9490_v58  ;;  %v9502_v30 = vrot.slane %v11320_v35, 4 }
0x1e75   : > { %v9497_v27 = vadd.f32 %v11318_v31, %v9496_v25 }
0x1e76   : > { %v9492_v33 = vrot.slane %v9491_v19, 2  ;;  %v9503_v34 = vadd.f32 %v11320_v35, %v9502_v30 }
0x1e77   : > { %v9498_v36 = vrot.slane %v9497_v27, 2 }
0x1e78   : > { %v9493_v37 = vadd.f32 %v9492_v33, %v9491_v19  ;;  %v9504_v38 = vrot.slane %v9503_v34, 2 }
0x1e79   : > { %v9499_v39 = vadd.f32 %v9498_v36, %v9497_v27 }
0x1e7a   : > { %v9494_v42 = vrot.slane %v9493_v37, 1  ;;  %v9505_v41 = vadd.f32 %v9504_v38, %v9503_v34 }
0x1e7b   : > { %v9500_v20 = vrot.slane %v9499_v39, 1 }
0x1e7c   : > { %v9495_v26 = vadd.f32 %v9494_v42, %v9493_v37  ;;  %v9506_v43 = vrot.slane %v9505_v41, 1 }
0x1e7d   : > { %v9501_v44 = vadd.f32 %v9500_v20, %v9499_v39 }
0x1e7e   : > { %11321 = vlog2.f32 %v9495_v26  ;;  %v9507_v45 = vadd.f32 %v9506_v43, %v9505_v41 }
0x1e7f   : > { %11323 = vlog2.f32 %v9501_v44 }
0x1e80   : > { %11325 = vlog2.f32 %v9507_v45 }
0x1e88   : > { %v11322_v15 = vpop.eup %11321 }
0x1e89   : > { %v11324_v16 = vpop.eup %11323  ;;  %v9509_v48 = vmul.f32 0.6931472, %v11322_v15 }
0x1e8a   : > { %v11326_v46 = vpop.eup %11325  ;;  %v9511_v32 = vmul.f32 0.6931472, %v11324_v16 }
0x1e8b   : > { %v9514_v49 = vsub.f32 %v9481_v53, %v9509_v48  ;;  %v9513_v29 = vmul.f32 0.6931472, %v11326_v46 }
0x1e8c   : > { %v9515_v50 = vsub.f32 %v9482_v14, %v9511_v32 }
0x1e8d   : > { %9517 = vst [vmem:[%s842_s11] sm:$0xff] %v9514_v49  ;;  %v9516_v51 = vsub.f32 %v9483_v18, %v9513_v29 }
0x1e8e   : > { %9518 = vst [vmem:[%s842_s11 + $0x8] sm:$0xff] %v9515_v50 }
0x1e8f   : > { %9519 = vst [vmem:[%s842_s11 + $0x10] sm:$0xff] %v9516_v51 }
0x1e90 PF: > { %s38_s8 = sadd.s32 1, %s11334_s8  }
0x1e91   : > { %p35_p4 = scmp.ge.s32.totalorder %s38_s8, 4  }
0x1e93   :  { %37 = sbr.rel (!%p35_p4) target bundleno = 16 (0x10), region = 254 }

</bundles_post_ra>
